<compile_context>
chip_gen: v7x
topology: tpu7x:2x2x1
jax: 0.10.0
libtpu: 0.0.40
codegen_flags: <defaults>
</compile_context>

<pallas_src>
import jax
import jax.numpy as jnp
from jax.experimental import pallas as pl
from jax.experimental.pallas import tpu as pltpu

H_CONV = 128          # original module hardcodes 512; scaled down for the small test
SCALE = 8
K = 3
D = 2
PAD = D * (K - 1) // 2
BOTTLENECK = 128
EPS = 1e-5


# --------------------------------------------------------------------------
# Stage 1: 1x1 expand conv + ReLU, gridded over token tiles (pipelined).
# --------------------------------------------------------------------------
def _expand_kernel(x_ref, we_ref, be_ref, y_ref):
    # bf16 MXU operands, f32 accumulation; result stored bf16 (pre-BN).
    y = jnp.dot(x_ref[...], we_ref[...], preferred_element_type=jnp.float32)
    y_ref[...] = jnp.maximum(y + be_ref[...], 0.0).astype(y_ref.dtype)


# --------------------------------------------------------------------------
# Stage 2: res2 chain + collapse conv + BN + SE (single resident invocation).
# --------------------------------------------------------------------------
def _res2_se_kernel(y_ref,
                    ge_ref, bte_ref,
                    wr_ref, br_ref, gr_ref, btr_ref,
                    wc_ref, bc_ref, gc_ref, btc_ref,
                    w1_ref, b1_ref, w2_ref, b2_ref,
                    o_ref,
                    xp_ref, coll_ref):
    B, T, H = o_ref.shape
    N = B * T
    inv_n = 1.0 / N
    bf16 = jnp.bfloat16

    # Ones operand for MXU row-reductions (hoisted once; 8 sublanes so the
    # result is tile-shaped -- row 0 holds the column sums).
    ones_bf = jnp.ones((8, N), bf16)

    def col_sum(v_bf):  # (N, C) bf16 -> (1, C) f32 column sum via the MXU
        return jnp.dot(ones_bf, v_bf, preferred_element_type=jnp.float32)[0:1, :]

    def bn(a, gamma, beta):
        # nn.BatchNorm1d training-mode forward: per-channel stats over (B, T),
        # biased variance, eps=1e-5, affine.  Two-pass (centered) variance
        # avoids E[x^2]-E[x]^2 cancellation; reductions run on the MXU.
        a2 = a.reshape(N, -1)
        mean = col_sum(a2.astype(bf16)) * inv_n
        c = a2 - mean
        var = jnp.maximum(col_sum((c * c).astype(bf16)) * inv_n, 0.0)
        scale = gamma.reshape(1, -1) * jax.lax.rsqrt(var + EPS)
        return (c * scale + beta.reshape(1, -1)).reshape(a.shape)

    relu = lambda v: jnp.maximum(v, 0.0)

    # Zero the time halo of the shared padded conv-input scratch once; reused
    # by all 7 scale iterations.
    halo = jnp.zeros((B, PAD, H), bf16)
    xp_ref[:, :PAD, :] = halo
    xp_ref[:, PAD + T:, :] = halo

    ge = ge_ref[...]      # (1, 1, SCALE*H)
    bte = bte_ref[...]

    last = None
    for i in range(SCALE):
        # Expand-BN is per-channel, so normalizing one H-wide chunk at a time
        # is exact and keeps f32 transients at (B, T, H).
        y_chunk = y_ref[:, :, i * H:(i + 1) * H].astype(jnp.float32)
        chunk = bn(y_chunk,
                   ge[:, :, i * H:(i + 1) * H],
                   bte[:, :, i * H:(i + 1) * H])
        if i > 1:
            chunk = chunk + last
        if i > 0:
            # Dilated k=3, d=2 conv = 3 accumulating MXU matmuls on shifted
            # views of the padded scratch (no concatenate on the serial path).
            xp_ref[:, PAD:PAD + T, :] = chunk.astype(bf16)
            y = None
            for j in range(K):
                tap = xp_ref[:, j * D:j * D + T, :].reshape(N, H)
                part = jnp.dot(tap, wr_ref[i - 1, j * H:(j + 1) * H, :],
                               preferred_element_type=jnp.float32)
                y = part if y is None else y + part
            y = y.reshape(B, T, H) + br_ref[i - 1]
            chunk = bn(relu(y), gr_ref[i - 1], btr_ref[i - 1])
        # Incremental 1x1 collapse: accumulate chunk @ Wc_i into a persistent
        # f32 VMEM accumulator (replaces the (B, T, SCALE*H) concat buffer).
        part_c = jnp.dot(chunk.astype(bf16).reshape(N, H),
                         wc_ref[i * H:(i + 1) * H, :],
                         preferred_element_type=jnp.float32).reshape(B, T, H)
        if i == 0:
            coll_ref[...] = part_c
        else:
            coll_ref[...] = coll_ref[...] + part_c
        last = chunk

    t_out = bn(relu(coll_ref[...] + bc_ref[...]), gc_ref[...], btc_ref[...])

    # ---- SE block ----
    z = jnp.mean(t_out, axis=1)                                    # (B, H) f32
    h1 = relu(jnp.dot(z.astype(bf16), w1_ref[...],
                      preferred_element_type=jnp.float32) + b1_ref[...])
    s = jax.nn.sigmoid(jnp.dot(h1.astype(bf16), w2_ref[...],
                               preferred_element_type=jnp.float32) + b2_ref[...])
    o_ref[...] = (s[:, None, :] * t_out).astype(o_ref.dtype)


# --------------------------------------------------------------------------
# Wrapper helpers.
# --------------------------------------------------------------------------
def _round_up(n, m):
    return ((n + m - 1) // m) * m


def _vmem_limit_bytes():
    # Generation-aware scoped-VMEM request; leave headroom for compiler
    # scratch / internal buffers (v7x only has 64 MiB physical VMEM).
    cap = 64 * 1024 * 1024
    try:
        info_cap = int(pltpu.get_tpu_info().vmem_capacity_bytes)
        if info_cap > 0:
            cap = info_cap
    except Exception:
        pass
    return int(min(cap - 16 * 1024 * 1024, 100 * 1024 * 1024))


def _stage2_vmem_bytes(B, T, H):
    """Rough VMEM requirement of the resident stage-2 kernel (fail-fast check)."""
    bt = B * T
    w_bytes = ((SCALE - 1) * K * H * H + SCALE * H * H + 2 * H * BOTTLENECK) * 2
    affine_bytes = (8 * SCALE * H + 8 * (SCALE - 1) * H + 8 * H
                    + 2 * BOTTLENECK + 2 * H) * 4
    act_bytes = (bt * SCALE * H * 2            # pre-BN expand input (bf16)
                 + B * (T + 2 * PAD) * H * 2   # padded conv scratch (bf16)
                 + bt * H * 4                  # collapse accumulator (f32)
                 + bt * H * 4                  # output (f32)
                 + 6 * bt * H * 4)             # live f32 transients (chunks, conv, t_out)
    return w_bytes + affine_bytes + act_bytes


def pack_params(p):
    """One-time weight packing / bf16 cast (outside the per-call path)."""
    bf16 = jnp.bfloat16
    H = p['we'].shape[0]
    return dict(
        we=p['we'].astype(bf16),
        be2=p['be'].reshape(1, SCALE * H),
        ge=p['ge'], bte=p['bte'],
        wr_fused=p['wr'].reshape(SCALE - 1, K * H, H).astype(bf16),
        br=p['br'], gr=p['gr'], btr=p['btr'],
        wc_full=p['wc'].reshape(SCALE * H, H).astype(bf16),
        bc=p['bc'], gc=p['gc'], btc=p['btc'],
        w1=p['w1'].astype(bf16), b1=p['b1'],
        w2=p['w2'].astype(bf16), b2=p['b2'],
    )


def se_res2block(x_btc, pp):
    """x_btc: (B, T, H_CONV) float32 -> (B, T, H_CONV) float32."""
    B, T, H = x_btc.shape
    bf16 = jnp.bfloat16
    N = B * T
    limit = _vmem_limit_bytes()

    need = _stage2_vmem_bytes(B, T, H)
    if need > int(0.8 * limit):
        # TODO(synk): fall back to a fully tiled multi-pass res2 chain
        # (per-stage BN-stats + apply passes) for shapes that exceed VMEM.
        raise ValueError(
            f"SE_RES2Block resident stage needs ~{need / 2**20:.1f} MiB VMEM, "
            f"budget ~{limit / 2**20:.1f} MiB; reduce (B, T) or tile the chain.")

    # ---- Stage 1: 1x1 expand conv + ReLU, gridded & pipelined over tokens ----
    x_tok = x_btc.reshape(N, H).astype(bf16)
    TM = 256 if N >= 256 else max(8, _round_up(N, 8))
    N_pad = _round_up(N, TM)
    if N_pad != N:
        x_tok = jnp.pad(x_tok, ((0, N_pad - N), (0, 0)))

    y_pre = pl.pallas_call(
        _expand_kernel,
        out_shape=jax.ShapeDtypeStruct((N_pad, SCALE * H), bf16),
        grid=(N_pad // TM,),
        in_specs=[pl.BlockSpec((TM, H), lambda i: (i, 0)),
                  pl.BlockSpec((H, SCALE * H), lambda i: (0, 0)),
                  pl.BlockSpec((1, SCALE * H), lambda i: (0, 0))],
        out_specs=pl.BlockSpec((TM, SCALE * H), lambda i: (i, 0)),
        compiler_params=pltpu.CompilerParams(
            dimension_semantics=("parallel",),
            vmem_limit_bytes=limit),
    )(x_tok, pp['we'], pp['be2'])
    y_pre = y_pre[:N].reshape(B, T, SCALE * H)

    # ---- Stage 2: res2 chain + collapse + SE (single resident invocation) ----
    args = (y_pre,
            pp['ge'], pp['bte'],
            pp['wr_fused'], pp['br'], pp['gr'], pp['btr'],
            pp['wc_full'], pp['bc'], pp['gc'], pp['btc'],
            pp['w1'], pp['b1'], pp['w2'], pp['b2'])
    vmem = pl.BlockSpec(memory_space=pltpu.MemorySpace.VMEM)
    return pl.pallas_call(
        _res2_se_kernel,
        out_shape=jax.ShapeDtypeStruct((B, T, H), jnp.float32),
        in_specs=[vmem] * len(args),
        out_specs=vmem,
        scratch_shapes=[
            pltpu.VMEM((B, T + 2 * PAD, H), bf16),   # shared padded conv input
            pltpu.VMEM((B, T, H), jnp.float32),      # collapse-conv accumulator
        ],
        compiler_params=pltpu.CompilerParams(vmem_limit_bytes=limit),
    )(*args)


# --------------------------------------------------------------------------
# Parameters & pure-JAX reference (validation).
# --------------------------------------------------------------------------
def init_params(key):
    """Deterministic synthetic parameters in kernel-friendly layout (f32)."""
    H = H_CONV
    ks = jax.random.split(key, 10)
    sd = 0.05

    def nrm(k, shape):
        return (sd * jax.random.normal(k, shape)).astype(jnp.float32)

    return dict(
        # conv1d_expand: pytorch weight (H*SCALE, H, 1) -> (H, H*SCALE)
        we=nrm(ks[0], (H, H * SCALE)),
        be=nrm(ks[1], (1, 1, H * SCALE)),
        ge=jnp.ones((1, 1, H * SCALE), jnp.float32),
        bte=jnp.zeros((1, 1, H * SCALE), jnp.float32),
        # res2conv1d_list: pytorch (H, H, K) -> (SCALE-1, K, H_in, H_out)
        wr=nrm(ks[2], (SCALE - 1, K, H, H)),
        br=nrm(ks[3], (SCALE - 1, 1, 1, H)),
        gr=jnp.ones((SCALE - 1, 1, 1, H), jnp.float32),
        btr=jnp.zeros((SCALE - 1, 1, 1, H), jnp.float32),
        # conv1d_collapse: pytorch (H, H*SCALE, 1) -> (SCALE, H_in, H_out)
        wc=nrm(ks[4], (SCALE, H, H)),
        bc=nrm(ks[5], (1, 1, H)),
        gc=jnp.ones((1, 1, H), jnp.float32),
        btc=jnp.zeros((1, 1, H), jnp.float32),
        # fc_1 / fc_2: pytorch (out, in) -> (in, out)
        w1=nrm(ks[6], (H, BOTTLENECK)),
        b1=nrm(ks[7], (1, BOTTLENECK)),
        w2=nrm(ks[8], (BOTTLENECK, H)),
        b2=nrm(ks[9], (1, H)),
    )


def reference_nct(x_nct, p):
    """Pure-JAX f32 reference in PyTorch NCT layout (validates the kernels)."""
    hp = jax.lax.Precision.HIGHEST
    H = H_CONV

    def conv1x1(x, w_io, b):
        return jnp.einsum('nct,cd->ndt', x, w_io, precision=hp) + b.reshape(1, -1, 1)

    def bn(x, gamma, beta):
        mean = jnp.mean(x, axis=(0, 2), keepdims=True)
        var = jnp.mean(jnp.square(x - mean), axis=(0, 2), keepdims=True)
        return ((x - mean) / jnp.sqrt(var + EPS)) * gamma.reshape(1, -1, 1) \
            + beta.reshape(1, -1, 1)

    def dconv(x, w_kio, b):
        w_oik = jnp.transpose(w_kio, (2, 1, 0))   # == pytorch (Cout, Cin, K)
        y = jax.lax.conv_general_dilated(
            x, w_oik, window_strides=(1,), padding=[(PAD, PAD)],
            rhs_dilation=(D,), dimension_numbers=('NCH', 'OIH', 'NCH'),
            precision=hp)
        return y + b.reshape(1, -1, 1)

    relu = lambda v: jnp.maximum(v, 0.0)

    t = bn(relu(conv1x1(x_nct, p['we'], p['be'])), p['ge'], p['bte'])
    chunks = [t[:, i * H:(i + 1) * H, :] for i in range(SCALE)]
    outs, last = [], None
    for i, c in enumerate(chunks):
        if i > 1:
            c = c + last
        if i > 0:
            c = bn(relu(dconv(c, p['wr'][i - 1], p['br'][i - 1])),
                   p['gr'][i - 1], p['btr'][i - 1])
        outs.append(c)
        last = c
    cat = jnp.concatenate(outs, axis=1)
    wc_full = p['wc'].reshape(SCALE * H, H)
    t = bn(relu(conv1x1(cat, wc_full, p['bc'])), p['gc'], p['btc'])
    z = jnp.mean(t, axis=2)
    h1 = relu(z @ p['w1'] + p['b1'])
    s = jax.nn.sigmoid(h1 @ p['w2'] + p['b2'])
    return s[:, :, None] * t


if __name__ == "__main__":
    B, T = 2, 16
    key = jax.random.PRNGKey(0)
    kx, kp = jax.random.split(key)

    params = init_params(kp)
    packed = pack_params(params)                        # one-time packing / bf16 cast

    x_nct = jax.random.normal(kx, (B, H_CONV, T), dtype=jnp.float32)   # PyTorch NCT input
    x_btc = jnp.transpose(x_nct, (0, 2, 1))                            # kernel layout (B, T, C)

    fwd = jax.jit(se_res2block)
    out_btc = jax.block_until_ready(fwd(x_btc, packed))
    out_nct = jnp.transpose(out_btc, (0, 2, 1))

    ref_nct = jax.block_until_ready(reference_nct(x_nct, params))

    assert out_nct.shape == (B, H_CONV, T)
    assert bool(jnp.isfinite(out_nct).all())
    # bf16 MXU operands / bf16 stored activations through a 7-deep normalized
    # res2 chain vs an f32 HIGHEST reference: expected max abs err ~1e-2 on
    # ~unit-scale outputs, so 1e-1 keeps margin while catching structural bugs.
    max_err = float(jnp.max(jnp.abs(out_nct - ref_nct)))
    assert max_err < 1e-1, f"max abs err too large: {max_err}"
    print("KERNEL_OK")
</pallas_src>

<mosaic_0001>
module attributes {stable_mosaic.version = 11 : i64} {
  func.func @_expand_kernel(%arg0: i32, %arg1: memref<32x128xbf16, #tpu.memory_space<vmem>>, %arg2: memref<128x1024xbf16, #tpu.memory_space<vmem>>, %arg3: memref<1x1024xf32, #tpu.memory_space<vmem>>, %arg4: memref<32x1024xbf16, #tpu.memory_space<vmem>>) attributes {dimension_semantics = [#tpu.dimension_semantics<parallel>], iteration_bounds = array<i64: 1>, scalar_prefetch = 0 : i64, scratch_operands = 0 : i64, tpu.core_type = #tpu.core_type<tc>, window_params = [{transform_indices = @transform_0, window_bounds = array<i64: 32, 128>}, {pipeline_mode = #tpu.pipeline_mode<synchronous>, transform_indices = @transform_1, window_bounds = array<i64: 128, 1024>}, {pipeline_mode = #tpu.pipeline_mode<synchronous>, transform_indices = @transform_2, window_bounds = array<i64: 1, 1024>}, {transform_indices = @transform_3, window_bounds = array<i64: 32, 1024>}]} {
    %c0 = arith.constant 0 : index
    %c0_0 = arith.constant 0 : index
    %0 = vector.load %arg1[%c0, %c0_0] : memref<32x128xbf16, #tpu.memory_space<vmem>>, vector<32x128xbf16>
    %c0_1 = arith.constant 0 : index
    %c0_2 = arith.constant 0 : index
    %1 = vector.load %arg2[%c0_1, %c0_2] : memref<128x1024xbf16, #tpu.memory_space<vmem>>, vector<128x1024xbf16>
    %cst = arith.constant dense<0.000000e+00> : vector<32x1024xf32>
    %2 = tpu.matmul %0, %1, %cst {dimension_numbers = #tpu.dot_dimension_numbers<[1], [0], [0], [1], [0, 0, 1, 1], [], []>} : vector<32x128xbf16>, vector<128x1024xbf16>, vector<32x1024xf32> -> vector<32x1024xf32>
    %c0_3 = arith.constant 0 : index
    %c0_4 = arith.constant 0 : index
    %3 = vector.load %arg3[%c0_3, %c0_4] : memref<1x1024xf32, #tpu.memory_space<vmem>>, vector<1x1024xf32>
    %4 = vector.broadcast %3 : vector<1x1024xf32> to vector<32x1024xf32>
    %5 = arith.addf %2, %4 : vector<32x1024xf32>
    %cst_5 = arith.constant 0.000000e+00 : f32
    %6 = vector.broadcast %cst_5 : f32 to vector<32x1024xf32>
    %7 = arith.maximumf %5, %6 : vector<32x1024xf32>
    %8 = arith.truncf %7 : vector<32x1024xf32> to vector<32x1024xbf16>
    %c0_6 = arith.constant 0 : index
    %c0_7 = arith.constant 0 : index
    %9 = vector.load %arg4[%c0_6, %c0_7] : memref<32x1024xbf16, #tpu.memory_space<vmem>>, vector<32x1024xbf16>
    tpu.vector_store %arg4[%c0_6, %c0_7], %8 {strides = array<i32>} : memref<32x1024xbf16, #tpu.memory_space<vmem>>, vector<32x1024xbf16>,
    return
  }
  func.func @transform_0(%arg0: i32) -> (i32, i32) {
    %c0_i32 = arith.constant 0 : i32
    %c0_i32_0 = arith.constant 0 : i32
    return %arg0, %c0_i32 : i32, i32
  }
  func.func @transform_1(%arg0: i32) -> (i32, i32) {
    %c0_i32 = arith.constant 0 : i32
    %c0_i32_0 = arith.constant 0 : i32
    %c0_i32_1 = arith.constant 0 : i32
    return %c0_i32, %c0_i32_0 : i32, i32
  }
  func.func @transform_2(%arg0: i32) -> (i32, i32) {
    %c0_i32 = arith.constant 0 : i32
    %c0_i32_0 = arith.constant 0 : i32
    %c0_i32_1 = arith.constant 0 : i32
    return %c0_i32, %c0_i32_0 : i32, i32
  }
  func.func @transform_3(%arg0: i32) -> (i32, i32) {
    %c0_i32 = arith.constant 0 : i32
    %c0_i32_0 = arith.constant 0 : i32
    return %arg0, %c0_i32 : i32, i32
  }
}

module attributes {stable_mosaic.version = 11 : i64} {
  func.func @_res2_se_kernel(%arg0: memref<2x16x1024xbf16, #tpu.memory_space<vmem>>, %arg1: memref<1x1x1024xf32, #tpu.memory_space<vmem>>, %arg2: memref<1x1x1024xf32, #tpu.memory_space<vmem>>, %arg3: memref<7x384x128xbf16, #tpu.memory_space<vmem>>, %arg4: memref<7x1x1x128xf32, #tpu.memory_space<vmem>>, %arg5: memref<7x1x1x128xf32, #tpu.memory_space<vmem>>, %arg6: memref<7x1x1x128xf32, #tpu.memory_space<vmem>>, %arg7: memref<1024x128xbf16, #tpu.memory_space<vmem>>, %arg8: memref<1x1x128xf32, #tpu.memory_space<vmem>>, %arg9: memref<1x1x128xf32, #tpu.memory_space<vmem>>, %arg10: memref<1x1x128xf32, #tpu.memory_space<vmem>>, %arg11: memref<128x128xbf16, #tpu.memory_space<vmem>>, %arg12: memref<1x128xf32, #tpu.memory_space<vmem>>, %arg13: memref<128x128xbf16, #tpu.memory_space<vmem>>, %arg14: memref<1x128xf32, #tpu.memory_space<vmem>>, %arg15: memref<2x16x128xf32, #tpu.memory_space<vmem>>, %arg16: memref<2x20x128xbf16, #tpu.memory_space<vmem>>, %arg17: memref<2x16x128xf32, #tpu.memory_space<vmem>>) attributes {dimension_semantics = [], scalar_prefetch = 0 : i64, scratch_operands = 2 : i64, tpu.core_type = #tpu.core_type<tc>} {
    %cst = arith.constant 1.000000e+00 : bf16
    %0 = vector.broadcast %cst : bf16 to vector<8x32xbf16>
    %cst_0 = arith.constant 0.000000e+00 : bf16
    %1 = vector.broadcast %cst_0 : bf16 to vector<2x2x128xbf16>
    %c0 = arith.constant 0 : index
    %c0_1 = arith.constant 0 : index
    %c0_2 = arith.constant 0 : index
    %2 = vector.load %arg16[%c0, %c0_1, %c0_2] : memref<2x20x128xbf16, #tpu.memory_space<vmem>>, vector<2x2x128xbf16>
    tpu.vector_store %arg16[%c0, %c0_1, %c0_2], %1 {strides = array<i32>} : memref<2x20x128xbf16, #tpu.memory_space<vmem>>, vector<2x2x128xbf16>,
    %c0_3 = arith.constant 0 : index
    %c18 = arith.constant 18 : index
    %c0_4 = arith.constant 0 : index
    %3 = vector.load %arg16[%c0_3, %c18, %c0_4] : memref<2x20x128xbf16, #tpu.memory_space<vmem>>, vector<2x2x128xbf16>
    tpu.vector_store %arg16[%c0_3, %c18, %c0_4], %1 {strides = array<i32>} : memref<2x20x128xbf16, #tpu.memory_space<vmem>>, vector<2x2x128xbf16>,
    %c0_5 = arith.constant 0 : index
    %c0_6 = arith.constant 0 : index
    %c0_7 = arith.constant 0 : index
    %4 = vector.load %arg1[%c0_5, %c0_6, %c0_7] : memref<1x1x1024xf32, #tpu.memory_space<vmem>>, vector<1x1x1024xf32>
    %c0_8 = arith.constant 0 : index
    %c0_9 = arith.constant 0 : index
    %c0_10 = arith.constant 0 : index
    %5 = vector.load %arg2[%c0_8, %c0_9, %c0_10] : memref<1x1x1024xf32, #tpu.memory_space<vmem>>, vector<1x1x1024xf32>
    %c0_11 = arith.constant 0 : index
    %c0_12 = arith.constant 0 : index
    %c0_13 = arith.constant 0 : index
    %6 = vector.load %arg0[%c0_11, %c0_12, %c0_13] : memref<2x16x1024xbf16, #tpu.memory_space<vmem>>, vector<2x16x128xbf16>
    %7 = arith.extf %6 : vector<2x16x128xbf16> to vector<2x16x128xf32>
    %8 = vector.extract_strided_slice %4 {offsets = [0, 0, 0], sizes = [1, 1, 128], strides = [1, 1, 1]} : vector<1x1x1024xf32> to vector<1x1x128xf32>
    %9 = vector.extract_strided_slice %5 {offsets = [0, 0, 0], sizes = [1, 1, 128], strides = [1, 1, 1]} : vector<1x1x1024xf32> to vector<1x1x128xf32>
    %10 = vector.shape_cast %7 : vector<2x16x128xf32> to vector<32x128xf32>
    %11 = arith.truncf %10 : vector<32x128xf32> to vector<32x128xbf16>
    %cst_14 = arith.constant dense<0.000000e+00> : vector<8x128xf32>
    %12 = tpu.matmul %0, %11, %cst_14 {dimension_numbers = #tpu.dot_dimension_numbers<[1], [0], [0], [1], [0, 0, 1, 1], [], []>} : vector<8x32xbf16>, vector<32x128xbf16>, vector<8x128xf32> -> vector<8x128xf32>
    %13 = vector.extract_strided_slice %12 {offsets = [0, 0], sizes = [1, 128], strides = [1, 1]} : vector<8x128xf32> to vector<1x128xf32>
    %cst_15 = arith.constant 3.125000e-02 : f32
    %14 = vector.broadcast %cst_15 : f32 to vector<1x128xf32>
    %15 = arith.mulf %13, %14 : vector<1x128xf32>
    %16 = vector.broadcast %15 : vector<1x128xf32> to vector<32x128xf32>
    %17 = arith.subf %10, %16 : vector<32x128xf32>
    %18 = arith.mulf %17, %17 : vector<32x128xf32>
    %19 = arith.truncf %18 : vector<32x128xf32> to vector<32x128xbf16>
    %cst_16 = arith.constant dense<0.000000e+00> : vector<8x128xf32>
    %20 = tpu.matmul %0, %19, %cst_16 {dimension_numbers = #tpu.dot_dimension_numbers<[1], [0], [0], [1], [0, 0, 1, 1], [], []>} : vector<8x32xbf16>, vector<32x128xbf16>, vector<8x128xf32> -> vector<8x128xf32>
    %21 = vector.extract_strided_slice %20 {offsets = [0, 0], sizes = [1, 128], strides = [1, 1]} : vector<8x128xf32> to vector<1x128xf32>
    %cst_17 = arith.constant 3.125000e-02 : f32
    %22 = vector.broadcast %cst_17 : f32 to vector<1x128xf32>
    %23 = arith.mulf %21, %22 : vector<1x128xf32>
    %cst_18 = arith.constant 0.000000e+00 : f32
    %24 = vector.broadcast %cst_18 : f32 to vector<1x128xf32>
    %25 = arith.maximumf %23, %24 : vector<1x128xf32>
    %26 = vector.shape_cast %8 : vector<1x1x128xf32> to vector<1x128xf32>
    %cst_19 = arith.constant 9.99999974E-6 : f32
    %27 = vector.broadcast %cst_19 : f32 to vector<1x128xf32>
    %28 = arith.addf %25, %27 : vector<1x128xf32>
    %29 = math.rsqrt %28 : vector<1x128xf32>
    %30 = arith.mulf %26, %29 : vector<1x128xf32>
    %31 = vector.broadcast %30 : vector<1x128xf32> to vector<32x128xf32>
    %32 = arith.mulf %17, %31 : vector<32x128xf32>
    %33 = vector.shape_cast %9 : vector<1x1x128xf32> to vector<1x128xf32>
    %34 = vector.broadcast %33 : vector<1x128xf32> to vector<32x128xf32>
    %35 = arith.addf %32, %34 : vector<32x128xf32>
    %36 = vector.shape_cast %35 : vector<32x128xf32> to vector<2x16x128xf32>
    %37 = arith.truncf %36 : vector<2x16x128xf32> to vector<2x16x128xbf16>
    %38 = vector.shape_cast %37 : vector<2x16x128xbf16> to vector<32x128xbf16>
    %c0_20 = arith.constant 0 : index
    %c0_21 = arith.constant 0 : index
    %39 = vector.load %arg7[%c0_20, %c0_21] : memref<1024x128xbf16, #tpu.memory_space<vmem>>, vector<128x128xbf16>
    %cst_22 = arith.constant dense<0.000000e+00> : vector<32x128xf32>
    %40 = tpu.matmul %38, %39, %cst_22 {dimension_numbers = #tpu.dot_dimension_numbers<[1], [0], [0], [1], [0, 0, 1, 1], [], []>} : vector<32x128xbf16>, vector<128x128xbf16>, vector<32x128xf32> -> vector<32x128xf32>
    %41 = vector.shape_cast %40 : vector<32x128xf32> to vector<2x16x128xf32>
    %c0_23 = arith.constant 0 : index
    %c0_24 = arith.constant 0 : index
    %c0_25 = arith.constant 0 : index
    %42 = vector.load %arg17[%c0_23, %c0_24, %c0_25] : memref<2x16x128xf32, #tpu.memory_space<vmem>>, vector<2x16x128xf32>
    tpu.vector_store %arg17[%c0_23, %c0_24, %c0_25], %41 {strides = array<i32>} : memref<2x16x128xf32, #tpu.memory_space<vmem>>, vector<2x16x128xf32>,
    %c0_26 = arith.constant 0 : index
    %c0_27 = arith.constant 0 : index
    %c128 = arith.constant 128 : index
    %43 = vector.load %arg0[%c0_26, %c0_27, %c128] : memref<2x16x1024xbf16, #tpu.memory_space<vmem>>, vector<2x16x128xbf16>
    %44 = arith.extf %43 : vector<2x16x128xbf16> to vector<2x16x128xf32>
    %45 = vector.extract_strided_slice %4 {offsets = [0, 0, 128], sizes = [1, 1, 128], strides = [1, 1, 1]} : vector<1x1x1024xf32> to vector<1x1x128xf32>
    %46 = vector.extract_strided_slice %5 {offsets = [0, 0, 128], sizes = [1, 1, 128], strides = [1, 1, 1]} : vector<1x1x1024xf32> to vector<1x1x128xf32>
    %47 = vector.shape_cast %44 : vector<2x16x128xf32> to vector<32x128xf32>
    %48 = arith.truncf %47 : vector<32x128xf32> to vector<32x128xbf16>
    %cst_28 = arith.constant dense<0.000000e+00> : vector<8x128xf32>
    %49 = tpu.matmul %0, %48, %cst_28 {dimension_numbers = #tpu.dot_dimension_numbers<[1], [0], [0], [1], [0, 0, 1, 1], [], []>} : vector<8x32xbf16>, vector<32x128xbf16>, vector<8x128xf32> -> vector<8x128xf32>
    %50 = vector.extract_strided_slice %49 {offsets = [0, 0], sizes = [1, 128], strides = [1, 1]} : vector<8x128xf32> to vector<1x128xf32>
    %cst_29 = arith.constant 3.125000e-02 : f32
    %51 = vector.broadcast %cst_29 : f32 to vector<1x128xf32>
    %52 = arith.mulf %50, %51 : vector<1x128xf32>
    %53 = vector.broadcast %52 : vector<1x128xf32> to vector<32x128xf32>
    %54 = arith.subf %47, %53 : vector<32x128xf32>
    %55 = arith.mulf %54, %54 : vector<32x128xf32>
    %56 = arith.truncf %55 : vector<32x128xf32> to vector<32x128xbf16>
    %cst_30 = arith.constant dense<0.000000e+00> : vector<8x128xf32>
    %57 = tpu.matmul %0, %56, %cst_30 {dimension_numbers = #tpu.dot_dimension_numbers<[1], [0], [0], [1], [0, 0, 1, 1], [], []>} : vector<8x32xbf16>, vector<32x128xbf16>, vector<8x128xf32> -> vector<8x128xf32>
    %58 = vector.extract_strided_slice %57 {offsets = [0, 0], sizes = [1, 128], strides = [1, 1]} : vector<8x128xf32> to vector<1x128xf32>
    %cst_31 = arith.constant 3.125000e-02 : f32
    %59 = vector.broadcast %cst_31 : f32 to vector<1x128xf32>
    %60 = arith.mulf %58, %59 : vector<1x128xf32>
    %cst_32 = arith.constant 0.000000e+00 : f32
    %61 = vector.broadcast %cst_32 : f32 to vector<1x128xf32>
    %62 = arith.maximumf %60, %61 : vector<1x128xf32>
    %63 = vector.shape_cast %45 : vector<1x1x128xf32> to vector<1x128xf32>
    %cst_33 = arith.constant 9.99999974E-6 : f32
    %64 = vector.broadcast %cst_33 : f32 to vector<1x128xf32>
    %65 = arith.addf %62, %64 : vector<1x128xf32>
    %66 = math.rsqrt %65 : vector<1x128xf32>
    %67 = arith.mulf %63, %66 : vector<1x128xf32>
    %68 = vector.broadcast %67 : vector<1x128xf32> to vector<32x128xf32>
    %69 = arith.mulf %54, %68 : vector<32x128xf32>
    %70 = vector.shape_cast %46 : vector<1x1x128xf32> to vector<1x128xf32>
    %71 = vector.broadcast %70 : vector<1x128xf32> to vector<32x128xf32>
    %72 = arith.addf %69, %71 : vector<32x128xf32>
    %73 = vector.shape_cast %72 : vector<32x128xf32> to vector<2x16x128xf32>
    %74 = arith.truncf %73 : vector<2x16x128xf32> to vector<2x16x128xbf16>
    %c0_34 = arith.constant 0 : index
    %c2 = arith.constant 2 : index
    %c0_35 = arith.constant 0 : index
    %75 = vector.load %arg16[%c0_34, %c2, %c0_35] : memref<2x20x128xbf16, #tpu.memory_space<vmem>>, vector<2x16x128xbf16>
    tpu.vector_store %arg16[%c0_34, %c2, %c0_35], %74 {strides = array<i32>} : memref<2x20x128xbf16, #tpu.memory_space<vmem>>, vector<2x16x128xbf16>,
    %c0_36 = arith.constant 0 : index
    %c0_37 = arith.constant 0 : index
    %c0_38 = arith.constant 0 : index
    %76 = vector.load %arg16[%c0_36, %c0_37, %c0_38] : memref<2x20x128xbf16, #tpu.memory_space<vmem>>, vector<2x16x128xbf16>
    %77 = vector.shape_cast %76 : vector<2x16x128xbf16> to vector<32x128xbf16>
    %c0_39 = arith.constant 0 : index
    %c0_40 = arith.constant 0 : index
    %c0_41 = arith.constant 0 : index
    %78 = vector.load %arg3[%c0_39, %c0_40, %c0_41] : memref<7x384x128xbf16, #tpu.memory_space<vmem>>, vector<1x128x128xbf16>
    %79 = vector.shape_cast %78 : vector<1x128x128xbf16> to vector<128x128xbf16>
    %cst_42 = arith.constant dense<0.000000e+00> : vector<32x128xf32>
    %80 = tpu.matmul %77, %79, %cst_42 {dimension_numbers = #tpu.dot_dimension_numbers<[1], [0], [0], [1], [0, 0, 1, 1], [], []>} : vector<32x128xbf16>, vector<128x128xbf16>, vector<32x128xf32> -> vector<32x128xf32>
    %c0_43 = arith.constant 0 : index
    %c2_44 = arith.constant 2 : index
    %c0_45 = arith.constant 0 : index
    %81 = vector.load %arg16[%c0_43, %c2_44, %c0_45] : memref<2x20x128xbf16, #tpu.memory_space<vmem>>, vector<2x16x128xbf16>
    %82 = vector.shape_cast %81 : vector<2x16x128xbf16> to vector<32x128xbf16>
    %c0_46 = arith.constant 0 : index
    %c128_47 = arith.constant 128 : index
    %c0_48 = arith.constant 0 : index
    %83 = vector.load %arg3[%c0_46, %c128_47, %c0_48] : memref<7x384x128xbf16, #tpu.memory_space<vmem>>, vector<1x128x128xbf16>
    %84 = vector.shape_cast %83 : vector<1x128x128xbf16> to vector<128x128xbf16>
    %cst_49 = arith.constant dense<0.000000e+00> : vector<32x128xf32>
    %85 = tpu.matmul %82, %84, %cst_49 {dimension_numbers = #tpu.dot_dimension_numbers<[1], [0], [0], [1], [0, 0, 1, 1], [], []>} : vector<32x128xbf16>, vector<128x128xbf16>, vector<32x128xf32> -> vector<32x128xf32>
    %86 = arith.addf %80, %85 : vector<32x128xf32>
    %c0_50 = arith.constant 0 : index
    %c4 = arith.constant 4 : index
    %c0_51 = arith.constant 0 : index
    %87 = vector.load %arg16[%c0_50, %c4, %c0_51] : memref<2x20x128xbf16, #tpu.memory_space<vmem>>, vector<2x16x128xbf16>
    %88 = vector.shape_cast %87 : vector<2x16x128xbf16> to vector<32x128xbf16>
    %c0_52 = arith.constant 0 : index
    %c256 = arith.constant 256 : index
    %c0_53 = arith.constant 0 : index
    %89 = vector.load %arg3[%c0_52, %c256, %c0_53] : memref<7x384x128xbf16, #tpu.memory_space<vmem>>, vector<1x128x128xbf16>
    %90 = vector.shape_cast %89 : vector<1x128x128xbf16> to vector<128x128xbf16>
    %cst_54 = arith.constant dense<0.000000e+00> : vector<32x128xf32>
    %91 = tpu.matmul %88, %90, %cst_54 {dimension_numbers = #tpu.dot_dimension_numbers<[1], [0], [0], [1], [0, 0, 1, 1], [], []>} : vector<32x128xbf16>, vector<128x128xbf16>, vector<32x128xf32> -> vector<32x128xf32>
    %92 = arith.addf %86, %91 : vector<32x128xf32>
    %93 = vector.shape_cast %92 : vector<32x128xf32> to vector<2x16x128xf32>
    %c0_55 = arith.constant 0 : index
    %c0_56 = arith.constant 0 : index
    %c0_57 = arith.constant 0 : index
    %c0_58 = arith.constant 0 : index
    %94 = vector.load %arg4[%c0_55, %c0_56, %c0_57, %c0_58] : memref<7x1x1x128xf32, #tpu.memory_space<vmem>>, vector<1x1x1x128xf32>
    %95 = vector.shape_cast %94 : vector<1x1x1x128xf32> to vector<1x1x128xf32>
    %96 = vector.broadcast %95 : vector<1x1x128xf32> to vector<2x16x128xf32>
    %97 = arith.addf %93, %96 : vector<2x16x128xf32>
    %cst_59 = arith.constant 0.000000e+00 : f32
    %98 = vector.broadcast %cst_59 : f32 to vector<2x16x128xf32>
    %99 = arith.maximumf %97, %98 : vector<2x16x128xf32>
    %c0_60 = arith.constant 0 : index
    %c0_61 = arith.constant 0 : index
    %c0_62 = arith.constant 0 : index
    %c0_63 = arith.constant 0 : index
    %100 = vector.load %arg5[%c0_60, %c0_61, %c0_62, %c0_63] : memref<7x1x1x128xf32, #tpu.memory_space<vmem>>, vector<1x1x1x128xf32>
    %101 = vector.shape_cast %100 : vector<1x1x1x128xf32> to vector<1x1x128xf32>
    %c0_64 = arith.constant 0 : index
    %c0_65 = arith.constant 0 : index
    %c0_66 = arith.constant 0 : index
    %c0_67 = arith.constant 0 : index
    %102 = vector.load %arg6[%c0_64, %c0_65, %c0_66, %c0_67] : memref<7x1x1x128xf32, #tpu.memory_space<vmem>>, vector<1x1x1x128xf32>
    %103 = vector.shape_cast %102 : vector<1x1x1x128xf32> to vector<1x1x128xf32>
    %104 = vector.shape_cast %99 : vector<2x16x128xf32> to vector<32x128xf32>
    %105 = arith.truncf %104 : vector<32x128xf32> to vector<32x128xbf16>
    %cst_68 = arith.constant dense<0.000000e+00> : vector<8x128xf32>
    %106 = tpu.matmul %0, %105, %cst_68 {dimension_numbers = #tpu.dot_dimension_numbers<[1], [0], [0], [1], [0, 0, 1, 1], [], []>} : vector<8x32xbf16>, vector<32x128xbf16>, vector<8x128xf32> -> vector<8x128xf32>
    %107 = vector.extract_strided_slice %106 {offsets = [0, 0], sizes = [1, 128], strides = [1, 1]} : vector<8x128xf32> to vector<1x128xf32>
    %cst_69 = arith.constant 3.125000e-02 : f32
    %108 = vector.broadcast %cst_69 : f32 to vector<1x128xf32>
    %109 = arith.mulf %107, %108 : vector<1x128xf32>
    %110 = vector.broadcast %109 : vector<1x128xf32> to vector<32x128xf32>
    %111 = arith.subf %104, %110 : vector<32x128xf32>
    %112 = arith.mulf %111, %111 : vector<32x128xf32>
    %113 = arith.truncf %112 : vector<32x128xf32> to vector<32x128xbf16>
    %cst_70 = arith.constant dense<0.000000e+00> : vector<8x128xf32>
    %114 = tpu.matmul %0, %113, %cst_70 {dimension_numbers = #tpu.dot_dimension_numbers<[1], [0], [0], [1], [0, 0, 1, 1], [], []>} : vector<8x32xbf16>, vector<32x128xbf16>, vector<8x128xf32> -> vector<8x128xf32>
    %115 = vector.extract_strided_slice %114 {offsets = [0, 0], sizes = [1, 128], strides = [1, 1]} : vector<8x128xf32> to vector<1x128xf32>
    %cst_71 = arith.constant 3.125000e-02 : f32
    %116 = vector.broadcast %cst_71 : f32 to vector<1x128xf32>
    %117 = arith.mulf %115, %116 : vector<1x128xf32>
    %cst_72 = arith.constant 0.000000e+00 : f32
    %118 = vector.broadcast %cst_72 : f32 to vector<1x128xf32>
    %119 = arith.maximumf %117, %118 : vector<1x128xf32>
    %120 = vector.shape_cast %101 : vector<1x1x128xf32> to vector<1x128xf32>
    %cst_73 = arith.constant 9.99999974E-6 : f32
    %121 = vector.broadcast %cst_73 : f32 to vector<1x128xf32>
    %122 = arith.addf %119, %121 : vector<1x128xf32>
    %123 = math.rsqrt %122 : vector<1x128xf32>
    %124 = arith.mulf %120, %123 : vector<1x128xf32>
    %125 = vector.broadcast %124 : vector<1x128xf32> to vector<32x128xf32>
    %126 = arith.mulf %111, %125 : vector<32x128xf32>
    %127 = vector.shape_cast %103 : vector<1x1x128xf32> to vector<1x128xf32>
    %128 = vector.broadcast %127 : vector<1x128xf32> to vector<32x128xf32>
    %129 = arith.addf %126, %128 : vector<32x128xf32>
    %130 = vector.shape_cast %129 : vector<32x128xf32> to vector<2x16x128xf32>
    %131 = arith.truncf %130 : vector<2x16x128xf32> to vector<2x16x128xbf16>
    %132 = vector.shape_cast %131 : vector<2x16x128xbf16> to vector<32x128xbf16>
    %c128_74 = arith.constant 128 : index
    %c0_75 = arith.constant 0 : index
    %133 = vector.load %arg7[%c128_74, %c0_75] : memref<1024x128xbf16, #tpu.memory_space<vmem>>, vector<128x128xbf16>
    %cst_76 = arith.constant dense<0.000000e+00> : vector<32x128xf32>
    %134 = tpu.matmul %132, %133, %cst_76 {dimension_numbers = #tpu.dot_dimension_numbers<[1], [0], [0], [1], [0, 0, 1, 1], [], []>} : vector<32x128xbf16>, vector<128x128xbf16>, vector<32x128xf32> -> vector<32x128xf32>
    %135 = vector.shape_cast %134 : vector<32x128xf32> to vector<2x16x128xf32>
    %c0_77 = arith.constant 0 : index
    %c0_78 = arith.constant 0 : index
    %c0_79 = arith.constant 0 : index
    %136 = vector.load %arg17[%c0_77, %c0_78, %c0_79] : memref<2x16x128xf32, #tpu.memory_space<vmem>>, vector<2x16x128xf32>
    %137 = arith.addf %136, %135 : vector<2x16x128xf32>
    %c0_80 = arith.constant 0 : index
    %c0_81 = arith.constant 0 : index
    %c0_82 = arith.constant 0 : index
    %138 = vector.load %arg17[%c0_80, %c0_81, %c0_82] : memref<2x16x128xf32, #tpu.memory_space<vmem>>, vector<2x16x128xf32>
    tpu.vector_store %arg17[%c0_80, %c0_81, %c0_82], %137 {strides = array<i32>} : memref<2x16x128xf32, #tpu.memory_space<vmem>>, vector<2x16x128xf32>,
    %c0_83 = arith.constant 0 : index
    %c0_84 = arith.constant 0 : index
    %c256_85 = arith.constant 256 : index
    %139 = vector.load %arg0[%c0_83, %c0_84, %c256_85] : memref<2x16x1024xbf16, #tpu.memory_space<vmem>>, vector<2x16x128xbf16>
    %140 = arith.extf %139 : vector<2x16x128xbf16> to vector<2x16x128xf32>
    %141 = vector.extract_strided_slice %4 {offsets = [0, 0, 256], sizes = [1, 1, 128], strides = [1, 1, 1]} : vector<1x1x1024xf32> to vector<1x1x128xf32>
    %142 = vector.extract_strided_slice %5 {offsets = [0, 0, 256], sizes = [1, 1, 128], strides = [1, 1, 1]} : vector<1x1x1024xf32> to vector<1x1x128xf32>
    %143 = vector.shape_cast %140 : vector<2x16x128xf32> to vector<32x128xf32>
    %144 = arith.truncf %143 : vector<32x128xf32> to vector<32x128xbf16>
    %cst_86 = arith.constant dense<0.000000e+00> : vector<8x128xf32>
    %145 = tpu.matmul %0, %144, %cst_86 {dimension_numbers = #tpu.dot_dimension_numbers<[1], [0], [0], [1], [0, 0, 1, 1], [], []>} : vector<8x32xbf16>, vector<32x128xbf16>, vector<8x128xf32> -> vector<8x128xf32>
    %146 = vector.extract_strided_slice %145 {offsets = [0, 0], sizes = [1, 128], strides = [1, 1]} : vector<8x128xf32> to vector<1x128xf32>
    %cst_87 = arith.constant 3.125000e-02 : f32
    %147 = vector.broadcast %cst_87 : f32 to vector<1x128xf32>
    %148 = arith.mulf %146, %147 : vector<1x128xf32>
    %149 = vector.broadcast %148 : vector<1x128xf32> to vector<32x128xf32>
    %150 = arith.subf %143, %149 : vector<32x128xf32>
    %151 = arith.mulf %150, %150 : vector<32x128xf32>
    %152 = arith.truncf %151 : vector<32x128xf32> to vector<32x128xbf16>
    %cst_88 = arith.constant dense<0.000000e+00> : vector<8x128xf32>
    %153 = tpu.matmul %0, %152, %cst_88 {dimension_numbers = #tpu.dot_dimension_numbers<[1], [0], [0], [1], [0, 0, 1, 1], [], []>} : vector<8x32xbf16>, vector<32x128xbf16>, vector<8x128xf32> -> vector<8x128xf32>
    %154 = vector.extract_strided_slice %153 {offsets = [0, 0], sizes = [1, 128], strides = [1, 1]} : vector<8x128xf32> to vector<1x128xf32>
    %cst_89 = arith.constant 3.125000e-02 : f32
    %155 = vector.broadcast %cst_89 : f32 to vector<1x128xf32>
    %156 = arith.mulf %154, %155 : vector<1x128xf32>
    %cst_90 = arith.constant 0.000000e+00 : f32
    %157 = vector.broadcast %cst_90 : f32 to vector<1x128xf32>
    %158 = arith.maximumf %156, %157 : vector<1x128xf32>
    %159 = vector.shape_cast %141 : vector<1x1x128xf32> to vector<1x128xf32>
    %cst_91 = arith.constant 9.99999974E-6 : f32
    %160 = vector.broadcast %cst_91 : f32 to vector<1x128xf32>
    %161 = arith.addf %158, %160 : vector<1x128xf32>
    %162 = math.rsqrt %161 : vector<1x128xf32>
    %163 = arith.mulf %159, %162 : vector<1x128xf32>
    %164 = vector.broadcast %163 : vector<1x128xf32> to vector<32x128xf32>
    %165 = arith.mulf %150, %164 : vector<32x128xf32>
    %166 = vector.shape_cast %142 : vector<1x1x128xf32> to vector<1x128xf32>
    %167 = vector.broadcast %166 : vector<1x128xf32> to vector<32x128xf32>
    %168 = arith.addf %165, %167 : vector<32x128xf32>
    %169 = vector.shape_cast %168 : vector<32x128xf32> to vector<2x16x128xf32>
    %170 = arith.addf %169, %130 : vector<2x16x128xf32>
    %171 = arith.truncf %170 : vector<2x16x128xf32> to vector<2x16x128xbf16>
    %c0_92 = arith.constant 0 : index
    %c2_93 = arith.constant 2 : index
    %c0_94 = arith.constant 0 : index
    %172 = vector.load %arg16[%c0_92, %c2_93, %c0_94] : memref<2x20x128xbf16, #tpu.memory_space<vmem>>, vector<2x16x128xbf16>
    tpu.vector_store %arg16[%c0_92, %c2_93, %c0_94], %171 {strides = array<i32>} : memref<2x20x128xbf16, #tpu.memory_space<vmem>>, vector<2x16x128xbf16>,
    %c0_95 = arith.constant 0 : index
    %c0_96 = arith.constant 0 : index
    %c0_97 = arith.constant 0 : index
    %173 = vector.load %arg16[%c0_95, %c0_96, %c0_97] : memref<2x20x128xbf16, #tpu.memory_space<vmem>>, vector<2x16x128xbf16>
    %174 = vector.shape_cast %173 : vector<2x16x128xbf16> to vector<32x128xbf16>
    %c1 = arith.constant 1 : index
    %c0_98 = arith.constant 0 : index
    %c0_99 = arith.constant 0 : index
    %175 = vector.load %arg3[%c1, %c0_98, %c0_99] : memref<7x384x128xbf16, #tpu.memory_space<vmem>>, vector<1x128x128xbf16>
    %176 = vector.shape_cast %175 : vector<1x128x128xbf16> to vector<128x128xbf16>
    %cst_100 = arith.constant dense<0.000000e+00> : vector<32x128xf32>
    %177 = tpu.matmul %174, %176, %cst_100 {dimension_numbers = #tpu.dot_dimension_numbers<[1], [0], [0], [1], [0, 0, 1, 1], [], []>} : vector<32x128xbf16>, vector<128x128xbf16>, vector<32x128xf32> -> vector<32x128xf32>
    %c0_101 = arith.constant 0 : index
    %c2_102 = arith.constant 2 : index
    %c0_103 = arith.constant 0 : index
    %178 = vector.load %arg16[%c0_101, %c2_102, %c0_103] : memref<2x20x128xbf16, #tpu.memory_space<vmem>>, vector<2x16x128xbf16>
    %179 = vector.shape_cast %178 : vector<2x16x128xbf16> to vector<32x128xbf16>
    %c1_104 = arith.constant 1 : index
    %c128_105 = arith.constant 128 : index
    %c0_106 = arith.constant 0 : index
    %180 = vector.load %arg3[%c1_104, %c128_105, %c0_106] : memref<7x384x128xbf16, #tpu.memory_space<vmem>>, vector<1x128x128xbf16>
    %181 = vector.shape_cast %180 : vector<1x128x128xbf16> to vector<128x128xbf16>
    %cst_107 = arith.constant dense<0.000000e+00> : vector<32x128xf32>
    %182 = tpu.matmul %179, %181, %cst_107 {dimension_numbers = #tpu.dot_dimension_numbers<[1], [0], [0], [1], [0, 0, 1, 1], [], []>} : vector<32x128xbf16>, vector<128x128xbf16>, vector<32x128xf32> -> vector<32x128xf32>
    %183 = arith.addf %177, %182 : vector<32x128xf32>
    %c0_108 = arith.constant 0 : index
    %c4_109 = arith.constant 4 : index
    %c0_110 = arith.constant 0 : index
    %184 = vector.load %arg16[%c0_108, %c4_109, %c0_110] : memref<2x20x128xbf16, #tpu.memory_space<vmem>>, vector<2x16x128xbf16>
    %185 = vector.shape_cast %184 : vector<2x16x128xbf16> to vector<32x128xbf16>
    %c1_111 = arith.constant 1 : index
    %c256_112 = arith.constant 256 : index
    %c0_113 = arith.constant 0 : index
    %186 = vector.load %arg3[%c1_111, %c256_112, %c0_113] : memref<7x384x128xbf16, #tpu.memory_space<vmem>>, vector<1x128x128xbf16>
    %187 = vector.shape_cast %186 : vector<1x128x128xbf16> to vector<128x128xbf16>
    %cst_114 = arith.constant dense<0.000000e+00> : vector<32x128xf32>
    %188 = tpu.matmul %185, %187, %cst_114 {dimension_numbers = #tpu.dot_dimension_numbers<[1], [0], [0], [1], [0, 0, 1, 1], [], []>} : vector<32x128xbf16>, vector<128x128xbf16>, vector<32x128xf32> -> vector<32x128xf32>
    %189 = arith.addf %183, %188 : vector<32x128xf32>
    %190 = vector.shape_cast %189 : vector<32x128xf32> to vector<2x16x128xf32>
    %c1_115 = arith.constant 1 : index
    %c0_116 = arith.constant 0 : index
    %c0_117 = arith.constant 0 : index
    %c0_118 = arith.constant 0 : index
    %191 = vector.load %arg4[%c1_115, %c0_116, %c0_117, %c0_118] : memref<7x1x1x128xf32, #tpu.memory_space<vmem>>, vector<1x1x1x128xf32>
    %192 = vector.shape_cast %191 : vector<1x1x1x128xf32> to vector<1x1x128xf32>
    %193 = vector.broadcast %192 : vector<1x1x128xf32> to vector<2x16x128xf32>
    %194 = arith.addf %190, %193 : vector<2x16x128xf32>
    %cst_119 = arith.constant 0.000000e+00 : f32
    %195 = vector.broadcast %cst_119 : f32 to vector<2x16x128xf32>
    %196 = arith.maximumf %194, %195 : vector<2x16x128xf32>
    %c1_120 = arith.constant 1 : index
    %c0_121 = arith.constant 0 : index
    %c0_122 = arith.constant 0 : index
    %c0_123 = arith.constant 0 : index
    %197 = vector.load %arg5[%c1_120, %c0_121, %c0_122, %c0_123] : memref<7x1x1x128xf32, #tpu.memory_space<vmem>>, vector<1x1x1x128xf32>
    %198 = vector.shape_cast %197 : vector<1x1x1x128xf32> to vector<1x1x128xf32>
    %c1_124 = arith.constant 1 : index
    %c0_125 = arith.constant 0 : index
    %c0_126 = arith.constant 0 : index
    %c0_127 = arith.constant 0 : index
    %199 = vector.load %arg6[%c1_124, %c0_125, %c0_126, %c0_127] : memref<7x1x1x128xf32, #tpu.memory_space<vmem>>, vector<1x1x1x128xf32>
    %200 = vector.shape_cast %199 : vector<1x1x1x128xf32> to vector<1x1x128xf32>
    %201 = vector.shape_cast %196 : vector<2x16x128xf32> to vector<32x128xf32>
    %202 = arith.truncf %201 : vector<32x128xf32> to vector<32x128xbf16>
    %cst_128 = arith.constant dense<0.000000e+00> : vector<8x128xf32>
    %203 = tpu.matmul %0, %202, %cst_128 {dimension_numbers = #tpu.dot_dimension_numbers<[1], [0], [0], [1], [0, 0, 1, 1], [], []>} : vector<8x32xbf16>, vector<32x128xbf16>, vector<8x128xf32> -> vector<8x128xf32>
    %204 = vector.extract_strided_slice %203 {offsets = [0, 0], sizes = [1, 128], strides = [1, 1]} : vector<8x128xf32> to vector<1x128xf32>
    %cst_129 = arith.constant 3.125000e-02 : f32
    %205 = vector.broadcast %cst_129 : f32 to vector<1x128xf32>
    %206 = arith.mulf %204, %205 : vector<1x128xf32>
    %207 = vector.broadcast %206 : vector<1x128xf32> to vector<32x128xf32>
    %208 = arith.subf %201, %207 : vector<32x128xf32>
    %209 = arith.mulf %208, %208 : vector<32x128xf32>
    %210 = arith.truncf %209 : vector<32x128xf32> to vector<32x128xbf16>
    %cst_130 = arith.constant dense<0.000000e+00> : vector<8x128xf32>
    %211 = tpu.matmul %0, %210, %cst_130 {dimension_numbers = #tpu.dot_dimension_numbers<[1], [0], [0], [1], [0, 0, 1, 1], [], []>} : vector<8x32xbf16>, vector<32x128xbf16>, vector<8x128xf32> -> vector<8x128xf32>
    %212 = vector.extract_strided_slice %211 {offsets = [0, 0], sizes = [1, 128], strides = [1, 1]} : vector<8x128xf32> to vector<1x128xf32>
    %cst_131 = arith.constant 3.125000e-02 : f32
    %213 = vector.broadcast %cst_131 : f32 to vector<1x128xf32>
    %214 = arith.mulf %212, %213 : vector<1x128xf32>
    %cst_132 = arith.constant 0.000000e+00 : f32
    %215 = vector.broadcast %cst_132 : f32 to vector<1x128xf32>
    %216 = arith.maximumf %214, %215 : vector<1x128xf32>
    %217 = vector.shape_cast %198 : vector<1x1x128xf32> to vector<1x128xf32>
    %cst_133 = arith.constant 9.99999974E-6 : f32
    %218 = vector.broadcast %cst_133 : f32 to vector<1x128xf32>
    %219 = arith.addf %216, %218 : vector<1x128xf32>
    %220 = math.rsqrt %219 : vector<1x128xf32>
    %221 = arith.mulf %217, %220 : vector<1x128xf32>
    %222 = vector.broadcast %221 : vector<1x128xf32> to vector<32x128xf32>
    %223 = arith.mulf %208, %222 : vector<32x128xf32>
    %224 = vector.shape_cast %200 : vector<1x1x128xf32> to vector<1x128xf32>
    %225 = vector.broadcast %224 : vector<1x128xf32> to vector<32x128xf32>
    %226 = arith.addf %223, %225 : vector<32x128xf32>
    %227 = vector.shape_cast %226 : vector<32x128xf32> to vector<2x16x128xf32>
    %228 = arith.truncf %227 : vector<2x16x128xf32> to vector<2x16x128xbf16>
    %229 = vector.shape_cast %228 : vector<2x16x128xbf16> to vector<32x128xbf16>
    %c256_134 = arith.constant 256 : index
    %c0_135 = arith.constant 0 : index
    %230 = vector.load %arg7[%c256_134, %c0_135] : memref<1024x128xbf16, #tpu.memory_space<vmem>>, vector<128x128xbf16>
    %cst_136 = arith.constant dense<0.000000e+00> : vector<32x128xf32>
    %231 = tpu.matmul %229, %230, %cst_136 {dimension_numbers = #tpu.dot_dimension_numbers<[1], [0], [0], [1], [0, 0, 1, 1], [], []>} : vector<32x128xbf16>, vector<128x128xbf16>, vector<32x128xf32> -> vector<32x128xf32>
    %232 = vector.shape_cast %231 : vector<32x128xf32> to vector<2x16x128xf32>
    %c0_137 = arith.constant 0 : index
    %c0_138 = arith.constant 0 : index
    %c0_139 = arith.constant 0 : index
    %233 = vector.load %arg17[%c0_137, %c0_138, %c0_139] : memref<2x16x128xf32, #tpu.memory_space<vmem>>, vector<2x16x128xf32>
    %234 = arith.addf %233, %232 : vector<2x16x128xf32>
    %c0_140 = arith.constant 0 : index
    %c0_141 = arith.constant 0 : index
    %c0_142 = arith.constant 0 : index
    %235 = vector.load %arg17[%c0_140, %c0_141, %c0_142] : memref<2x16x128xf32, #tpu.memory_space<vmem>>, vector<2x16x128xf32>
    tpu.vector_store %arg17[%c0_140, %c0_141, %c0_142], %234 {strides = array<i32>} : memref<2x16x128xf32, #tpu.memory_space<vmem>>, vector<2x16x128xf32>,
    %c0_143 = arith.constant 0 : index
    %c0_144 = arith.constant 0 : index
    %c384 = arith.constant 384 : index
    %236 = vector.load %arg0[%c0_143, %c0_144, %c384] : memref<2x16x1024xbf16, #tpu.memory_space<vmem>>, vector<2x16x128xbf16>
    %237 = arith.extf %236 : vector<2x16x128xbf16> to vector<2x16x128xf32>
    %238 = vector.extract_strided_slice %4 {offsets = [0, 0, 384], sizes = [1, 1, 128], strides = [1, 1, 1]} : vector<1x1x1024xf32> to vector<1x1x128xf32>
    %239 = vector.extract_strided_slice %5 {offsets = [0, 0, 384], sizes = [1, 1, 128], strides = [1, 1, 1]} : vector<1x1x1024xf32> to vector<1x1x128xf32>
    %240 = vector.shape_cast %237 : vector<2x16x128xf32> to vector<32x128xf32>
    %241 = arith.truncf %240 : vector<32x128xf32> to vector<32x128xbf16>
    %cst_145 = arith.constant dense<0.000000e+00> : vector<8x128xf32>
    %242 = tpu.matmul %0, %241, %cst_145 {dimension_numbers = #tpu.dot_dimension_numbers<[1], [0], [0], [1], [0, 0, 1, 1], [], []>} : vector<8x32xbf16>, vector<32x128xbf16>, vector<8x128xf32> -> vector<8x128xf32>
    %243 = vector.extract_strided_slice %242 {offsets = [0, 0], sizes = [1, 128], strides = [1, 1]} : vector<8x128xf32> to vector<1x128xf32>
    %cst_146 = arith.constant 3.125000e-02 : f32
    %244 = vector.broadcast %cst_146 : f32 to vector<1x128xf32>
    %245 = arith.mulf %243, %244 : vector<1x128xf32>
    %246 = vector.broadcast %245 : vector<1x128xf32> to vector<32x128xf32>
    %247 = arith.subf %240, %246 : vector<32x128xf32>
    %248 = arith.mulf %247, %247 : vector<32x128xf32>
    %249 = arith.truncf %248 : vector<32x128xf32> to vector<32x128xbf16>
    %cst_147 = arith.constant dense<0.000000e+00> : vector<8x128xf32>
    %250 = tpu.matmul %0, %249, %cst_147 {dimension_numbers = #tpu.dot_dimension_numbers<[1], [0], [0], [1], [0, 0, 1, 1], [], []>} : vector<8x32xbf16>, vector<32x128xbf16>, vector<8x128xf32> -> vector<8x128xf32>
    %251 = vector.extract_strided_slice %250 {offsets = [0, 0], sizes = [1, 128], strides = [1, 1]} : vector<8x128xf32> to vector<1x128xf32>
    %cst_148 = arith.constant 3.125000e-02 : f32
    %252 = vector.broadcast %cst_148 : f32 to vector<1x128xf32>
    %253 = arith.mulf %251, %252 : vector<1x128xf32>
    %cst_149 = arith.constant 0.000000e+00 : f32
    %254 = vector.broadcast %cst_149 : f32 to vector<1x128xf32>
    %255 = arith.maximumf %253, %254 : vector<1x128xf32>
    %256 = vector.shape_cast %238 : vector<1x1x128xf32> to vector<1x128xf32>
    %cst_150 = arith.constant 9.99999974E-6 : f32
    %257 = vector.broadcast %cst_150 : f32 to vector<1x128xf32>
    %258 = arith.addf %255, %257 : vector<1x128xf32>
    %259 = math.rsqrt %258 : vector<1x128xf32>
    %260 = arith.mulf %256, %259 : vector<1x128xf32>
    %261 = vector.broadcast %260 : vector<1x128xf32> to vector<32x128xf32>
    %262 = arith.mulf %247, %261 : vector<32x128xf32>
    %263 = vector.shape_cast %239 : vector<1x1x128xf32> to vector<1x128xf32>
    %264 = vector.broadcast %263 : vector<1x128xf32> to vector<32x128xf32>
    %265 = arith.addf %262, %264 : vector<32x128xf32>
    %266 = vector.shape_cast %265 : vector<32x128xf32> to vector<2x16x128xf32>
    %267 = arith.addf %266, %227 : vector<2x16x128xf32>
    %268 = arith.truncf %267 : vector<2x16x128xf32> to vector<2x16x128xbf16>
    %c0_151 = arith.constant 0 : index
    %c2_152 = arith.constant 2 : index
    %c0_153 = arith.constant 0 : index
    %269 = vector.load %arg16[%c0_151, %c2_152, %c0_153] : memref<2x20x128xbf16, #tpu.memory_space<vmem>>, vector<2x16x128xbf16>
    tpu.vector_store %arg16[%c0_151, %c2_152, %c0_153], %268 {strides = array<i32>} : memref<2x20x128xbf16, #tpu.memory_space<vmem>>, vector<2x16x128xbf16>,
    %c0_154 = arith.constant 0 : index
    %c0_155 = arith.constant 0 : index
    %c0_156 = arith.constant 0 : index
    %270 = vector.load %arg16[%c0_154, %c0_155, %c0_156] : memref<2x20x128xbf16, #tpu.memory_space<vmem>>, vector<2x16x128xbf16>
    %271 = vector.shape_cast %270 : vector<2x16x128xbf16> to vector<32x128xbf16>
    %c2_157 = arith.constant 2 : index
    %c0_158 = arith.constant 0 : index
    %c0_159 = arith.constant 0 : index
    %272 = vector.load %arg3[%c2_157, %c0_158, %c0_159] : memref<7x384x128xbf16, #tpu.memory_space<vmem>>, vector<1x128x128xbf16>
    %273 = vector.shape_cast %272 : vector<1x128x128xbf16> to vector<128x128xbf16>
    %cst_160 = arith.constant dense<0.000000e+00> : vector<32x128xf32>
    %274 = tpu.matmul %271, %273, %cst_160 {dimension_numbers = #tpu.dot_dimension_numbers<[1], [0], [0], [1], [0, 0, 1, 1], [], []>} : vector<32x128xbf16>, vector<128x128xbf16>, vector<32x128xf32> -> vector<32x128xf32>
    %c0_161 = arith.constant 0 : index
    %c2_162 = arith.constant 2 : index
    %c0_163 = arith.constant 0 : index
    %275 = vector.load %arg16[%c0_161, %c2_162, %c0_163] : memref<2x20x128xbf16, #tpu.memory_space<vmem>>, vector<2x16x128xbf16>
    %276 = vector.shape_cast %275 : vector<2x16x128xbf16> to vector<32x128xbf16>
    %c2_164 = arith.constant 2 : index
    %c128_165 = arith.constant 128 : index
    %c0_166 = arith.constant 0 : index
    %277 = vector.load %arg3[%c2_164, %c128_165, %c0_166] : memref<7x384x128xbf16, #tpu.memory_space<vmem>>, vector<1x128x128xbf16>
    %278 = vector.shape_cast %277 : vector<1x128x128xbf16> to vector<128x128xbf16>
    %cst_167 = arith.constant dense<0.000000e+00> : vector<32x128xf32>
    %279 = tpu.matmul %276, %278, %cst_167 {dimension_numbers = #tpu.dot_dimension_numbers<[1], [0], [0], [1], [0, 0, 1, 1], [], []>} : vector<32x128xbf16>, vector<128x128xbf16>, vector<32x128xf32> -> vector<32x128xf32>
    %280 = arith.addf %274, %279 : vector<32x128xf32>
    %c0_168 = arith.constant 0 : index
    %c4_169 = arith.constant 4 : index
    %c0_170 = arith.constant 0 : index
    %281 = vector.load %arg16[%c0_168, %c4_169, %c0_170] : memref<2x20x128xbf16, #tpu.memory_space<vmem>>, vector<2x16x128xbf16>
    %282 = vector.shape_cast %281 : vector<2x16x128xbf16> to vector<32x128xbf16>
    %c2_171 = arith.constant 2 : index
    %c256_172 = arith.constant 256 : index
    %c0_173 = arith.constant 0 : index
    %283 = vector.load %arg3[%c2_171, %c256_172, %c0_173] : memref<7x384x128xbf16, #tpu.memory_space<vmem>>, vector<1x128x128xbf16>
    %284 = vector.shape_cast %283 : vector<1x128x128xbf16> to vector<128x128xbf16>
    %cst_174 = arith.constant dense<0.000000e+00> : vector<32x128xf32>
    %285 = tpu.matmul %282, %284, %cst_174 {dimension_numbers = #tpu.dot_dimension_numbers<[1], [0], [0], [1], [0, 0, 1, 1], [], []>} : vector<32x128xbf16>, vector<128x128xbf16>, vector<32x128xf32> -> vector<32x128xf32>
    %286 = arith.addf %280, %285 : vector<32x128xf32>
    %287 = vector.shape_cast %286 : vector<32x128xf32> to vector<2x16x128xf32>
    %c2_175 = arith.constant 2 : index
    %c0_176 = arith.constant 0 : index
    %c0_177 = arith.constant 0 : index
    %c0_178 = arith.constant 0 : index
    %288 = vector.load %arg4[%c2_175, %c0_176, %c0_177, %c0_178] : memref<7x1x1x128xf32, #tpu.memory_space<vmem>>, vector<1x1x1x128xf32>
    %289 = vector.shape_cast %288 : vector<1x1x1x128xf32> to vector<1x1x128xf32>
    %290 = vector.broadcast %289 : vector<1x1x128xf32> to vector<2x16x128xf32>
    %291 = arith.addf %287, %290 : vector<2x16x128xf32>
    %cst_179 = arith.constant 0.000000e+00 : f32
    %292 = vector.broadcast %cst_179 : f32 to vector<2x16x128xf32>
    %293 = arith.maximumf %291, %292 : vector<2x16x128xf32>
    %c2_180 = arith.constant 2 : index
    %c0_181 = arith.constant 0 : index
    %c0_182 = arith.constant 0 : index
    %c0_183 = arith.constant 0 : index
    %294 = vector.load %arg5[%c2_180, %c0_181, %c0_182, %c0_183] : memref<7x1x1x128xf32, #tpu.memory_space<vmem>>, vector<1x1x1x128xf32>
    %295 = vector.shape_cast %294 : vector<1x1x1x128xf32> to vector<1x1x128xf32>
    %c2_184 = arith.constant 2 : index
    %c0_185 = arith.constant 0 : index
    %c0_186 = arith.constant 0 : index
    %c0_187 = arith.constant 0 : index
    %296 = vector.load %arg6[%c2_184, %c0_185, %c0_186, %c0_187] : memref<7x1x1x128xf32, #tpu.memory_space<vmem>>, vector<1x1x1x128xf32>
    %297 = vector.shape_cast %296 : vector<1x1x1x128xf32> to vector<1x1x128xf32>
    %298 = vector.shape_cast %293 : vector<2x16x128xf32> to vector<32x128xf32>
    %299 = arith.truncf %298 : vector<32x128xf32> to vector<32x128xbf16>
    %cst_188 = arith.constant dense<0.000000e+00> : vector<8x128xf32>
    %300 = tpu.matmul %0, %299, %cst_188 {dimension_numbers = #tpu.dot_dimension_numbers<[1], [0], [0], [1], [0, 0, 1, 1], [], []>} : vector<8x32xbf16>, vector<32x128xbf16>, vector<8x128xf32> -> vector<8x128xf32>
    %301 = vector.extract_strided_slice %300 {offsets = [0, 0], sizes = [1, 128], strides = [1, 1]} : vector<8x128xf32> to vector<1x128xf32>
    %cst_189 = arith.constant 3.125000e-02 : f32
    %302 = vector.broadcast %cst_189 : f32 to vector<1x128xf32>
    %303 = arith.mulf %301, %302 : vector<1x128xf32>
    %304 = vector.broadcast %303 : vector<1x128xf32> to vector<32x128xf32>
    %305 = arith.subf %298, %304 : vector<32x128xf32>
    %306 = arith.mulf %305, %305 : vector<32x128xf32>
    %307 = arith.truncf %306 : vector<32x128xf32> to vector<32x128xbf16>
    %cst_190 = arith.constant dense<0.000000e+00> : vector<8x128xf32>
    %308 = tpu.matmul %0, %307, %cst_190 {dimension_numbers = #tpu.dot_dimension_numbers<[1], [0], [0], [1], [0, 0, 1, 1], [], []>} : vector<8x32xbf16>, vector<32x128xbf16>, vector<8x128xf32> -> vector<8x128xf32>
    %309 = vector.extract_strided_slice %308 {offsets = [0, 0], sizes = [1, 128], strides = [1, 1]} : vector<8x128xf32> to vector<1x128xf32>
    %cst_191 = arith.constant 3.125000e-02 : f32
    %310 = vector.broadcast %cst_191 : f32 to vector<1x128xf32>
    %311 = arith.mulf %309, %310 : vector<1x128xf32>
    %cst_192 = arith.constant 0.000000e+00 : f32
    %312 = vector.broadcast %cst_192 : f32 to vector<1x128xf32>
    %313 = arith.maximumf %311, %312 : vector<1x128xf32>
    %314 = vector.shape_cast %295 : vector<1x1x128xf32> to vector<1x128xf32>
    %cst_193 = arith.constant 9.99999974E-6 : f32
    %315 = vector.broadcast %cst_193 : f32 to vector<1x128xf32>
    %316 = arith.addf %313, %315 : vector<1x128xf32>
    %317 = math.rsqrt %316 : vector<1x128xf32>
    %318 = arith.mulf %314, %317 : vector<1x128xf32>
    %319 = vector.broadcast %318 : vector<1x128xf32> to vector<32x128xf32>
    %320 = arith.mulf %305, %319 : vector<32x128xf32>
    %321 = vector.shape_cast %297 : vector<1x1x128xf32> to vector<1x128xf32>
    %322 = vector.broadcast %321 : vector<1x128xf32> to vector<32x128xf32>
    %323 = arith.addf %320, %322 : vector<32x128xf32>
    %324 = vector.shape_cast %323 : vector<32x128xf32> to vector<2x16x128xf32>
    %325 = arith.truncf %324 : vector<2x16x128xf32> to vector<2x16x128xbf16>
    %326 = vector.shape_cast %325 : vector<2x16x128xbf16> to vector<32x128xbf16>
    %c384_194 = arith.constant 384 : index
    %c0_195 = arith.constant 0 : index
    %327 = vector.load %arg7[%c384_194, %c0_195] : memref<1024x128xbf16, #tpu.memory_space<vmem>>, vector<128x128xbf16>
    %cst_196 = arith.constant dense<0.000000e+00> : vector<32x128xf32>
    %328 = tpu.matmul %326, %327, %cst_196 {dimension_numbers = #tpu.dot_dimension_numbers<[1], [0], [0], [1], [0, 0, 1, 1], [], []>} : vector<32x128xbf16>, vector<128x128xbf16>, vector<32x128xf32> -> vector<32x128xf32>
    %329 = vector.shape_cast %328 : vector<32x128xf32> to vector<2x16x128xf32>
    %c0_197 = arith.constant 0 : index
    %c0_198 = arith.constant 0 : index
    %c0_199 = arith.constant 0 : index
    %330 = vector.load %arg17[%c0_197, %c0_198, %c0_199] : memref<2x16x128xf32, #tpu.memory_space<vmem>>, vector<2x16x128xf32>
    %331 = arith.addf %330, %329 : vector<2x16x128xf32>
    %c0_200 = arith.constant 0 : index
    %c0_201 = arith.constant 0 : index
    %c0_202 = arith.constant 0 : index
    %332 = vector.load %arg17[%c0_200, %c0_201, %c0_202] : memref<2x16x128xf32, #tpu.memory_space<vmem>>, vector<2x16x128xf32>
    tpu.vector_store %arg17[%c0_200, %c0_201, %c0_202], %331 {strides = array<i32>} : memref<2x16x128xf32, #tpu.memory_space<vmem>>, vector<2x16x128xf32>,
    %c0_203 = arith.constant 0 : index
    %c0_204 = arith.constant 0 : index
    %c512 = arith.constant 512 : index
    %333 = vector.load %arg0[%c0_203, %c0_204, %c512] : memref<2x16x1024xbf16, #tpu.memory_space<vmem>>, vector<2x16x128xbf16>
    %334 = arith.extf %333 : vector<2x16x128xbf16> to vector<2x16x128xf32>
    %335 = vector.extract_strided_slice %4 {offsets = [0, 0, 512], sizes = [1, 1, 128], strides = [1, 1, 1]} : vector<1x1x1024xf32> to vector<1x1x128xf32>
    %336 = vector.extract_strided_slice %5 {offsets = [0, 0, 512], sizes = [1, 1, 128], strides = [1, 1, 1]} : vector<1x1x1024xf32> to vector<1x1x128xf32>
    %337 = vector.shape_cast %334 : vector<2x16x128xf32> to vector<32x128xf32>
    %338 = arith.truncf %337 : vector<32x128xf32> to vector<32x128xbf16>
    %cst_205 = arith.constant dense<0.000000e+00> : vector<8x128xf32>
    %339 = tpu.matmul %0, %338, %cst_205 {dimension_numbers = #tpu.dot_dimension_numbers<[1], [0], [0], [1], [0, 0, 1, 1], [], []>} : vector<8x32xbf16>, vector<32x128xbf16>, vector<8x128xf32> -> vector<8x128xf32>
    %340 = vector.extract_strided_slice %339 {offsets = [0, 0], sizes = [1, 128], strides = [1, 1]} : vector<8x128xf32> to vector<1x128xf32>
    %cst_206 = arith.constant 3.125000e-02 : f32
    %341 = vector.broadcast %cst_206 : f32 to vector<1x128xf32>
    %342 = arith.mulf %340, %341 : vector<1x128xf32>
    %343 = vector.broadcast %342 : vector<1x128xf32> to vector<32x128xf32>
    %344 = arith.subf %337, %343 : vector<32x128xf32>
    %345 = arith.mulf %344, %344 : vector<32x128xf32>
    %346 = arith.truncf %345 : vector<32x128xf32> to vector<32x128xbf16>
    %cst_207 = arith.constant dense<0.000000e+00> : vector<8x128xf32>
    %347 = tpu.matmul %0, %346, %cst_207 {dimension_numbers = #tpu.dot_dimension_numbers<[1], [0], [0], [1], [0, 0, 1, 1], [], []>} : vector<8x32xbf16>, vector<32x128xbf16>, vector<8x128xf32> -> vector<8x128xf32>
    %348 = vector.extract_strided_slice %347 {offsets = [0, 0], sizes = [1, 128], strides = [1, 1]} : vector<8x128xf32> to vector<1x128xf32>
    %cst_208 = arith.constant 3.125000e-02 : f32
    %349 = vector.broadcast %cst_208 : f32 to vector<1x128xf32>
    %350 = arith.mulf %348, %349 : vector<1x128xf32>
    %cst_209 = arith.constant 0.000000e+00 : f32
    %351 = vector.broadcast %cst_209 : f32 to vector<1x128xf32>
    %352 = arith.maximumf %350, %351 : vector<1x128xf32>
    %353 = vector.shape_cast %335 : vector<1x1x128xf32> to vector<1x128xf32>
    %cst_210 = arith.constant 9.99999974E-6 : f32
    %354 = vector.broadcast %cst_210 : f32 to vector<1x128xf32>
    %355 = arith.addf %352, %354 : vector<1x128xf32>
    %356 = math.rsqrt %355 : vector<1x128xf32>
    %357 = arith.mulf %353, %356 : vector<1x128xf32>
    %358 = vector.broadcast %357 : vector<1x128xf32> to vector<32x128xf32>
    %359 = arith.mulf %344, %358 : vector<32x128xf32>
    %360 = vector.shape_cast %336 : vector<1x1x128xf32> to vector<1x128xf32>
    %361 = vector.broadcast %360 : vector<1x128xf32> to vector<32x128xf32>
    %362 = arith.addf %359, %361 : vector<32x128xf32>
    %363 = vector.shape_cast %362 : vector<32x128xf32> to vector<2x16x128xf32>
    %364 = arith.addf %363, %324 : vector<2x16x128xf32>
    %365 = arith.truncf %364 : vector<2x16x128xf32> to vector<2x16x128xbf16>
    %c0_211 = arith.constant 0 : index
    %c2_212 = arith.constant 2 : index
    %c0_213 = arith.constant 0 : index
    %366 = vector.load %arg16[%c0_211, %c2_212, %c0_213] : memref<2x20x128xbf16, #tpu.memory_space<vmem>>, vector<2x16x128xbf16>
    tpu.vector_store %arg16[%c0_211, %c2_212, %c0_213], %365 {strides = array<i32>} : memref<2x20x128xbf16, #tpu.memory_space<vmem>>, vector<2x16x128xbf16>,
    %c0_214 = arith.constant 0 : index
    %c0_215 = arith.constant 0 : index
    %c0_216 = arith.constant 0 : index
    %367 = vector.load %arg16[%c0_214, %c0_215, %c0_216] : memref<2x20x128xbf16, #tpu.memory_space<vmem>>, vector<2x16x128xbf16>
    %368 = vector.shape_cast %367 : vector<2x16x128xbf16> to vector<32x128xbf16>
    %c3 = arith.constant 3 : index
    %c0_217 = arith.constant 0 : index
    %c0_218 = arith.constant 0 : index
    %369 = vector.load %arg3[%c3, %c0_217, %c0_218] : memref<7x384x128xbf16, #tpu.memory_space<vmem>>, vector<1x128x128xbf16>
    %370 = vector.shape_cast %369 : vector<1x128x128xbf16> to vector<128x128xbf16>
    %cst_219 = arith.constant dense<0.000000e+00> : vector<32x128xf32>
    %371 = tpu.matmul %368, %370, %cst_219 {dimension_numbers = #tpu.dot_dimension_numbers<[1], [0], [0], [1], [0, 0, 1, 1], [], []>} : vector<32x128xbf16>, vector<128x128xbf16>, vector<32x128xf32> -> vector<32x128xf32>
    %c0_220 = arith.constant 0 : index
    %c2_221 = arith.constant 2 : index
    %c0_222 = arith.constant 0 : index
    %372 = vector.load %arg16[%c0_220, %c2_221, %c0_222] : memref<2x20x128xbf16, #tpu.memory_space<vmem>>, vector<2x16x128xbf16>
    %373 = vector.shape_cast %372 : vector<2x16x128xbf16> to vector<32x128xbf16>
    %c3_223 = arith.constant 3 : index
    %c128_224 = arith.constant 128 : index
    %c0_225 = arith.constant 0 : index
    %374 = vector.load %arg3[%c3_223, %c128_224, %c0_225] : memref<7x384x128xbf16, #tpu.memory_space<vmem>>, vector<1x128x128xbf16>
    %375 = vector.shape_cast %374 : vector<1x128x128xbf16> to vector<128x128xbf16>
    %cst_226 = arith.constant dense<0.000000e+00> : vector<32x128xf32>
    %376 = tpu.matmul %373, %375, %cst_226 {dimension_numbers = #tpu.dot_dimension_numbers<[1], [0], [0], [1], [0, 0, 1, 1], [], []>} : vector<32x128xbf16>, vector<128x128xbf16>, vector<32x128xf32> -> vector<32x128xf32>
    %377 = arith.addf %371, %376 : vector<32x128xf32>
    %c0_227 = arith.constant 0 : index
    %c4_228 = arith.constant 4 : index
    %c0_229 = arith.constant 0 : index
    %378 = vector.load %arg16[%c0_227, %c4_228, %c0_229] : memref<2x20x128xbf16, #tpu.memory_space<vmem>>, vector<2x16x128xbf16>
    %379 = vector.shape_cast %378 : vector<2x16x128xbf16> to vector<32x128xbf16>
    %c3_230 = arith.constant 3 : index
    %c256_231 = arith.constant 256 : index
    %c0_232 = arith.constant 0 : index
    %380 = vector.load %arg3[%c3_230, %c256_231, %c0_232] : memref<7x384x128xbf16, #tpu.memory_space<vmem>>, vector<1x128x128xbf16>
    %381 = vector.shape_cast %380 : vector<1x128x128xbf16> to vector<128x128xbf16>
    %cst_233 = arith.constant dense<0.000000e+00> : vector<32x128xf32>
    %382 = tpu.matmul %379, %381, %cst_233 {dimension_numbers = #tpu.dot_dimension_numbers<[1], [0], [0], [1], [0, 0, 1, 1], [], []>} : vector<32x128xbf16>, vector<128x128xbf16>, vector<32x128xf32> -> vector<32x128xf32>
    %383 = arith.addf %377, %382 : vector<32x128xf32>
    %384 = vector.shape_cast %383 : vector<32x128xf32> to vector<2x16x128xf32>
    %c3_234 = arith.constant 3 : index
    %c0_235 = arith.constant 0 : index
    %c0_236 = arith.constant 0 : index
    %c0_237 = arith.constant 0 : index
    %385 = vector.load %arg4[%c3_234, %c0_235, %c0_236, %c0_237] : memref<7x1x1x128xf32, #tpu.memory_space<vmem>>, vector<1x1x1x128xf32>
    %386 = vector.shape_cast %385 : vector<1x1x1x128xf32> to vector<1x1x128xf32>
    %387 = vector.broadcast %386 : vector<1x1x128xf32> to vector<2x16x128xf32>
    %388 = arith.addf %384, %387 : vector<2x16x128xf32>
    %cst_238 = arith.constant 0.000000e+00 : f32
    %389 = vector.broadcast %cst_238 : f32 to vector<2x16x128xf32>
    %390 = arith.maximumf %388, %389 : vector<2x16x128xf32>
    %c3_239 = arith.constant 3 : index
    %c0_240 = arith.constant 0 : index
    %c0_241 = arith.constant 0 : index
    %c0_242 = arith.constant 0 : index
    %391 = vector.load %arg5[%c3_239, %c0_240, %c0_241, %c0_242] : memref<7x1x1x128xf32, #tpu.memory_space<vmem>>, vector<1x1x1x128xf32>
    %392 = vector.shape_cast %391 : vector<1x1x1x128xf32> to vector<1x1x128xf32>
    %c3_243 = arith.constant 3 : index
    %c0_244 = arith.constant 0 : index
    %c0_245 = arith.constant 0 : index
    %c0_246 = arith.constant 0 : index
    %393 = vector.load %arg6[%c3_243, %c0_244, %c0_245, %c0_246] : memref<7x1x1x128xf32, #tpu.memory_space<vmem>>, vector<1x1x1x128xf32>
    %394 = vector.shape_cast %393 : vector<1x1x1x128xf32> to vector<1x1x128xf32>
    %395 = vector.shape_cast %390 : vector<2x16x128xf32> to vector<32x128xf32>
    %396 = arith.truncf %395 : vector<32x128xf32> to vector<32x128xbf16>
    %cst_247 = arith.constant dense<0.000000e+00> : vector<8x128xf32>
    %397 = tpu.matmul %0, %396, %cst_247 {dimension_numbers = #tpu.dot_dimension_numbers<[1], [0], [0], [1], [0, 0, 1, 1], [], []>} : vector<8x32xbf16>, vector<32x128xbf16>, vector<8x128xf32> -> vector<8x128xf32>
    %398 = vector.extract_strided_slice %397 {offsets = [0, 0], sizes = [1, 128], strides = [1, 1]} : vector<8x128xf32> to vector<1x128xf32>
    %cst_248 = arith.constant 3.125000e-02 : f32
    %399 = vector.broadcast %cst_248 : f32 to vector<1x128xf32>
    %400 = arith.mulf %398, %399 : vector<1x128xf32>
    %401 = vector.broadcast %400 : vector<1x128xf32> to vector<32x128xf32>
    %402 = arith.subf %395, %401 : vector<32x128xf32>
    %403 = arith.mulf %402, %402 : vector<32x128xf32>
    %404 = arith.truncf %403 : vector<32x128xf32> to vector<32x128xbf16>
    %cst_249 = arith.constant dense<0.000000e+00> : vector<8x128xf32>
    %405 = tpu.matmul %0, %404, %cst_249 {dimension_numbers = #tpu.dot_dimension_numbers<[1], [0], [0], [1], [0, 0, 1, 1], [], []>} : vector<8x32xbf16>, vector<32x128xbf16>, vector<8x128xf32> -> vector<8x128xf32>
    %406 = vector.extract_strided_slice %405 {offsets = [0, 0], sizes = [1, 128], strides = [1, 1]} : vector<8x128xf32> to vector<1x128xf32>
    %cst_250 = arith.constant 3.125000e-02 : f32
    %407 = vector.broadcast %cst_250 : f32 to vector<1x128xf32>
    %408 = arith.mulf %406, %407 : vector<1x128xf32>
    %cst_251 = arith.constant 0.000000e+00 : f32
    %409 = vector.broadcast %cst_251 : f32 to vector<1x128xf32>
    %410 = arith.maximumf %408, %409 : vector<1x128xf32>
    %411 = vector.shape_cast %392 : vector<1x1x128xf32> to vector<1x128xf32>
    %cst_252 = arith.constant 9.99999974E-6 : f32
    %412 = vector.broadcast %cst_252 : f32 to vector<1x128xf32>
    %413 = arith.addf %410, %412 : vector<1x128xf32>
    %414 = math.rsqrt %413 : vector<1x128xf32>
    %415 = arith.mulf %411, %414 : vector<1x128xf32>
    %416 = vector.broadcast %415 : vector<1x128xf32> to vector<32x128xf32>
    %417 = arith.mulf %402, %416 : vector<32x128xf32>
    %418 = vector.shape_cast %394 : vector<1x1x128xf32> to vector<1x128xf32>
    %419 = vector.broadcast %418 : vector<1x128xf32> to vector<32x128xf32>
    %420 = arith.addf %417, %419 : vector<32x128xf32>
    %421 = vector.shape_cast %420 : vector<32x128xf32> to vector<2x16x128xf32>
    %422 = arith.truncf %421 : vector<2x16x128xf32> to vector<2x16x128xbf16>
    %423 = vector.shape_cast %422 : vector<2x16x128xbf16> to vector<32x128xbf16>
    %c512_253 = arith.constant 512 : index
    %c0_254 = arith.constant 0 : index
    %424 = vector.load %arg7[%c512_253, %c0_254] : memref<1024x128xbf16, #tpu.memory_space<vmem>>, vector<128x128xbf16>
    %cst_255 = arith.constant dense<0.000000e+00> : vector<32x128xf32>
    %425 = tpu.matmul %423, %424, %cst_255 {dimension_numbers = #tpu.dot_dimension_numbers<[1], [0], [0], [1], [0, 0, 1, 1], [], []>} : vector<32x128xbf16>, vector<128x128xbf16>, vector<32x128xf32> -> vector<32x128xf32>
    %426 = vector.shape_cast %425 : vector<32x128xf32> to vector<2x16x128xf32>
    %c0_256 = arith.constant 0 : index
    %c0_257 = arith.constant 0 : index
    %c0_258 = arith.constant 0 : index
    %427 = vector.load %arg17[%c0_256, %c0_257, %c0_258] : memref<2x16x128xf32, #tpu.memory_space<vmem>>, vector<2x16x128xf32>
    %428 = arith.addf %427, %426 : vector<2x16x128xf32>
    %c0_259 = arith.constant 0 : index
    %c0_260 = arith.constant 0 : index
    %c0_261 = arith.constant 0 : index
    %429 = vector.load %arg17[%c0_259, %c0_260, %c0_261] : memref<2x16x128xf32, #tpu.memory_space<vmem>>, vector<2x16x128xf32>
    tpu.vector_store %arg17[%c0_259, %c0_260, %c0_261], %428 {strides = array<i32>} : memref<2x16x128xf32, #tpu.memory_space<vmem>>, vector<2x16x128xf32>,
    %c0_262 = arith.constant 0 : index
    %c0_263 = arith.constant 0 : index
    %c640 = arith.constant 640 : index
    %430 = vector.load %arg0[%c0_262, %c0_263, %c640] : memref<2x16x1024xbf16, #tpu.memory_space<vmem>>, vector<2x16x128xbf16>
    %431 = arith.extf %430 : vector<2x16x128xbf16> to vector<2x16x128xf32>
    %432 = vector.extract_strided_slice %4 {offsets = [0, 0, 640], sizes = [1, 1, 128], strides = [1, 1, 1]} : vector<1x1x1024xf32> to vector<1x1x128xf32>
    %433 = vector.extract_strided_slice %5 {offsets = [0, 0, 640], sizes = [1, 1, 128], strides = [1, 1, 1]} : vector<1x1x1024xf32> to vector<1x1x128xf32>
    %434 = vector.shape_cast %431 : vector<2x16x128xf32> to vector<32x128xf32>
    %435 = arith.truncf %434 : vector<32x128xf32> to vector<32x128xbf16>
    %cst_264 = arith.constant dense<0.000000e+00> : vector<8x128xf32>
    %436 = tpu.matmul %0, %435, %cst_264 {dimension_numbers = #tpu.dot_dimension_numbers<[1], [0], [0], [1], [0, 0, 1, 1], [], []>} : vector<8x32xbf16>, vector<32x128xbf16>, vector<8x128xf32> -> vector<8x128xf32>
    %437 = vector.extract_strided_slice %436 {offsets = [0, 0], sizes = [1, 128], strides = [1, 1]} : vector<8x128xf32> to vector<1x128xf32>
    %cst_265 = arith.constant 3.125000e-02 : f32
    %438 = vector.broadcast %cst_265 : f32 to vector<1x128xf32>
    %439 = arith.mulf %437, %438 : vector<1x128xf32>
    %440 = vector.broadcast %439 : vector<1x128xf32> to vector<32x128xf32>
    %441 = arith.subf %434, %440 : vector<32x128xf32>
    %442 = arith.mulf %441, %441 : vector<32x128xf32>
    %443 = arith.truncf %442 : vector<32x128xf32> to vector<32x128xbf16>
    %cst_266 = arith.constant dense<0.000000e+00> : vector<8x128xf32>
    %444 = tpu.matmul %0, %443, %cst_266 {dimension_numbers = #tpu.dot_dimension_numbers<[1], [0], [0], [1], [0, 0, 1, 1], [], []>} : vector<8x32xbf16>, vector<32x128xbf16>, vector<8x128xf32> -> vector<8x128xf32>
    %445 = vector.extract_strided_slice %444 {offsets = [0, 0], sizes = [1, 128], strides = [1, 1]} : vector<8x128xf32> to vector<1x128xf32>
    %cst_267 = arith.constant 3.125000e-02 : f32
    %446 = vector.broadcast %cst_267 : f32 to vector<1x128xf32>
    %447 = arith.mulf %445, %446 : vector<1x128xf32>
    %cst_268 = arith.constant 0.000000e+00 : f32
    %448 = vector.broadcast %cst_268 : f32 to vector<1x128xf32>
    %449 = arith.maximumf %447, %448 : vector<1x128xf32>
    %450 = vector.shape_cast %432 : vector<1x1x128xf32> to vector<1x128xf32>
    %cst_269 = arith.constant 9.99999974E-6 : f32
    %451 = vector.broadcast %cst_269 : f32 to vector<1x128xf32>
    %452 = arith.addf %449, %451 : vector<1x128xf32>
    %453 = math.rsqrt %452 : vector<1x128xf32>
    %454 = arith.mulf %450, %453 : vector<1x128xf32>
    %455 = vector.broadcast %454 : vector<1x128xf32> to vector<32x128xf32>
    %456 = arith.mulf %441, %455 : vector<32x128xf32>
    %457 = vector.shape_cast %433 : vector<1x1x128xf32> to vector<1x128xf32>
    %458 = vector.broadcast %457 : vector<1x128xf32> to vector<32x128xf32>
    %459 = arith.addf %456, %458 : vector<32x128xf32>
    %460 = vector.shape_cast %459 : vector<32x128xf32> to vector<2x16x128xf32>
    %461 = arith.addf %460, %421 : vector<2x16x128xf32>
    %462 = arith.truncf %461 : vector<2x16x128xf32> to vector<2x16x128xbf16>
    %c0_270 = arith.constant 0 : index
    %c2_271 = arith.constant 2 : index
    %c0_272 = arith.constant 0 : index
    %463 = vector.load %arg16[%c0_270, %c2_271, %c0_272] : memref<2x20x128xbf16, #tpu.memory_space<vmem>>, vector<2x16x128xbf16>
    tpu.vector_store %arg16[%c0_270, %c2_271, %c0_272], %462 {strides = array<i32>} : memref<2x20x128xbf16, #tpu.memory_space<vmem>>, vector<2x16x128xbf16>,
    %c0_273 = arith.constant 0 : index
    %c0_274 = arith.constant 0 : index
    %c0_275 = arith.constant 0 : index
    %464 = vector.load %arg16[%c0_273, %c0_274, %c0_275] : memref<2x20x128xbf16, #tpu.memory_space<vmem>>, vector<2x16x128xbf16>
    %465 = vector.shape_cast %464 : vector<2x16x128xbf16> to vector<32x128xbf16>
    %c4_276 = arith.constant 4 : index
    %c0_277 = arith.constant 0 : index
    %c0_278 = arith.constant 0 : index
    %466 = vector.load %arg3[%c4_276, %c0_277, %c0_278] : memref<7x384x128xbf16, #tpu.memory_space<vmem>>, vector<1x128x128xbf16>
    %467 = vector.shape_cast %466 : vector<1x128x128xbf16> to vector<128x128xbf16>
    %cst_279 = arith.constant dense<0.000000e+00> : vector<32x128xf32>
    %468 = tpu.matmul %465, %467, %cst_279 {dimension_numbers = #tpu.dot_dimension_numbers<[1], [0], [0], [1], [0, 0, 1, 1], [], []>} : vector<32x128xbf16>, vector<128x128xbf16>, vector<32x128xf32> -> vector<32x128xf32>
    %c0_280 = arith.constant 0 : index
    %c2_281 = arith.constant 2 : index
    %c0_282 = arith.constant 0 : index
    %469 = vector.load %arg16[%c0_280, %c2_281, %c0_282] : memref<2x20x128xbf16, #tpu.memory_space<vmem>>, vector<2x16x128xbf16>
    %470 = vector.shape_cast %469 : vector<2x16x128xbf16> to vector<32x128xbf16>
    %c4_283 = arith.constant 4 : index
    %c128_284 = arith.constant 128 : index
    %c0_285 = arith.constant 0 : index
    %471 = vector.load %arg3[%c4_283, %c128_284, %c0_285] : memref<7x384x128xbf16, #tpu.memory_space<vmem>>, vector<1x128x128xbf16>
    %472 = vector.shape_cast %471 : vector<1x128x128xbf16> to vector<128x128xbf16>
    %cst_286 = arith.constant dense<0.000000e+00> : vector<32x128xf32>
    %473 = tpu.matmul %470, %472, %cst_286 {dimension_numbers = #tpu.dot_dimension_numbers<[1], [0], [0], [1], [0, 0, 1, 1], [], []>} : vector<32x128xbf16>, vector<128x128xbf16>, vector<32x128xf32> -> vector<32x128xf32>
    %474 = arith.addf %468, %473 : vector<32x128xf32>
    %c0_287 = arith.constant 0 : index
    %c4_288 = arith.constant 4 : index
    %c0_289 = arith.constant 0 : index
    %475 = vector.load %arg16[%c0_287, %c4_288, %c0_289] : memref<2x20x128xbf16, #tpu.memory_space<vmem>>, vector<2x16x128xbf16>
    %476 = vector.shape_cast %475 : vector<2x16x128xbf16> to vector<32x128xbf16>
    %c4_290 = arith.constant 4 : index
    %c256_291 = arith.constant 256 : index
    %c0_292 = arith.constant 0 : index
    %477 = vector.load %arg3[%c4_290, %c256_291, %c0_292] : memref<7x384x128xbf16, #tpu.memory_space<vmem>>, vector<1x128x128xbf16>
    %478 = vector.shape_cast %477 : vector<1x128x128xbf16> to vector<128x128xbf16>
    %cst_293 = arith.constant dense<0.000000e+00> : vector<32x128xf32>
    %479 = tpu.matmul %476, %478, %cst_293 {dimension_numbers = #tpu.dot_dimension_numbers<[1], [0], [0], [1], [0, 0, 1, 1], [], []>} : vector<32x128xbf16>, vector<128x128xbf16>, vector<32x128xf32> -> vector<32x128xf32>
    %480 = arith.addf %474, %479 : vector<32x128xf32>
    %481 = vector.shape_cast %480 : vector<32x128xf32> to vector<2x16x128xf32>
    %c4_294 = arith.constant 4 : index
    %c0_295 = arith.constant 0 : index
    %c0_296 = arith.constant 0 : index
    %c0_297 = arith.constant 0 : index
    %482 = vector.load %arg4[%c4_294, %c0_295, %c0_296, %c0_297] : memref<7x1x1x128xf32, #tpu.memory_space<vmem>>, vector<1x1x1x128xf32>
    %483 = vector.shape_cast %482 : vector<1x1x1x128xf32> to vector<1x1x128xf32>
    %484 = vector.broadcast %483 : vector<1x1x128xf32> to vector<2x16x128xf32>
    %485 = arith.addf %481, %484 : vector<2x16x128xf32>
    %cst_298 = arith.constant 0.000000e+00 : f32
    %486 = vector.broadcast %cst_298 : f32 to vector<2x16x128xf32>
    %487 = arith.maximumf %485, %486 : vector<2x16x128xf32>
    %c4_299 = arith.constant 4 : index
    %c0_300 = arith.constant 0 : index
    %c0_301 = arith.constant 0 : index
    %c0_302 = arith.constant 0 : index
    %488 = vector.load %arg5[%c4_299, %c0_300, %c0_301, %c0_302] : memref<7x1x1x128xf32, #tpu.memory_space<vmem>>, vector<1x1x1x128xf32>
    %489 = vector.shape_cast %488 : vector<1x1x1x128xf32> to vector<1x1x128xf32>
    %c4_303 = arith.constant 4 : index
    %c0_304 = arith.constant 0 : index
    %c0_305 = arith.constant 0 : index
    %c0_306 = arith.constant 0 : index
    %490 = vector.load %arg6[%c4_303, %c0_304, %c0_305, %c0_306] : memref<7x1x1x128xf32, #tpu.memory_space<vmem>>, vector<1x1x1x128xf32>
    %491 = vector.shape_cast %490 : vector<1x1x1x128xf32> to vector<1x1x128xf32>
    %492 = vector.shape_cast %487 : vector<2x16x128xf32> to vector<32x128xf32>
    %493 = arith.truncf %492 : vector<32x128xf32> to vector<32x128xbf16>
    %cst_307 = arith.constant dense<0.000000e+00> : vector<8x128xf32>
    %494 = tpu.matmul %0, %493, %cst_307 {dimension_numbers = #tpu.dot_dimension_numbers<[1], [0], [0], [1], [0, 0, 1, 1], [], []>} : vector<8x32xbf16>, vector<32x128xbf16>, vector<8x128xf32> -> vector<8x128xf32>
    %495 = vector.extract_strided_slice %494 {offsets = [0, 0], sizes = [1, 128], strides = [1, 1]} : vector<8x128xf32> to vector<1x128xf32>
    %cst_308 = arith.constant 3.125000e-02 : f32
    %496 = vector.broadcast %cst_308 : f32 to vector<1x128xf32>
    %497 = arith.mulf %495, %496 : vector<1x128xf32>
    %498 = vector.broadcast %497 : vector<1x128xf32> to vector<32x128xf32>
    %499 = arith.subf %492, %498 : vector<32x128xf32>
    %500 = arith.mulf %499, %499 : vector<32x128xf32>
    %501 = arith.truncf %500 : vector<32x128xf32> to vector<32x128xbf16>
    %cst_309 = arith.constant dense<0.000000e+00> : vector<8x128xf32>
    %502 = tpu.matmul %0, %501, %cst_309 {dimension_numbers = #tpu.dot_dimension_numbers<[1], [0], [0], [1], [0, 0, 1, 1], [], []>} : vector<8x32xbf16>, vector<32x128xbf16>, vector<8x128xf32> -> vector<8x128xf32>
    %503 = vector.extract_strided_slice %502 {offsets = [0, 0], sizes = [1, 128], strides = [1, 1]} : vector<8x128xf32> to vector<1x128xf32>
    %cst_310 = arith.constant 3.125000e-02 : f32
    %504 = vector.broadcast %cst_310 : f32 to vector<1x128xf32>
    %505 = arith.mulf %503, %504 : vector<1x128xf32>
    %cst_311 = arith.constant 0.000000e+00 : f32
    %506 = vector.broadcast %cst_311 : f32 to vector<1x128xf32>
    %507 = arith.maximumf %505, %506 : vector<1x128xf32>
    %508 = vector.shape_cast %489 : vector<1x1x128xf32> to vector<1x128xf32>
    %cst_312 = arith.constant 9.99999974E-6 : f32
    %509 = vector.broadcast %cst_312 : f32 to vector<1x128xf32>
    %510 = arith.addf %507, %509 : vector<1x128xf32>
    %511 = math.rsqrt %510 : vector<1x128xf32>
    %512 = arith.mulf %508, %511 : vector<1x128xf32>
    %513 = vector.broadcast %512 : vector<1x128xf32> to vector<32x128xf32>
    %514 = arith.mulf %499, %513 : vector<32x128xf32>
    %515 = vector.shape_cast %491 : vector<1x1x128xf32> to vector<1x128xf32>
    %516 = vector.broadcast %515 : vector<1x128xf32> to vector<32x128xf32>
    %517 = arith.addf %514, %516 : vector<32x128xf32>
    %518 = vector.shape_cast %517 : vector<32x128xf32> to vector<2x16x128xf32>
    %519 = arith.truncf %518 : vector<2x16x128xf32> to vector<2x16x128xbf16>
    %520 = vector.shape_cast %519 : vector<2x16x128xbf16> to vector<32x128xbf16>
    %c640_313 = arith.constant 640 : index
    %c0_314 = arith.constant 0 : index
    %521 = vector.load %arg7[%c640_313, %c0_314] : memref<1024x128xbf16, #tpu.memory_space<vmem>>, vector<128x128xbf16>
    %cst_315 = arith.constant dense<0.000000e+00> : vector<32x128xf32>
    %522 = tpu.matmul %520, %521, %cst_315 {dimension_numbers = #tpu.dot_dimension_numbers<[1], [0], [0], [1], [0, 0, 1, 1], [], []>} : vector<32x128xbf16>, vector<128x128xbf16>, vector<32x128xf32> -> vector<32x128xf32>
    %523 = vector.shape_cast %522 : vector<32x128xf32> to vector<2x16x128xf32>
    %c0_316 = arith.constant 0 : index
    %c0_317 = arith.constant 0 : index
    %c0_318 = arith.constant 0 : index
    %524 = vector.load %arg17[%c0_316, %c0_317, %c0_318] : memref<2x16x128xf32, #tpu.memory_space<vmem>>, vector<2x16x128xf32>
    %525 = arith.addf %524, %523 : vector<2x16x128xf32>
    %c0_319 = arith.constant 0 : index
    %c0_320 = arith.constant 0 : index
    %c0_321 = arith.constant 0 : index
    %526 = vector.load %arg17[%c0_319, %c0_320, %c0_321] : memref<2x16x128xf32, #tpu.memory_space<vmem>>, vector<2x16x128xf32>
    tpu.vector_store %arg17[%c0_319, %c0_320, %c0_321], %525 {strides = array<i32>} : memref<2x16x128xf32, #tpu.memory_space<vmem>>, vector<2x16x128xf32>,
    %c0_322 = arith.constant 0 : index
    %c0_323 = arith.constant 0 : index
    %c768 = arith.constant 768 : index
    %527 = vector.load %arg0[%c0_322, %c0_323, %c768] : memref<2x16x1024xbf16, #tpu.memory_space<vmem>>, vector<2x16x128xbf16>
    %528 = arith.extf %527 : vector<2x16x128xbf16> to vector<2x16x128xf32>
    %529 = vector.extract_strided_slice %4 {offsets = [0, 0, 768], sizes = [1, 1, 128], strides = [1, 1, 1]} : vector<1x1x1024xf32> to vector<1x1x128xf32>
    %530 = vector.extract_strided_slice %5 {offsets = [0, 0, 768], sizes = [1, 1, 128], strides = [1, 1, 1]} : vector<1x1x1024xf32> to vector<1x1x128xf32>
    %531 = vector.shape_cast %528 : vector<2x16x128xf32> to vector<32x128xf32>
    %532 = arith.truncf %531 : vector<32x128xf32> to vector<32x128xbf16>
    %cst_324 = arith.constant dense<0.000000e+00> : vector<8x128xf32>
    %533 = tpu.matmul %0, %532, %cst_324 {dimension_numbers = #tpu.dot_dimension_numbers<[1], [0], [0], [1], [0, 0, 1, 1], [], []>} : vector<8x32xbf16>, vector<32x128xbf16>, vector<8x128xf32> -> vector<8x128xf32>
    %534 = vector.extract_strided_slice %533 {offsets = [0, 0], sizes = [1, 128], strides = [1, 1]} : vector<8x128xf32> to vector<1x128xf32>
    %cst_325 = arith.constant 3.125000e-02 : f32
    %535 = vector.broadcast %cst_325 : f32 to vector<1x128xf32>
    %536 = arith.mulf %534, %535 : vector<1x128xf32>
    %537 = vector.broadcast %536 : vector<1x128xf32> to vector<32x128xf32>
    %538 = arith.subf %531, %537 : vector<32x128xf32>
    %539 = arith.mulf %538, %538 : vector<32x128xf32>
    %540 = arith.truncf %539 : vector<32x128xf32> to vector<32x128xbf16>
    %cst_326 = arith.constant dense<0.000000e+00> : vector<8x128xf32>
    %541 = tpu.matmul %0, %540, %cst_326 {dimension_numbers = #tpu.dot_dimension_numbers<[1], [0], [0], [1], [0, 0, 1, 1], [], []>} : vector<8x32xbf16>, vector<32x128xbf16>, vector<8x128xf32> -> vector<8x128xf32>
    %542 = vector.extract_strided_slice %541 {offsets = [0, 0], sizes = [1, 128], strides = [1, 1]} : vector<8x128xf32> to vector<1x128xf32>
    %cst_327 = arith.constant 3.125000e-02 : f32
    %543 = vector.broadcast %cst_327 : f32 to vector<1x128xf32>
    %544 = arith.mulf %542, %543 : vector<1x128xf32>
    %cst_328 = arith.constant 0.000000e+00 : f32
    %545 = vector.broadcast %cst_328 : f32 to vector<1x128xf32>
    %546 = arith.maximumf %544, %545 : vector<1x128xf32>
    %547 = vector.shape_cast %529 : vector<1x1x128xf32> to vector<1x128xf32>
    %cst_329 = arith.constant 9.99999974E-6 : f32
    %548 = vector.broadcast %cst_329 : f32 to vector<1x128xf32>
    %549 = arith.addf %546, %548 : vector<1x128xf32>
    %550 = math.rsqrt %549 : vector<1x128xf32>
    %551 = arith.mulf %547, %550 : vector<1x128xf32>
    %552 = vector.broadcast %551 : vector<1x128xf32> to vector<32x128xf32>
    %553 = arith.mulf %538, %552 : vector<32x128xf32>
    %554 = vector.shape_cast %530 : vector<1x1x128xf32> to vector<1x128xf32>
    %555 = vector.broadcast %554 : vector<1x128xf32> to vector<32x128xf32>
    %556 = arith.addf %553, %555 : vector<32x128xf32>
    %557 = vector.shape_cast %556 : vector<32x128xf32> to vector<2x16x128xf32>
    %558 = arith.addf %557, %518 : vector<2x16x128xf32>
    %559 = arith.truncf %558 : vector<2x16x128xf32> to vector<2x16x128xbf16>
    %c0_330 = arith.constant 0 : index
    %c2_331 = arith.constant 2 : index
    %c0_332 = arith.constant 0 : index
    %560 = vector.load %arg16[%c0_330, %c2_331, %c0_332] : memref<2x20x128xbf16, #tpu.memory_space<vmem>>, vector<2x16x128xbf16>
    tpu.vector_store %arg16[%c0_330, %c2_331, %c0_332], %559 {strides = array<i32>} : memref<2x20x128xbf16, #tpu.memory_space<vmem>>, vector<2x16x128xbf16>,
    %c0_333 = arith.constant 0 : index
    %c0_334 = arith.constant 0 : index
    %c0_335 = arith.constant 0 : index
    %561 = vector.load %arg16[%c0_333, %c0_334, %c0_335] : memref<2x20x128xbf16, #tpu.memory_space<vmem>>, vector<2x16x128xbf16>
    %562 = vector.shape_cast %561 : vector<2x16x128xbf16> to vector<32x128xbf16>
    %c5 = arith.constant 5 : index
    %c0_336 = arith.constant 0 : index
    %c0_337 = arith.constant 0 : index
    %563 = vector.load %arg3[%c5, %c0_336, %c0_337] : memref<7x384x128xbf16, #tpu.memory_space<vmem>>, vector<1x128x128xbf16>
    %564 = vector.shape_cast %563 : vector<1x128x128xbf16> to vector<128x128xbf16>
    %cst_338 = arith.constant dense<0.000000e+00> : vector<32x128xf32>
    %565 = tpu.matmul %562, %564, %cst_338 {dimension_numbers = #tpu.dot_dimension_numbers<[1], [0], [0], [1], [0, 0, 1, 1], [], []>} : vector<32x128xbf16>, vector<128x128xbf16>, vector<32x128xf32> -> vector<32x128xf32>
    %c0_339 = arith.constant 0 : index
    %c2_340 = arith.constant 2 : index
    %c0_341 = arith.constant 0 : index
    %566 = vector.load %arg16[%c0_339, %c2_340, %c0_341] : memref<2x20x128xbf16, #tpu.memory_space<vmem>>, vector<2x16x128xbf16>
    %567 = vector.shape_cast %566 : vector<2x16x128xbf16> to vector<32x128xbf16>
    %c5_342 = arith.constant 5 : index
    %c128_343 = arith.constant 128 : index
    %c0_344 = arith.constant 0 : index
    %568 = vector.load %arg3[%c5_342, %c128_343, %c0_344] : memref<7x384x128xbf16, #tpu.memory_space<vmem>>, vector<1x128x128xbf16>
    %569 = vector.shape_cast %568 : vector<1x128x128xbf16> to vector<128x128xbf16>
    %cst_345 = arith.constant dense<0.000000e+00> : vector<32x128xf32>
    %570 = tpu.matmul %567, %569, %cst_345 {dimension_numbers = #tpu.dot_dimension_numbers<[1], [0], [0], [1], [0, 0, 1, 1], [], []>} : vector<32x128xbf16>, vector<128x128xbf16>, vector<32x128xf32> -> vector<32x128xf32>
    %571 = arith.addf %565, %570 : vector<32x128xf32>
    %c0_346 = arith.constant 0 : index
    %c4_347 = arith.constant 4 : index
    %c0_348 = arith.constant 0 : index
    %572 = vector.load %arg16[%c0_346, %c4_347, %c0_348] : memref<2x20x128xbf16, #tpu.memory_space<vmem>>, vector<2x16x128xbf16>
    %573 = vector.shape_cast %572 : vector<2x16x128xbf16> to vector<32x128xbf16>
    %c5_349 = arith.constant 5 : index
    %c256_350 = arith.constant 256 : index
    %c0_351 = arith.constant 0 : index
    %574 = vector.load %arg3[%c5_349, %c256_350, %c0_351] : memref<7x384x128xbf16, #tpu.memory_space<vmem>>, vector<1x128x128xbf16>
    %575 = vector.shape_cast %574 : vector<1x128x128xbf16> to vector<128x128xbf16>
    %cst_352 = arith.constant dense<0.000000e+00> : vector<32x128xf32>
    %576 = tpu.matmul %573, %575, %cst_352 {dimension_numbers = #tpu.dot_dimension_numbers<[1], [0], [0], [1], [0, 0, 1, 1], [], []>} : vector<32x128xbf16>, vector<128x128xbf16>, vector<32x128xf32> -> vector<32x128xf32>
    %577 = arith.addf %571, %576 : vector<32x128xf32>
    %578 = vector.shape_cast %577 : vector<32x128xf32> to vector<2x16x128xf32>
    %c5_353 = arith.constant 5 : index
    %c0_354 = arith.constant 0 : index
    %c0_355 = arith.constant 0 : index
    %c0_356 = arith.constant 0 : index
    %579 = vector.load %arg4[%c5_353, %c0_354, %c0_355, %c0_356] : memref<7x1x1x128xf32, #tpu.memory_space<vmem>>, vector<1x1x1x128xf32>
    %580 = vector.shape_cast %579 : vector<1x1x1x128xf32> to vector<1x1x128xf32>
    %581 = vector.broadcast %580 : vector<1x1x128xf32> to vector<2x16x128xf32>
    %582 = arith.addf %578, %581 : vector<2x16x128xf32>
    %cst_357 = arith.constant 0.000000e+00 : f32
    %583 = vector.broadcast %cst_357 : f32 to vector<2x16x128xf32>
    %584 = arith.maximumf %582, %583 : vector<2x16x128xf32>
    %c5_358 = arith.constant 5 : index
    %c0_359 = arith.constant 0 : index
    %c0_360 = arith.constant 0 : index
    %c0_361 = arith.constant 0 : index
    %585 = vector.load %arg5[%c5_358, %c0_359, %c0_360, %c0_361] : memref<7x1x1x128xf32, #tpu.memory_space<vmem>>, vector<1x1x1x128xf32>
    %586 = vector.shape_cast %585 : vector<1x1x1x128xf32> to vector<1x1x128xf32>
    %c5_362 = arith.constant 5 : index
    %c0_363 = arith.constant 0 : index
    %c0_364 = arith.constant 0 : index
    %c0_365 = arith.constant 0 : index
    %587 = vector.load %arg6[%c5_362, %c0_363, %c0_364, %c0_365] : memref<7x1x1x128xf32, #tpu.memory_space<vmem>>, vector<1x1x1x128xf32>
    %588 = vector.shape_cast %587 : vector<1x1x1x128xf32> to vector<1x1x128xf32>
    %589 = vector.shape_cast %584 : vector<2x16x128xf32> to vector<32x128xf32>
    %590 = arith.truncf %589 : vector<32x128xf32> to vector<32x128xbf16>
    %cst_366 = arith.constant dense<0.000000e+00> : vector<8x128xf32>
    %591 = tpu.matmul %0, %590, %cst_366 {dimension_numbers = #tpu.dot_dimension_numbers<[1], [0], [0], [1], [0, 0, 1, 1], [], []>} : vector<8x32xbf16>, vector<32x128xbf16>, vector<8x128xf32> -> vector<8x128xf32>
    %592 = vector.extract_strided_slice %591 {offsets = [0, 0], sizes = [1, 128], strides = [1, 1]} : vector<8x128xf32> to vector<1x128xf32>
    %cst_367 = arith.constant 3.125000e-02 : f32
    %593 = vector.broadcast %cst_367 : f32 to vector<1x128xf32>
    %594 = arith.mulf %592, %593 : vector<1x128xf32>
    %595 = vector.broadcast %594 : vector<1x128xf32> to vector<32x128xf32>
    %596 = arith.subf %589, %595 : vector<32x128xf32>
    %597 = arith.mulf %596, %596 : vector<32x128xf32>
    %598 = arith.truncf %597 : vector<32x128xf32> to vector<32x128xbf16>
    %cst_368 = arith.constant dense<0.000000e+00> : vector<8x128xf32>
    %599 = tpu.matmul %0, %598, %cst_368 {dimension_numbers = #tpu.dot_dimension_numbers<[1], [0], [0], [1], [0, 0, 1, 1], [], []>} : vector<8x32xbf16>, vector<32x128xbf16>, vector<8x128xf32> -> vector<8x128xf32>
    %600 = vector.extract_strided_slice %599 {offsets = [0, 0], sizes = [1, 128], strides = [1, 1]} : vector<8x128xf32> to vector<1x128xf32>
    %cst_369 = arith.constant 3.125000e-02 : f32
    %601 = vector.broadcast %cst_369 : f32 to vector<1x128xf32>
    %602 = arith.mulf %600, %601 : vector<1x128xf32>
    %cst_370 = arith.constant 0.000000e+00 : f32
    %603 = vector.broadcast %cst_370 : f32 to vector<1x128xf32>
    %604 = arith.maximumf %602, %603 : vector<1x128xf32>
    %605 = vector.shape_cast %586 : vector<1x1x128xf32> to vector<1x128xf32>
    %cst_371 = arith.constant 9.99999974E-6 : f32
    %606 = vector.broadcast %cst_371 : f32 to vector<1x128xf32>
    %607 = arith.addf %604, %606 : vector<1x128xf32>
    %608 = math.rsqrt %607 : vector<1x128xf32>
    %609 = arith.mulf %605, %608 : vector<1x128xf32>
    %610 = vector.broadcast %609 : vector<1x128xf32> to vector<32x128xf32>
    %611 = arith.mulf %596, %610 : vector<32x128xf32>
    %612 = vector.shape_cast %588 : vector<1x1x128xf32> to vector<1x128xf32>
    %613 = vector.broadcast %612 : vector<1x128xf32> to vector<32x128xf32>
    %614 = arith.addf %611, %613 : vector<32x128xf32>
    %615 = vector.shape_cast %614 : vector<32x128xf32> to vector<2x16x128xf32>
    %616 = arith.truncf %615 : vector<2x16x128xf32> to vector<2x16x128xbf16>
    %617 = vector.shape_cast %616 : vector<2x16x128xbf16> to vector<32x128xbf16>
    %c768_372 = arith.constant 768 : index
    %c0_373 = arith.constant 0 : index
    %618 = vector.load %arg7[%c768_372, %c0_373] : memref<1024x128xbf16, #tpu.memory_space<vmem>>, vector<128x128xbf16>
    %cst_374 = arith.constant dense<0.000000e+00> : vector<32x128xf32>
    %619 = tpu.matmul %617, %618, %cst_374 {dimension_numbers = #tpu.dot_dimension_numbers<[1], [0], [0], [1], [0, 0, 1, 1], [], []>} : vector<32x128xbf16>, vector<128x128xbf16>, vector<32x128xf32> -> vector<32x128xf32>
    %620 = vector.shape_cast %619 : vector<32x128xf32> to vector<2x16x128xf32>
    %c0_375 = arith.constant 0 : index
    %c0_376 = arith.constant 0 : index
    %c0_377 = arith.constant 0 : index
    %621 = vector.load %arg17[%c0_375, %c0_376, %c0_377] : memref<2x16x128xf32, #tpu.memory_space<vmem>>, vector<2x16x128xf32>
    %622 = arith.addf %621, %620 : vector<2x16x128xf32>
    %c0_378 = arith.constant 0 : index
    %c0_379 = arith.constant 0 : index
    %c0_380 = arith.constant 0 : index
    %623 = vector.load %arg17[%c0_378, %c0_379, %c0_380] : memref<2x16x128xf32, #tpu.memory_space<vmem>>, vector<2x16x128xf32>
    tpu.vector_store %arg17[%c0_378, %c0_379, %c0_380], %622 {strides = array<i32>} : memref<2x16x128xf32, #tpu.memory_space<vmem>>, vector<2x16x128xf32>,
    %c0_381 = arith.constant 0 : index
    %c0_382 = arith.constant 0 : index
    %c896 = arith.constant 896 : index
    %624 = vector.load %arg0[%c0_381, %c0_382, %c896] : memref<2x16x1024xbf16, #tpu.memory_space<vmem>>, vector<2x16x128xbf16>
    %625 = arith.extf %624 : vector<2x16x128xbf16> to vector<2x16x128xf32>
    %626 = vector.extract_strided_slice %4 {offsets = [0, 0, 896], sizes = [1, 1, 128], strides = [1, 1, 1]} : vector<1x1x1024xf32> to vector<1x1x128xf32>
    %627 = vector.extract_strided_slice %5 {offsets = [0, 0, 896], sizes = [1, 1, 128], strides = [1, 1, 1]} : vector<1x1x1024xf32> to vector<1x1x128xf32>
    %628 = vector.shape_cast %625 : vector<2x16x128xf32> to vector<32x128xf32>
    %629 = arith.truncf %628 : vector<32x128xf32> to vector<32x128xbf16>
    %cst_383 = arith.constant dense<0.000000e+00> : vector<8x128xf32>
    %630 = tpu.matmul %0, %629, %cst_383 {dimension_numbers = #tpu.dot_dimension_numbers<[1], [0], [0], [1], [0, 0, 1, 1], [], []>} : vector<8x32xbf16>, vector<32x128xbf16>, vector<8x128xf32> -> vector<8x128xf32>
    %631 = vector.extract_strided_slice %630 {offsets = [0, 0], sizes = [1, 128], strides = [1, 1]} : vector<8x128xf32> to vector<1x128xf32>
    %cst_384 = arith.constant 3.125000e-02 : f32
    %632 = vector.broadcast %cst_384 : f32 to vector<1x128xf32>
    %633 = arith.mulf %631, %632 : vector<1x128xf32>
    %634 = vector.broadcast %633 : vector<1x128xf32> to vector<32x128xf32>
    %635 = arith.subf %628, %634 : vector<32x128xf32>
    %636 = arith.mulf %635, %635 : vector<32x128xf32>
    %637 = arith.truncf %636 : vector<32x128xf32> to vector<32x128xbf16>
    %cst_385 = arith.constant dense<0.000000e+00> : vector<8x128xf32>
    %638 = tpu.matmul %0, %637, %cst_385 {dimension_numbers = #tpu.dot_dimension_numbers<[1], [0], [0], [1], [0, 0, 1, 1], [], []>} : vector<8x32xbf16>, vector<32x128xbf16>, vector<8x128xf32> -> vector<8x128xf32>
    %639 = vector.extract_strided_slice %638 {offsets = [0, 0], sizes = [1, 128], strides = [1, 1]} : vector<8x128xf32> to vector<1x128xf32>
    %cst_386 = arith.constant 3.125000e-02 : f32
    %640 = vector.broadcast %cst_386 : f32 to vector<1x128xf32>
    %641 = arith.mulf %639, %640 : vector<1x128xf32>
    %cst_387 = arith.constant 0.000000e+00 : f32
    %642 = vector.broadcast %cst_387 : f32 to vector<1x128xf32>
    %643 = arith.maximumf %641, %642 : vector<1x128xf32>
    %644 = vector.shape_cast %626 : vector<1x1x128xf32> to vector<1x128xf32>
    %cst_388 = arith.constant 9.99999974E-6 : f32
    %645 = vector.broadcast %cst_388 : f32 to vector<1x128xf32>
    %646 = arith.addf %643, %645 : vector<1x128xf32>
    %647 = math.rsqrt %646 : vector<1x128xf32>
    %648 = arith.mulf %644, %647 : vector<1x128xf32>
    %649 = vector.broadcast %648 : vector<1x128xf32> to vector<32x128xf32>
    %650 = arith.mulf %635, %649 : vector<32x128xf32>
    %651 = vector.shape_cast %627 : vector<1x1x128xf32> to vector<1x128xf32>
    %652 = vector.broadcast %651 : vector<1x128xf32> to vector<32x128xf32>
    %653 = arith.addf %650, %652 : vector<32x128xf32>
    %654 = vector.shape_cast %653 : vector<32x128xf32> to vector<2x16x128xf32>
    %655 = arith.addf %654, %615 : vector<2x16x128xf32>
    %656 = arith.truncf %655 : vector<2x16x128xf32> to vector<2x16x128xbf16>
    %c0_389 = arith.constant 0 : index
    %c2_390 = arith.constant 2 : index
    %c0_391 = arith.constant 0 : index
    %657 = vector.load %arg16[%c0_389, %c2_390, %c0_391] : memref<2x20x128xbf16, #tpu.memory_space<vmem>>, vector<2x16x128xbf16>
    tpu.vector_store %arg16[%c0_389, %c2_390, %c0_391], %656 {strides = array<i32>} : memref<2x20x128xbf16, #tpu.memory_space<vmem>>, vector<2x16x128xbf16>,
    %c0_392 = arith.constant 0 : index
    %c0_393 = arith.constant 0 : index
    %c0_394 = arith.constant 0 : index
    %658 = vector.load %arg16[%c0_392, %c0_393, %c0_394] : memref<2x20x128xbf16, #tpu.memory_space<vmem>>, vector<2x16x128xbf16>
    %659 = vector.shape_cast %658 : vector<2x16x128xbf16> to vector<32x128xbf16>
    %c6 = arith.constant 6 : index
    %c0_395 = arith.constant 0 : index
    %c0_396 = arith.constant 0 : index
    %660 = vector.load %arg3[%c6, %c0_395, %c0_396] : memref<7x384x128xbf16, #tpu.memory_space<vmem>>, vector<1x128x128xbf16>
    %661 = vector.shape_cast %660 : vector<1x128x128xbf16> to vector<128x128xbf16>
    %cst_397 = arith.constant dense<0.000000e+00> : vector<32x128xf32>
    %662 = tpu.matmul %659, %661, %cst_397 {dimension_numbers = #tpu.dot_dimension_numbers<[1], [0], [0], [1], [0, 0, 1, 1], [], []>} : vector<32x128xbf16>, vector<128x128xbf16>, vector<32x128xf32> -> vector<32x128xf32>
    %c0_398 = arith.constant 0 : index
    %c2_399 = arith.constant 2 : index
    %c0_400 = arith.constant 0 : index
    %663 = vector.load %arg16[%c0_398, %c2_399, %c0_400] : memref<2x20x128xbf16, #tpu.memory_space<vmem>>, vector<2x16x128xbf16>
    %664 = vector.shape_cast %663 : vector<2x16x128xbf16> to vector<32x128xbf16>
    %c6_401 = arith.constant 6 : index
    %c128_402 = arith.constant 128 : index
    %c0_403 = arith.constant 0 : index
    %665 = vector.load %arg3[%c6_401, %c128_402, %c0_403] : memref<7x384x128xbf16, #tpu.memory_space<vmem>>, vector<1x128x128xbf16>
    %666 = vector.shape_cast %665 : vector<1x128x128xbf16> to vector<128x128xbf16>
    %cst_404 = arith.constant dense<0.000000e+00> : vector<32x128xf32>
    %667 = tpu.matmul %664, %666, %cst_404 {dimension_numbers = #tpu.dot_dimension_numbers<[1], [0], [0], [1], [0, 0, 1, 1], [], []>} : vector<32x128xbf16>, vector<128x128xbf16>, vector<32x128xf32> -> vector<32x128xf32>
    %668 = arith.addf %662, %667 : vector<32x128xf32>
    %c0_405 = arith.constant 0 : index
    %c4_406 = arith.constant 4 : index
    %c0_407 = arith.constant 0 : index
    %669 = vector.load %arg16[%c0_405, %c4_406, %c0_407] : memref<2x20x128xbf16, #tpu.memory_space<vmem>>, vector<2x16x128xbf16>
    %670 = vector.shape_cast %669 : vector<2x16x128xbf16> to vector<32x128xbf16>
    %c6_408 = arith.constant 6 : index
    %c256_409 = arith.constant 256 : index
    %c0_410 = arith.constant 0 : index
    %671 = vector.load %arg3[%c6_408, %c256_409, %c0_410] : memref<7x384x128xbf16, #tpu.memory_space<vmem>>, vector<1x128x128xbf16>
    %672 = vector.shape_cast %671 : vector<1x128x128xbf16> to vector<128x128xbf16>
    %cst_411 = arith.constant dense<0.000000e+00> : vector<32x128xf32>
    %673 = tpu.matmul %670, %672, %cst_411 {dimension_numbers = #tpu.dot_dimension_numbers<[1], [0], [0], [1], [0, 0, 1, 1], [], []>} : vector<32x128xbf16>, vector<128x128xbf16>, vector<32x128xf32> -> vector<32x128xf32>
    %674 = arith.addf %668, %673 : vector<32x128xf32>
    %675 = vector.shape_cast %674 : vector<32x128xf32> to vector<2x16x128xf32>
    %c6_412 = arith.constant 6 : index
    %c0_413 = arith.constant 0 : index
    %c0_414 = arith.constant 0 : index
    %c0_415 = arith.constant 0 : index
    %676 = vector.load %arg4[%c6_412, %c0_413, %c0_414, %c0_415] : memref<7x1x1x128xf32, #tpu.memory_space<vmem>>, vector<1x1x1x128xf32>
    %677 = vector.shape_cast %676 : vector<1x1x1x128xf32> to vector<1x1x128xf32>
    %678 = vector.broadcast %677 : vector<1x1x128xf32> to vector<2x16x128xf32>
    %679 = arith.addf %675, %678 : vector<2x16x128xf32>
    %cst_416 = arith.constant 0.000000e+00 : f32
    %680 = vector.broadcast %cst_416 : f32 to vector<2x16x128xf32>
    %681 = arith.maximumf %679, %680 : vector<2x16x128xf32>
    %c6_417 = arith.constant 6 : index
    %c0_418 = arith.constant 0 : index
    %c0_419 = arith.constant 0 : index
    %c0_420 = arith.constant 0 : index
    %682 = vector.load %arg5[%c6_417, %c0_418, %c0_419, %c0_420] : memref<7x1x1x128xf32, #tpu.memory_space<vmem>>, vector<1x1x1x128xf32>
    %683 = vector.shape_cast %682 : vector<1x1x1x128xf32> to vector<1x1x128xf32>
    %c6_421 = arith.constant 6 : index
    %c0_422 = arith.constant 0 : index
    %c0_423 = arith.constant 0 : index
    %c0_424 = arith.constant 0 : index
    %684 = vector.load %arg6[%c6_421, %c0_422, %c0_423, %c0_424] : memref<7x1x1x128xf32, #tpu.memory_space<vmem>>, vector<1x1x1x128xf32>
    %685 = vector.shape_cast %684 : vector<1x1x1x128xf32> to vector<1x1x128xf32>
    %686 = vector.shape_cast %681 : vector<2x16x128xf32> to vector<32x128xf32>
    %687 = arith.truncf %686 : vector<32x128xf32> to vector<32x128xbf16>
    %cst_425 = arith.constant dense<0.000000e+00> : vector<8x128xf32>
    %688 = tpu.matmul %0, %687, %cst_425 {dimension_numbers = #tpu.dot_dimension_numbers<[1], [0], [0], [1], [0, 0, 1, 1], [], []>} : vector<8x32xbf16>, vector<32x128xbf16>, vector<8x128xf32> -> vector<8x128xf32>
    %689 = vector.extract_strided_slice %688 {offsets = [0, 0], sizes = [1, 128], strides = [1, 1]} : vector<8x128xf32> to vector<1x128xf32>
    %cst_426 = arith.constant 3.125000e-02 : f32
    %690 = vector.broadcast %cst_426 : f32 to vector<1x128xf32>
    %691 = arith.mulf %689, %690 : vector<1x128xf32>
    %692 = vector.broadcast %691 : vector<1x128xf32> to vector<32x128xf32>
    %693 = arith.subf %686, %692 : vector<32x128xf32>
    %694 = arith.mulf %693, %693 : vector<32x128xf32>
    %695 = arith.truncf %694 : vector<32x128xf32> to vector<32x128xbf16>
    %cst_427 = arith.constant dense<0.000000e+00> : vector<8x128xf32>
    %696 = tpu.matmul %0, %695, %cst_427 {dimension_numbers = #tpu.dot_dimension_numbers<[1], [0], [0], [1], [0, 0, 1, 1], [], []>} : vector<8x32xbf16>, vector<32x128xbf16>, vector<8x128xf32> -> vector<8x128xf32>
    %697 = vector.extract_strided_slice %696 {offsets = [0, 0], sizes = [1, 128], strides = [1, 1]} : vector<8x128xf32> to vector<1x128xf32>
    %cst_428 = arith.constant 3.125000e-02 : f32
    %698 = vector.broadcast %cst_428 : f32 to vector<1x128xf32>
    %699 = arith.mulf %697, %698 : vector<1x128xf32>
    %cst_429 = arith.constant 0.000000e+00 : f32
    %700 = vector.broadcast %cst_429 : f32 to vector<1x128xf32>
    %701 = arith.maximumf %699, %700 : vector<1x128xf32>
    %702 = vector.shape_cast %683 : vector<1x1x128xf32> to vector<1x128xf32>
    %cst_430 = arith.constant 9.99999974E-6 : f32
    %703 = vector.broadcast %cst_430 : f32 to vector<1x128xf32>
    %704 = arith.addf %701, %703 : vector<1x128xf32>
    %705 = math.rsqrt %704 : vector<1x128xf32>
    %706 = arith.mulf %702, %705 : vector<1x128xf32>
    %707 = vector.broadcast %706 : vector<1x128xf32> to vector<32x128xf32>
    %708 = arith.mulf %693, %707 : vector<32x128xf32>
    %709 = vector.shape_cast %685 : vector<1x1x128xf32> to vector<1x128xf32>
    %710 = vector.broadcast %709 : vector<1x128xf32> to vector<32x128xf32>
    %711 = arith.addf %708, %710 : vector<32x128xf32>
    %712 = vector.shape_cast %711 : vector<32x128xf32> to vector<2x16x128xf32>
    %713 = arith.truncf %712 : vector<2x16x128xf32> to vector<2x16x128xbf16>
    %714 = vector.shape_cast %713 : vector<2x16x128xbf16> to vector<32x128xbf16>
    %c896_431 = arith.constant 896 : index
    %c0_432 = arith.constant 0 : index
    %715 = vector.load %arg7[%c896_431, %c0_432] : memref<1024x128xbf16, #tpu.memory_space<vmem>>, vector<128x128xbf16>
    %cst_433 = arith.constant dense<0.000000e+00> : vector<32x128xf32>
    %716 = tpu.matmul %714, %715, %cst_433 {dimension_numbers = #tpu.dot_dimension_numbers<[1], [0], [0], [1], [0, 0, 1, 1], [], []>} : vector<32x128xbf16>, vector<128x128xbf16>, vector<32x128xf32> -> vector<32x128xf32>
    %717 = vector.shape_cast %716 : vector<32x128xf32> to vector<2x16x128xf32>
    %c0_434 = arith.constant 0 : index
    %c0_435 = arith.constant 0 : index
    %c0_436 = arith.constant 0 : index
    %718 = vector.load %arg17[%c0_434, %c0_435, %c0_436] : memref<2x16x128xf32, #tpu.memory_space<vmem>>, vector<2x16x128xf32>
    %719 = arith.addf %718, %717 : vector<2x16x128xf32>
    %c0_437 = arith.constant 0 : index
    %c0_438 = arith.constant 0 : index
    %c0_439 = arith.constant 0 : index
    %720 = vector.load %arg17[%c0_437, %c0_438, %c0_439] : memref<2x16x128xf32, #tpu.memory_space<vmem>>, vector<2x16x128xf32>
    tpu.vector_store %arg17[%c0_437, %c0_438, %c0_439], %719 {strides = array<i32>} : memref<2x16x128xf32, #tpu.memory_space<vmem>>, vector<2x16x128xf32>,
    %c0_440 = arith.constant 0 : index
    %c0_441 = arith.constant 0 : index
    %c0_442 = arith.constant 0 : index
    %721 = vector.load %arg17[%c0_440, %c0_441, %c0_442] : memref<2x16x128xf32, #tpu.memory_space<vmem>>, vector<2x16x128xf32>
    %c0_443 = arith.constant 0 : index
    %c0_444 = arith.constant 0 : index
    %c0_445 = arith.constant 0 : index
    %722 = vector.load %arg8[%c0_443, %c0_444, %c0_445] : memref<1x1x128xf32, #tpu.memory_space<vmem>>, vector<1x1x128xf32>
    %723 = vector.broadcast %722 : vector<1x1x128xf32> to vector<2x16x128xf32>
    %724 = arith.addf %721, %723 : vector<2x16x128xf32>
    %cst_446 = arith.constant 0.000000e+00 : f32
    %725 = vector.broadcast %cst_446 : f32 to vector<2x16x128xf32>
    %726 = arith.maximumf %724, %725 : vector<2x16x128xf32>
    %c0_447 = arith.constant 0 : index
    %c0_448 = arith.constant 0 : index
    %c0_449 = arith.constant 0 : index
    %727 = vector.load %arg9[%c0_447, %c0_448, %c0_449] : memref<1x1x128xf32, #tpu.memory_space<vmem>>, vector<1x1x128xf32>
    %c0_450 = arith.constant 0 : index
    %c0_451 = arith.constant 0 : index
    %c0_452 = arith.constant 0 : index
    %728 = vector.load %arg10[%c0_450, %c0_451, %c0_452] : memref<1x1x128xf32, #tpu.memory_space<vmem>>, vector<1x1x128xf32>
    %729 = vector.shape_cast %726 : vector<2x16x128xf32> to vector<32x128xf32>
    %730 = arith.truncf %729 : vector<32x128xf32> to vector<32x128xbf16>
    %cst_453 = arith.constant dense<0.000000e+00> : vector<8x128xf32>
    %731 = tpu.matmul %0, %730, %cst_453 {dimension_numbers = #tpu.dot_dimension_numbers<[1], [0], [0], [1], [0, 0, 1, 1], [], []>} : vector<8x32xbf16>, vector<32x128xbf16>, vector<8x128xf32> -> vector<8x128xf32>
    %732 = vector.extract_strided_slice %731 {offsets = [0, 0], sizes = [1, 128], strides = [1, 1]} : vector<8x128xf32> to vector<1x128xf32>
    %cst_454 = arith.constant 3.125000e-02 : f32
    %733 = vector.broadcast %cst_454 : f32 to vector<1x128xf32>
    %734 = arith.mulf %732, %733 : vector<1x128xf32>
    %735 = vector.broadcast %734 : vector<1x128xf32> to vector<32x128xf32>
    %736 = arith.subf %729, %735 : vector<32x128xf32>
    %737 = arith.mulf %736, %736 : vector<32x128xf32>
    %738 = arith.truncf %737 : vector<32x128xf32> to vector<32x128xbf16>
    %cst_455 = arith.constant dense<0.000000e+00> : vector<8x128xf32>
    %739 = tpu.matmul %0, %738, %cst_455 {dimension_numbers = #tpu.dot_dimension_numbers<[1], [0], [0], [1], [0, 0, 1, 1], [], []>} : vector<8x32xbf16>, vector<32x128xbf16>, vector<8x128xf32> -> vector<8x128xf32>
    %740 = vector.extract_strided_slice %739 {offsets = [0, 0], sizes = [1, 128], strides = [1, 1]} : vector<8x128xf32> to vector<1x128xf32>
    %cst_456 = arith.constant 3.125000e-02 : f32
    %741 = vector.broadcast %cst_456 : f32 to vector<1x128xf32>
    %742 = arith.mulf %740, %741 : vector<1x128xf32>
    %cst_457 = arith.constant 0.000000e+00 : f32
    %743 = vector.broadcast %cst_457 : f32 to vector<1x128xf32>
    %744 = arith.maximumf %742, %743 : vector<1x128xf32>
    %745 = vector.shape_cast %727 : vector<1x1x128xf32> to vector<1x128xf32>
    %cst_458 = arith.constant 9.99999974E-6 : f32
    %746 = vector.broadcast %cst_458 : f32 to vector<1x128xf32>
    %747 = arith.addf %744, %746 : vector<1x128xf32>
    %748 = math.rsqrt %747 : vector<1x128xf32>
    %749 = arith.mulf %745, %748 : vector<1x128xf32>
    %750 = vector.broadcast %749 : vector<1x128xf32> to vector<32x128xf32>
    %751 = arith.mulf %736, %750 : vector<32x128xf32>
    %752 = vector.shape_cast %728 : vector<1x1x128xf32> to vector<1x128xf32>
    %753 = vector.broadcast %752 : vector<1x128xf32> to vector<32x128xf32>
    %754 = arith.addf %751, %753 : vector<32x128xf32>
    %755 = vector.shape_cast %754 : vector<32x128xf32> to vector<2x16x128xf32>
    %cst_459 = arith.constant dense<0.000000e+00> : vector<2x128xf32>
    %756 = vector.multi_reduction <add>, %755, %cst_459 [1] : vector<2x16x128xf32> to vector<2x128xf32>
    %cst_460 = arith.constant 1.600000e+01 : f32
    %757 = vector.broadcast %cst_460 : f32 to vector<2x128xf32>
    %758 = arith.divf %756, %757 : vector<2x128xf32>
    %759 = arith.truncf %758 : vector<2x128xf32> to vector<2x128xbf16>
    %c0_461 = arith.constant 0 : index
    %c0_462 = arith.constant 0 : index
    %760 = vector.load %arg11[%c0_461, %c0_462] : memref<128x128xbf16, #tpu.memory_space<vmem>>, vector<128x128xbf16>
    %cst_463 = arith.constant dense<0.000000e+00> : vector<2x128xf32>
    %761 = tpu.matmul %759, %760, %cst_463 {dimension_numbers = #tpu.dot_dimension_numbers<[1], [0], [0], [1], [0, 0, 1, 1], [], []>} : vector<2x128xbf16>, vector<128x128xbf16>, vector<2x128xf32> -> vector<2x128xf32>
    %c0_464 = arith.constant 0 : index
    %c0_465 = arith.constant 0 : index
    %762 = vector.load %arg12[%c0_464, %c0_465] : memref<1x128xf32, #tpu.memory_space<vmem>>, vector<1x128xf32>
    %763 = vector.broadcast %762 : vector<1x128xf32> to vector<2x128xf32>
    %764 = arith.addf %761, %763 : vector<2x128xf32>
    %cst_466 = arith.constant 0.000000e+00 : f32
    %765 = vector.broadcast %cst_466 : f32 to vector<2x128xf32>
    %766 = arith.maximumf %764, %765 : vector<2x128xf32>
    %767 = arith.truncf %766 : vector<2x128xf32> to vector<2x128xbf16>
    %c0_467 = arith.constant 0 : index
    %c0_468 = arith.constant 0 : index
    %768 = vector.load %arg13[%c0_467, %c0_468] : memref<128x128xbf16, #tpu.memory_space<vmem>>, vector<128x128xbf16>
    %cst_469 = arith.constant dense<0.000000e+00> : vector<2x128xf32>
    %769 = tpu.matmul %767, %768, %cst_469 {dimension_numbers = #tpu.dot_dimension_numbers<[1], [0], [0], [1], [0, 0, 1, 1], [], []>} : vector<2x128xbf16>, vector<128x128xbf16>, vector<2x128xf32> -> vector<2x128xf32>
    %c0_470 = arith.constant 0 : index
    %c0_471 = arith.constant 0 : index
    %770 = vector.load %arg14[%c0_470, %c0_471] : memref<1x128xf32, #tpu.memory_space<vmem>>, vector<1x128xf32>
    %771 = vector.broadcast %770 : vector<1x128xf32> to vector<2x128xf32>
    %772 = arith.addf %769, %771 : vector<2x128xf32>
    %773 = arith.negf %772 : vector<2x128xf32>
    %774 = math.exp %773 : vector<2x128xf32>
    %cst_472 = arith.constant 1.000000e+00 : f32
    %775 = vector.broadcast %cst_472 : f32 to vector<2x128xf32>
    %776 = arith.addf %775, %774 : vector<2x128xf32>
    %777 = arith.divf %775, %776 : vector<2x128xf32>
    %778 = vector.shape_cast %777 : vector<2x128xf32> to vector<2x1x128xf32>
    %779 = vector.broadcast %778 : vector<2x1x128xf32> to vector<2x16x128xf32>
    %780 = arith.mulf %779, %755 : vector<2x16x128xf32>
    %c0_473 = arith.constant 0 : index
    %c0_474 = arith.constant 0 : index
    %c0_475 = arith.constant 0 : index
    %781 = vector.load %arg15[%c0_473, %c0_474, %c0_475] : memref<2x16x128xf32, #tpu.memory_space<vmem>>, vector<2x16x128xf32>
    tpu.vector_store %arg15[%c0_473, %c0_474, %c0_475], %780 {strides = array<i32>} : memref<2x16x128xf32, #tpu.memory_space<vmem>>, vector<2x16x128xf32>,
    return
  }
}

</mosaic_0001>

<bundles_post_ra>
// kernel: se_res2block.2
= control target key start
LH: loop header
LB: loop body
LE: loop exit
PB: predicated region body
PF: predicated region fallthrough
CT: control target
= control target key end

     0   :  { %8 = vsyncpa [#allocation3], 0  ;;  %s1141_s0 = inlined_call_operand.vmem [shape: bf16[32,128], index: 0, kind: input, shape index: {}]   ;;  %s1142_s1 = inlined_call_operand.hbm [shape: bf16[128,1024], index: 1, kind: input, shape index: {}]   ;;  %s1143_s2 = inlined_call_operand.hbm [shape: f32[1,1024], index: 2, kind: input, shape index: {}]   ;;  %s1144_s3 = inlined_call_operand.vmem [shape: bf16[32,1024], index: 3, kind: output, shape index: {}]  }
   0x1   :  { %9 = vsyncpa [#allocation5], 0  ;;  %s998_s12 = smov [#allocation2]   ;;  %s950_s16 = scalar_lea.hbm %s1142_s1, 8192 }
   0x2   :  { %s17_s13 = sshll.u32 %s998_s12, 4  ;;  %p951_p0 = scmp.ne.s32.totalorder %s1142_s1, %s950_s16  ;;  %s18_s13 = int_to_ptr.vmem [resolvable:$true] %s17_s13 }
   0x3   :  { %p954_p1 = scmp.lt.u32.totalorder %s950_s16, %s1142_s1 }
   0x5   :  { %p956_p2 = pnand %p954_p1, %p951_p0 }
   0x7   :  { %959 = shalt.err (!%p956_p2)
}
   0x8   :  { %s960_s21 = scalar_lea.vmem %s18_s13, 8192  ;;  %p965_p4 = scmp.lt.s32.totalorder %s18_s13, %s18_s13 }
   0x9   :  { %p961_p3 = scmp.ne.s32.totalorder %s18_s13, %s960_s21  ;;  %p966_p5 = scmp.lt.s32.totalorder %s960_s21, %s960_s21 }
   0xb   :  { %p967_p6 = por %p966_p5, %p965_p4 }
   0xd   :  { %p968_p7 = pnand %p967_p6, %p961_p3 }
   0xf   :  { %971 = shalt.err (!%p968_p7)
}
  0x10   :  { %s999_s22 = smov 512   ;;  %s1000_s23 = smov 32  }
  0x11   :  { %23 = dma.hbm_to_vmem [thread:$0]  %s1142_s1, 8192, %s18_s13, [#allocation3], %s999_s22, %s999_s22, %s1000_s23  }
  0x12   :  { %s1001_s26 = smov [#allocation4]   ;;  %s972_s30 = scalar_lea.hbm %s1143_s2, 128 }
  0x13   :  { %s30_s27 = sshll.u32 %s1001_s26, 4  ;;  %p973_p8 = scmp.ne.s32.totalorder %s1143_s2, %s972_s30  ;;  %s31_s27 = int_to_ptr.vmem [resolvable:$true] %s30_s27 }
  0x14   :  { %p976_p9 = scmp.lt.u32.totalorder %s972_s30, %s1143_s2 }
  0x16   :  { %p978_p10 = pnand %p976_p9, %p973_p8 }
  0x18   :  { %981 = shalt.err (!%p978_p10)
}
  0x19   :  { %s982_s8 = scalar_lea.vmem %s31_s27, 128  ;;  %p987_p12 = scmp.lt.s32.totalorder %s31_s27, %s31_s27 }
  0x1a   :  { %p983_p11 = scmp.ne.s32.totalorder %s31_s27, %s982_s8  ;;  %p988_p13 = scmp.lt.s32.totalorder %s982_s8, %s982_s8 }
  0x1c   :  { %p989_p0 = por %p988_p13, %p987_p12 }
  0x1e   :  { %p990_p1 = pnand %p989_p0, %p983_p11 }
  0x20   :  { %993 = shalt.err (!%p990_p1)
}
  0x21   :  { %33 = dma.hbm_to_vmem [thread:$0]  %s1143_s2, 128, %s31_s27, [#allocation5]  }
  0x22   :  { %994 = dma.done.wait [#allocation3], 8192  }
  0x23   :  { %995 = vsyncadd [#allocation3], 4294959104 }
  0x24   :  { %996 = dma.done.wait [#allocation5], 128  }
  0x25   :  { %997 = vsyncadd [#allocation5], 4294967168  ;;  %v1002_v0 = vmov 0   ;;  %v45_v1 = vld [vmem:[#allocation2] sm:$0xff]  ;;  %v46_v3 = vld [vmem:[#allocation2 + $0x8] sm:$0xff] }
  0x26   :  { %515 = vmatprep.mubr.bf16.mxu0 %v1002_v0  ;;  %568 = vmatprep.mubr.bf16.mxu1 %v1002_v0  ;;  %v49_v2 = vld [vmem:[#allocation2 + $0x20] sm:$0xff]  ;;  %v50_v5 = vld [vmem:[#allocation2 + $0x28] sm:$0xff]  ;;  %v47_v63 = vld [vmem:[#allocation2 + $0x10] sm:$0xff] }
  0x27   :  { %v848_v4 = vcombine.high %v45_v1, %v49_v2  ;;  %v847_v6 = vcombine.low %v45_v1, %v49_v2  ;;  %v53_v7 = vld [vmem:[#allocation2 + $0x40] sm:$0xff]  ;;  %v850_v9 = vcombine.high %v46_v3, %v50_v5  ;;  %v849_v10 = vcombine.low %v46_v3, %v50_v5  ;;  %v54_v12 = vld [vmem:[#allocation2 + $0x48] sm:$0xff]  ;;  %v51_v1 = vld [vmem:[#allocation2 + $0x30] sm:$0xff] }
  0x28   :  { %v57_v8 = vld [vmem:[#allocation2 + $0x60] sm:$0xff]  ;;  %v58_v13 = vld [vmem:[#allocation2 + $0x68] sm:$0xff]  ;;  %v48_v2 = vld [vmem:[#allocation2 + $0x18] sm:$0xff] }
  0x29   :  { %v856_v11 = vcombine.high %v53_v7, %v57_v8  ;;  %v61_v14 = vld [vmem:[#allocation2 + $0x80] sm:$0xff]  ;;  %483 = vmatprep.subr.bf16.mxu0 %v848_v4  ;;  %v858_v15 = vcombine.high %v54_v12, %v58_v13  ;;  %v62_v17 = vld [vmem:[#allocation2 + $0x88] sm:$0xff]  ;;  %536 = vmatprep.subr.bf16.mxu1 %v850_v9  ;;  %v855_v19 = vcombine.low %v53_v7, %v57_v8  ;;  %v52_v3 = vld [vmem:[#allocation2 + $0x38] sm:$0xff] }
  0x2a   :  { %v65_v16 = vld [vmem:[#allocation2 + $0xa0] sm:$0xff]  ;;  %v66_v18 = vld [vmem:[#allocation2 + $0xa8] sm:$0xff]  ;;  %484 = vmatpush1.bf16.msra.mxu0 %v847_v6  ;;  %537 = vmatpush1.bf16.msra.mxu1 %v849_v10  ;;  %v857_v20 = vcombine.low %v54_v12, %v58_v13  ;;  %v852_v6 = vcombine.high %v47_v63, %v51_v1  ;;  %v854_v7 = vcombine.high %v48_v2, %v52_v3  ;;  %v55_v8 = vld [vmem:[#allocation2 + $0x50] sm:$0xff] }
  0x2b   :  { %485 = vmatprep.subr.bf16.mxu0 %v856_v11  ;;  %v864_v21 = vcombine.high %v61_v14, %v65_v16  ;;  %538 = vmatprep.subr.bf16.mxu1 %v858_v15  ;;  %v866_v22 = vcombine.high %v62_v17, %v66_v18  ;;  %v69_v23 = vld [vmem:[#allocation2 + $0xc0] sm:$0xff]  ;;  %v70_v25 = vld [vmem:[#allocation2 + $0xc8] sm:$0xff]  ;;  %v863_v27 = vcombine.low %v61_v14, %v65_v16  ;;  %v59_v9 = vld [vmem:[#allocation2 + $0x70] sm:$0xff] }
  0x2c   :  { %v73_v24 = vld [vmem:[#allocation2 + $0xe0] sm:$0xff]  ;;  %v74_v26 = vld [vmem:[#allocation2 + $0xe8] sm:$0xff]  ;;  %v865_v28 = vcombine.low %v62_v17, %v66_v18  ;;  %v56_v11 = vld [vmem:[#allocation2 + $0x58] sm:$0xff]  ;;  %v851_v13 = vcombine.low %v47_v63, %v51_v1  ;;  %v853_v14 = vcombine.low %v48_v2, %v52_v3  ;;  %v860_v15 = vcombine.high %v55_v8, %v59_v9 }
  0x2d   :  { %v872_v29 = vcombine.high %v69_v23, %v73_v24  ;;  %v874_v30 = vcombine.high %v70_v25, %v74_v26  ;;  %v77_v31 = vld [vmem:[#allocation2 + $0x100] sm:$0xff]  ;;  %v78_v33 = vld [vmem:[#allocation2 + $0x108] sm:$0xff]  ;;  %v871_v35 = vcombine.low %v69_v23, %v73_v24  ;;  %v873_v36 = vcombine.low %v70_v25, %v74_v26  ;;  %v60_v12 = vld [vmem:[#allocation2 + $0x78] sm:$0xff] }
  0x2e   :  { %486 = vmatpush1.bf16.msra.mxu0 %v855_v19  ;;  %539 = vmatpush1.bf16.msra.mxu1 %v857_v20  ;;  %v81_v32 = vld [vmem:[#allocation2 + $0x120] sm:$0xff]  ;;  %v82_v34 = vld [vmem:[#allocation2 + $0x128] sm:$0xff]  ;;  %v862_v16 = vcombine.high %v56_v11, %v60_v12  ;;  %v63_v17 = vld [vmem:[#allocation2 + $0x90] sm:$0xff] }
  0x2f   :  { %487 = vmatprep.subr.bf16.mxu0 %v864_v21  ;;  %540 = vmatprep.subr.bf16.mxu1 %v866_v22  ;;  %v880_v37 = vcombine.high %v77_v31, %v81_v32  ;;  %v882_v38 = vcombine.high %v78_v33, %v82_v34  ;;  %v85_v39 = vld [vmem:[#allocation2 + $0x140] sm:$0xff]  ;;  %v86_v41 = vld [vmem:[#allocation2 + $0x148] sm:$0xff]  ;;  %v879_v43 = vcombine.low %v77_v31, %v81_v32  ;;  %v67_v18 = vld [vmem:[#allocation2 + $0xb0] sm:$0xff] }
  0x30   :  { %v89_v40 = vld [vmem:[#allocation2 + $0x160] sm:$0xff]  ;;  %v90_v42 = vld [vmem:[#allocation2 + $0x168] sm:$0xff]  ;;  %v881_v44 = vcombine.low %v78_v33, %v82_v34  ;;  %v64_v19 = vld [vmem:[#allocation2 + $0x98] sm:$0xff]  ;;  %v859_v21 = vcombine.low %v55_v8, %v59_v9  ;;  %v861_v22 = vcombine.low %v56_v11, %v60_v12  ;;  %v868_v23 = vcombine.high %v63_v17, %v67_v18 }
  0x31   :  { %v888_v45 = vcombine.high %v85_v39, %v89_v40  ;;  %v890_v46 = vcombine.high %v86_v41, %v90_v42  ;;  %v93_v47 = vld [vmem:[#allocation2 + $0x180] sm:$0xff]  ;;  %v94_v49 = vld [vmem:[#allocation2 + $0x188] sm:$0xff]  ;;  %v887_v51 = vcombine.low %v85_v39, %v89_v40  ;;  %v889_v52 = vcombine.low %v86_v41, %v90_v42  ;;  %v68_v20 = vld [vmem:[#allocation2 + $0xb8] sm:$0xff] }
  0x32   :  { %488 = vmatpush1.bf16.msra.mxu0 %v863_v27  ;;  %541 = vmatpush1.bf16.msra.mxu1 %v865_v28  ;;  %v97_v48 = vld [vmem:[#allocation2 + $0x1a0] sm:$0xff]  ;;  %v98_v50 = vld [vmem:[#allocation2 + $0x1a8] sm:$0xff]  ;;  %v870_v24 = vcombine.high %v64_v19, %v68_v20  ;;  %v71_v25 = vld [vmem:[#allocation2 + $0xd0] sm:$0xff]  ;;  %v869_v31 = vcombine.low %v64_v19, %v68_v20 }
  0x33   :  { %489 = vmatprep.subr.bf16.mxu0 %v872_v29  ;;  %542 = vmatprep.subr.bf16.mxu1 %v874_v30  ;;  %v896_v53 = vcombine.high %v93_v47, %v97_v48  ;;  %v898_v54 = vcombine.high %v94_v49, %v98_v50  ;;  %v101_v55 = vld [vmem:[#allocation2 + $0x1c0] sm:$0xff]  ;;  %v102_v57 = vld [vmem:[#allocation2 + $0x1c8] sm:$0xff]  ;;  %v895_v59 = vcombine.low %v93_v47, %v97_v48  ;;  %v75_v26 = vld [vmem:[#allocation2 + $0xf0] sm:$0xff] }
  0x34   :  { %v105_v56 = vld [vmem:[#allocation2 + $0x1e0] sm:$0xff]  ;;  %v106_v58 = vld [vmem:[#allocation2 + $0x1e8] sm:$0xff]  ;;  %v897_v60 = vcombine.low %v94_v49, %v98_v50  ;;  %v72_v27 = vld [vmem:[#allocation2 + $0xd8] sm:$0xff]  ;;  %v867_v30 = vcombine.low %v63_v17, %v67_v18  ;;  %v876_v32 = vcombine.high %v71_v25, %v75_v26 }
  0x35   :  { %v904_v61 = vcombine.high %v101_v55, %v105_v56  ;;  %v906_v62 = vcombine.high %v102_v57, %v106_v58  ;;  %v903_v4 = vcombine.low %v101_v55, %v105_v56  ;;  %v905_v5 = vcombine.low %v102_v57, %v106_v58  ;;  %v1052_v10 = vld [vmem:[%s1141_s0] sm:$0xff]   ;;  %v76_v28 = vld [vmem:[#allocation2 + $0xf8] sm:$0xff]  ;;  %v1061_v29 = vld [vmem:[%s1141_s0 + $0x8] sm:$0xff]  }
  0x36   :  { %490 = vmatpush1.bf16.msra.mxu0 %v871_v35  ;;  %543 = vmatpush1.bf16.msra.mxu1 %v873_v36  ;;  %v878_v33 = vcombine.high %v72_v27, %v76_v28  ;;  %v79_v34 = vld [vmem:[#allocation2 + $0x110] sm:$0xff]  ;;  %v80_v36 = vld [vmem:[#allocation2 + $0x118] sm:$0xff]  ;;  %v877_v39 = vcombine.low %v72_v27, %v76_v28  ;;  %v1076_v8 = vld [vmem:[#allocation4] sm:$0xff] }
  0x37   :  { %491 = vmatprep.subr.bf16.mxu0 %v880_v37  ;;  %544 = vmatprep.subr.bf16.mxu1 %v882_v38  ;;  %v83_v35 = vld [vmem:[#allocation2 + $0x130] sm:$0xff]  ;;  %v84_v37 = vld [vmem:[#allocation2 + $0x138] sm:$0xff]  ;;  %v875_v38 = vcombine.low %v71_v25, %v75_v26 }
  0x38   :  { %v884_v40 = vcombine.high %v79_v34, %v83_v35  ;;  %v886_v41 = vcombine.high %v80_v36, %v84_v37  ;;  %v87_v42 = vld [vmem:[#allocation2 + $0x150] sm:$0xff]  ;;  %v885_v47 = vcombine.low %v80_v36, %v84_v37 }
  0x39   :  { %v95_v50 = vld [vmem:[#allocation2 + $0x190] sm:$0xff] }
  0x3a   :  { %492 = vmatpush1.bf16.msra.mxu0 %v879_v43  ;;  %545 = vmatpush1.bf16.msra.mxu1 %v881_v44  ;;  %v91_v43 = vld [vmem:[#allocation2 + $0x170] sm:$0xff]  ;;  %v88_v44 = vld [vmem:[#allocation2 + $0x158] sm:$0xff] }
  0x3b   :  { %493 = vmatprep.subr.bf16.mxu0 %v888_v45  ;;  %546 = vmatprep.subr.bf16.mxu1 %v890_v46  ;;  %v92_v45 = vld [vmem:[#allocation2 + $0x178] sm:$0xff]  ;;  %v883_v46 = vcombine.low %v79_v34, %v83_v35  ;;  %v892_v48 = vcombine.high %v87_v42, %v91_v43  ;;  %v103_v58 = vld [vmem:[#allocation2 + $0x1d0] sm:$0xff] }
  0x3c   :  { %v894_v49 = vcombine.high %v88_v44, %v92_v45  ;;  %v893_v55 = vcombine.low %v88_v44, %v92_v45 }
  0x3e   :  { %494 = vmatpush1.bf16.msra.mxu0 %v887_v51  ;;  %547 = vmatpush1.bf16.msra.mxu1 %v889_v52  ;;  %v99_v51 = vld [vmem:[#allocation2 + $0x1b0] sm:$0xff]  ;;  %v96_v52 = vld [vmem:[#allocation2 + $0x198] sm:$0xff] }
  0x3f   :  { %495 = vmatprep.subr.bf16.mxu0 %v896_v53  ;;  %548 = vmatprep.subr.bf16.mxu1 %v898_v54  ;;  %v100_v53 = vld [vmem:[#allocation2 + $0x1b8] sm:$0xff]  ;;  %v891_v54 = vcombine.low %v87_v42, %v91_v43  ;;  %v900_v56 = vcombine.high %v95_v50, %v99_v51 }
  0x40   :  { %v902_v57 = vcombine.high %v96_v52, %v100_v53  ;;  %v901_v63 = vcombine.low %v96_v52, %v100_v53 }
  0x42   :  { %496 = vmatpush1.bf16.msra.mxu0 %v895_v59  ;;  %549 = vmatpush1.bf16.msra.mxu1 %v897_v60  ;;  %v107_v59 = vld [vmem:[#allocation2 + $0x1f0] sm:$0xff]  ;;  %v104_v60 = vld [vmem:[#allocation2 + $0x1d8] sm:$0xff] }
  0x43   :  { %497 = vmatprep.subr.bf16.mxu0 %v904_v61  ;;  %550 = vmatprep.subr.bf16.mxu1 %v906_v62  ;;  %v108_v61 = vld [vmem:[#allocation2 + $0x1f8] sm:$0xff]  ;;  %v899_v62 = vcombine.low %v95_v50, %v99_v51  ;;  %v908_v1 = vcombine.high %v103_v58, %v107_v59  ;;  %v907_v3 = vcombine.low %v103_v58, %v107_v59 }
  0x44   :  { %v910_v2 = vcombine.high %v104_v60, %v108_v61 }
  0x46   :  { %498 = vmatpush1.bf16.msra.mxu0 %v903_v4  ;;  %551 = vmatpush1.bf16.msra.mxu1 %v905_v5  ;;  %v909_v4 = vcombine.low %v104_v60, %v108_v61  ;;  %v111_v5 = vlaneseq }
  0x47   :  { %589 = vmatprep.subr.bf16.mxu0 %v852_v6  ;;  %642 = vmatprep.subr.bf16.mxu1 %v854_v7 }
  0x48   :  { %v1073_v6 = vshrl.u32 %v111_v5, 7 }
  0x49   :  { %516 = vmatmul.mubr.bf16.vlgmr.msra.gmra.mrb[0].mxu0 %v1052_v10  ;;  %569 = vmatmul.mubr.bf16.vlgmr.msra.gmra.mrb[0].mxu1 %v1052_v10 }
  0x4a   :  { %590 = vmatpush1.bf16.msra.mxu0 %v851_v13  ;;  %643 = vmatpush1.bf16.msra.mxu1 %v853_v14  ;;  %v113_v7 = vsub.s32 0, %v1073_v6  ;;  %v121_v9 = vsub.s32 2, %v1073_v6  ;;  %v117_v11 = vsub.s32 1, %v1073_v6 }
  0x4b   :  { %591 = vmatprep.subr.bf16.mxu0 %v860_v15  ;;  %644 = vmatprep.subr.bf16.mxu1 %v862_v16 }
  0x4c   :  { %525 = vmatprep.mubr.bf16.mxu0 %v1002_v0  ;;  %578 = vmatprep.mubr.bf16.mxu1 %v1002_v0  ;;  %v114_v12 = vrot.slane %v1076_v8, %v113_v7  ;;  %v118_v13 = vrot.slane %v1076_v8, %v117_v11  ;;  %v129_v11 = vsub.s32 4, %v1073_v6 }
  0x4e   :  { %592 = vmatpush1.bf16.msra.mxu0 %v859_v21  ;;  %645 = vmatpush1.bf16.msra.mxu1 %v861_v22 }
  0x4f   :  { %593 = vmatprep.subr.bf16.mxu0 %v868_v23  ;;  %646 = vmatprep.subr.bf16.mxu1 %v870_v24 }
  0x51   :  { %526 = vmatmul.mubr.bf16.gmra.mrb[4].mxu0 %v1061_v29  ;;  %579 = vmatmul.mubr.bf16.gmra.mrb[4].mxu1 %v1061_v29 }
  0x52   :  { %594 = vmatpush1.bf16.msra.mxu0 %v867_v30  ;;  %647 = vmatpush1.bf16.msra.mxu1 %v869_v31 }
  0x53   :  { %595 = vmatprep.subr.bf16.mxu0 %v876_v32  ;;  %648 = vmatprep.subr.bf16.mxu1 %v878_v33 }
  0x54   :  { %621 = vmatprep.mubr.bf16.mxu0 %v1002_v0  ;;  %674 = vmatprep.mubr.bf16.mxu1 %v1002_v0 }
  0x56   :  { %596 = vmatpush1.bf16.msra.mxu0 %v875_v38  ;;  %649 = vmatpush1.bf16.msra.mxu1 %v877_v39 }
  0x57   :  { %597 = vmatprep.subr.bf16.mxu0 %v884_v40  ;;  %650 = vmatprep.subr.bf16.mxu1 %v886_v41 }
  0x5a   :  { %598 = vmatpush1.bf16.msra.mxu0 %v883_v46  ;;  %651 = vmatpush1.bf16.msra.mxu1 %v885_v47 }
  0x5b   :  { %599 = vmatprep.subr.bf16.mxu0 %v892_v48  ;;  %652 = vmatprep.subr.bf16.mxu1 %v894_v49 }
  0x5e   :  { %600 = vmatpush1.bf16.msra.mxu0 %v891_v54  ;;  %653 = vmatpush1.bf16.msra.mxu1 %v893_v55 }
  0x5f   :  { %601 = vmatprep.subr.bf16.mxu0 %v900_v56  ;;  %654 = vmatprep.subr.bf16.mxu1 %v902_v57 }
  0x62   :  { %602 = vmatpush1.bf16.msra.mxu0 %v899_v62  ;;  %655 = vmatpush1.bf16.msra.mxu1 %v901_v63 }
  0x63   :  { %603 = vmatprep.subr.bf16.mxu0 %v908_v1  ;;  %656 = vmatprep.subr.bf16.mxu1 %v910_v2 }
  0x66   :  { %604 = vmatpush1.bf16.msra.mxu0 %v907_v3  ;;  %657 = vmatpush1.bf16.msra.mxu1 %v909_v4 }
  0x69   :  { %622 = vmatmul.mubr.bf16.vlgmr.msra.gmra.mrb[8].mxu0 %v1052_v10  ;;  %675 = vmatmul.mubr.bf16.vlgmr.msra.gmra.mrb[8].mxu1 %v1052_v10  ;;  %v125_v10 = vsub.s32 3, %v1073_v6 }
  0x6a   :  { %631 = vmatprep.mubr.bf16.mxu0 %v1002_v0  ;;  %684 = vmatprep.mubr.bf16.mxu1 %v1002_v0  ;;  %v122_v0 = vrot.slane %v1076_v8, %v121_v9 }
  0x6b   :  { %v126_v14 = vrot.slane %v1076_v8, %v125_v10  ;;  %v137_v10 = vsub.s32 6, %v1073_v6 }
  0x71   :  { %632 = vmatmul.mubr.bf16.gmra.mrb[12].mxu0 %v1061_v29  ;;  %685 = vmatmul.mubr.bf16.gmra.mrb[12].mxu1 %v1061_v29 }
 0x11c   :  { %v517_v15 = vpop.f32.mrb[0].mxu0  ;;  %v570_v17 = vpop.f32.mrb[0].mxu1 }
 0x11d   :  { %v518_v16 = vadd.f32 %v517_v15, %v114_v12  ;;  %v519_v18 = vpop.f32.mrb[1].mxu0  ;;  %v571_v19 = vadd.f32 %v570_v17, %v122_v0  ;;  %v572_v21 = vpop.f32.mrb[1].mxu1 }
 0x11e   :  { %v520_v20 = vadd.f32 %v519_v18, %v118_v13  ;;  %v521_v22 = vpop.f32.mrb[2].mxu0  ;;  %v573_v24 = vadd.f32 %v572_v21, %v126_v14  ;;  %v574_v26 = vpop.f32.mrb[2].mxu1 }
 0x11f   :  { %v695_v23 = vmax.f32 %v518_v16, 0.0  ;;  %v522_v25 = vadd.f32 %v521_v22, %v114_v12  ;;  %v523_v27 = vpop.f32.mrb[3].mxu0  ;;  %v697_v28 = vmax.f32 %v571_v19, 0.0  ;;  %v575_v30 = vadd.f32 %v574_v26, %v122_v0  ;;  %v576_v32 = vpop.f32.mrb[3].mxu1 }
 0x120   :  { %v696_v29 = vmax.f32 %v520_v20, 0.0  ;;  %v524_v31 = vadd.f32 %v523_v27, %v118_v13  ;;  %v698_v33 = vmax.f32 %v573_v24, 0.0  ;;  %v577_v35 = vadd.f32 %v576_v32, %v126_v14 }
 0x121   :  { %v703_v34 = vmax.f32 %v522_v25, 0.0  ;;  %v705_v37 = vmax.f32 %v575_v30, 0.0 }
 0x122   :  { %v927_v36 = vpack.c.bf16 %v696_v29, %v695_v23  ;;  %v704_v38 = vmax.f32 %v524_v31, 0.0  ;;  %v928_v39 = vpack.c.bf16 %v698_v33, %v697_v28  ;;  %v706_v40 = vmax.f32 %v577_v35, 0.0 }
 0x124   :  { %823 = vst [vmem:[%s1144_s3] sm:$0xff] %v927_v36  ;;  %v931_v41 = vpack.c.bf16 %v704_v38, %v703_v34  ;;  %v527_v42 = vpop.f32.mrb[4].mxu0  ;;  %824 = vst [vmem:[%s1144_s3 + $0x8] sm:$0xff] %v928_v39  ;;  %v932_v43 = vpack.c.bf16 %v706_v40, %v705_v37  ;;  %v580_v45 = vpop.f32.mrb[4].mxu1 }
 0x125   :  { %v528_v44 = vadd.f32 %v527_v42, %v114_v12  ;;  %v529_v46 = vpop.f32.mrb[5].mxu0  ;;  %v581_v47 = vadd.f32 %v580_v45, %v122_v0  ;;  %v582_v49 = vpop.f32.mrb[5].mxu1 }
 0x126   :  { %827 = vst [vmem:[%s1144_s3 + $0x20] sm:$0xff] %v931_v41  ;;  %v530_v48 = vadd.f32 %v529_v46, %v118_v13  ;;  %v531_v50 = vpop.f32.mrb[6].mxu0  ;;  %828 = vst [vmem:[%s1144_s3 + $0x28] sm:$0xff] %v932_v43  ;;  %v583_v52 = vadd.f32 %v582_v49, %v126_v14  ;;  %v584_v54 = vpop.f32.mrb[6].mxu1 }
 0x127   :  { %v711_v51 = vmax.f32 %v528_v44, 0.0  ;;  %v532_v53 = vadd.f32 %v531_v50, %v114_v12  ;;  %v533_v55 = vpop.f32.mrb[7].mxu0  ;;  %v713_v56 = vmax.f32 %v581_v47, 0.0  ;;  %v585_v58 = vadd.f32 %v584_v54, %v122_v0  ;;  %v586_v60 = vpop.f32.mrb[7].mxu1 }
 0x128   :  { %v712_v57 = vmax.f32 %v530_v48, 0.0  ;;  %v534_v59 = vadd.f32 %v533_v55, %v118_v13  ;;  %v714_v61 = vmax.f32 %v583_v52, 0.0  ;;  %v587_v63 = vadd.f32 %v586_v60, %v126_v14 }
 0x129   :  { %v719_v62 = vmax.f32 %v532_v53, 0.0  ;;  %v721_v2 = vmax.f32 %v585_v58, 0.0  ;;  %v133_v12 = vsub.s32 5, %v1073_v6  ;;  %v141_v0 = vsub.s32 7, %v1073_v6 }
 0x12a   :  { %v935_v1 = vpack.c.bf16 %v712_v57, %v711_v51  ;;  %v720_v3 = vmax.f32 %v534_v59, 0.0  ;;  %v936_v4 = vpack.c.bf16 %v714_v61, %v713_v56  ;;  %v722_v5 = vmax.f32 %v587_v63, 0.0 }
 0x12b   :  { %v130_v13 = vrot.slane %v1076_v8, %v129_v11  ;;  %v138_v14 = vrot.slane %v1076_v8, %v137_v10  ;;  %v134_v15 = vrot.slane %v1076_v8, %v133_v12  ;;  %v142_v16 = vrot.slane %v1076_v8, %v141_v0 }
 0x12c   :  { %831 = vst [vmem:[%s1144_s3 + $0x40] sm:$0xff] %v935_v1  ;;  %v939_v7 = vpack.c.bf16 %v720_v3, %v719_v62  ;;  %832 = vst [vmem:[%s1144_s3 + $0x48] sm:$0xff] %v936_v4  ;;  %v940_v9 = vpack.c.bf16 %v722_v5, %v721_v2 }
 0x12e   :  { %835 = vst [vmem:[%s1144_s3 + $0x60] sm:$0xff] %v939_v7  ;;  %836 = vst [vmem:[%s1144_s3 + $0x68] sm:$0xff] %v940_v9 }
 0x13c   :  { %v623_v17 = vpop.f32.mrb[8].mxu0  ;;  %v676_v19 = vpop.f32.mrb[8].mxu1 }
 0x13d   :  { %v624_v18 = vadd.f32 %v623_v17, %v130_v13  ;;  %v625_v20 = vpop.f32.mrb[9].mxu0  ;;  %v677_v21 = vadd.f32 %v676_v19, %v138_v14  ;;  %v678_v23 = vpop.f32.mrb[9].mxu1 }
 0x13e   :  { %v626_v22 = vadd.f32 %v625_v20, %v134_v15  ;;  %v627_v24 = vpop.f32.mrb[10].mxu0  ;;  %v679_v26 = vadd.f32 %v678_v23, %v142_v16  ;;  %v680_v6 = vpop.f32.mrb[10].mxu1 }
 0x13f   :  { %v699_v25 = vmax.f32 %v624_v18, 0.0  ;;  %v628_v27 = vadd.f32 %v627_v24, %v130_v13  ;;  %v629_v28 = vpop.f32.mrb[11].mxu0  ;;  %v701_v29 = vmax.f32 %v677_v21, 0.0  ;;  %v681_v31 = vadd.f32 %v680_v6, %v138_v14  ;;  %v682_v33 = vpop.f32.mrb[11].mxu1 }
 0x140   :  { %v700_v30 = vmax.f32 %v626_v22, 0.0  ;;  %v630_v32 = vadd.f32 %v629_v28, %v134_v15  ;;  %v702_v34 = vmax.f32 %v679_v26, 0.0  ;;  %v683_v35 = vadd.f32 %v682_v33, %v142_v16 }
 0x141   :  { %v707_v8 = vmax.f32 %v628_v27, 0.0  ;;  %v709_v37 = vmax.f32 %v681_v31, 0.0 }
 0x142   :  { %v929_v36 = vpack.c.bf16 %v700_v30, %v699_v25  ;;  %v708_v38 = vmax.f32 %v630_v32, 0.0  ;;  %v930_v39 = vpack.c.bf16 %v702_v34, %v701_v29  ;;  %v710_v40 = vmax.f32 %v683_v35, 0.0 }
 0x144   :  { %825 = vst [vmem:[%s1144_s3 + $0x10] sm:$0xff] %v929_v36  ;;  %v933_v41 = vpack.c.bf16 %v708_v38, %v707_v8  ;;  %v633_v42 = vpop.f32.mrb[12].mxu0  ;;  %826 = vst [vmem:[%s1144_s3 + $0x18] sm:$0xff] %v930_v39  ;;  %v934_v43 = vpack.c.bf16 %v710_v40, %v709_v37  ;;  %v686_v45 = vpop.f32.mrb[12].mxu1 }
 0x145   :  { %v634_v44 = vadd.f32 %v633_v42, %v130_v13  ;;  %v635_v46 = vpop.f32.mrb[13].mxu0  ;;  %v687_v47 = vadd.f32 %v686_v45, %v138_v14  ;;  %v688_v49 = vpop.f32.mrb[13].mxu1 }
 0x146   :  { %829 = vst [vmem:[%s1144_s3 + $0x30] sm:$0xff] %v933_v41  ;;  %v636_v48 = vadd.f32 %v635_v46, %v134_v15  ;;  %v637_v50 = vpop.f32.mrb[14].mxu0  ;;  %830 = vst [vmem:[%s1144_s3 + $0x38] sm:$0xff] %v934_v43  ;;  %v689_v52 = vadd.f32 %v688_v49, %v142_v16  ;;  %v690_v54 = vpop.f32.mrb[14].mxu1 }
 0x147   :  { %v715_v51 = vmax.f32 %v634_v44, 0.0  ;;  %v638_v53 = vadd.f32 %v637_v50, %v130_v13  ;;  %v639_v55 = vpop.f32.mrb[15].mxu0  ;;  %v717_v56 = vmax.f32 %v687_v47, 0.0  ;;  %v691_v58 = vadd.f32 %v690_v54, %v138_v14  ;;  %v692_v60 = vpop.f32.mrb[15].mxu1 }
 0x148   :  { %v716_v57 = vmax.f32 %v636_v48, 0.0  ;;  %v640_v59 = vadd.f32 %v639_v55, %v134_v15  ;;  %v718_v61 = vmax.f32 %v689_v52, 0.0  ;;  %v693_v63 = vadd.f32 %v692_v60, %v142_v16 }
 0x149   :  { %v723_v62 = vmax.f32 %v638_v53, 0.0  ;;  %v725_v2 = vmax.f32 %v691_v58, 0.0 }
 0x14a   :  { %v937_v1 = vpack.c.bf16 %v716_v57, %v715_v51  ;;  %v724_v3 = vmax.f32 %v640_v59, 0.0  ;;  %v938_v4 = vpack.c.bf16 %v718_v61, %v717_v56  ;;  %v726_v5 = vmax.f32 %v693_v63, 0.0 }
 0x14c   :  { %833 = vst [vmem:[%s1144_s3 + $0x50] sm:$0xff] %v937_v1  ;;  %v941_v7 = vpack.c.bf16 %v724_v3, %v723_v62  ;;  %834 = vst [vmem:[%s1144_s3 + $0x58] sm:$0xff] %v938_v4  ;;  %v942_v9 = vpack.c.bf16 %v726_v5, %v725_v2 }
 0x14e   :  { %837 = vst [vmem:[%s1144_s3 + $0x70] sm:$0xff] %v941_v7  ;;  %838 = vst [vmem:[%s1144_s3 + $0x78] sm:$0xff] %v942_v9 }
 0x14f   :  { %843 = vsyncpa [#allocation3], 1 }
 0x150   :  { %844 = vsyncpa [#allocation5], 1 }

// kernel: se_res2block.3
= control target key start
LH: loop header
LB: loop body
LE: loop exit
PB: predicated region body
PF: predicated region fallthrough
CT: control target
= control target key end

     0   :  { %20 = vsyncpa [#allocation5], 0  ;;  %s10339_s0 = inlined_call_operand.vmem [shape: bf16[2,16,1024], index: 0, kind: input, shape index: {}]   ;;  %s10340_s1 = inlined_call_operand.vmem [shape: f32[1,1,1024], index: 1, kind: input, shape index: {}]   ;;  %s10341_s2 = inlined_call_operand.vmem [shape: f32[1,1,1024], index: 2, kind: input, shape index: {}]   ;;  %s10342_s3 = inlined_call_operand.hbm [shape: bf16[7,384,128], index: 3, kind: input, shape index: {}]   ;;  %s10343_s4 = inlined_call_operand.vmem [shape: f32[7,1,1,128], index: 4, kind: input, shape index: {}]   ;;  %s10344_s5 = inlined_call_operand.vmem [shape: f32[7,1,1,128], index: 5, kind: input, shape index: {}]   ;;  %s10345_s6 = inlined_call_operand.vmem [shape: f32[7,1,1,128], index: 6, kind: input, shape index: {}]   ;;  %s10346_s7 = inlined_call_operand.vmem [shape: bf16[1024,128], index: 7, kind: input, shape index: {}]   ;;  %s10347_s8 = inlined_call_operand.vmem [shape: f32[1,1,128], index: 8, kind: input, shape index: {}]   ;;  %s10348_s9 = inlined_call_operand.vmem [shape: f32[1,1,128], index: 9, kind: input, shape index: {}]   ;;  %s10349_s10 = inlined_call_operand.vmem [shape: f32[1,1,128], index: 10, kind: input, shape index: {}]   ;;  %s10350_s11 = inlined_call_operand.vmem [shape: bf16[128,128], index: 11, kind: input, shape index: {}]   ;;  %s10351_s12 = inlined_call_operand.vmem [shape: f32[1,128], index: 12, kind: input, shape index: {}]   ;;  %s10352_s13 = inlined_call_operand.vmem [shape: bf16[128,128], index: 13, kind: input, shape index: {}]   ;;  %s10353_s14 = inlined_call_operand.vmem [shape: f32[1,128], index: 14, kind: input, shape index: {}]   ;;  %s10354_s15 = inlined_call_operand.hbm [shape: f32[2,16,128], index: 15, kind: output, shape index: {}]  }
   0x1   :  { %21 = vsyncpa [#allocation6], 0  ;;  %s8991_s18 = smov [#allocation4]   ;;  %s8943_s22 = scalar_lea.hbm %s10342_s3, 21504 }
   0x2   :  { %s33_s19 = sshll.u32 %s8991_s18, 4  ;;  %p8944_p0 = scmp.ne.s32.totalorder %s10342_s3, %s8943_s22  ;;  %s34_s19 = int_to_ptr.vmem [resolvable:$true] %s33_s19 }
   0x3   :  { %p8947_p1 = scmp.lt.u32.totalorder %s8943_s22, %s10342_s3 }
   0x5   :  { %p8949_p2 = pnand %p8947_p1, %p8944_p0 }
   0x7   :  { %8952 = shalt.err (!%p8949_p2)
}
   0x8   :  { %s8953_s27 = scalar_lea.vmem %s34_s19, 21504  ;;  %p8958_p4 = scmp.lt.s32.totalorder %s34_s19, %s34_s19 }
   0x9   :  { %p8954_p3 = scmp.ne.s32.totalorder %s34_s19, %s8953_s27  ;;  %p8959_p5 = scmp.lt.s32.totalorder %s8953_s27, %s8953_s27 }
   0xb   :  { %p8960_p6 = por %p8959_p5, %p8958_p4 }
   0xd   :  { %p8961_p7 = pnand %p8960_p6, %p8954_p3 }
   0xf   :  { %8964 = shalt.err (!%p8961_p7)
}
  0x10   :  { %s8992_s28 = smov 64   ;;  %s8993_s29 = smov 4  }
  0x11   :  { %39 = dma.hbm_to_vmem [thread:$0]  %s10342_s3, 21504, %s34_s19, [#allocation5], %s8992_s28, %s8992_s28, %s8993_s29  }
  0x12   :  { %8987 = dma.done.wait [#allocation5], 21504  }
  0x13   :  { %8988 = vsyncadd [#allocation5], 4294945792  ;;  %v8994_v0 = vmov 0.0   ;;  %vm8995_vm0 = vmmov 0   ;;  %vm83_vm1 = vcmask 261120   ;;  %v128_v14 = vlaneseq }
  0x14   :  { %7698 = vmatprep.subr.bf16.mxu1 %v8994_v0  ;;  %7702 = vmatprep.mubr.msk.bf16.mxu1 %vm8995_vm0, %v8994_v0  ;;  %v326_v1 = vld [vmem:[%s10339_s0 + $0x4] sm:$0xf]  ;;  %v73_v6 = vld [vmem:[%s10339_s0] sm:$0xf]  ;;  %v8996_v13 = vmov 1065369472  }
  0x15   :  { %7662 = vmatprep.subr.bf16.mxu0 %v8994_v0  ;;  %7666 = vmatprep.mubr.msk.bf16.mxu0 %vm8995_vm0, %v8994_v0  ;;  %v327_v2 = vld [vmem:[%s10339_s0 + $0x24] sm:$0xf]  ;;  %v74_v7 = vld [vmem:[%s10339_s0 + $0x20] sm:$0xf]  ;;  %v9136_v15 = vshrl.u32 %v128_v14, 7  ;;  %v8645_v14 = vld [vmem:[%s10346_s7 + $0x8] sm:$0xff]  }
  0x16   :  { %v328_v3 = vld [vmem:[%s10339_s0 + $0x44] sm:$0xf]  ;;  %v6811_v4 = vcombine.low %v326_v1, %v327_v2  ;;  %v75_v8 = vld [vmem:[%s10339_s0 + $0x40] sm:$0xf]  ;;  %v6799_v11 = vcombine.low %v73_v6, %v74_v7  ;;  %v8633_v2 = vld [vmem:[#allocation4 + $0x40] sm:$0xff]   ;;  %v8997_v7 = vmov 0  }
  0x17   :  { %v329_v5 = vld [vmem:[%s10339_s0 + $0x64] sm:$0xf]  ;;  %v76_v9 = vld [vmem:[%s10339_s0 + $0x60] sm:$0xf]  ;;  %v9139_v16 = vsub.s32 0, %v9136_v15  ;;  %v8637_v6 = vld [vmem:[#allocation4 + $0x60] sm:$0xff]  }
  0x18   :  { %7699 = vmatpush3.bf16.msra.mxu1 %v6811_v4  ;;  %v6812_v10 = vcombine.low %v328_v3, %v329_v5  ;;  %7663 = vmatpush3.bf16.msra.mxu0 %v6799_v11  ;;  %v6800_v12 = vcombine.low %v75_v8, %v76_v9  ;;  %v8929_v17 = vld [vmem:[%s10339_s0 + $0x4] sm:$0xf]  ;;  %v8933_v34 = vld [vmem:[%s10339_s0] sm:$0xf]  ;;  %v8635_v4 = vld [vmem:[#allocation4 + $0x50] sm:$0xff]   ;;  %vm471_vm2 = vcmask 1040384  }
  0x19   :  { %7700 = vmatprep.subr.bf16.mxu1 %v8994_v0  ;;  %7664 = vmatprep.subr.bf16.mxu0 %v8994_v0  ;;  %v330_v18 = vunpack.c.l.bf16 %v8929_v17  ;;  %v8930_v20 = vld [vmem:[%s10339_s0 + $0x24] sm:$0xf]  ;;  %v77_v35 = vunpack.c.l.bf16 %v8933_v34  ;;  %v8934_v36 = vld [vmem:[%s10339_s0 + $0x20] sm:$0xf]  ;;  %v8636_v5 = vld [vmem:[#allocation4 + $0x58] sm:$0xff]   ;;  %vm472_vm3 = vcmask 1044484  }
  0x1a   :  { %v331_v21 = vunpack.c.l.bf16 %v8930_v20  ;;  %v8931_v22 = vld [vmem:[%s10339_s0 + $0x44] sm:$0xf]  ;;  %v78_v37 = vunpack.c.l.bf16 %v8934_v36  ;;  %v8935_v38 = vld [vmem:[%s10339_s0 + $0x40] sm:$0xf]  ;;  %67 = vst [vmem:[#allocation2] sm:$0x1] %v8997_v7  ;;  %vm9261_vm4 = vmor %vm471_vm2, %vm472_vm3 }
  0x1b   :  { %v332_v23 = vunpack.c.l.bf16 %v8931_v22  ;;  %v8932_v24 = vld [vmem:[%s10339_s0 + $0x64] sm:$0xf]  ;;  %v79_v39 = vunpack.c.l.bf16 %v8935_v38  ;;  %v8936_v40 = vld [vmem:[%s10339_s0 + $0x60] sm:$0xf]  ;;  %70 = vst [vmem:[#allocation2 + $0x14] sm:$0x2] %v8997_v7 }
  0x1c   :  { %7701 = vmatpush3.bf16.msra.mxu1 %v6812_v10  ;;  %7665 = vmatpush3.bf16.msra.mxu0 %v6800_v12  ;;  %v333_v25 = vunpack.c.l.bf16 %v8932_v24  ;;  %v80_v41 = vunpack.c.l.bf16 %v8936_v40  ;;  %v8634_v3 = vld [vmem:[#allocation4 + $0x48] sm:$0xff]   ;;  %68 = vst [vmem:[#allocation2 + $0xc] sm:$0x1] %v8997_v7  ;;  %69 = vst [vmem:[#allocation2 + $0x8] sm:$0x2] %v8997_v7  ;;  %v8639_v9 = vld [vmem:[#allocation4 + $0x70] sm:$0xff]  }
  0x1d   :  { %7706 = vmatprep.subr.bf16.mxu1 %v8994_v0  ;;  %7670 = vmatprep.subr.bf16.mxu0 %v8994_v0  ;;  %v8638_v8 = vld [vmem:[#allocation4 + $0x68] sm:$0xff]   ;;  %v8640_v10 = vld [vmem:[#allocation4 + $0x78] sm:$0xff]   ;;  %v9205_v11 = vld [vmem:[#allocation4] sm:$0xff]   ;;  %vm526_vm5 = vcmask 1042432   ;;  %vm527_vm6 = vcmask 1046532   ;;  %vm779_vm8 = vcmask 1041408  }
  0x1e   :  { %v8643_v12 = vld [vmem:[%s10346_s7] sm:$0xff]   ;;  %v8647_v17 = vld [vmem:[%s10346_s7 + $0x10] sm:$0xff]   ;;  %v8653_v20 = vld [vmem:[%s10346_s7 + $0x28] sm:$0xff]   ;;  %vm780_vm9 = vcmask 1045508   ;;  %vm6530_vm11 = vcmask 1041409  }
  0x1f   :  { %7703 = vmatmul.mubr.msk.bf16.vlgmr.msra.gmra.mrb[0].mxu1 %vm83_vm1, %v8996_v13  ;;  %7667 = vmatmul.mubr.msk.bf16.vlgmr.msra.gmra.mrb[0].mxu0 %vm83_vm1, %v8996_v13  ;;  %v8657_v22 = vld [vmem:[%s10346_s7 + $0x38] sm:$0xff]   ;;  %v9241_v38 = vld [vmem:[%s10341_s2] sm:$0xff]  ;;  %vm9274_vm7 = vmor %vm526_vm5, %vm527_vm6 }
  0x20   :  { %7710 = vmatprep.mubr.msk.bf16.mxu1 %vm8995_vm0, %v8994_v0  ;;  %7674 = vmatprep.mubr.msk.bf16.mxu0 %vm8995_vm0, %v8994_v0  ;;  %v449_v40 = vrot.slane %v9241_v38, 1  ;;  %vm9287_vm10 = vmor %vm779_vm8, %vm780_vm9 }
  0xf2   :  { %v370_v19 = vpop.f32.mrb[0].mxu1  ;;  %v121_v29 = vpop.f32.mrb[0].mxu0 }
  0xf3   :  { %v376_v26 = vmul.f32 0.03125, %v370_v19  ;;  %v7704_v27 = vpop.f32.mrb[1].mxu1  ;;  %v127_v32 = vmul.f32 0.03125, %v121_v29  ;;  %v7668_v33 = vpop.f32.mrb[1].mxu0  ;;  %v8651_v19 = vld [vmem:[%s10346_s7 + $0x20] sm:$0xff]  }
  0xf4   :  { %v373_v28 = vpop.f32.mrb[2].mxu1  ;;  %v124_v42 = vpop.f32.mrb[2].mxu0 }
  0xf5   :  { %v380_v30 = vrot.slane %v376_v26, %v9139_v16  ;;  %v7705_v31 = vpop.f32.mrb[3].mxu1  ;;  %v7669_v47 = vpop.f32.mrb[3].mxu0  ;;  %v131_v48 = vrot.slane %v127_v32, %v9139_v16 }
  0xf7   :  { %v9166_v43 = vsub.f32 %v330_v18, %v380_v30  ;;  %v9168_v44 = vsub.f32 %v331_v21, %v380_v30  ;;  %v9170_v45 = vsub.f32 %v332_v23, %v380_v30  ;;  %v9172_v46 = vsub.f32 %v333_v25, %v380_v30  ;;  %v8649_v18 = vld [vmem:[%s10346_s7 + $0x18] sm:$0xff]   ;;  %v8655_v21 = vld [vmem:[%s10346_s7 + $0x30] sm:$0xff]  }
  0xf8   :  { %v9179_v51 = vsub.f32 %v77_v35, %v131_v48  ;;  %v9181_v52 = vsub.f32 %v78_v37, %v131_v48  ;;  %v9183_v53 = vsub.f32 %v79_v39, %v131_v48  ;;  %v9185_v54 = vsub.f32 %v80_v41, %v131_v48  ;;  %v9236_v37 = vld [vmem:[%s10340_s1] sm:$0xff] }
  0xf9   :  { %v385_v49 = vmul.f32 %v9166_v43, %v9166_v43  ;;  %v386_v50 = vmul.f32 %v9168_v44, %v9168_v44  ;;  %v387_v56 = vmul.f32 %v9170_v45, %v9170_v45  ;;  %v388_v57 = vmul.f32 %v9172_v46, %v9172_v46 }
  0xfa   :  { %v136_v58 = vmul.f32 %v9179_v51, %v9179_v51  ;;  %v137_v59 = vmul.f32 %v9181_v52, %v9181_v52  ;;  %v138_v60 = vmul.f32 %v9183_v53, %v9183_v53  ;;  %v139_v61 = vmul.f32 %v9185_v54, %v9185_v54 }
  0xfb   :  { %v389_v55 = vpack.c.bf16 %v386_v50, %v385_v49  ;;  %v390_v63 = vpack.c.bf16 %v388_v57, %v387_v56  ;;  %v434_v39 = vrot.slane %v9236_v37, 1  ;;  %v453_v49 = vrot.slane %v449_v40, %v9139_v16 }
  0xfc   :  { %v140_v62 = vpack.c.bf16 %v137_v59, %v136_v58  ;;  %v141_v1 = vpack.c.bf16 %v139_v61, %v138_v60  ;;  %v201_v60 = vrot.slane %v9241_v38, %v9139_v16 }
  0xfd   :  { %7707 = vmatpush3.bf16.msra.mxu1 %v389_v55 }
  0xfe   :  { %7708 = vmatprep.subr.bf16.mxu1 %v8994_v0  ;;  %7671 = vmatpush3.bf16.msra.mxu0 %v140_v62 }
  0xff   :  { %7672 = vmatprep.subr.bf16.mxu0 %v8994_v0 }
 0x101   :  { %7709 = vmatpush3.bf16.msra.mxu1 %v390_v63 }
 0x102   :  { %7673 = vmatpush3.bf16.msra.mxu0 %v141_v1  ;;  %7714 = vmatprep.subr.bf16.mxu1 %v8633_v2 }
 0x103   :  { %7678 = vmatprep.subr.bf16.mxu0 %v8643_v12 }
 0x104   :  { %7711 = vmatmul.mubr.msk.bf16.vlgmr.msra.gmra.mrb[4].mxu1 %vm83_vm1, %v8996_v13 }
 0x105   :  { %7675 = vmatmul.mubr.msk.bf16.vlgmr.msra.gmra.mrb[4].mxu0 %vm83_vm1, %v8996_v13  ;;  %7715 = vmatpush3.bf16.msra.mxu1 %v8633_v2 }
 0x106   :  { %7716 = vmatprep.subr.bf16.mxu1 %v8634_v3  ;;  %7679 = vmatpush3.bf16.msra.mxu0 %v8643_v12 }
 0x107   :  { %7680 = vmatprep.subr.bf16.mxu0 %v8645_v14 }
 0x109   :  { %7717 = vmatpush3.bf16.msra.mxu1 %v8634_v3 }
 0x10a   :  { %7718 = vmatprep.subr.bf16.mxu1 %v8635_v4  ;;  %7681 = vmatpush3.bf16.msra.mxu0 %v8645_v14 }
 0x10b   :  { %7682 = vmatprep.subr.bf16.mxu0 %v8647_v17 }
 0x10d   :  { %7719 = vmatpush3.bf16.msra.mxu1 %v8635_v4 }
 0x10e   :  { %7720 = vmatprep.subr.bf16.mxu1 %v8636_v5  ;;  %7683 = vmatpush3.bf16.msra.mxu0 %v8647_v17 }
 0x10f   :  { %7684 = vmatprep.subr.bf16.mxu0 %v8649_v18 }
 0x111   :  { %7721 = vmatpush3.bf16.msra.mxu1 %v8636_v5 }
 0x112   :  { %7722 = vmatprep.subr.bf16.mxu1 %v8637_v6  ;;  %7685 = vmatpush3.bf16.msra.mxu0 %v8649_v18 }
 0x113   :  { %7686 = vmatprep.subr.bf16.mxu0 %v8651_v19 }
 0x115   :  { %7723 = vmatpush3.bf16.msra.mxu1 %v8637_v6 }
 0x116   :  { %7724 = vmatprep.subr.bf16.mxu1 %v8638_v8  ;;  %7687 = vmatpush3.bf16.msra.mxu0 %v8651_v19 }
 0x117   :  { %7688 = vmatprep.subr.bf16.mxu0 %v8653_v20 }
 0x119   :  { %7725 = vmatpush3.bf16.msra.mxu1 %v8638_v8 }
 0x11a   :  { %7726 = vmatprep.subr.bf16.mxu1 %v8639_v9  ;;  %7689 = vmatpush3.bf16.msra.mxu0 %v8653_v20 }
 0x11b   :  { %7690 = vmatprep.subr.bf16.mxu0 %v8655_v21 }
 0x11d   :  { %7727 = vmatpush3.bf16.msra.mxu1 %v8639_v9 }
 0x11e   :  { %7728 = vmatprep.subr.bf16.mxu1 %v8640_v10  ;;  %7691 = vmatpush3.bf16.msra.mxu0 %v8655_v21 }
 0x11f   :  { %7692 = vmatprep.subr.bf16.mxu0 %v8657_v22 }
 0x121   :  { %7729 = vmatpush3.bf16.msra.mxu1 %v8640_v10 }
 0x122   :  { %7734 = vmatprep.subr.bf16.mxu1 %v9205_v11  ;;  %7693 = vmatpush3.bf16.msra.mxu0 %v8657_v22 }
 0x123   :  { %7774 = vmatprep.subr.bf16.mxu0 %v8994_v0 }
 0x1d7   :  { %v425_v23 = vpop.f32.mrb[4].mxu1 }
 0x1d8   :  { %v431_v24 = vmul.f32 0.03125, %v425_v23  ;;  %v7712_v25 = vpop.f32.mrb[5].mxu1  ;;  %v176_v29 = vpop.f32.mrb[4].mxu0 }
 0x1d9   :  { %v428_v26 = vpop.f32.mrb[6].mxu1  ;;  %v182_v30 = vmul.f32 0.03125, %v176_v29  ;;  %v7676_v31 = vpop.f32.mrb[5].mxu0 }
 0x1da   :  { %v432_v27 = vmax.f32 %v431_v24, 0.0  ;;  %v7713_v28 = vpop.f32.mrb[7].mxu1  ;;  %v179_v33 = vpop.f32.mrb[6].mxu0  ;;  %v8857_v31 = vld [vmem:[#allocation4 + $0x4a8] sm:$0xff]  }
 0x1db   :  { %v183_v34 = vmax.f32 %v182_v30, 0.0  ;;  %v7677_v35 = vpop.f32.mrb[7].mxu0 }
 0x1dc   :  { %v436_v32 = vadd.f32 1e-05, %v432_v27 }
 0x1dd   :  { %v184_v36 = vadd.f32 1e-05, %v183_v34 }
 0x1de   :  { %8893 = vrsqrt.f32 %v436_v32 }
 0x1df   :  { %8895 = vrsqrt.f32 %v184_v36 }
 0x1e8   :  { %v8894_v41 = vpop.eup %8893 }
 0x1e9   :  { %v438_v42 = vmul.f32 %v8894_v41, %v434_v39  ;;  %v8896_v47 = vpop.eup %8895 }
 0x1ea   :  { %v186_v50 = vmul.f32 %v8896_v47, %v9236_v37 }
 0x1eb   :  { %v443_v48 = vrot.slane %v438_v42, %v9139_v16 }
 0x1ec   :  { %v191_v59 = vrot.slane %v186_v50, %v9139_v16 }
 0x1ed   :  { %v445_v55 = vmul.f32 %v443_v48, %v9166_v43  ;;  %v446_v56 = vmul.f32 %v443_v48, %v9168_v44  ;;  %v447_v57 = vmul.f32 %v443_v48, %v9170_v45  ;;  %v448_v58 = vmul.f32 %v443_v48, %v9172_v46 }
 0x1ee   :  { %v193_v2 = vmul.f32 %v191_v59, %v9179_v51  ;;  %v194_v43 = vmul.f32 %v191_v59, %v9181_v52  ;;  %v195_v44 = vmul.f32 %v191_v59, %v9183_v53  ;;  %v196_v45 = vmul.f32 %v191_v59, %v9185_v54  ;;  %v8648_v59 = vld [vmem:[#allocation4 + $0x20] sm:$0xff]  }
 0x1ef   :  { %v455_v61 = vadd.f32 %v453_v49, %v445_v55  ;;  %v456_v62 = vadd.f32 %v453_v49, %v446_v56  ;;  %v457_v63 = vadd.f32 %v453_v49, %v447_v57  ;;  %v458_v1 = vadd.f32 %v453_v49, %v448_v58  ;;  %v8642_v55 = vld [vmem:[#allocation4 + $0x8] sm:$0xff]   ;;  %v8644_v57 = vld [vmem:[#allocation4 + $0x10] sm:$0xff]   ;;  %v8646_v58 = vld [vmem:[#allocation4 + $0x18] sm:$0xff]  }
 0x1f0   :  { %v203_v6 = vadd.f32 %v201_v60, %v193_v2  ;;  %v204_v7 = vadd.f32 %v201_v60, %v194_v43  ;;  %v205_v8 = vadd.f32 %v201_v60, %v195_v44  ;;  %v206_v9 = vadd.f32 %v201_v60, %v196_v45  ;;  %v8650_v60 = vld [vmem:[#allocation4 + $0x28] sm:$0xff]   ;;  %v8656_v43 = vld [vmem:[#allocation4 + $0x80] sm:$0xff]  }
 0x1f1   :  { %v7230_v46 = vpack.c.bf16 %v455_v61, %v455_v61  ;;  %v7231_v3 = vpack.c.bf16 %v456_v62, %v456_v62  ;;  %v7232_v4 = vpack.c.bf16 %v457_v63, %v457_v63  ;;  %v7233_v5 = vpack.c.bf16 %v458_v1, %v458_v1  ;;  %v8652_v61 = vld [vmem:[#allocation4 + $0x30] sm:$0xff]   ;;  %v8654_v63 = vld [vmem:[#allocation4 + $0x38] sm:$0xff]  }
 0x1f2   :  { %v207_v52 = vpack.c.bf16 %v204_v7, %v203_v6  ;;  %v208_v53 = vpack.c.bf16 %v206_v9, %v205_v8  ;;  %v8658_v7 = vld [vmem:[#allocation4 + $0x88] sm:$0xff]   ;;  %v8659_v9 = vld [vmem:[#allocation4 + $0x90] sm:$0xff]  }
 0x1f3   :  { %v474_v10 = vrot.slane %v7230_v46, 7  ;;  %v476_v12 = vrot.slane %v7231_v3, 7  ;;  %v479_v14 = vrot.slane %v7232_v4, 7  ;;  %v481_v17 = vrot.slane %v7233_v5, 7 }
 0x1f4   :  { %7694 = vmatprep.mubr.bf16.mxu0 %v207_v52 }
 0x1f5   :  { %v475_v54 = vrot.slane %v474_v10, 4  ;;  %v478_v18 = vrot.slane %v476_v12, 4  ;;  %v480_v19 = vrot.slane %v479_v14, 4  ;;  %v483_v20 = vrot.slane %v481_v17, 4  ;;  %490 = vst [vmem:[#allocation2] sm:$0xe] %v474_v10  ;;  %7695 = vmatmul.mubr.bf16.vlgmr.msra.gmra.mrb[8].mxu0 %v208_v53 }
 0x1f6   :  { %493 = vst [vmem:[#allocation2 + $0xc] sm:$0xe] %v479_v14  ;;  %7778 = vmatprep.mubr.msk.bf16.mxu0 %vm8995_vm0, %v8994_v0  ;;  %v8660_v10 = vld [vmem:[#allocation4 + $0x98] sm:$0xff]   ;;  %v8662_v14 = vld [vmem:[#allocation4 + $0xa8] sm:$0xff]  }
 0x1f7   :  { %v477_v21 = vsel %vm9261_vm4, %v475_v54, %v476_v12  ;;  %v482_v22 = vsel %vm9261_vm4, %v480_v19, %v481_v17  ;;  %492 = vst [vmem:[#allocation2 + $0x8] sm:$0x1] %v478_v18  ;;  %495 = vst [vmem:[#allocation2 + $0x14] sm:$0x1] %v483_v20  ;;  %v8661_v12 = vld [vmem:[#allocation4 + $0xa0] sm:$0xff]   ;;  %v8663_v17 = vld [vmem:[#allocation4 + $0xb0] sm:$0xff]  }
 0x1f8   :  { %491 = vst [vmem:[#allocation2 + $0x4] sm:$0xf] %v477_v21  ;;  %494 = vst [vmem:[#allocation2 + $0x10] sm:$0xf] %v482_v22  ;;  %v8664_v53 = vld [vmem:[#allocation4 + $0xb8] sm:$0xff]  }
 0x1fc   :  { %v516_v23 = vld [vmem:[#allocation2] sm:$0xe] }
 0x1fd   :  { %v518_v25 = vld [vmem:[#allocation2 + $0xc] sm:$0xe]  ;;  %v6819_v32 = vrot.slane %v516_v23, 9  ;;  %v496_v50 = vld [vmem:[#allocation2] sm:$0xf] }
 0x1fe   :  { %v517_v24 = vld [vmem:[#allocation2 + $0x8] sm:$0x1]  ;;  %v519_v28 = vld [vmem:[#allocation2 + $0x14] sm:$0x1]  ;;  %v6820_v33 = vrot.slane %v518_v25, 9 }
 0x1ff   :  { %v497_v26 = vld [vmem:[#allocation2 + $0x4] sm:$0xf]  ;;  %v9271_v27 = vld [vmem:[#allocation2 + $0x10] sm:$0xf]  ;;  %v534_v35 = vrot.slane %v517_v24, 5  ;;  %v541_v39 = vrot.slane %v519_v28, 5 }
 0x200   :  { %v531_v29 = vrot.slane %v497_v26, 5  ;;  %v538_v30 = vrot.slane %v9271_v27, 5  ;;  %v6831_v56 = vcombine.low %v496_v50, %v497_v26  ;;  %v784_v62 = vrot.slane %v497_v26, 6  ;;  %v771_v2 = vld [vmem:[#allocation2] sm:$0xc] }
 0x201   :  { %v6841_v46 = vrot.slane %v771_v2, 10  ;;  %v498_v4 = vld [vmem:[#allocation2 + $0xc] sm:$0xf]  ;;  %v791_v52 = vrot.slane %v9271_v27, 6  ;;  %v774_v54 = vld [vmem:[#allocation2 + $0x14] sm:$0x3] }
 0x202   :  { %v533_v34 = vrot.slane %v531_v29, 4  ;;  %v540_v36 = vrot.slane %v538_v30, 4  ;;  %v532_v40 = vsel %vm9274_vm7, %v6819_v32, %v531_v29  ;;  %v539_v42 = vsel %vm9274_vm7, %v6820_v33, %v538_v30  ;;  %v773_v19 = vld [vmem:[#allocation2 + $0xc] sm:$0xc]  ;;  %v6853_v25 = vld [vmem:[%s10343_s4] ss:$0 sm:$0xff] }
 0x203   :  { %v786_v1 = vrot.slane %v784_v62, 4  ;;  %v6832_v5 = vcombine.low %v498_v4, %v9271_v27  ;;  %v785_v6 = vsel %vm9287_vm10, %v6841_v46, %v784_v62  ;;  %v793_v18 = vrot.slane %v791_v52, 4  ;;  %v8665_v2 = vld [vmem:[%s10346_s7 + $0x40] sm:$0xff]   ;;  %v8667_v46 = vld [vmem:[%s10346_s7 + $0x50] sm:$0xff]  }
 0x204   :  { %v535_v41 = vsel %vm9274_vm7, %v533_v34, %v534_v35  ;;  %v542_v47 = vsel %vm9274_vm7, %v540_v36, %v541_v39  ;;  %v794_v20 = vrot.slane %v774_v54, 6  ;;  %v6842_v21 = vrot.slane %v773_v19, 10  ;;  %v8669_v4 = vld [vmem:[%s10346_s7 + $0x60] sm:$0xff]  }
 0x205   :  { %v6821_v48 = vcombine.low %v532_v40, %v535_v41  ;;  %v6822_v49 = vcombine.low %v539_v42, %v542_v47 }
 0x206   :  { %v795_v22 = vsel %vm9287_vm10, %v793_v18, %v794_v20  ;;  %v792_v23 = vsel %vm9287_vm10, %v6842_v21, %v791_v52  ;;  %v6856_v20 = vld [vmem:[%s10345_s6] ss:$0 sm:$0xff] }
 0x207   :  { %7730 = vmatprep.mubr.bf16.mxu1 %v6821_v48  ;;  %v6844_v24 = vcombine.low %v792_v23, %v795_v22 }
 0x208   :  { %7731 = vmatmul.mubr.bf16.vlgmr.msra.gmra.mrb[8].mxu1 %v6822_v49 }
 0x209   :  { %7735 = vmatpush3.bf16.msra.mxu1 %v9205_v11  ;;  %7750 = vmatprep.mubr.bf16.mxu1 %v6831_v56  ;;  %v772_v11 = vld [vmem:[#allocation2 + $0x8] sm:$0x3] }
 0x20a   :  { %7736 = vmatprep.subr.bf16.mxu1 %v8642_v55  ;;  %v787_v44 = vrot.slane %v772_v11, 6 }
 0x20c   :  { %v788_v3 = vsel %vm9287_vm10, %v786_v1, %v787_v44  ;;  %v8666_v44 = vld [vmem:[%s10346_s7 + $0x48] sm:$0xff]  }
 0x20d   :  { %7737 = vmatpush3.bf16.msra.mxu1 %v8642_v55  ;;  %v6843_v8 = vcombine.low %v785_v6, %v788_v3  ;;  %v8668_v3 = vld [vmem:[%s10346_s7 + $0x58] sm:$0xff]   ;;  %v8671_v6 = vld [vmem:[%s10346_s7 + $0x70] sm:$0xff]  }
 0x20e   :  { %7738 = vmatprep.subr.bf16.mxu1 %v8644_v57 }
 0x211   :  { %7739 = vmatpush3.bf16.msra.mxu1 %v8644_v57 }
 0x212   :  { %7740 = vmatprep.subr.bf16.mxu1 %v8646_v58 }
 0x215   :  { %7741 = vmatpush3.bf16.msra.mxu1 %v8646_v58 }
 0x216   :  { %7742 = vmatprep.subr.bf16.mxu1 %v8648_v59 }
 0x219   :  { %7743 = vmatpush3.bf16.msra.mxu1 %v8648_v59 }
 0x21a   :  { %7744 = vmatprep.subr.bf16.mxu1 %v8650_v60 }
 0x21d   :  { %7745 = vmatpush3.bf16.msra.mxu1 %v8650_v60 }
 0x21e   :  { %7746 = vmatprep.subr.bf16.mxu1 %v8652_v61 }
 0x221   :  { %7747 = vmatpush3.bf16.msra.mxu1 %v8652_v61 }
 0x222   :  { %7748 = vmatprep.subr.bf16.mxu1 %v8654_v63 }
 0x225   :  { %7749 = vmatpush3.bf16.msra.mxu1 %v8654_v63 }
 0x226   :  { %7754 = vmatprep.subr.bf16.mxu1 %v8656_v43 }
 0x228   :  { %7751 = vmatmul.mubr.bf16.vlgmr.msra.gmra.mrb[8].mxu1 %v6832_v5  ;;  %v8670_v5 = vld [vmem:[%s10346_s7 + $0x68] sm:$0xff]  }
 0x229   :  { %7755 = vmatpush3.bf16.msra.mxu1 %v8656_v43  ;;  %7770 = vmatprep.mubr.bf16.mxu1 %v6843_v8 }
 0x22a   :  { %7756 = vmatprep.subr.bf16.mxu1 %v8658_v7 }
 0x22d   :  { %7757 = vmatpush3.bf16.msra.mxu1 %v8658_v7  ;;  %v8672_v7 = vld [vmem:[%s10346_s7 + $0x78] sm:$0xff]  }
 0x22e   :  { %7758 = vmatprep.subr.bf16.mxu1 %v8659_v9 }
 0x231   :  { %7759 = vmatpush3.bf16.msra.mxu1 %v8659_v9 }
 0x232   :  { %7760 = vmatprep.subr.bf16.mxu1 %v8660_v10 }
 0x235   :  { %7761 = vmatpush3.bf16.msra.mxu1 %v8660_v10 }
 0x236   :  { %7762 = vmatprep.subr.bf16.mxu1 %v8661_v12 }
 0x239   :  { %7763 = vmatpush3.bf16.msra.mxu1 %v8661_v12 }
 0x23a   :  { %7764 = vmatprep.subr.bf16.mxu1 %v8662_v14 }
 0x23d   :  { %7765 = vmatpush3.bf16.msra.mxu1 %v8662_v14 }
 0x23e   :  { %7766 = vmatprep.subr.bf16.mxu1 %v8663_v17 }
 0x241   :  { %7767 = vmatpush3.bf16.msra.mxu1 %v8663_v17 }
 0x242   :  { %7768 = vmatprep.subr.bf16.mxu1 %v8664_v53 }
 0x245   :  { %7769 = vmatpush3.bf16.msra.mxu1 %v8664_v53  ;;  %v936_v53 = vld [vmem:[%s10344_s5] sm:$0x1] }
 0x246   :  { %7886 = vmatprep.subr.bf16.mxu1 %v8994_v0 }
 0x248   :  { %7771 = vmatmul.mubr.bf16.vlgmr.msra.gmra.mrb[8].mxu1 %v6844_v24 }
 0x249   :  { %7890 = vmatprep.mubr.msk.bf16.mxu1 %vm8995_vm0, %v8994_v0 }
 0x31b   :  { %v7772_v26 = vpop.f32.mrb[8].mxu1 }
 0x31c   :  { %v902_v27 = vpop.f32.mrb[9].mxu1  ;;  %v930_v34 = vadd.f32 %v7772_v26, %v6853_v25  ;;  %v1188_v26 = vld [vmem:[%s10339_s0 + $0x28] sm:$0xf] }
 0x31d   :  { %v928_v28 = vadd.f32 %v6853_v25, %v902_v27  ;;  %v7773_v29 = vpop.f32.mrb[10].mxu1 }
 0x31e   :  { %v905_v30 = vpop.f32.mrb[11].mxu1  ;;  %v931_v32 = vadd.f32 %v7773_v29, %v6853_v25  ;;  %v934_v41 = vmax.f32 %v930_v34, 0.0 }
 0x31f   :  { %v929_v33 = vadd.f32 %v6853_v25, %v905_v30  ;;  %v932_v35 = vmax.f32 %v928_v28, 0.0  ;;  %v1187_v25 = vld [vmem:[%s10339_s0 + $0x8] sm:$0xf] }
 0x320   :  { %v935_v39 = vmax.f32 %v931_v32, 0.0  ;;  %v6865_v34 = vcombine.low %v1187_v25, %v1188_v26 }
 0x321   :  { %v933_v36 = vmax.f32 %v929_v33, 0.0 }
 0x322   :  { %v939_v42 = vpack.c.bf16 %v935_v39, %v934_v41 }
 0x323   :  { %v938_v40 = vpack.c.bf16 %v933_v36, %v932_v35 }
 0x325   :  { %7775 = vmatpush3.bf16.msra.mxu0 %v938_v40  ;;  %v1191_v40 = vunpack.c.l.bf16 %v1187_v25 }
 0x326   :  { %7776 = vmatprep.subr.bf16.mxu0 %v8994_v0 }
 0x329   :  { %7777 = vmatpush3.bf16.msra.mxu0 %v939_v42  ;;  %v1192_v42 = vunpack.c.l.bf16 %v1188_v26 }
 0x32a   :  { %7782 = vmatprep.subr.bf16.mxu0 %v8994_v0 }
 0x32c   :  { %7779 = vmatmul.mubr.msk.bf16.vlgmr.msra.gmra.mrb[12].mxu0 %vm83_vm1, %v8996_v13 }
 0x32d   :  { %7786 = vmatprep.mubr.msk.bf16.mxu0 %vm8995_vm0, %v8994_v0 }
 0x3ff   :  { %v974_v47 = vpop.f32.mrb[12].mxu0 }
 0x400   :  { %v980_v48 = vmul.f32 0.03125, %v974_v47  ;;  %v7780_v49 = vpop.f32.mrb[13].mxu0 }
 0x401   :  { %v977_v50 = vpop.f32.mrb[14].mxu0 }
 0x402   :  { %v984_v55 = vrot.slane %v980_v48, %v9139_v16  ;;  %v7781_v56 = vpop.f32.mrb[15].mxu0 }
 0x404   :  { %v985_v57 = vsub.f32 %v932_v35, %v984_v55  ;;  %v986_v58 = vsub.f32 %v933_v36, %v984_v55  ;;  %v987_v59 = vsub.f32 %v934_v41, %v984_v55  ;;  %v988_v60 = vsub.f32 %v935_v39, %v984_v55  ;;  %v1189_v35 = vld [vmem:[%s10339_s0 + $0x48] sm:$0xf] }
 0x405   :  { %v1190_v36 = vld [vmem:[%s10339_s0 + $0x68] sm:$0xf]  ;;  %v1193_v47 = vunpack.c.l.bf16 %v1189_v35 }
 0x406   :  { %v989_v61 = vmul.f32 %v985_v57, %v985_v57  ;;  %v990_v62 = vmul.f32 %v986_v58, %v986_v58  ;;  %v991_v11 = vmul.f32 %v987_v59, %v987_v59  ;;  %v992_v1 = vmul.f32 %v988_v60, %v988_v60 }
 0x407   :  { %v6866_v39 = vcombine.low %v1189_v35, %v1190_v36  ;;  %v1194_v48 = vunpack.c.l.bf16 %v1190_v36 }
 0x408   :  { %v993_v63 = vpack.c.bf16 %v990_v62, %v989_v61  ;;  %v994_v43 = vpack.c.bf16 %v992_v1, %v991_v11 }
 0x40a   :  { %7783 = vmatpush3.bf16.msra.mxu0 %v993_v63 }
 0x40b   :  { %7784 = vmatprep.subr.bf16.mxu0 %v8994_v0 }
 0x40e   :  { %7785 = vmatpush3.bf16.msra.mxu0 %v994_v43 }
 0x40f   :  { %7790 = vmatprep.subr.bf16.mxu0 %v8665_v2 }
 0x411   :  { %7787 = vmatmul.mubr.msk.bf16.vlgmr.msra.gmra.mrb[16].mxu0 %vm83_vm1, %v8996_v13 }
 0x412   :  { %7791 = vmatpush3.bf16.msra.mxu0 %v8665_v2 }
 0x413   :  { %7792 = vmatprep.subr.bf16.mxu0 %v8666_v44 }
 0x416   :  { %7793 = vmatpush3.bf16.msra.mxu0 %v8666_v44  ;;  %v8673_v44 = vld [vmem:[#allocation4 + $0x100] sm:$0xff]  }
 0x417   :  { %7794 = vmatprep.subr.bf16.mxu0 %v8667_v46 }
 0x41a   :  { %7795 = vmatpush3.bf16.msra.mxu0 %v8667_v46  ;;  %v8674_v46 = vld [vmem:[#allocation4 + $0x108] sm:$0xff]  }
 0x41b   :  { %7796 = vmatprep.subr.bf16.mxu0 %v8668_v3 }
 0x41e   :  { %7797 = vmatpush3.bf16.msra.mxu0 %v8668_v3  ;;  %v8675_v3 = vld [vmem:[#allocation4 + $0x110] sm:$0xff]  }
 0x41f   :  { %7798 = vmatprep.subr.bf16.mxu0 %v8669_v4 }
 0x422   :  { %7799 = vmatpush3.bf16.msra.mxu0 %v8669_v4  ;;  %v8676_v4 = vld [vmem:[#allocation4 + $0x118] sm:$0xff]  }
 0x423   :  { %7800 = vmatprep.subr.bf16.mxu0 %v8670_v5 }
 0x426   :  { %7801 = vmatpush3.bf16.msra.mxu0 %v8670_v5  ;;  %v8677_v5 = vld [vmem:[#allocation4 + $0x120] sm:$0xff]  }
 0x427   :  { %7802 = vmatprep.subr.bf16.mxu0 %v8671_v6 }
 0x42a   :  { %7803 = vmatpush3.bf16.msra.mxu0 %v8671_v6  ;;  %v8678_v6 = vld [vmem:[#allocation4 + $0x128] sm:$0xff]  }
 0x42b   :  { %7804 = vmatprep.subr.bf16.mxu0 %v8672_v7 }
 0x42e   :  { %7805 = vmatpush3.bf16.msra.mxu0 %v8672_v7  ;;  %v8679_v7 = vld [vmem:[#allocation4 + $0x130] sm:$0xff]  }
 0x42f   :  { %7810 = vmatprep.subr.bf16.mxu0 %v8994_v0 }
 0x4e4   :  { %v1029_v8 = vpop.f32.mrb[16].mxu0 }
 0x4e5   :  { %v1035_v9 = vmul.f32 0.03125, %v1029_v8  ;;  %v7788_v10 = vpop.f32.mrb[17].mxu0  ;;  %v8680_v8 = vld [vmem:[#allocation4 + $0x138] sm:$0xff]  }
 0x4e6   :  { %v1032_v12 = vpop.f32.mrb[18].mxu0 }
 0x4e7   :  { %v1036_v14 = vmax.f32 %v1035_v9, 0.0  ;;  %v7789_v17 = vpop.f32.mrb[19].mxu0  ;;  %v9385_v9 = vld [vmem:[#allocation4 + $0xc0] sm:$0xff]  }
 0x4e9   :  { %v1037_v52 = vadd.f32 1e-05, %v1036_v14 }
 0x4eb   :  { %8897 = vrsqrt.f32 %v1037_v52 }
 0x4f5   :  { %v8898_v54 = vpop.eup %8897 }
 0x4f6   :  { %v1039_v18 = vmul.f32 %v8898_v54, %v936_v53 }
 0x4f8   :  { %v1044_v19 = vrot.slane %v1039_v18, %v9139_v16  ;;  %v1294_v18 = vrot.slane %v9236_v37, 2 }
 0x4fa   :  { %v1046_v21 = vmul.f32 %v1044_v19, %v985_v57  ;;  %v1047_v22 = vmul.f32 %v1044_v19, %v986_v58  ;;  %v1048_v23 = vmul.f32 %v1044_v19, %v987_v59  ;;  %v1049_v24 = vmul.f32 %v1044_v19, %v988_v60 }
 0x4fb   :  { %v1309_v19 = vrot.slane %v9241_v38, 2 }
 0x4fc   :  { %v9355_v27 = vadd.f32 %v6856_v20, %v1046_v21  ;;  %v9357_v28 = vadd.f32 %v6856_v20, %v1047_v22  ;;  %v9359_v29 = vadd.f32 %v6856_v20, %v1048_v23  ;;  %v9361_v30 = vadd.f32 %v6856_v20, %v1049_v24 }
 0x4fd   :  { %v1313_v23 = vrot.slane %v1309_v19, %v9139_v16  ;;  %v8686_v19 = vld [vmem:[#allocation4 + $0xe0] sm:$0xff]  }
 0x4fe   :  { %v1060_v32 = vpack.c.bf16 %v9357_v28, %v9355_v27  ;;  %v1061_v33 = vpack.c.bf16 %v9361_v30, %v9359_v29 }
 0x500   :  { %7806 = vmatprep.mubr.bf16.mxu0 %v1060_v32 }
 0x501   :  { %7807 = vmatmul.mubr.bf16.vlgmr.msra.gmra.mrb[8].mxu0 %v1061_v33 }
 0x502   :  { %7811 = vmatpush3.bf16.msra.mxu0 %v6865_v34  ;;  %7814 = vmatprep.mubr.msk.bf16.mxu0 %vm8995_vm0, %v8994_v0 }
 0x503   :  { %7812 = vmatprep.subr.bf16.mxu0 %v8994_v0 }
 0x506   :  { %7813 = vmatpush3.bf16.msra.mxu0 %v6866_v39 }
 0x507   :  { %7818 = vmatprep.subr.bf16.mxu0 %v8994_v0 }
 0x509   :  { %7815 = vmatmul.mubr.msk.bf16.vlgmr.msra.gmra.mrb[20].mxu0 %vm83_vm1, %v8996_v13 }
 0x50a   :  { %7822 = vmatprep.mubr.msk.bf16.mxu0 %vm8995_vm0, %v8994_v0 }
 0x5dc   :  { %v1231_v41 = vpop.f32.mrb[20].mxu0 }
 0x5dd   :  { %v1237_v49 = vmul.f32 0.03125, %v1231_v41  ;;  %v7816_v50 = vpop.f32.mrb[21].mxu0 }
 0x5de   :  { %v1234_v55 = vpop.f32.mrb[22].mxu0 }
 0x5df   :  { %v1241_v56 = vrot.slane %v1237_v49, %v9139_v16  ;;  %v7817_v57 = vpop.f32.mrb[23].mxu0 }
 0x5e1   :  { %v1242_v58 = vsub.f32 %v1191_v40, %v1241_v56  ;;  %v1243_v59 = vsub.f32 %v1192_v42, %v1241_v56  ;;  %v1244_v60 = vsub.f32 %v1193_v47, %v1241_v56  ;;  %v1245_v61 = vsub.f32 %v1194_v48, %v1241_v56 }
 0x5e3   :  { %v1246_v62 = vmul.f32 %v1242_v58, %v1242_v58  ;;  %v1247_v63 = vmul.f32 %v1243_v59, %v1243_v59  ;;  %v1248_v1 = vmul.f32 %v1244_v60, %v1244_v60  ;;  %v1249_v2 = vmul.f32 %v1245_v61, %v1245_v61 }
 0x5e5   :  { %v1250_v11 = vpack.c.bf16 %v1247_v63, %v1246_v62  ;;  %v1251_v43 = vpack.c.bf16 %v1249_v2, %v1248_v1 }
 0x5e7   :  { %7819 = vmatpush3.bf16.msra.mxu0 %v1250_v11 }
 0x5e8   :  { %7820 = vmatprep.subr.bf16.mxu0 %v8994_v0 }
 0x5eb   :  { %7821 = vmatpush3.bf16.msra.mxu0 %v1251_v43 }
 0x5ec   :  { %7826 = vmatprep.subr.bf16.mxu0 %v8673_v44 }
 0x5ee   :  { %7823 = vmatmul.mubr.msk.bf16.vlgmr.msra.gmra.mrb[24].mxu0 %vm83_vm1, %v8996_v13 }
 0x5ef   :  { %7827 = vmatpush3.bf16.msra.mxu0 %v8673_v44 }
 0x5f0   :  { %7828 = vmatprep.subr.bf16.mxu0 %v8674_v46 }
 0x5f3   :  { %7829 = vmatpush3.bf16.msra.mxu0 %v8674_v46 }
 0x5f4   :  { %7830 = vmatprep.subr.bf16.mxu0 %v8675_v3 }
 0x5f7   :  { %7831 = vmatpush3.bf16.msra.mxu0 %v8675_v3 }
 0x5f8   :  { %7832 = vmatprep.subr.bf16.mxu0 %v8676_v4 }
 0x5fb   :  { %7833 = vmatpush3.bf16.msra.mxu0 %v8676_v4 }
 0x5fc   :  { %7834 = vmatprep.subr.bf16.mxu0 %v8677_v5 }
 0x5ff   :  { %7835 = vmatpush3.bf16.msra.mxu0 %v8677_v5 }
 0x600   :  { %7836 = vmatprep.subr.bf16.mxu0 %v8678_v6 }
 0x603   :  { %7837 = vmatpush3.bf16.msra.mxu0 %v8678_v6 }
 0x604   :  { %7838 = vmatprep.subr.bf16.mxu0 %v8679_v7 }
 0x607   :  { %7839 = vmatpush3.bf16.msra.mxu0 %v8679_v7 }
 0x608   :  { %7840 = vmatprep.subr.bf16.mxu0 %v8680_v8 }
 0x60b   :  { %7841 = vmatpush3.bf16.msra.mxu0 %v8680_v8 }
 0x60c   :  { %7846 = vmatprep.subr.bf16.mxu0 %v9385_v9 }
 0x6c1   :  { %v1286_v10 = vpop.f32.mrb[24].mxu0 }
 0x6c2   :  { %v1292_v12 = vmul.f32 0.03125, %v1286_v10  ;;  %v7824_v14 = vpop.f32.mrb[25].mxu0 }
 0x6c3   :  { %v1289_v17 = vpop.f32.mrb[26].mxu0 }
 0x6c4   :  { %v1293_v52 = vmax.f32 %v1292_v12, 0.0  ;;  %v7825_v53 = vpop.f32.mrb[27].mxu0 }
 0x6c6   :  { %v1296_v54 = vadd.f32 1e-05, %v1293_v52  ;;  %v8683_v52 = vld [vmem:[#allocation4 + $0xc8] sm:$0xff]  }
 0x6c8   :  { %8899 = vrsqrt.f32 %v1296_v54  ;;  %v8684_v54 = vld [vmem:[#allocation4 + $0xd0] sm:$0xff]  }
 0x6d2   :  { %v8900_v20 = vpop.eup %8899 }
 0x6d3   :  { %v1298_v21 = vmul.f32 %v8900_v20, %v1294_v18  ;;  %v8685_v18 = vld [vmem:[#allocation4 + $0xd8] sm:$0xff]   ;;  %v8687_v20 = vld [vmem:[#allocation4 + $0xe8] sm:$0xff]  }
 0x6d5   :  { %v1303_v22 = vrot.slane %v1298_v21, %v9139_v16  ;;  %v8688_v21 = vld [vmem:[#allocation4 + $0xf0] sm:$0xff]  }
 0x6d7   :  { %v1305_v24 = vmul.f32 %v1303_v22, %v1242_v58  ;;  %v1306_v25 = vmul.f32 %v1303_v22, %v1243_v59  ;;  %v1307_v26 = vmul.f32 %v1303_v22, %v1244_v60  ;;  %v1308_v32 = vmul.f32 %v1303_v22, %v1245_v61 }
 0x6d9   :  { %v1315_v33 = vadd.f32 %v1313_v23, %v1305_v24  ;;  %v1316_v34 = vadd.f32 %v1313_v23, %v1306_v25  ;;  %v1317_v35 = vadd.f32 %v1313_v23, %v1307_v26  ;;  %v1318_v36 = vadd.f32 %v1313_v23, %v1308_v32  ;;  %v8689_v23 = vld [vmem:[#allocation4 + $0xf8] sm:$0xff]   ;;  %v8691_v26 = vld [vmem:[#allocation4 + $0x140] sm:$0xff]  }
 0x6db   :  { %v1319_v39 = vadd.f32 %v1315_v33, %v9355_v27  ;;  %v1320_v37 = vadd.f32 %v1316_v34, %v9357_v28  ;;  %v1321_v38 = vadd.f32 %v1317_v35, %v9359_v29  ;;  %v1322_v40 = vadd.f32 %v1318_v36, %v9361_v30 }
 0x6dd   :  { %v7234_v41 = vpack.c.bf16 %v1319_v39, %v1319_v39  ;;  %v7235_v42 = vpack.c.bf16 %v1320_v37, %v1320_v37  ;;  %v7236_v47 = vpack.c.bf16 %v1321_v38, %v1321_v38  ;;  %v7237_v48 = vpack.c.bf16 %v1322_v40, %v1322_v40  ;;  %v8692_v37 = vld [vmem:[#allocation4 + $0x148] sm:$0xff]   ;;  %v8693_v40 = vld [vmem:[#allocation4 + $0x150] sm:$0xff]  }
 0x6df   :  { %v1335_v49 = vrot.slane %v7234_v41, 7  ;;  %v1337_v50 = vrot.slane %v7235_v42, 7  ;;  %v1340_v55 = vrot.slane %v7236_v47, 7  ;;  %v1342_v56 = vrot.slane %v7237_v48, 7  ;;  %v8694_v41 = vld [vmem:[#allocation4 + $0x158] sm:$0xff]   ;;  %v8695_v42 = vld [vmem:[#allocation4 + $0x160] sm:$0xff]  }
 0x6e0   :  { %v8696_v47 = vld [vmem:[#allocation4 + $0x168] sm:$0xff]   ;;  %v8697_v48 = vld [vmem:[#allocation4 + $0x170] sm:$0xff]  }
 0x6e1   :  { %v1336_v57 = vrot.slane %v1335_v49, 4  ;;  %v1339_v58 = vrot.slane %v1337_v50, 4  ;;  %v1341_v59 = vrot.slane %v1340_v55, 4  ;;  %v1344_v60 = vrot.slane %v1342_v56, 4  ;;  %1351 = vst [vmem:[#allocation2] sm:$0xe] %v1335_v49 }
 0x6e2   :  { %1354 = vst [vmem:[#allocation2 + $0xc] sm:$0xe] %v1340_v55 }
 0x6e3   :  { %v1338_v27 = vsel %vm9261_vm4, %v1336_v57, %v1337_v50  ;;  %v1343_v28 = vsel %vm9261_vm4, %v1341_v59, %v1342_v56  ;;  %1353 = vst [vmem:[#allocation2 + $0x8] sm:$0x1] %v1339_v58  ;;  %1356 = vst [vmem:[#allocation2 + $0x14] sm:$0x1] %v1344_v60  ;;  %v8698_v50 = vld [vmem:[#allocation4 + $0x178] sm:$0xff]  }
 0x6e4   :  { %1352 = vst [vmem:[#allocation2 + $0x4] sm:$0xf] %v1338_v27  ;;  %1355 = vst [vmem:[#allocation2 + $0x10] sm:$0xf] %v1343_v28 }
 0x6e8   :  { %v1378_v29 = vld [vmem:[#allocation2] sm:$0xe] }
 0x6e9   :  { %v1380_v61 = vld [vmem:[#allocation2 + $0xc] sm:$0xe]  ;;  %v6873_v43 = vrot.slane %v1378_v29, 9  ;;  %v1357_v17 = vld [vmem:[#allocation2] sm:$0xf] }
 0x6ea   :  { %v1379_v30 = vld [vmem:[#allocation2 + $0x8] sm:$0x1]  ;;  %v1381_v11 = vld [vmem:[#allocation2 + $0x14] sm:$0x1]  ;;  %v6874_v44 = vrot.slane %v1380_v61, 9 }
 0x6eb   :  { %v1358_v62 = vld [vmem:[#allocation2 + $0x4] sm:$0xf]  ;;  %v9400_v63 = vld [vmem:[#allocation2 + $0x10] sm:$0xf]  ;;  %v1393_v3 = vrot.slane %v1379_v30, 5  ;;  %v1400_v5 = vrot.slane %v1381_v11, 5 }
 0x6ec   :  { %v1390_v1 = vrot.slane %v1358_v62, 5  ;;  %v1397_v2 = vrot.slane %v9400_v63, 5  ;;  %v6885_v53 = vcombine.low %v1357_v17, %v1358_v62  ;;  %v1640_v22 = vrot.slane %v1358_v62, 6  ;;  %v1630_v25 = vld [vmem:[#allocation2] sm:$0xc] }
 0x6ed   :  { %v6895_v33 = vrot.slane %v1630_v25, 10  ;;  %v1359_v35 = vld [vmem:[#allocation2 + $0xc] sm:$0xf]  ;;  %v1647_v49 = vrot.slane %v9400_v63, 6  ;;  %v1633_v55 = vld [vmem:[#allocation2 + $0x14] sm:$0x3] }
 0x6ee   :  { %v1392_v46 = vrot.slane %v1390_v1, 4  ;;  %v1399_v4 = vrot.slane %v1397_v2, 4  ;;  %v1391_v6 = vsel %vm9274_vm7, %v6873_v43, %v1390_v1  ;;  %v1398_v8 = vsel %vm9274_vm7, %v6874_v44, %v1397_v2  ;;  %v1632_v57 = vld [vmem:[#allocation2 + $0xc] sm:$0xc]  ;;  %v6908_v29 = vld [vmem:[%s10343_s4 + $0x1] ss:$0 sm:$0xff] }
 0x6ef   :  { %v1642_v24 = vrot.slane %v1640_v22, 4  ;;  %v6886_v36 = vcombine.low %v1359_v35, %v9400_v63  ;;  %v1641_v39 = vsel %vm9287_vm10, %v6895_v33, %v1640_v22  ;;  %v1649_v56 = vrot.slane %v1647_v49, 4  ;;  %v2047_v25 = vld [vmem:[%s10339_s0 + $0x2c] sm:$0xf] }
 0x6f0   :  { %v1394_v7 = vsel %vm9274_vm7, %v1392_v46, %v1393_v3  ;;  %v1401_v10 = vsel %vm9274_vm7, %v1399_v4, %v1400_v5  ;;  %v1650_v58 = vrot.slane %v1633_v55, 6  ;;  %v6896_v59 = vrot.slane %v1632_v57, 10  ;;  %v2048_v33 = vld [vmem:[%s10339_s0 + $0x4c] sm:$0xf] }
 0x6f1   :  { %v6875_v12 = vcombine.low %v1391_v6, %v1394_v7  ;;  %v6876_v14 = vcombine.low %v1398_v8, %v1401_v10  ;;  %v8699_v7 = vld [vmem:[%s10346_s7 + $0x80] sm:$0xff]  }
 0x6f2   :  { %v1651_v60 = vsel %vm9287_vm10, %v1649_v56, %v1650_v58  ;;  %v1648_v27 = vsel %vm9287_vm10, %v6896_v59, %v1647_v49 }
 0x6f3   :  { %7842 = vmatprep.mubr.bf16.mxu0 %v6875_v12  ;;  %v6898_v28 = vcombine.low %v1648_v27, %v1651_v60  ;;  %v2051_v60 = vunpack.c.l.bf16 %v2047_v25  ;;  %v2052_v27 = vunpack.c.l.bf16 %v2048_v33 }
 0x6f4   :  { %7843 = vmatmul.mubr.bf16.vlgmr.msra.gmra.mrb[28].mxu0 %v6876_v14 }
 0x6f5   :  { %7847 = vmatpush3.bf16.msra.mxu0 %v9385_v9  ;;  %7862 = vmatprep.mubr.bf16.mxu0 %v6885_v53  ;;  %v1631_v9 = vld [vmem:[#allocation2 + $0x8] sm:$0x3] }
 0x6f6   :  { %7848 = vmatprep.subr.bf16.mxu0 %v8683_v52  ;;  %v1643_v32 = vrot.slane %v1631_v9, 6 }
 0x6f8   :  { %v1644_v34 = vsel %vm9287_vm10, %v1642_v24, %v1643_v32  ;;  %v2046_v24 = vld [vmem:[%s10339_s0 + $0xc] sm:$0xf] }
 0x6f9   :  { %7849 = vmatpush3.bf16.msra.mxu0 %v8683_v52  ;;  %v6897_v38 = vcombine.low %v1641_v39, %v1644_v34  ;;  %v6922_v32 = vcombine.low %v2046_v24, %v2047_v25  ;;  %v2049_v34 = vld [vmem:[%s10339_s0 + $0x6c] sm:$0xf]  ;;  %v8701_v39 = vld [vmem:[%s10346_s7 + $0x90] sm:$0xff]   ;;  %v2050_v58 = vunpack.c.l.bf16 %v2046_v24 }
 0x6fa   :  { %7850 = vmatprep.subr.bf16.mxu0 %v8684_v54  ;;  %v6923_v35 = vcombine.low %v2048_v33, %v2049_v34  ;;  %v8712_v33 = vld [vmem:[#allocation4 + $0x1e8] sm:$0xff]  }
 0x6fd   :  { %7851 = vmatpush3.bf16.msra.mxu0 %v8684_v54 }
 0x6fe   :  { %7852 = vmatprep.subr.bf16.mxu0 %v8685_v18 }
 0x701   :  { %7853 = vmatpush3.bf16.msra.mxu0 %v8685_v18 }
 0x702   :  { %7854 = vmatprep.subr.bf16.mxu0 %v8686_v19 }
 0x705   :  { %7855 = vmatpush3.bf16.msra.mxu0 %v8686_v19 }
 0x706   :  { %7856 = vmatprep.subr.bf16.mxu0 %v8687_v20 }
 0x709   :  { %7857 = vmatpush3.bf16.msra.mxu0 %v8687_v20 }
 0x70a   :  { %7858 = vmatprep.subr.bf16.mxu0 %v8688_v21 }
 0x70d   :  { %7859 = vmatpush3.bf16.msra.mxu0 %v8688_v21 }
 0x70e   :  { %7860 = vmatprep.subr.bf16.mxu0 %v8689_v23 }
 0x711   :  { %7861 = vmatpush3.bf16.msra.mxu0 %v8689_v23 }
 0x712   :  { %7866 = vmatprep.subr.bf16.mxu0 %v8691_v26 }
 0x714   :  { %7863 = vmatmul.mubr.bf16.vlgmr.msra.gmra.mrb[28].mxu0 %v6886_v36  ;;  %v8700_v36 = vld [vmem:[%s10346_s7 + $0x88] sm:$0xff]  }
 0x715   :  { %7867 = vmatpush3.bf16.msra.mxu0 %v8691_v26  ;;  %7882 = vmatprep.mubr.bf16.mxu0 %v6897_v38  ;;  %v8703_v38 = vld [vmem:[%s10346_s7 + $0xa0] sm:$0xff]  }
 0x716   :  { %7868 = vmatprep.subr.bf16.mxu0 %v8692_v37 }
 0x719   :  { %7869 = vmatpush3.bf16.msra.mxu0 %v8692_v37  ;;  %v8702_v37 = vld [vmem:[%s10346_s7 + $0x98] sm:$0xff]  }
 0x71a   :  { %7870 = vmatprep.subr.bf16.mxu0 %v8693_v40 }
 0x71d   :  { %7871 = vmatpush3.bf16.msra.mxu0 %v8693_v40  ;;  %v8704_v40 = vld [vmem:[%s10346_s7 + $0xa8] sm:$0xff]  }
 0x71e   :  { %7872 = vmatprep.subr.bf16.mxu0 %v8694_v41 }
 0x721   :  { %7873 = vmatpush3.bf16.msra.mxu0 %v8694_v41  ;;  %v8705_v41 = vld [vmem:[%s10346_s7 + $0xb0] sm:$0xff]  }
 0x722   :  { %7874 = vmatprep.subr.bf16.mxu0 %v8695_v42 }
 0x725   :  { %7875 = vmatpush3.bf16.msra.mxu0 %v8695_v42  ;;  %v8706_v42 = vld [vmem:[%s10346_s7 + $0xb8] sm:$0xff]  }
 0x726   :  { %7876 = vmatprep.subr.bf16.mxu0 %v8696_v47 }
 0x729   :  { %7877 = vmatpush3.bf16.msra.mxu0 %v8696_v47 }
 0x72a   :  { %7878 = vmatprep.subr.bf16.mxu0 %v8697_v48 }
 0x72d   :  { %7879 = vmatpush3.bf16.msra.mxu0 %v8697_v48 }
 0x72e   :  { %7880 = vmatprep.subr.bf16.mxu0 %v8698_v50 }
 0x731   :  { %7881 = vmatpush3.bf16.msra.mxu0 %v8698_v50 }
 0x732   :  { %7902 = vmatprep.subr.bf16.mxu0 %v8699_v7 }
 0x734   :  { %7883 = vmatmul.mubr.bf16.vlgmr.msra.gmra.mrb[28].mxu0 %v6898_v28  ;;  %v2053_v28 = vunpack.c.l.bf16 %v2049_v34  ;;  %v8713_v34 = vld [vmem:[#allocation4 + $0x1f0] sm:$0xff]  }
 0x735   :  { %7903 = vmatpush3.bf16.msra.mxu0 %v8699_v7 }
 0x736   :  { %7904 = vmatprep.subr.bf16.mxu0 %v8700_v36 }
 0x739   :  { %7905 = vmatpush3.bf16.msra.mxu0 %v8700_v36  ;;  %v9530_v36 = vld [vmem:[#allocation4 + $0x180] sm:$0xff]  }
 0x73a   :  { %7906 = vmatprep.subr.bf16.mxu0 %v8701_v39 }
 0x73d   :  { %7907 = vmatpush3.bf16.msra.mxu0 %v8701_v39 }
 0x73e   :  { %7908 = vmatprep.subr.bf16.mxu0 %v8702_v37 }
 0x741   :  { %7909 = vmatpush3.bf16.msra.mxu0 %v8702_v37 }
 0x742   :  { %7910 = vmatprep.subr.bf16.mxu0 %v8703_v38 }
 0x745   :  { %7911 = vmatpush3.bf16.msra.mxu0 %v8703_v38 }
 0x746   :  { %7912 = vmatprep.subr.bf16.mxu0 %v8704_v40 }
 0x749   :  { %7913 = vmatpush3.bf16.msra.mxu0 %v8704_v40 }
 0x74a   :  { %7914 = vmatprep.subr.bf16.mxu0 %v8705_v41 }
 0x74d   :  { %7915 = vmatpush3.bf16.msra.mxu0 %v8705_v41 }
 0x74e   :  { %7916 = vmatprep.subr.bf16.mxu0 %v8706_v42 }
 0x751   :  { %7917 = vmatpush3.bf16.msra.mxu0 %v8706_v42 }
 0x752   :  { %7998 = vmatprep.subr.bf16.mxu0 %v8994_v0 }
 0x807   :  { %v7884_v30 = vpop.f32.mrb[28].mxu0 }
 0x808   :  { %v1758_v61 = vpop.f32.mrb[29].mxu0  ;;  %v1787_v43 = vadd.f32 %v7884_v30, %v6908_v29 }
 0x809   :  { %v1785_v62 = vadd.f32 %v6908_v29, %v1758_v61  ;;  %v7885_v63 = vpop.f32.mrb[30].mxu0 }
 0x80a   :  { %v1761_v11 = vpop.f32.mrb[31].mxu0  ;;  %v1788_v1 = vadd.f32 %v7885_v63, %v6908_v29  ;;  %v1791_v5 = vmax.f32 %v1787_v43, 0.0 }
 0x80b   :  { %v1786_v2 = vadd.f32 %v6908_v29, %v1761_v11  ;;  %v1789_v44 = vmax.f32 %v1785_v62, 0.0 }
 0x80c   :  { %v1792_v3 = vmax.f32 %v1788_v1, 0.0 }
 0x80d   :  { %v1790_v46 = vmax.f32 %v1786_v2, 0.0 }
 0x80e   :  { %v1798_v6 = vpack.c.bf16 %v1792_v3, %v1791_v5 }
 0x80f   :  { %v1797_v4 = vpack.c.bf16 %v1790_v46, %v1789_v44 }
 0x811   :  { %7887 = vmatpush3.bf16.msra.mxu1 %v1797_v4 }
 0x812   :  { %7888 = vmatprep.subr.bf16.mxu1 %v8994_v0 }
 0x815   :  { %7889 = vmatpush3.bf16.msra.mxu1 %v1798_v6 }
 0x816   :  { %7894 = vmatprep.subr.bf16.mxu1 %v8994_v0 }
 0x818   :  { %7891 = vmatmul.mubr.msk.bf16.vlgmr.msra.gmra.mrb[12].mxu1 %vm83_vm1, %v8996_v13 }
 0x819   :  { %7898 = vmatprep.mubr.msk.bf16.mxu1 %vm8995_vm0, %v8994_v0 }
 0x8eb   :  { %v1833_v8 = vpop.f32.mrb[12].mxu1 }
 0x8ec   :  { %v1839_v10 = vmul.f32 0.03125, %v1833_v8  ;;  %v7892_v12 = vpop.f32.mrb[13].mxu1 }
 0x8ed   :  { %v1836_v14 = vpop.f32.mrb[14].mxu1 }
 0x8ee   :  { %v1843_v17 = vrot.slane %v1839_v10, %v9139_v16  ;;  %v7893_v52 = vpop.f32.mrb[15].mxu1  ;;  %v6913_v14 = vld [vmem:[%s10345_s6 + $0x1] ss:$0 sm:$0xff] }
 0x8f0   :  { %v9435_v53 = vsub.f32 %v1789_v44, %v1843_v17  ;;  %v9437_v54 = vsub.f32 %v1790_v46, %v1843_v17  ;;  %v9439_v18 = vsub.f32 %v1791_v5, %v1843_v17  ;;  %v9441_v19 = vsub.f32 %v1792_v3, %v1843_v17  ;;  %v6909_v44 = vld [vmem:[%s10344_s5 + $0x1] sm:$0x1] }
 0x8f2   :  { %v1848_v20 = vmul.f32 %v9435_v53, %v9435_v53  ;;  %v1849_v21 = vmul.f32 %v9437_v54, %v9437_v54  ;;  %v1850_v23 = vmul.f32 %v9439_v18, %v9439_v18  ;;  %v1851_v9 = vmul.f32 %v9441_v19, %v9441_v19 }
 0x8f4   :  { %v1852_v22 = vpack.c.bf16 %v1849_v21, %v1848_v20  ;;  %v1853_v26 = vpack.c.bf16 %v1851_v9, %v1850_v23 }
 0x8f6   :  { %7895 = vmatpush3.bf16.msra.mxu1 %v1852_v22 }
 0x8f7   :  { %7896 = vmatprep.subr.bf16.mxu1 %v8994_v0 }
 0x8fa   :  { %7897 = vmatpush3.bf16.msra.mxu1 %v1853_v26 }
 0x8fb   :  { %7922 = vmatprep.subr.bf16.mxu1 %v8994_v0 }
 0x8fd   :  { %7899 = vmatmul.mubr.msk.bf16.vlgmr.msra.gmra.mrb[16].mxu1 %vm83_vm1, %v8996_v13 }
 0x8fe   :  { %7923 = vmatpush3.bf16.msra.mxu1 %v6922_v32  ;;  %7926 = vmatprep.mubr.msk.bf16.mxu1 %vm8995_vm0, %v8994_v0  ;;  %v8711_v32 = vld [vmem:[#allocation4 + $0x1e0] sm:$0xff]  }
 0x8ff   :  { %7924 = vmatprep.subr.bf16.mxu1 %v8994_v0 }
 0x902   :  { %7925 = vmatpush3.bf16.msra.mxu1 %v6923_v35  ;;  %v8714_v35 = vld [vmem:[#allocation4 + $0x1f8] sm:$0xff]  }
 0x903   :  { %7930 = vmatprep.subr.bf16.mxu1 %v8994_v0 }
 0x905   :  { %7927 = vmatmul.mubr.msk.bf16.vlgmr.msra.gmra.mrb[20].mxu1 %vm83_vm1, %v8996_v13 }
 0x906   :  { %7934 = vmatprep.mubr.msk.bf16.mxu1 %vm8995_vm0, %v8994_v0 }
 0x9d0   :  { %v1888_v47 = vpop.f32.mrb[16].mxu1 }
 0x9d1   :  { %v1894_v48 = vmul.f32 0.03125, %v1888_v47  ;;  %v7900_v49 = vpop.f32.mrb[17].mxu1 }
 0x9d2   :  { %v1891_v50 = vpop.f32.mrb[18].mxu1 }
 0x9d3   :  { %v1895_v55 = vmax.f32 %v1894_v48, 0.0  ;;  %v7901_v56 = vpop.f32.mrb[19].mxu1  ;;  %v9536_v48 = vld [vmem:[%s10340_s1] sm:$0xff] }
 0x9d4   :  { %v2153_v49 = vrot.slane %v9536_v48, 3  ;;  %v9542_v50 = vld [vmem:[%s10341_s2] sm:$0xff] }
 0x9d5   :  { %v1896_v57 = vadd.f32 1e-05, %v1895_v55  ;;  %v2168_v55 = vrot.slane %v9542_v50, 3 }
 0x9d7   :  { %8901 = vrsqrt.f32 %v1896_v57 }
 0x9d8   :  { %v2090_v59 = vpop.f32.mrb[20].mxu1 }
 0x9d9   :  { %v2096_v29 = vmul.f32 0.03125, %v2090_v59  ;;  %v7928_v30 = vpop.f32.mrb[21].mxu1  ;;  %v2172_v59 = vrot.slane %v2168_v55, %v9139_v16  ;;  %v8718_v55 = vld [vmem:[#allocation4 + $0x190] sm:$0xff]  }
 0x9da   :  { %v2093_v61 = vpop.f32.mrb[22].mxu1 }
 0x9db   :  { %v2100_v62 = vrot.slane %v2096_v29, %v9139_v16  ;;  %v7929_v63 = vpop.f32.mrb[23].mxu1 }
 0x9dd   :  { %v9498_v11 = vsub.f32 %v2050_v58, %v2100_v62  ;;  %v9500_v1 = vsub.f32 %v2051_v60, %v2100_v62  ;;  %v9502_v2 = vsub.f32 %v2052_v27, %v2100_v62  ;;  %v9504_v43 = vsub.f32 %v2053_v28, %v2100_v62 }
 0x9df   :  { %v2105_v46 = vmul.f32 %v9498_v11, %v9498_v11  ;;  %v2106_v3 = vmul.f32 %v9500_v1, %v9500_v1  ;;  %v2107_v6 = vmul.f32 %v9502_v2, %v9502_v2  ;;  %v2108_v7 = vmul.f32 %v9504_v43, %v9504_v43 }
 0x9e1   :  { %v8902_v4 = vpop.eup %8901  ;;  %v2109_v5 = vpack.c.bf16 %v2106_v3, %v2105_v46  ;;  %v2110_v12 = vpack.c.bf16 %v2108_v7, %v2107_v6 }
 0x9e2   :  { %v1898_v8 = vmul.f32 %v8902_v4, %v6909_v44 }
 0x9e3   :  { %7931 = vmatpush3.bf16.msra.mxu1 %v2109_v5 }
 0x9e4   :  { %v1903_v10 = vrot.slane %v1898_v8, %v9139_v16  ;;  %7932 = vmatprep.subr.bf16.mxu1 %v8994_v0 }
 0x9e6   :  { %v1905_v17 = vmul.f32 %v1903_v10, %v9435_v53  ;;  %v1906_v52 = vmul.f32 %v1903_v10, %v9437_v54  ;;  %v1907_v20 = vmul.f32 %v1903_v10, %v9439_v18  ;;  %v1908_v21 = vmul.f32 %v1903_v10, %v9441_v19  ;;  %v8707_v53 = vld [vmem:[#allocation4 + $0x1c0] sm:$0xff]   ;;  %v8708_v54 = vld [vmem:[#allocation4 + $0x1c8] sm:$0xff]   ;;  %v8709_v18 = vld [vmem:[#allocation4 + $0x1d0] sm:$0xff]  }
 0x9e7   :  { %7933 = vmatpush3.bf16.msra.mxu1 %v2110_v12  ;;  %v8710_v19 = vld [vmem:[#allocation4 + $0x1d8] sm:$0xff]  }
 0x9e8   :  { %v1915_v22 = vadd.f32 %v6913_v14, %v1905_v17  ;;  %v1916_v23 = vadd.f32 %v6913_v14, %v1906_v52  ;;  %v1917_v9 = vadd.f32 %v6913_v14, %v1907_v20  ;;  %v1918_v24 = vadd.f32 %v6913_v14, %v1908_v21  ;;  %7938 = vmatprep.subr.bf16.mxu1 %v8707_v53 }
 0x9ea   :  { %7935 = vmatmul.mubr.msk.bf16.vlgmr.msra.gmra.mrb[24].mxu1 %vm83_vm1, %v8996_v13  ;;  %v1919_v25 = vpack.c.bf16 %v1916_v23, %v1915_v22  ;;  %v1920_v26 = vpack.c.bf16 %v1918_v24, %v1917_v9 }
 0x9eb   :  { %7939 = vmatpush3.bf16.msra.mxu1 %v8707_v53 }
 0x9ec   :  { %7918 = vmatprep.mubr.bf16.mxu0 %v1919_v25  ;;  %7940 = vmatprep.subr.bf16.mxu1 %v8708_v54 }
 0x9ed   :  { %7919 = vmatmul.mubr.bf16.vlgmr.msra.gmra.mrb[8].mxu0 %v1920_v26 }
 0x9ee   :  { %8002 = vmatprep.mubr.msk.bf16.mxu0 %vm8995_vm0, %v8994_v0 }
 0x9ef   :  { %7941 = vmatpush3.bf16.msra.mxu1 %v8708_v54 }
 0x9f0   :  { %7942 = vmatprep.subr.bf16.mxu1 %v8709_v18 }
 0x9f3   :  { %7943 = vmatpush3.bf16.msra.mxu1 %v8709_v18 }
 0x9f4   :  { %7944 = vmatprep.subr.bf16.mxu1 %v8710_v19 }
 0x9f7   :  { %7945 = vmatpush3.bf16.msra.mxu1 %v8710_v19 }
 0x9f8   :  { %7946 = vmatprep.subr.bf16.mxu1 %v8711_v32 }
 0x9fb   :  { %7947 = vmatpush3.bf16.msra.mxu1 %v8711_v32 }
 0x9fc   :  { %7948 = vmatprep.subr.bf16.mxu1 %v8712_v33 }
 0x9ff   :  { %7949 = vmatpush3.bf16.msra.mxu1 %v8712_v33 }
 0xa00   :  { %7950 = vmatprep.subr.bf16.mxu1 %v8713_v34 }
 0xa03   :  { %7951 = vmatpush3.bf16.msra.mxu1 %v8713_v34 }
 0xa04   :  { %7952 = vmatprep.subr.bf16.mxu1 %v8714_v35 }
 0xa07   :  { %7953 = vmatpush3.bf16.msra.mxu1 %v8714_v35 }
 0xa08   :  { %7958 = vmatprep.subr.bf16.mxu1 %v9530_v36 }
 0xabd   :  { %v2145_v39 = vpop.f32.mrb[24].mxu1 }
 0xabe   :  { %v2151_v37 = vmul.f32 0.03125, %v2145_v39  ;;  %v7936_v38 = vpop.f32.mrb[25].mxu1 }
 0xabf   :  { %v2148_v40 = vpop.f32.mrb[26].mxu1 }
 0xac0   :  { %v2152_v41 = vmax.f32 %v2151_v37, 0.0  ;;  %v7937_v42 = vpop.f32.mrb[27].mxu1 }
 0xac2   :  { %v2155_v47 = vadd.f32 1e-05, %v2152_v41 }
 0xac4   :  { %8903 = vrsqrt.f32 %v2155_v47  ;;  %v8717_v47 = vld [vmem:[#allocation4 + $0x188] sm:$0xff]  }
 0xace   :  { %v8904_v56 = vpop.eup %8903 }
 0xacf   :  { %v2157_v57 = vmul.f32 %v8904_v56, %v2153_v49  ;;  %v8719_v56 = vld [vmem:[#allocation4 + $0x198] sm:$0xff]  }
 0xad1   :  { %v2162_v58 = vrot.slane %v2157_v57, %v9139_v16  ;;  %v8720_v57 = vld [vmem:[#allocation4 + $0x1a0] sm:$0xff]  }
 0xad3   :  { %v2164_v60 = vmul.f32 %v2162_v58, %v9498_v11  ;;  %v2165_v27 = vmul.f32 %v2162_v58, %v9500_v1  ;;  %v2166_v28 = vmul.f32 %v2162_v58, %v9502_v2  ;;  %v2167_v29 = vmul.f32 %v2162_v58, %v9504_v43  ;;  %v8721_v58 = vld [vmem:[#allocation4 + $0x1a8] sm:$0xff]  }
 0xad5   :  { %v2174_v30 = vadd.f32 %v2172_v59, %v2164_v60  ;;  %v2175_v61 = vadd.f32 %v2172_v59, %v2165_v27  ;;  %v2176_v62 = vadd.f32 %v2172_v59, %v2166_v28  ;;  %v2177_v63 = vadd.f32 %v2172_v59, %v2167_v29  ;;  %v8722_v59 = vld [vmem:[#allocation4 + $0x1b0] sm:$0xff]   ;;  %v8723_v27 = vld [vmem:[#allocation4 + $0x1b8] sm:$0xff]  }
 0xad7   :  { %v2178_v44 = vadd.f32 %v2174_v30, %v1915_v22  ;;  %v2179_v46 = vadd.f32 %v2175_v61, %v1916_v23  ;;  %v2180_v3 = vadd.f32 %v2176_v62, %v1917_v9  ;;  %v2181_v4 = vadd.f32 %v2177_v63, %v1918_v24  ;;  %v8725_v30 = vld [vmem:[#allocation4 + $0x200] sm:$0xff]  }
 0xad9   :  { %v7238_v5 = vpack.c.bf16 %v2178_v44, %v2178_v44  ;;  %v7239_v6 = vpack.c.bf16 %v2179_v46, %v2179_v46  ;;  %v7240_v7 = vpack.c.bf16 %v2180_v3, %v2180_v3  ;;  %v7241_v8 = vpack.c.bf16 %v2181_v4, %v2181_v4  ;;  %v8726_v4 = vld [vmem:[#allocation4 + $0x208] sm:$0xff]  }
 0xadb   :  { %v2194_v10 = vrot.slane %v7238_v5, 7  ;;  %v2196_v11 = vrot.slane %v7239_v6, 7  ;;  %v2199_v12 = vrot.slane %v7240_v7, 7  ;;  %v2201_v1 = vrot.slane %v7241_v8, 7  ;;  %v8727_v6 = vld [vmem:[#allocation4 + $0x210] sm:$0xff]   ;;  %v8728_v7 = vld [vmem:[#allocation4 + $0x218] sm:$0xff]  }
 0xadc   :  { %v8729_v8 = vld [vmem:[#allocation4 + $0x220] sm:$0xff]  }
 0xadd   :  { %v2195_v14 = vrot.slane %v2194_v10, 4  ;;  %v2198_v2 = vrot.slane %v2196_v11, 4  ;;  %v2200_v17 = vrot.slane %v2199_v12, 4  ;;  %v2203_v43 = vrot.slane %v2201_v1, 4  ;;  %2210 = vst [vmem:[#allocation2] sm:$0xe] %v2194_v10 }
 0xade   :  { %2213 = vst [vmem:[#allocation2 + $0xc] sm:$0xe] %v2199_v12  ;;  %v8730_v10 = vld [vmem:[#allocation4 + $0x228] sm:$0xff]  }
 0xadf   :  { %v2197_v52 = vsel %vm9261_vm4, %v2195_v14, %v2196_v11  ;;  %v2202_v20 = vsel %vm9261_vm4, %v2200_v17, %v2201_v1  ;;  %2212 = vst [vmem:[#allocation2 + $0x8] sm:$0x1] %v2198_v2  ;;  %2215 = vst [vmem:[#allocation2 + $0x14] sm:$0x1] %v2203_v43  ;;  %v8731_v11 = vld [vmem:[#allocation4 + $0x230] sm:$0xff]   ;;  %v8732_v1 = vld [vmem:[#allocation4 + $0x238] sm:$0xff]  }
 0xae0   :  { %2211 = vst [vmem:[#allocation2 + $0x4] sm:$0xf] %v2197_v52  ;;  %2214 = vst [vmem:[#allocation2 + $0x10] sm:$0xf] %v2202_v20  ;;  %v2905_v52 = vld [vmem:[%s10339_s0 + $0x10] sm:$0xf] }
 0xae1   :  { %v2906_v20 = vld [vmem:[%s10339_s0 + $0x30] sm:$0xf] }
 0xae4   :  { %v2237_v21 = vld [vmem:[#allocation2] sm:$0xe] }
 0xae5   :  { %v2239_v23 = vld [vmem:[#allocation2 + $0xc] sm:$0xe]  ;;  %v6930_v54 = vrot.slane %v2237_v21, 9  ;;  %v2216_v42 = vld [vmem:[#allocation2] sm:$0xf] }
 0xae6   :  { %v2238_v22 = vld [vmem:[#allocation2 + $0x8] sm:$0x1]  ;;  %v2240_v25 = vld [vmem:[#allocation2 + $0x14] sm:$0x1]  ;;  %v6931_v18 = vrot.slane %v2239_v23, 9 }
 0xae7   :  { %v2217_v9 = vld [vmem:[#allocation2 + $0x4] sm:$0xf]  ;;  %v9555_v24 = vld [vmem:[#allocation2 + $0x10] sm:$0xf]  ;;  %v2252_v32 = vrot.slane %v2238_v22, 5  ;;  %v2259_v34 = vrot.slane %v2240_v25, 5 }
 0xae8   :  { %v2249_v26 = vrot.slane %v2217_v9, 5  ;;  %v2256_v53 = vrot.slane %v9555_v24, 5  ;;  %v6942_v49 = vcombine.low %v2216_v42, %v2217_v9  ;;  %v2499_v60 = vrot.slane %v2217_v9, 6  ;;  %v2489_v29 = vld [vmem:[#allocation2] sm:$0xc] }
 0xae9   :  { %v6952_v62 = vrot.slane %v2489_v29, 10  ;;  %v2218_v44 = vld [vmem:[#allocation2 + $0xc] sm:$0xf]  ;;  %v2506_v12 = vrot.slane %v9555_v24, 6  ;;  %v2492_v14 = vld [vmem:[#allocation2 + $0x14] sm:$0x3]  ;;  %v6979_v9 = vcombine.low %v2905_v52, %v2906_v20 }
 0xaea   :  { %v2251_v19 = vrot.slane %v2249_v26, 4  ;;  %v2258_v33 = vrot.slane %v2256_v53, 4  ;;  %v2250_v35 = vsel %vm9274_vm7, %v6930_v54, %v2249_v26  ;;  %v2257_v37 = vsel %vm9274_vm7, %v6931_v18, %v2256_v53  ;;  %v2491_v17 = vld [vmem:[#allocation2 + $0xc] sm:$0xc]  ;;  %v2907_v25 = vld [vmem:[%s10339_s0 + $0x50] sm:$0xf] }
 0xaeb   :  { %v2501_v28 = vrot.slane %v2499_v60, 4  ;;  %v6943_v46 = vcombine.low %v2218_v44, %v9555_v24  ;;  %v2500_v3 = vsel %vm9287_vm10, %v6952_v62, %v2499_v60  ;;  %v2508_v2 = vrot.slane %v2506_v12, 4  ;;  %v2908_v26 = vld [vmem:[%s10339_s0 + $0x70] sm:$0xf]  ;;  %v6965_v54 = vld [vmem:[%s10343_s4 + $0x2] ss:$0 sm:$0xff] }
 0xaec   :  { %v2253_v39 = vsel %vm9274_vm7, %v2251_v19, %v2252_v32  ;;  %v2260_v38 = vsel %vm9274_vm7, %v2258_v33, %v2259_v34  ;;  %v2509_v43 = vrot.slane %v2492_v14, 6  ;;  %v6953_v21 = vrot.slane %v2491_v17, 10 }
 0xaed   :  { %v6932_v40 = vcombine.low %v2250_v35, %v2253_v39  ;;  %v6933_v41 = vcombine.low %v2257_v37, %v2260_v38  ;;  %v6980_v53 = vcombine.low %v2907_v25, %v2908_v26 }
 0xaee   :  { %v2510_v22 = vsel %vm9287_vm10, %v2508_v2, %v2509_v43  ;;  %v2507_v23 = vsel %vm9287_vm10, %v6953_v21, %v2506_v12 }
 0xaef   :  { %7954 = vmatprep.mubr.bf16.mxu1 %v6932_v40  ;;  %v6955_v24 = vcombine.low %v2507_v23, %v2510_v22 }
 0xaf0   :  { %7955 = vmatmul.mubr.bf16.vlgmr.msra.gmra.mrb[28].mxu1 %v6933_v41  ;;  %v2909_v41 = vunpack.c.l.bf16 %v2905_v52 }
 0xaf1   :  { %7959 = vmatpush3.bf16.msra.mxu1 %v9530_v36  ;;  %7974 = vmatprep.mubr.bf16.mxu1 %v6942_v49  ;;  %v2490_v36 = vld [vmem:[#allocation2 + $0x8] sm:$0x3] }
 0xaf2   :  { %7960 = vmatprep.subr.bf16.mxu1 %v8717_v47  ;;  %v2502_v61 = vrot.slane %v2490_v36, 6 }
 0xaf4   :  { %v2503_v63 = vsel %vm9287_vm10, %v2501_v28, %v2502_v61 }
 0xaf5   :  { %7961 = vmatpush3.bf16.msra.mxu1 %v8717_v47  ;;  %v6954_v5 = vcombine.low %v2500_v3, %v2503_v63 }
 0xaf6   :  { %7962 = vmatprep.subr.bf16.mxu1 %v8718_v55 }
 0xaf9   :  { %7963 = vmatpush3.bf16.msra.mxu1 %v8718_v55  ;;  %v2910_v55 = vunpack.c.l.bf16 %v2906_v20 }
 0xafa   :  { %7964 = vmatprep.subr.bf16.mxu1 %v8719_v56 }
 0xafd   :  { %7965 = vmatpush3.bf16.msra.mxu1 %v8719_v56  ;;  %v2911_v56 = vunpack.c.l.bf16 %v2907_v25 }
 0xafe   :  { %7966 = vmatprep.subr.bf16.mxu1 %v8720_v57 }
 0xb01   :  { %7967 = vmatpush3.bf16.msra.mxu1 %v8720_v57  ;;  %v2912_v57 = vunpack.c.l.bf16 %v2908_v26  ;;  %v8733_v26 = vld [vmem:[%s10346_s7 + $0xc0] sm:$0xff]  }
 0xb02   :  { %7968 = vmatprep.subr.bf16.mxu1 %v8721_v58 }
 0xb05   :  { %7969 = vmatpush3.bf16.msra.mxu1 %v8721_v58 }
 0xb06   :  { %7970 = vmatprep.subr.bf16.mxu1 %v8722_v59 }
 0xb09   :  { %7971 = vmatpush3.bf16.msra.mxu1 %v8722_v59 }
 0xb0a   :  { %7972 = vmatprep.subr.bf16.mxu1 %v8723_v27 }
 0xb0d   :  { %7973 = vmatpush3.bf16.msra.mxu1 %v8723_v27 }
 0xb0e   :  { %7978 = vmatprep.subr.bf16.mxu1 %v8725_v30 }
 0xb10   :  { %7975 = vmatmul.mubr.bf16.vlgmr.msra.gmra.mrb[28].mxu1 %v6943_v46 }
 0xb11   :  { %7979 = vmatpush3.bf16.msra.mxu1 %v8725_v30  ;;  %7994 = vmatprep.mubr.bf16.mxu1 %v6954_v5 }
 0xb12   :  { %7980 = vmatprep.subr.bf16.mxu1 %v8726_v4 }
 0xb15   :  { %7981 = vmatpush3.bf16.msra.mxu1 %v8726_v4 }
 0xb16   :  { %7982 = vmatprep.subr.bf16.mxu1 %v8727_v6 }
 0xb19   :  { %7983 = vmatpush3.bf16.msra.mxu1 %v8727_v6 }
 0xb1a   :  { %7984 = vmatprep.subr.bf16.mxu1 %v8728_v7 }
 0xb1d   :  { %7985 = vmatpush3.bf16.msra.mxu1 %v8728_v7 }
 0xb1e   :  { %7986 = vmatprep.subr.bf16.mxu1 %v8729_v8 }
 0xb21   :  { %7987 = vmatpush3.bf16.msra.mxu1 %v8729_v8 }
 0xb22   :  { %7988 = vmatprep.subr.bf16.mxu1 %v8730_v10 }
 0xb25   :  { %7989 = vmatpush3.bf16.msra.mxu1 %v8730_v10 }
 0xb26   :  { %7990 = vmatprep.subr.bf16.mxu1 %v8731_v11 }
 0xb29   :  { %7991 = vmatpush3.bf16.msra.mxu1 %v8731_v11 }
 0xb2a   :  { %7992 = vmatprep.subr.bf16.mxu1 %v8732_v1 }
 0xb2d   :  { %7993 = vmatpush3.bf16.msra.mxu1 %v8732_v1 }
 0xb2e   :  { %8034 = vmatprep.subr.bf16.mxu1 %v8994_v0 }
 0xb30   :  { %7995 = vmatmul.mubr.bf16.vlgmr.msra.gmra.mrb[28].mxu1 %v6955_v24 }
 0xb31   :  { %8035 = vmatpush3.bf16.msra.mxu1 %v6979_v9  ;;  %8038 = vmatprep.mubr.msk.bf16.mxu1 %vm8995_vm0, %v8994_v0 }
 0xb32   :  { %8036 = vmatprep.subr.bf16.mxu1 %v8994_v0 }
 0xb35   :  { %8037 = vmatpush3.bf16.msra.mxu1 %v6980_v53 }
 0xb36   :  { %8042 = vmatprep.subr.bf16.mxu1 %v8994_v0 }
 0xb38   :  { %8039 = vmatmul.mubr.msk.bf16.vlgmr.msra.gmra.mrb[32].mxu1 %vm83_vm1, %v8996_v13 }
 0xb39   :  { %8046 = vmatprep.mubr.msk.bf16.mxu1 %vm8995_vm0, %v8994_v0 }
 0xc03   :  { %v7996_v18 = vpop.f32.mrb[28].mxu1 }
 0xc04   :  { %v2617_v19 = vpop.f32.mrb[29].mxu1  ;;  %v2646_v37 = vadd.f32 %v7996_v18, %v6965_v54  ;;  %v8734_v18 = vld [vmem:[%s10346_s7 + $0xc8] sm:$0xff]  }
 0xc05   :  { %v2644_v32 = vadd.f32 %v6965_v54, %v2617_v19  ;;  %v7997_v33 = vpop.f32.mrb[30].mxu1  ;;  %v8735_v19 = vld [vmem:[%s10346_s7 + $0xd0] sm:$0xff]  }
 0xc06   :  { %v2620_v34 = vpop.f32.mrb[31].mxu1  ;;  %v2647_v35 = vadd.f32 %v7997_v33, %v6965_v54  ;;  %v2650_v60 = vmax.f32 %v2646_v37, 0.0  ;;  %v8737_v33 = vld [vmem:[%s10346_s7 + $0xe0] sm:$0xff]  }
 0xc07   :  { %v2645_v39 = vadd.f32 %v6965_v54, %v2620_v34  ;;  %v2648_v38 = vmax.f32 %v2644_v32, 0.0  ;;  %v8736_v32 = vld [vmem:[%s10346_s7 + $0xd8] sm:$0xff]   ;;  %v8738_v34 = vld [vmem:[%s10346_s7 + $0xe8] sm:$0xff]   ;;  %v8741_v37 = vld [vmem:[#allocation4 + $0x288] sm:$0xff]  }
 0xc08   :  { %v2651_v42 = vmax.f32 %v2647_v35, 0.0  ;;  %v8739_v35 = vld [vmem:[#allocation4 + $0x280] sm:$0xff]  }
 0xc09   :  { %v2649_v40 = vmax.f32 %v2645_v39, 0.0  ;;  %v8740_v39 = vld [vmem:[%s10346_s7 + $0xf0] sm:$0xff]  }
 0xc0a   :  { %v2657_v29 = vpack.c.bf16 %v2651_v42, %v2650_v60 }
 0xc0b   :  { %v2656_v47 = vpack.c.bf16 %v2649_v40, %v2648_v38  ;;  %v2949_v49 = vpop.f32.mrb[32].mxu1 }
 0xc0c   :  { %v2955_v58 = vmul.f32 0.03125, %v2949_v49  ;;  %v8040_v59 = vpop.f32.mrb[33].mxu1  ;;  %v8747_v49 = vld [vmem:[#allocation4 + $0x2b0] sm:$0xff]  }
 0xc0d   :  { %7999 = vmatpush3.bf16.msra.mxu0 %v2656_v47  ;;  %v2952_v27 = vpop.f32.mrb[34].mxu1  ;;  %v8746_v47 = vld [vmem:[#allocation4 + $0x2a8] sm:$0xff]  }
 0xc0e   :  { %v2959_v36 = vrot.slane %v2955_v58, %v9139_v16  ;;  %8000 = vmatprep.subr.bf16.mxu0 %v8994_v0  ;;  %v8041_v28 = vpop.f32.mrb[35].mxu1 }
 0xc10   :  { %v9603_v30 = vsub.f32 %v2909_v41, %v2959_v36  ;;  %v9605_v61 = vsub.f32 %v2910_v55, %v2959_v36  ;;  %v9607_v62 = vsub.f32 %v2911_v56, %v2959_v36  ;;  %v9609_v63 = vsub.f32 %v2912_v57, %v2959_v36  ;;  %v8744_v41 = vld [vmem:[#allocation4 + $0x298] sm:$0xff]   ;;  %v9672_v56 = vld [vmem:[#allocation4 + $0x240] sm:$0xff]  }
 0xc11   :  { %8001 = vmatpush3.bf16.msra.mxu0 %v2657_v29  ;;  %v8748_v55 = vld [vmem:[#allocation4 + $0x2b8] sm:$0xff]  }
 0xc12   :  { %v2964_v44 = vmul.f32 %v9603_v30, %v9603_v30  ;;  %v2965_v46 = vmul.f32 %v9605_v61, %v9605_v61  ;;  %v2966_v3 = vmul.f32 %v9607_v62, %v9607_v62  ;;  %v2967_v4 = vmul.f32 %v9609_v63, %v9609_v63  ;;  %8006 = vmatprep.subr.bf16.mxu0 %v8994_v0 }
 0xc14   :  { %8003 = vmatmul.mubr.msk.bf16.vlgmr.msra.gmra.mrb[32].mxu0 %vm83_vm1, %v8996_v13  ;;  %v2968_v5 = vpack.c.bf16 %v2965_v46, %v2964_v44  ;;  %v2969_v6 = vpack.c.bf16 %v2967_v4, %v2966_v3  ;;  %v3012_v3 = vrot.slane %v9536_v48, 4 }
 0xc15   :  { %8010 = vmatprep.mubr.msk.bf16.mxu0 %vm8995_vm0, %v8994_v0 }
 0xc16   :  { %8043 = vmatpush3.bf16.msra.mxu1 %v2968_v5 }
 0xc17   :  { %8044 = vmatprep.subr.bf16.mxu1 %v8994_v0 }
 0xc1a   :  { %8045 = vmatpush3.bf16.msra.mxu1 %v2969_v6 }
 0xc1b   :  { %8050 = vmatprep.subr.bf16.mxu1 %v8739_v35 }
 0xc1d   :  { %8047 = vmatmul.mubr.msk.bf16.vlgmr.msra.gmra.mrb[36].mxu1 %vm83_vm1, %v8996_v13 }
 0xc1e   :  { %8051 = vmatpush3.bf16.msra.mxu1 %v8739_v35 }
 0xc1f   :  { %8052 = vmatprep.subr.bf16.mxu1 %v8741_v37 }
 0xc22   :  { %8053 = vmatpush3.bf16.msra.mxu1 %v8741_v37 }
 0xce7   :  { %v2692_v7 = vpop.f32.mrb[32].mxu0 }
 0xce8   :  { %v2698_v8 = vmul.f32 0.03125, %v2692_v7  ;;  %v8004_v10 = vpop.f32.mrb[33].mxu0  ;;  %v6966_v7 = vld [vmem:[%s10344_s5 + $0x2] sm:$0x1] }
 0xce9   :  { %v2695_v11 = vpop.f32.mrb[34].mxu0 }
 0xcea   :  { %v2702_v12 = vrot.slane %v2698_v8, %v9139_v16  ;;  %v8005_v1 = vpop.f32.mrb[35].mxu0  ;;  %v3027_v8 = vrot.slane %v9542_v50, 4 }
 0xcec   :  { %v9628_v14 = vsub.f32 %v2648_v38, %v2702_v12  ;;  %v9630_v2 = vsub.f32 %v2649_v40, %v2702_v12  ;;  %v9632_v17 = vsub.f32 %v2650_v60, %v2702_v12  ;;  %v9634_v43 = vsub.f32 %v2651_v42, %v2702_v12  ;;  %v8742_v38 = vld [vmem:[%s10346_s7 + $0xf8] sm:$0xff]   ;;  %v8743_v40 = vld [vmem:[#allocation4 + $0x290] sm:$0xff]  }
 0xced   :  { %8054 = vmatprep.subr.bf16.mxu1 %v8743_v40  ;;  %v8745_v42 = vld [vmem:[#allocation4 + $0x2a0] sm:$0xff]  }
 0xcee   :  { %v2707_v52 = vmul.f32 %v9628_v14, %v9628_v14  ;;  %v2708_v20 = vmul.f32 %v9630_v2, %v9630_v2  ;;  %v2709_v23 = vmul.f32 %v9632_v17, %v9632_v17  ;;  %v2710_v9 = vmul.f32 %v9634_v43, %v9634_v43  ;;  %8055 = vmatpush3.bf16.msra.mxu1 %v8743_v40 }
 0xcef   :  { %8056 = vmatprep.subr.bf16.mxu1 %v8744_v41 }
 0xcf0   :  { %v3004_v21 = vpop.f32.mrb[36].mxu1  ;;  %v2711_v22 = vpack.c.bf16 %v2708_v20, %v2707_v52  ;;  %v2712_v54 = vpack.c.bf16 %v2710_v9, %v2709_v23  ;;  %v3031_v52 = vrot.slane %v3027_v8, %v9139_v16  ;;  %v6970_v20 = vld [vmem:[%s10345_s6 + $0x2] ss:$0 sm:$0xff] }
 0xcf1   :  { %v8048_v24 = vpop.f32.mrb[37].mxu1  ;;  %v3010_v57 = vmul.f32 0.03125, %v3004_v21 }
 0xcf2   :  { %8007 = vmatpush3.bf16.msra.mxu0 %v2711_v22  ;;  %v3007_v25 = vpop.f32.mrb[38].mxu1  ;;  %8057 = vmatpush3.bf16.msra.mxu1 %v8744_v41 }
 0xcf3   :  { %8008 = vmatprep.subr.bf16.mxu0 %v8994_v0  ;;  %v8049_v53 = vpop.f32.mrb[39].mxu1  ;;  %8058 = vmatprep.subr.bf16.mxu1 %v8745_v42  ;;  %v3011_v58 = vmax.f32 %v3010_v57, 0.0 }
 0xcf5   :  { %v3014_v59 = vadd.f32 1e-05, %v3011_v58 }
 0xcf6   :  { %8009 = vmatpush3.bf16.msra.mxu0 %v2712_v54  ;;  %8059 = vmatpush3.bf16.msra.mxu1 %v8745_v42 }
 0xcf7   :  { %8014 = vmatprep.subr.bf16.mxu0 %v8733_v26  ;;  %8060 = vmatprep.subr.bf16.mxu1 %v8746_v47  ;;  %8905 = vrsqrt.f32 %v3014_v59 }
 0xcf9   :  { %8011 = vmatmul.mubr.msk.bf16.vlgmr.msra.gmra.mrb[36].mxu0 %vm83_vm1, %v8996_v13 }
 0xcfa   :  { %8015 = vmatpush3.bf16.msra.mxu0 %v8733_v26  ;;  %8061 = vmatpush3.bf16.msra.mxu1 %v8746_v47 }
 0xcfb   :  { %8016 = vmatprep.subr.bf16.mxu0 %v8734_v18  ;;  %8062 = vmatprep.subr.bf16.mxu1 %v8747_v49 }
 0xcfe   :  { %8017 = vmatpush3.bf16.msra.mxu0 %v8734_v18  ;;  %8063 = vmatpush3.bf16.msra.mxu1 %v8747_v49 }
 0xcff   :  { %8018 = vmatprep.subr.bf16.mxu0 %v8735_v19  ;;  %8064 = vmatprep.subr.bf16.mxu1 %v8748_v55 }
 0xd01   :  { %v8906_v4 = vpop.eup %8905 }
 0xd02   :  { %8019 = vmatpush3.bf16.msra.mxu0 %v8735_v19  ;;  %8065 = vmatpush3.bf16.msra.mxu1 %v8748_v55  ;;  %v3016_v5 = vmul.f32 %v8906_v4, %v3012_v3 }
 0xd03   :  { %8020 = vmatprep.subr.bf16.mxu0 %v8736_v32  ;;  %8070 = vmatprep.subr.bf16.mxu1 %v9672_v56 }
 0xd04   :  { %v3021_v6 = vrot.slane %v3016_v5, %v9139_v16 }
 0xd06   :  { %8021 = vmatpush3.bf16.msra.mxu0 %v8736_v32  ;;  %v3023_v12 = vmul.f32 %v3021_v6, %v9603_v30  ;;  %v3024_v1 = vmul.f32 %v3021_v6, %v9605_v61  ;;  %v3025_v21 = vmul.f32 %v3021_v6, %v9607_v62  ;;  %v3026_v22 = vmul.f32 %v3021_v6, %v9609_v63 }
 0xd07   :  { %8022 = vmatprep.subr.bf16.mxu0 %v8737_v33 }
 0xd08   :  { %v3033_v9 = vadd.f32 %v3031_v52, %v3023_v12  ;;  %v3034_v24 = vadd.f32 %v3031_v52, %v3024_v1  ;;  %v3035_v18 = vadd.f32 %v3031_v52, %v3025_v21  ;;  %v3036_v19 = vadd.f32 %v3031_v52, %v3026_v22  ;;  %v8752_v22 = vld [vmem:[#allocation4 + $0x250] sm:$0xff]  }
 0xd0a   :  { %8023 = vmatpush3.bf16.msra.mxu0 %v8737_v33 }
 0xd0b   :  { %8024 = vmatprep.subr.bf16.mxu0 %v8738_v34 }
 0xd0e   :  { %8025 = vmatpush3.bf16.msra.mxu0 %v8738_v34 }
 0xd0f   :  { %8026 = vmatprep.subr.bf16.mxu0 %v8740_v39 }
 0xd12   :  { %8027 = vmatpush3.bf16.msra.mxu0 %v8740_v39 }
 0xd13   :  { %8028 = vmatprep.subr.bf16.mxu0 %v8742_v38 }
 0xd16   :  { %8029 = vmatpush3.bf16.msra.mxu0 %v8742_v38 }
 0xd17   :  { %8110 = vmatprep.subr.bf16.mxu0 %v8994_v0 }
 0xdcc   :  { %v2747_v60 = vpop.f32.mrb[36].mxu0 }
 0xdcd   :  { %v2753_v27 = vmul.f32 0.03125, %v2747_v60  ;;  %v8012_v36 = vpop.f32.mrb[37].mxu0 }
 0xdce   :  { %v2750_v28 = vpop.f32.mrb[38].mxu0 }
 0xdcf   :  { %v2754_v29 = vmax.f32 %v2753_v27, 0.0  ;;  %v8013_v44 = vpop.f32.mrb[39].mxu0 }
 0xdd1   :  { %v2755_v46 = vadd.f32 1e-05, %v2754_v29 }
 0xdd3   :  { %8907 = vrsqrt.f32 %v2755_v46 }
 0xddd   :  { %v8908_v10 = vpop.eup %8907 }
 0xdde   :  { %v2757_v11 = vmul.f32 %v8908_v10, %v6966_v7 }
 0xde0   :  { %v2762_v48 = vrot.slane %v2757_v11, %v9139_v16 }
 0xde2   :  { %v2764_v50 = vmul.f32 %v2762_v48, %v9628_v14  ;;  %v2765_v23 = vmul.f32 %v2762_v48, %v9630_v2  ;;  %v2766_v30 = vmul.f32 %v2762_v48, %v9632_v17  ;;  %v2767_v61 = vmul.f32 %v2762_v48, %v9634_v43 }
 0xde4   :  { %v2774_v25 = vadd.f32 %v6970_v20, %v2764_v50  ;;  %v2775_v26 = vadd.f32 %v6970_v20, %v2765_v23  ;;  %v2776_v53 = vadd.f32 %v6970_v20, %v2766_v30  ;;  %v2777_v54 = vadd.f32 %v6970_v20, %v2767_v61  ;;  %v8751_v20 = vld [vmem:[#allocation4 + $0x248] sm:$0xff]   ;;  %v8753_v50 = vld [vmem:[#allocation4 + $0x258] sm:$0xff]   ;;  %v8754_v23 = vld [vmem:[#allocation4 + $0x260] sm:$0xff]  }
 0xde5   :  { %v8755_v30 = vld [vmem:[#allocation4 + $0x268] sm:$0xff]   ;;  %v8756_v61 = vld [vmem:[#allocation4 + $0x270] sm:$0xff]  }
 0xde6   :  { %v2778_v32 = vpack.c.bf16 %v2775_v26, %v2774_v25  ;;  %v3037_v62 = vadd.f32 %v3033_v9, %v2774_v25  ;;  %v3038_v33 = vadd.f32 %v3034_v24, %v2775_v26  ;;  %v2779_v63 = vpack.c.bf16 %v2777_v54, %v2776_v53  ;;  %v8757_v24 = vld [vmem:[#allocation4 + $0x278] sm:$0xff]  }
 0xde7   :  { %v3039_v34 = vadd.f32 %v3035_v18, %v2776_v53  ;;  %v3040_v14 = vadd.f32 %v3036_v19, %v2777_v54  ;;  %v8759_v53 = vld [vmem:[#allocation4 + $0x2c0] sm:$0xff]  }
 0xde8   :  { %8030 = vmatprep.mubr.bf16.mxu0 %v2778_v32  ;;  %v7242_v2 = vpack.c.bf16 %v3037_v62, %v3037_v62  ;;  %v7243_v35 = vpack.c.bf16 %v3038_v33, %v3038_v33 }
 0xde9   :  { %8031 = vmatmul.mubr.bf16.vlgmr.msra.gmra.mrb[8].mxu0 %v2779_v63  ;;  %v7244_v17 = vpack.c.bf16 %v3039_v34, %v3039_v34  ;;  %v7245_v43 = vpack.c.bf16 %v3040_v14, %v3040_v14  ;;  %v8760_v63 = vld [vmem:[#allocation4 + $0x2c8] sm:$0xff]   ;;  %v8761_v14 = vld [vmem:[#allocation4 + $0x2d0] sm:$0xff]  }
 0xdea   :  { %v3053_v39 = vrot.slane %v7242_v2, 7  ;;  %v3055_v37 = vrot.slane %v7243_v35, 7  ;;  %8114 = vmatprep.mubr.msk.bf16.mxu0 %vm8995_vm0, %v8994_v0  ;;  %v8762_v2 = vld [vmem:[#allocation4 + $0x2d8] sm:$0xff]   ;;  %v8763_v35 = vld [vmem:[#allocation4 + $0x2e0] sm:$0xff]  }
 0xdeb   :  { %v3058_v38 = vrot.slane %v7244_v17, 7  ;;  %v3060_v40 = vrot.slane %v7245_v43, 7  ;;  %v8764_v17 = vld [vmem:[#allocation4 + $0x2e8] sm:$0xff]   ;;  %v8765_v43 = vld [vmem:[#allocation4 + $0x2f0] sm:$0xff]  }
 0xdec   :  { %v3054_v41 = vrot.slane %v3053_v39, 4  ;;  %v3057_v42 = vrot.slane %v3055_v37, 4  ;;  %3069 = vst [vmem:[#allocation2] sm:$0xe] %v3053_v39 }
 0xded   :  { %v3059_v47 = vrot.slane %v3058_v38, 4  ;;  %v3062_v49 = vrot.slane %v3060_v40, 4  ;;  %3072 = vst [vmem:[#allocation2 + $0xc] sm:$0xe] %v3058_v38 }
 0xdee   :  { %v3056_v55 = vsel %vm9261_vm4, %v3054_v41, %v3055_v37  ;;  %3071 = vst [vmem:[#allocation2 + $0x8] sm:$0x1] %v3057_v42  ;;  %v8766_v37 = vld [vmem:[#allocation4 + $0x2f8] sm:$0xff]  }
 0xdef   :  { %3070 = vst [vmem:[#allocation2 + $0x4] sm:$0xf] %v3056_v55  ;;  %v3061_v57 = vsel %vm9261_vm4, %v3059_v47, %v3060_v40  ;;  %3074 = vst [vmem:[#allocation2 + $0x14] sm:$0x1] %v3062_v49 }
 0xdf0   :  { %3073 = vst [vmem:[#allocation2 + $0x10] sm:$0xf] %v3061_v57 }
 0xdf3   :  { %v3096_v58 = vld [vmem:[#allocation2] sm:$0xe] }
 0xdf4   :  { %v3098_v27 = vld [vmem:[#allocation2 + $0xc] sm:$0xe]  ;;  %v6987_v46 = vrot.slane %v3096_v58, 9  ;;  %v3075_v48 = vld [vmem:[#allocation2] sm:$0xf] }
 0xdf5   :  { %v3097_v60 = vld [vmem:[#allocation2 + $0x8] sm:$0x1]  ;;  %v6988_v5 = vrot.slane %v3098_v27, 9  ;;  %v3348_v26 = vld [vmem:[#allocation2] sm:$0xc] }
 0xdf6   :  { %v3076_v59 = vld [vmem:[#allocation2 + $0x4] sm:$0xf]  ;;  %v3099_v29 = vld [vmem:[#allocation2 + $0x14] sm:$0x1]  ;;  %v3111_v4 = vrot.slane %v3097_v60, 5  ;;  %v7009_v18 = vrot.slane %v3348_v26, 10 }
 0xdf7   :  { %v3108_v36 = vrot.slane %v3076_v59, 5  ;;  %v9700_v28 = vld [vmem:[#allocation2 + $0x10] sm:$0xf]  ;;  %v3118_v7 = vrot.slane %v3099_v29, 5  ;;  %v6999_v21 = vcombine.low %v3075_v48, %v3076_v59  ;;  %v3358_v9 = vrot.slane %v3076_v59, 6  ;;  %v8768_v26 = vld [vmem:[%s10346_s7 + $0x108] sm:$0xff]  }
 0xdf8   :  { %v3115_v44 = vrot.slane %v9700_v28, 5  ;;  %v3077_v32 = vld [vmem:[#allocation2 + $0xc] sm:$0xf]  ;;  %v3365_v39 = vrot.slane %v9700_v28, 6  ;;  %v3351_v38 = vld [vmem:[#allocation2 + $0x14] sm:$0x3] }
 0xdf9   :  { %v3110_v3 = vrot.slane %v3108_v36, 4  ;;  %v3109_v8 = vsel %vm9274_vm7, %v6987_v46, %v3108_v36  ;;  %v3360_v25 = vrot.slane %v3358_v9, 4  ;;  %v7000_v62 = vcombine.low %v3077_v32, %v9700_v28  ;;  %v3350_v41 = vld [vmem:[#allocation2 + $0xc] sm:$0xc]  ;;  %v7022_v58 = vld [vmem:[%s10343_s4 + $0x3] ss:$0 sm:$0xff] }
 0xdfa   :  { %v3117_v6 = vrot.slane %v3115_v44, 4  ;;  %v3116_v12 = vsel %vm9274_vm7, %v6988_v5, %v3115_v44  ;;  %v3359_v33 = vsel %vm9287_vm10, %v7009_v18, %v3358_v9  ;;  %v3367_v40 = vrot.slane %v3365_v39, 4  ;;  %v8771_v18 = vld [vmem:[%s10346_s7 + $0x120] sm:$0xff]   ;;  %v8773_v32 = vld [vmem:[%s10346_s7 + $0x130] sm:$0xff]  }
 0xdfb   :  { %v3112_v10 = vsel %vm9274_vm7, %v3110_v3, %v3111_v4  ;;  %v3368_v42 = vrot.slane %v3351_v38, 6  ;;  %v7010_v47 = vrot.slane %v3350_v41, 10 }
 0xdfc   :  { %v6989_v11 = vcombine.low %v3109_v8, %v3112_v10  ;;  %v3119_v1 = vsel %vm9274_vm7, %v3117_v6, %v3118_v7 }
 0xdfd   :  { %v6990_v52 = vcombine.low %v3116_v12, %v3119_v1  ;;  %v3369_v49 = vsel %vm9287_vm10, %v3367_v40, %v3368_v42  ;;  %v3366_v55 = vsel %vm9287_vm10, %v7010_v47, %v3365_v39  ;;  %v7027_v40 = vld [vmem:[%s10345_s6 + $0x3] ss:$0 sm:$0xff] }
 0xdfe   :  { %8066 = vmatprep.mubr.bf16.mxu1 %v6989_v11  ;;  %v7012_v57 = vcombine.low %v3366_v55, %v3369_v49  ;;  %v3764_v55 = vld [vmem:[%s10339_s0 + $0x14] sm:$0xf] }
 0xdff   :  { %8067 = vmatmul.mubr.bf16.vlgmr.msra.gmra.mrb[40].mxu1 %v6990_v52 }
 0xe00   :  { %8071 = vmatpush3.bf16.msra.mxu1 %v9672_v56  ;;  %8086 = vmatprep.mubr.bf16.mxu1 %v6999_v21  ;;  %v3349_v56 = vld [vmem:[#allocation2 + $0x8] sm:$0x3] }
 0xe01   :  { %8072 = vmatprep.subr.bf16.mxu1 %v8751_v20  ;;  %v3361_v54 = vrot.slane %v3349_v56, 6  ;;  %v8767_v56 = vld [vmem:[%s10346_s7 + $0x100] sm:$0xff]  }
 0xe03   :  { %v3362_v19 = vsel %vm9287_vm10, %v3360_v25, %v3361_v54  ;;  %v8770_v54 = vld [vmem:[%s10346_s7 + $0x118] sm:$0xff]  }
 0xe04   :  { %8073 = vmatpush3.bf16.msra.mxu1 %v8751_v20  ;;  %v7011_v34 = vcombine.low %v3359_v33, %v3362_v19  ;;  %v8772_v19 = vld [vmem:[%s10346_s7 + $0x128] sm:$0xff]  }
 0xe05   :  { %8074 = vmatprep.subr.bf16.mxu1 %v8752_v22 }
 0xe08   :  { %8075 = vmatpush3.bf16.msra.mxu1 %v8752_v22 }
 0xe09   :  { %8076 = vmatprep.subr.bf16.mxu1 %v8753_v50 }
 0xe0c   :  { %8077 = vmatpush3.bf16.msra.mxu1 %v8753_v50 }
 0xe0d   :  { %8078 = vmatprep.subr.bf16.mxu1 %v8754_v23 }
 0xe10   :  { %8079 = vmatpush3.bf16.msra.mxu1 %v8754_v23 }
 0xe11   :  { %8080 = vmatprep.subr.bf16.mxu1 %v8755_v30 }
 0xe14   :  { %8081 = vmatpush3.bf16.msra.mxu1 %v8755_v30 }
 0xe15   :  { %8082 = vmatprep.subr.bf16.mxu1 %v8756_v61 }
 0xe18   :  { %8083 = vmatpush3.bf16.msra.mxu1 %v8756_v61 }
 0xe19   :  { %8084 = vmatprep.subr.bf16.mxu1 %v8757_v24 }
 0xe1c   :  { %8085 = vmatpush3.bf16.msra.mxu1 %v8757_v24 }
 0xe1d   :  { %8090 = vmatprep.subr.bf16.mxu1 %v8759_v53 }
 0xe1f   :  { %8087 = vmatmul.mubr.bf16.vlgmr.msra.gmra.mrb[40].mxu1 %v7000_v62  ;;  %v8774_v62 = vld [vmem:[%s10346_s7 + $0x138] sm:$0xff]  }
 0xe20   :  { %8091 = vmatpush3.bf16.msra.mxu1 %v8759_v53  ;;  %8106 = vmatprep.mubr.bf16.mxu1 %v7011_v34  ;;  %v8769_v53 = vld [vmem:[%s10346_s7 + $0x110] sm:$0xff]  }
 0xe21   :  { %8092 = vmatprep.subr.bf16.mxu1 %v8760_v63 }
 0xe24   :  { %8093 = vmatpush3.bf16.msra.mxu1 %v8760_v63 }
 0xe25   :  { %8094 = vmatprep.subr.bf16.mxu1 %v8761_v14 }
 0xe28   :  { %8095 = vmatpush3.bf16.msra.mxu1 %v8761_v14 }
 0xe29   :  { %8096 = vmatprep.subr.bf16.mxu1 %v8762_v2 }
 0xe2c   :  { %8097 = vmatpush3.bf16.msra.mxu1 %v8762_v2 }
 0xe2d   :  { %8098 = vmatprep.subr.bf16.mxu1 %v8763_v35 }
 0xe30   :  { %8099 = vmatpush3.bf16.msra.mxu1 %v8763_v35 }
 0xe31   :  { %8100 = vmatprep.subr.bf16.mxu1 %v8764_v17 }
 0xe34   :  { %8101 = vmatpush3.bf16.msra.mxu1 %v8764_v17 }
 0xe35   :  { %8102 = vmatprep.subr.bf16.mxu1 %v8765_v43 }
 0xe38   :  { %8103 = vmatpush3.bf16.msra.mxu1 %v8765_v43  ;;  %v7023_v43 = vld [vmem:[%s10344_s5 + $0x3] sm:$0x1] }
 0xe39   :  { %8104 = vmatprep.subr.bf16.mxu1 %v8766_v37 }
 0xe3c   :  { %8105 = vmatpush3.bf16.msra.mxu1 %v8766_v37 }
 0xe3d   :  { %8222 = vmatprep.subr.bf16.mxu1 %v8994_v0 }
 0xe3f   :  { %8107 = vmatmul.mubr.bf16.vlgmr.msra.gmra.mrb[40].mxu1 %v7012_v57  ;;  %v3765_v57 = vld [vmem:[%s10339_s0 + $0x34] sm:$0xf] }
 0xe40   :  { %8226 = vmatprep.mubr.msk.bf16.mxu1 %vm8995_vm0, %v8994_v0 }
 0xf12   :  { %v8108_v59 = vpop.f32.mrb[40].mxu1 }
 0xf13   :  { %v3476_v60 = vpop.f32.mrb[41].mxu1  ;;  %v3505_v46 = vadd.f32 %v8108_v59, %v7022_v58 }
 0xf14   :  { %v3503_v27 = vadd.f32 %v7022_v58, %v3476_v60  ;;  %v8109_v36 = vpop.f32.mrb[42].mxu1 }
 0xf15   :  { %v3479_v28 = vpop.f32.mrb[43].mxu1  ;;  %v3506_v29 = vadd.f32 %v8109_v36, %v7022_v58  ;;  %v3509_v7 = vmax.f32 %v3505_v46, 0.0  ;;  %v3767_v46 = vld [vmem:[%s10339_s0 + $0x74] sm:$0xf] }
 0xf16   :  { %v3504_v44 = vadd.f32 %v7022_v58, %v3479_v28  ;;  %v3507_v3 = vmax.f32 %v3503_v27, 0.0 }
 0xf17   :  { %v3510_v5 = vmax.f32 %v3506_v29, 0.0  ;;  %v7036_v29 = vcombine.low %v3764_v55, %v3765_v57 }
 0xf18   :  { %v3508_v4 = vmax.f32 %v3504_v44, 0.0  ;;  %v3766_v44 = vld [vmem:[%s10339_s0 + $0x54] sm:$0xf] }
 0xf19   :  { %v3516_v8 = vpack.c.bf16 %v3510_v5, %v3509_v7 }
 0xf1a   :  { %v3515_v6 = vpack.c.bf16 %v3508_v4, %v3507_v3 }
 0xf1c   :  { %8111 = vmatpush3.bf16.msra.mxu0 %v3515_v6  ;;  %v3769_v6 = vunpack.c.l.bf16 %v3765_v57 }
 0xf1d   :  { %8112 = vmatprep.subr.bf16.mxu0 %v8994_v0 }
 0xf20   :  { %8113 = vmatpush3.bf16.msra.mxu0 %v3516_v8  ;;  %v3771_v8 = vunpack.c.l.bf16 %v3767_v46 }
 0xf21   :  { %8118 = vmatprep.subr.bf16.mxu0 %v8994_v0 }
 0xf23   :  { %8115 = vmatmul.mubr.msk.bf16.vlgmr.msra.gmra.mrb[40].mxu0 %vm83_vm1, %v8996_v13 }
 0xf24   :  { %8122 = vmatprep.mubr.msk.bf16.mxu0 %vm8995_vm0, %v8994_v0 }
 0xff6   :  { %v3551_v10 = vpop.f32.mrb[40].mxu0 }
 0xff7   :  { %v3557_v11 = vmul.f32 0.03125, %v3551_v10  ;;  %v8116_v12 = vpop.f32.mrb[41].mxu0 }
 0xff8   :  { %v3554_v1 = vpop.f32.mrb[42].mxu0 }
 0xff9   :  { %v3561_v52 = vrot.slane %v3557_v11, %v9139_v16  ;;  %v8117_v48 = vpop.f32.mrb[43].mxu0 }
 0xffb   :  { %v3562_v20 = vsub.f32 %v3507_v3, %v3561_v52  ;;  %v3563_v21 = vsub.f32 %v3508_v4, %v3561_v52  ;;  %v3564_v22 = vsub.f32 %v3509_v7, %v3561_v52  ;;  %v3565_v50 = vsub.f32 %v3510_v5, %v3561_v52 }
 0xffc   :  { %v7037_v3 = vcombine.low %v3766_v44, %v3767_v46  ;;  %v3768_v4 = vunpack.c.l.bf16 %v3764_v55  ;;  %v3770_v7 = vunpack.c.l.bf16 %v3766_v44 }
 0xffd   :  { %v3566_v23 = vmul.f32 %v3562_v20, %v3562_v20  ;;  %v3567_v30 = vmul.f32 %v3563_v21, %v3563_v21  ;;  %v3568_v9 = vmul.f32 %v3564_v22, %v3564_v22  ;;  %v3569_v24 = vmul.f32 %v3565_v50, %v3565_v50 }
 0xfff   :  { %v3570_v61 = vpack.c.bf16 %v3567_v30, %v3566_v23  ;;  %v3571_v25 = vpack.c.bf16 %v3569_v24, %v3568_v9 }
0x1001   :  { %8119 = vmatpush3.bf16.msra.mxu0 %v3570_v61 }
0x1002   :  { %8120 = vmatprep.subr.bf16.mxu0 %v8994_v0 }
0x1005   :  { %8121 = vmatpush3.bf16.msra.mxu0 %v3571_v25  ;;  %v8776_v25 = vld [vmem:[#allocation4 + $0x348] sm:$0xff]  }
0x1006   :  { %8126 = vmatprep.subr.bf16.mxu0 %v8767_v56 }
0x1008   :  { %8123 = vmatmul.mubr.msk.bf16.vlgmr.msra.gmra.mrb[44].mxu0 %vm83_vm1, %v8996_v13 }
0x1009   :  { %8127 = vmatpush3.bf16.msra.mxu0 %v8767_v56  ;;  %v8775_v56 = vld [vmem:[#allocation4 + $0x340] sm:$0xff]  }
0x100a   :  { %8128 = vmatprep.subr.bf16.mxu0 %v8768_v26 }
0x100d   :  { %8129 = vmatpush3.bf16.msra.mxu0 %v8768_v26  ;;  %v8777_v26 = vld [vmem:[#allocation4 + $0x350] sm:$0xff]  }
0x100e   :  { %8130 = vmatprep.subr.bf16.mxu0 %v8769_v53 }
0x1011   :  { %8131 = vmatpush3.bf16.msra.mxu0 %v8769_v53  ;;  %v8778_v53 = vld [vmem:[#allocation4 + $0x358] sm:$0xff]  }
0x1012   :  { %8132 = vmatprep.subr.bf16.mxu0 %v8770_v54 }
0x1015   :  { %8133 = vmatpush3.bf16.msra.mxu0 %v8770_v54  ;;  %v8779_v54 = vld [vmem:[#allocation4 + $0x360] sm:$0xff]  }
0x1016   :  { %8134 = vmatprep.subr.bf16.mxu0 %v8771_v18 }
0x1019   :  { %8135 = vmatpush3.bf16.msra.mxu0 %v8771_v18  ;;  %v8780_v18 = vld [vmem:[#allocation4 + $0x368] sm:$0xff]  }
0x101a   :  { %8136 = vmatprep.subr.bf16.mxu0 %v8772_v19 }
0x101d   :  { %8137 = vmatpush3.bf16.msra.mxu0 %v8772_v19  ;;  %v8781_v19 = vld [vmem:[#allocation4 + $0x370] sm:$0xff]  }
0x101e   :  { %8138 = vmatprep.subr.bf16.mxu0 %v8773_v32 }
0x1021   :  { %8139 = vmatpush3.bf16.msra.mxu0 %v8773_v32  ;;  %v8782_v32 = vld [vmem:[#allocation4 + $0x378] sm:$0xff]  }
0x1022   :  { %8140 = vmatprep.subr.bf16.mxu0 %v8774_v62 }
0x1025   :  { %8141 = vmatpush3.bf16.msra.mxu0 %v8774_v62  ;;  %v9806_v62 = vld [vmem:[#allocation4 + $0x300] sm:$0xff]  }
0x1026   :  { %8146 = vmatprep.subr.bf16.mxu0 %v8994_v0 }
0x10db   :  { %v3606_v33 = vpop.f32.mrb[44].mxu0 }
0x10dc   :  { %v3612_v63 = vmul.f32 0.03125, %v3606_v33  ;;  %v8124_v34 = vpop.f32.mrb[45].mxu0 }
0x10dd   :  { %v3609_v14 = vpop.f32.mrb[46].mxu0 }
0x10de   :  { %v3613_v2 = vmax.f32 %v3612_v63, 0.0  ;;  %v8125_v35 = vpop.f32.mrb[47].mxu0 }
0x10e0   :  { %v3614_v17 = vadd.f32 1e-05, %v3613_v2 }
0x10e2   :  { %8909 = vrsqrt.f32 %v3614_v17 }
0x10ec   :  { %v8910_v39 = vpop.eup %8909 }
0x10ed   :  { %v3616_v37 = vmul.f32 %v8910_v39, %v7023_v43  ;;  %v9812_v43 = vld [vmem:[%s10340_s1] sm:$0xff] }
0x10ee   :  { %v3871_v39 = vrot.slane %v9812_v43, 5 }
0x10ef   :  { %v3621_v38 = vrot.slane %v3616_v37, %v9139_v16  ;;  %v9818_v37 = vld [vmem:[%s10341_s2] sm:$0xff] }
0x10f1   :  { %v3623_v41 = vmul.f32 %v3621_v38, %v3562_v20  ;;  %v3624_v42 = vmul.f32 %v3621_v38, %v3563_v21  ;;  %v3625_v47 = vmul.f32 %v3621_v38, %v3564_v22  ;;  %v3626_v49 = vmul.f32 %v3621_v38, %v3565_v50 }
0x10f2   :  { %v3886_v38 = vrot.slane %v9818_v37, 5 }
0x10f3   :  { %v9776_v58 = vadd.f32 %v7027_v40, %v3623_v41  ;;  %v9778_v59 = vadd.f32 %v7027_v40, %v3624_v42  ;;  %v9780_v60 = vadd.f32 %v7027_v40, %v3625_v47  ;;  %v9782_v27 = vadd.f32 %v7027_v40, %v3626_v49 }
0x10f4   :  { %v3890_v47 = vrot.slane %v3886_v38, %v9139_v16  ;;  %v8786_v38 = vld [vmem:[#allocation4 + $0x310] sm:$0xff]  }
0x10f5   :  { %v3637_v36 = vpack.c.bf16 %v9778_v59, %v9776_v58  ;;  %v3638_v28 = vpack.c.bf16 %v9782_v27, %v9780_v60 }
0x10f7   :  { %8142 = vmatprep.mubr.bf16.mxu0 %v3637_v36 }
0x10f8   :  { %8143 = vmatmul.mubr.bf16.vlgmr.msra.gmra.mrb[8].mxu0 %v3638_v28 }
0x10f9   :  { %8147 = vmatpush3.bf16.msra.mxu0 %v7036_v29  ;;  %8150 = vmatprep.mubr.msk.bf16.mxu0 %vm8995_vm0, %v8994_v0 }
0x10fa   :  { %8148 = vmatprep.subr.bf16.mxu0 %v8994_v0 }
0x10fd   :  { %8149 = vmatpush3.bf16.msra.mxu0 %v7037_v3 }
0x10fe   :  { %8154 = vmatprep.subr.bf16.mxu0 %v8994_v0 }
0x1100   :  { %8151 = vmatmul.mubr.msk.bf16.vlgmr.msra.gmra.mrb[48].mxu0 %vm83_vm1, %v8996_v13 }
0x1101   :  { %8158 = vmatprep.mubr.msk.bf16.mxu0 %vm8995_vm0, %v8994_v0 }
0x11d3   :  { %v3808_v5 = vpop.f32.mrb[48].mxu0 }
0x11d4   :  { %v3814_v10 = vmul.f32 0.03125, %v3808_v5  ;;  %v8152_v11 = vpop.f32.mrb[49].mxu0 }
0x11d5   :  { %v3811_v12 = vpop.f32.mrb[50].mxu0 }
0x11d6   :  { %v3818_v1 = vrot.slane %v3814_v10, %v9139_v16  ;;  %v8153_v52 = vpop.f32.mrb[51].mxu0 }
0x11d8   :  { %v3819_v48 = vsub.f32 %v3768_v4, %v3818_v1  ;;  %v3820_v20 = vsub.f32 %v3769_v6, %v3818_v1  ;;  %v3821_v21 = vsub.f32 %v3770_v7, %v3818_v1  ;;  %v3822_v22 = vsub.f32 %v3771_v8, %v3818_v1 }
0x11da   :  { %v3823_v50 = vmul.f32 %v3819_v48, %v3819_v48  ;;  %v3824_v23 = vmul.f32 %v3820_v20, %v3820_v20  ;;  %v3825_v61 = vmul.f32 %v3821_v21, %v3821_v21  ;;  %v3826_v9 = vmul.f32 %v3822_v22, %v3822_v22 }
0x11dc   :  { %v3827_v30 = vpack.c.bf16 %v3824_v23, %v3823_v50  ;;  %v3828_v24 = vpack.c.bf16 %v3826_v9, %v3825_v61 }
0x11de   :  { %8155 = vmatpush3.bf16.msra.mxu0 %v3827_v30 }
0x11df   :  { %8156 = vmatprep.subr.bf16.mxu0 %v8994_v0 }
0x11e2   :  { %8157 = vmatpush3.bf16.msra.mxu0 %v3828_v24 }
0x11e3   :  { %8162 = vmatprep.subr.bf16.mxu0 %v8775_v56 }
0x11e5   :  { %8159 = vmatmul.mubr.msk.bf16.vlgmr.msra.gmra.mrb[52].mxu0 %vm83_vm1, %v8996_v13 }
0x11e6   :  { %8163 = vmatpush3.bf16.msra.mxu0 %v8775_v56 }
0x11e7   :  { %8164 = vmatprep.subr.bf16.mxu0 %v8776_v25 }
0x11ea   :  { %8165 = vmatpush3.bf16.msra.mxu0 %v8776_v25 }
0x11eb   :  { %8166 = vmatprep.subr.bf16.mxu0 %v8777_v26 }
0x11ee   :  { %8167 = vmatpush3.bf16.msra.mxu0 %v8777_v26 }
0x11ef   :  { %8168 = vmatprep.subr.bf16.mxu0 %v8778_v53 }
0x11f2   :  { %8169 = vmatpush3.bf16.msra.mxu0 %v8778_v53 }
0x11f3   :  { %8170 = vmatprep.subr.bf16.mxu0 %v8779_v54 }
0x11f6   :  { %8171 = vmatpush3.bf16.msra.mxu0 %v8779_v54 }
0x11f7   :  { %8172 = vmatprep.subr.bf16.mxu0 %v8780_v18 }
0x11fa   :  { %8173 = vmatpush3.bf16.msra.mxu0 %v8780_v18 }
0x11fb   :  { %8174 = vmatprep.subr.bf16.mxu0 %v8781_v19 }
0x11fe   :  { %8175 = vmatpush3.bf16.msra.mxu0 %v8781_v19 }
0x11ff   :  { %8176 = vmatprep.subr.bf16.mxu0 %v8782_v32 }
0x1202   :  { %8177 = vmatpush3.bf16.msra.mxu0 %v8782_v32 }
0x1203   :  { %8182 = vmatprep.subr.bf16.mxu0 %v9806_v62 }
0x12b8   :  { %v3863_v33 = vpop.f32.mrb[52].mxu0 }
0x12b9   :  { %v3869_v63 = vmul.f32 0.03125, %v3863_v33  ;;  %v8160_v34 = vpop.f32.mrb[53].mxu0 }
0x12ba   :  { %v3866_v14 = vpop.f32.mrb[54].mxu0 }
0x12bb   :  { %v3870_v2 = vmax.f32 %v3869_v63, 0.0  ;;  %v8161_v35 = vpop.f32.mrb[55].mxu0 }
0x12bd   :  { %v3873_v17 = vadd.f32 1e-05, %v3870_v2 }
0x12bf   :  { %8911 = vrsqrt.f32 %v3873_v17  ;;  %v8785_v17 = vld [vmem:[#allocation4 + $0x308] sm:$0xff]  }
0x12c9   :  { %v8912_v40 = vpop.eup %8911 }
0x12ca   :  { %v3875_v41 = vmul.f32 %v8912_v40, %v3871_v39  ;;  %v8787_v40 = vld [vmem:[#allocation4 + $0x318] sm:$0xff]  }
0x12cc   :  { %v3880_v42 = vrot.slane %v3875_v41, %v9139_v16  ;;  %v8788_v41 = vld [vmem:[#allocation4 + $0x320] sm:$0xff]  }
0x12ce   :  { %v3882_v49 = vmul.f32 %v3880_v42, %v3819_v48  ;;  %v3883_v55 = vmul.f32 %v3880_v42, %v3820_v20  ;;  %v3884_v57 = vmul.f32 %v3880_v42, %v3821_v21  ;;  %v3885_v36 = vmul.f32 %v3880_v42, %v3822_v22  ;;  %v8789_v42 = vld [vmem:[#allocation4 + $0x328] sm:$0xff]  }
0x12d0   :  { %v3892_v28 = vadd.f32 %v3890_v47, %v3882_v49  ;;  %v3893_v29 = vadd.f32 %v3890_v47, %v3883_v55  ;;  %v3894_v44 = vadd.f32 %v3890_v47, %v3884_v57  ;;  %v3895_v46 = vadd.f32 %v3890_v47, %v3885_v36  ;;  %v8790_v47 = vld [vmem:[#allocation4 + $0x330] sm:$0xff]   ;;  %v8791_v55 = vld [vmem:[#allocation4 + $0x338] sm:$0xff]  }
0x12d2   :  { %v3896_v3 = vadd.f32 %v3892_v28, %v9776_v58  ;;  %v3897_v4 = vadd.f32 %v3893_v29, %v9778_v59  ;;  %v3898_v5 = vadd.f32 %v3894_v44, %v9780_v60  ;;  %v3899_v6 = vadd.f32 %v3895_v46, %v9782_v27  ;;  %v8793_v28 = vld [vmem:[#allocation4 + $0x380] sm:$0xff]  }
0x12d4   :  { %v7246_v7 = vpack.c.bf16 %v3896_v3, %v3896_v3  ;;  %v7247_v8 = vpack.c.bf16 %v3897_v4, %v3897_v4  ;;  %v7248_v10 = vpack.c.bf16 %v3898_v5, %v3898_v5  ;;  %v7249_v11 = vpack.c.bf16 %v3899_v6, %v3899_v6  ;;  %v8794_v6 = vld [vmem:[#allocation4 + $0x388] sm:$0xff]  }
0x12d6   :  { %v3912_v12 = vrot.slane %v7246_v7, 7  ;;  %v3914_v1 = vrot.slane %v7247_v8, 7  ;;  %v3917_v52 = vrot.slane %v7248_v10, 7  ;;  %v3919_v48 = vrot.slane %v7249_v11, 7  ;;  %v8795_v8 = vld [vmem:[#allocation4 + $0x390] sm:$0xff]   ;;  %v8796_v10 = vld [vmem:[#allocation4 + $0x398] sm:$0xff]  }
0x12d7   :  { %v8797_v11 = vld [vmem:[#allocation4 + $0x3a0] sm:$0xff]  }
0x12d8   :  { %v3913_v20 = vrot.slane %v3912_v12, 4  ;;  %v3916_v21 = vrot.slane %v3914_v1, 4  ;;  %v3918_v22 = vrot.slane %v3917_v52, 4  ;;  %v3921_v50 = vrot.slane %v3919_v48, 4  ;;  %3928 = vst [vmem:[#allocation2] sm:$0xe] %v3912_v12 }
0x12d9   :  { %3931 = vst [vmem:[#allocation2 + $0xc] sm:$0xe] %v3917_v52  ;;  %v8798_v12 = vld [vmem:[#allocation4 + $0x3a8] sm:$0xff]  }
0x12da   :  { %v3915_v58 = vsel %vm9261_vm4, %v3913_v20, %v3914_v1  ;;  %v3920_v59 = vsel %vm9261_vm4, %v3918_v22, %v3919_v48  ;;  %3930 = vst [vmem:[#allocation2 + $0x8] sm:$0x1] %v3916_v21  ;;  %3933 = vst [vmem:[#allocation2 + $0x14] sm:$0x1] %v3921_v50  ;;  %v8799_v1 = vld [vmem:[#allocation4 + $0x3b0] sm:$0xff]   ;;  %v8800_v48 = vld [vmem:[#allocation4 + $0x3b8] sm:$0xff]  }
0x12db   :  { %3929 = vst [vmem:[#allocation2 + $0x4] sm:$0xf] %v3915_v58  ;;  %3932 = vst [vmem:[#allocation2 + $0x10] sm:$0xf] %v3920_v59 }
0x12df   :  { %v3955_v60 = vld [vmem:[#allocation2] sm:$0xe] }
0x12e0   :  { %v3957_v23 = vld [vmem:[#allocation2 + $0xc] sm:$0xe]  ;;  %v7044_v25 = vrot.slane %v3955_v60, 9  ;;  %v3934_v35 = vld [vmem:[#allocation2] sm:$0xf] }
0x12e1   :  { %v3956_v27 = vld [vmem:[#allocation2 + $0x8] sm:$0x1]  ;;  %v3958_v9 = vld [vmem:[#allocation2 + $0x14] sm:$0x1]  ;;  %v7045_v26 = vrot.slane %v3957_v23, 9 }
0x12e2   :  { %v3935_v30 = vld [vmem:[#allocation2 + $0x4] sm:$0xf]  ;;  %v9831_v61 = vld [vmem:[#allocation2 + $0x10] sm:$0xf]  ;;  %v3970_v54 = vrot.slane %v3956_v27, 5  ;;  %v3977_v19 = vrot.slane %v3958_v9, 5 }
0x12e3   :  { %v3967_v24 = vrot.slane %v3935_v30, 5  ;;  %v3974_v56 = vrot.slane %v9831_v61, 5  ;;  %v7056_v39 = vcombine.low %v3934_v35, %v3935_v30  ;;  %v4217_v49 = vrot.slane %v3935_v30, 6  ;;  %v4207_v36 = vld [vmem:[#allocation2] sm:$0xc] }
0x12e4   :  { %v7066_v44 = vrot.slane %v4207_v36, 10  ;;  %v3936_v3 = vld [vmem:[#allocation2 + $0xc] sm:$0xf]  ;;  %v4224_v52 = vrot.slane %v9831_v61, 6  ;;  %v4210_v20 = vld [vmem:[#allocation2 + $0x14] sm:$0x3] }
0x12e5   :  { %v3969_v53 = vrot.slane %v3967_v24, 4  ;;  %v3976_v18 = vrot.slane %v3974_v56, 4  ;;  %v3968_v32 = vsel %vm9274_vm7, %v7044_v25, %v3967_v24  ;;  %v3975_v63 = vsel %vm9274_vm7, %v7045_v26, %v3974_v56  ;;  %v4209_v22 = vld [vmem:[#allocation2 + $0xc] sm:$0xc]  ;;  %v7079_v23 = vld [vmem:[%s10343_s4 + $0x4] ss:$0 sm:$0xff] }
0x12e6   :  { %v4219_v57 = vrot.slane %v4217_v49, 4  ;;  %v7057_v4 = vcombine.low %v3936_v3, %v9831_v61  ;;  %v4218_v5 = vsel %vm9287_vm10, %v7066_v44, %v4217_v49  ;;  %v4226_v21 = vrot.slane %v4224_v52, 4  ;;  %v4625_v3 = vld [vmem:[%s10339_s0 + $0x58] sm:$0xf] }
0x12e7   :  { %v3971_v33 = vsel %vm9274_vm7, %v3969_v53, %v3970_v54  ;;  %v3978_v34 = vsel %vm9274_vm7, %v3976_v18, %v3977_v19  ;;  %v4227_v50 = vrot.slane %v4210_v20, 6  ;;  %v7067_v58 = vrot.slane %v4209_v22, 10 }
0x12e8   :  { %v7046_v14 = vcombine.low %v3968_v32, %v3971_v33  ;;  %v7047_v2 = vcombine.low %v3975_v63, %v3978_v34  ;;  %v8801_v34 = vld [vmem:[%s10346_s7 + $0x140] sm:$0xff]  }
0x12e9   :  { %v4228_v59 = vsel %vm9287_vm10, %v4226_v21, %v4227_v50  ;;  %v4225_v60 = vsel %vm9287_vm10, %v7067_v58, %v4224_v52 }
0x12ea   :  { %8178 = vmatprep.mubr.bf16.mxu0 %v7046_v14  ;;  %v7069_v27 = vcombine.low %v4225_v60, %v4228_v59 }
0x12eb   :  { %8179 = vmatmul.mubr.bf16.vlgmr.msra.gmra.mrb[56].mxu0 %v7047_v2 }
0x12ec   :  { %8183 = vmatpush3.bf16.msra.mxu0 %v9806_v62  ;;  %8198 = vmatprep.mubr.bf16.mxu0 %v7056_v39  ;;  %v4208_v62 = vld [vmem:[#allocation2 + $0x8] sm:$0x3] }
0x12ed   :  { %8184 = vmatprep.subr.bf16.mxu0 %v8785_v17  ;;  %v4220_v29 = vrot.slane %v4208_v62, 6 }
0x12ef   :  { %v4221_v46 = vsel %vm9287_vm10, %v4219_v57, %v4220_v29  ;;  %v4624_v29 = vld [vmem:[%s10339_s0 + $0x38] sm:$0xf] }
0x12f0   :  { %8185 = vmatpush3.bf16.msra.mxu0 %v8785_v17  ;;  %v7068_v7 = vcombine.low %v4218_v5, %v4221_v46 }
0x12f1   :  { %8186 = vmatprep.subr.bf16.mxu0 %v8786_v38 }
0x12f4   :  { %8187 = vmatpush3.bf16.msra.mxu0 %v8786_v38 }
0x12f5   :  { %8188 = vmatprep.subr.bf16.mxu0 %v8787_v40 }
0x12f8   :  { %8189 = vmatpush3.bf16.msra.mxu0 %v8787_v40 }
0x12f9   :  { %8190 = vmatprep.subr.bf16.mxu0 %v8788_v41 }
0x12fc   :  { %8191 = vmatpush3.bf16.msra.mxu0 %v8788_v41 }
0x12fd   :  { %8192 = vmatprep.subr.bf16.mxu0 %v8789_v42 }
0x1300   :  { %8193 = vmatpush3.bf16.msra.mxu0 %v8789_v42 }
0x1301   :  { %8194 = vmatprep.subr.bf16.mxu0 %v8790_v47 }
0x1304   :  { %8195 = vmatpush3.bf16.msra.mxu0 %v8790_v47 }
0x1305   :  { %8196 = vmatprep.subr.bf16.mxu0 %v8791_v55 }
0x1308   :  { %8197 = vmatpush3.bf16.msra.mxu0 %v8791_v55 }
0x1309   :  { %8202 = vmatprep.subr.bf16.mxu0 %v8793_v28 }
0x130b   :  { %8199 = vmatmul.mubr.bf16.vlgmr.msra.gmra.mrb[56].mxu0 %v7057_v4  ;;  %v4626_v4 = vld [vmem:[%s10339_s0 + $0x78] sm:$0xf] }
0x130c   :  { %8203 = vmatpush3.bf16.msra.mxu0 %v8793_v28  ;;  %8218 = vmatprep.mubr.bf16.mxu0 %v7068_v7  ;;  %v4623_v28 = vld [vmem:[%s10339_s0 + $0x18] sm:$0xf]  ;;  %v7094_v5 = vcombine.low %v4625_v3, %v4626_v4  ;;  %v8803_v7 = vld [vmem:[%s10346_s7 + $0x150] sm:$0xff]  }
0x130d   :  { %8204 = vmatprep.subr.bf16.mxu0 %v8794_v6  ;;  %v7093_v46 = vcombine.low %v4623_v28, %v4624_v29  ;;  %v4627_v59 = vunpack.c.l.bf16 %v4623_v28 }
0x1310   :  { %8205 = vmatpush3.bf16.msra.mxu0 %v8794_v6  ;;  %v8802_v6 = vld [vmem:[%s10346_s7 + $0x148] sm:$0xff]  }
0x1311   :  { %8206 = vmatprep.subr.bf16.mxu0 %v8795_v8 }
0x1314   :  { %8207 = vmatpush3.bf16.msra.mxu0 %v8795_v8  ;;  %v8804_v8 = vld [vmem:[%s10346_s7 + $0x158] sm:$0xff]  }
0x1315   :  { %8208 = vmatprep.subr.bf16.mxu0 %v8796_v10 }
0x1318   :  { %8209 = vmatpush3.bf16.msra.mxu0 %v8796_v10  ;;  %v8805_v10 = vld [vmem:[%s10346_s7 + $0x160] sm:$0xff]  }
0x1319   :  { %8210 = vmatprep.subr.bf16.mxu0 %v8797_v11 }
0x131c   :  { %8211 = vmatpush3.bf16.msra.mxu0 %v8797_v11  ;;  %v8806_v11 = vld [vmem:[%s10346_s7 + $0x168] sm:$0xff]  }
0x131d   :  { %8212 = vmatprep.subr.bf16.mxu0 %v8798_v12 }
0x1320   :  { %8213 = vmatpush3.bf16.msra.mxu0 %v8798_v12  ;;  %v8807_v12 = vld [vmem:[%s10346_s7 + $0x170] sm:$0xff]  }
0x1321   :  { %8214 = vmatprep.subr.bf16.mxu0 %v8799_v1 }
0x1324   :  { %8215 = vmatpush3.bf16.msra.mxu0 %v8799_v1  ;;  %v8808_v1 = vld [vmem:[%s10346_s7 + $0x178] sm:$0xff]  }
0x1325   :  { %8216 = vmatprep.subr.bf16.mxu0 %v8800_v48 }
0x1328   :  { %8217 = vmatpush3.bf16.msra.mxu0 %v8800_v48 }
0x1329   :  { %8238 = vmatprep.subr.bf16.mxu0 %v8801_v34 }
0x132b   :  { %8219 = vmatmul.mubr.bf16.vlgmr.msra.gmra.mrb[56].mxu0 %v7069_v27  ;;  %v4628_v27 = vunpack.c.l.bf16 %v4624_v29 }
0x132c   :  { %8239 = vmatpush3.bf16.msra.mxu0 %v8801_v34 }
0x132d   :  { %8240 = vmatprep.subr.bf16.mxu0 %v8802_v6 }
0x1330   :  { %8241 = vmatpush3.bf16.msra.mxu0 %v8802_v6  ;;  %v8815_v6 = vld [vmem:[#allocation4 + $0x430] sm:$0xff]  }
0x1331   :  { %8242 = vmatprep.subr.bf16.mxu0 %v8803_v7 }
0x1334   :  { %8243 = vmatpush3.bf16.msra.mxu0 %v8803_v7  ;;  %v8816_v7 = vld [vmem:[#allocation4 + $0x438] sm:$0xff]  }
0x1335   :  { %8244 = vmatprep.subr.bf16.mxu0 %v8804_v8 }
0x1338   :  { %8245 = vmatpush3.bf16.msra.mxu0 %v8804_v8  ;;  %v9961_v8 = vld [vmem:[#allocation4 + $0x3c0] sm:$0xff]  }
0x1339   :  { %8246 = vmatprep.subr.bf16.mxu0 %v8805_v10 }
0x133c   :  { %8247 = vmatpush3.bf16.msra.mxu0 %v8805_v10 }
0x133d   :  { %8248 = vmatprep.subr.bf16.mxu0 %v8806_v11 }
0x1340   :  { %8249 = vmatpush3.bf16.msra.mxu0 %v8806_v11 }
0x1341   :  { %8250 = vmatprep.subr.bf16.mxu0 %v8807_v12 }
0x1344   :  { %8251 = vmatpush3.bf16.msra.mxu0 %v8807_v12 }
0x1345   :  { %8252 = vmatprep.subr.bf16.mxu0 %v8808_v1 }
0x1348   :  { %8253 = vmatpush3.bf16.msra.mxu0 %v8808_v1 }
0x1349   :  { %8334 = vmatprep.subr.bf16.mxu0 %v8994_v0 }
0x13fe   :  { %v8220_v30 = vpop.f32.mrb[56].mxu0 }
0x13ff   :  { %v4335_v61 = vpop.f32.mrb[57].mxu0  ;;  %v4364_v53 = vadd.f32 %v8220_v30, %v7079_v23  ;;  %v4630_v30 = vunpack.c.l.bf16 %v4626_v4  ;;  %v8813_v4 = vld [vmem:[#allocation4 + $0x420] sm:$0xff]  }
0x1400   :  { %v4362_v9 = vadd.f32 %v7079_v23, %v4335_v61  ;;  %v8221_v24 = vpop.f32.mrb[58].mxu0 }
0x1401   :  { %v4338_v56 = vpop.f32.mrb[59].mxu0  ;;  %v4365_v25 = vadd.f32 %v8221_v24, %v7079_v23  ;;  %v4368_v33 = vmax.f32 %v4364_v53, 0.0 }
0x1402   :  { %v4363_v26 = vadd.f32 %v7079_v23, %v4338_v56  ;;  %v4366_v54 = vmax.f32 %v4362_v9, 0.0  ;;  %v4629_v23 = vunpack.c.l.bf16 %v4625_v3 }
0x1403   :  { %v4369_v19 = vmax.f32 %v4365_v25, 0.0 }
0x1404   :  { %v4367_v18 = vmax.f32 %v4363_v26, 0.0 }
0x1405   :  { %v4375_v63 = vpack.c.bf16 %v4369_v19, %v4368_v33 }
0x1406   :  { %v4374_v32 = vpack.c.bf16 %v4367_v18, %v4366_v54 }
0x1408   :  { %8223 = vmatpush3.bf16.msra.mxu1 %v4374_v32 }
0x1409   :  { %8224 = vmatprep.subr.bf16.mxu1 %v8994_v0 }
0x140c   :  { %8225 = vmatpush3.bf16.msra.mxu1 %v4375_v63 }
0x140d   :  { %8230 = vmatprep.subr.bf16.mxu1 %v8994_v0 }
0x140f   :  { %8227 = vmatmul.mubr.msk.bf16.vlgmr.msra.gmra.mrb[44].mxu1 %vm83_vm1, %v8996_v13 }
0x1410   :  { %8234 = vmatprep.mubr.msk.bf16.mxu1 %vm8995_vm0, %v8994_v0 }
0x14e2   :  { %v4410_v14 = vpop.f32.mrb[44].mxu1 }
0x14e3   :  { %v4416_v2 = vmul.f32 0.03125, %v4410_v14  ;;  %v8228_v35 = vpop.f32.mrb[45].mxu1 }
0x14e4   :  { %v4413_v17 = vpop.f32.mrb[46].mxu1 }
0x14e5   :  { %v4420_v39 = vrot.slane %v4416_v2, %v9139_v16  ;;  %v8229_v38 = vpop.f32.mrb[47].mxu1 }
0x14e6   :  { %v7084_v38 = vld [vmem:[%s10345_s6 + $0x4] ss:$0 sm:$0xff] }
0x14e7   :  { %v9866_v40 = vsub.f32 %v4366_v54, %v4420_v39  ;;  %v9868_v41 = vsub.f32 %v4367_v18, %v4420_v39  ;;  %v9870_v42 = vsub.f32 %v4368_v33, %v4420_v39  ;;  %v9872_v47 = vsub.f32 %v4369_v19, %v4420_v39  ;;  %v7080_v19 = vld [vmem:[%s10344_s5 + $0x4] sm:$0x1] }
0x14e9   :  { %v4425_v49 = vmul.f32 %v9866_v40, %v9866_v40  ;;  %v4426_v55 = vmul.f32 %v9868_v41, %v9868_v41  ;;  %v4427_v57 = vmul.f32 %v9870_v42, %v9870_v42  ;;  %v4428_v36 = vmul.f32 %v9872_v47, %v9872_v47 }
0x14eb   :  { %v4429_v62 = vpack.c.bf16 %v4426_v55, %v4425_v49  ;;  %v4430_v44 = vpack.c.bf16 %v4428_v36, %v4427_v57 }
0x14ed   :  { %8231 = vmatpush3.bf16.msra.mxu1 %v4429_v62 }
0x14ee   :  { %8232 = vmatprep.subr.bf16.mxu1 %v8994_v0 }
0x14f1   :  { %8233 = vmatpush3.bf16.msra.mxu1 %v4430_v44 }
0x14f2   :  { %8258 = vmatprep.subr.bf16.mxu1 %v8994_v0 }
0x14f4   :  { %8235 = vmatmul.mubr.msk.bf16.vlgmr.msra.gmra.mrb[48].mxu1 %vm83_vm1, %v8996_v13 }
0x14f5   :  { %8259 = vmatpush3.bf16.msra.mxu1 %v7093_v46  ;;  %8262 = vmatprep.mubr.msk.bf16.mxu1 %vm8995_vm0, %v8994_v0 }
0x14f6   :  { %8260 = vmatprep.subr.bf16.mxu1 %v8994_v0 }
0x14f9   :  { %8261 = vmatpush3.bf16.msra.mxu1 %v7094_v5  ;;  %v8814_v5 = vld [vmem:[#allocation4 + $0x428] sm:$0xff]  }
0x14fa   :  { %8266 = vmatprep.subr.bf16.mxu1 %v8994_v0 }
0x14fc   :  { %8263 = vmatmul.mubr.msk.bf16.vlgmr.msra.gmra.mrb[52].mxu1 %vm83_vm1, %v8996_v13 }
0x14fd   :  { %8270 = vmatprep.mubr.msk.bf16.mxu1 %vm8995_vm0, %v8994_v0 }
0x15c7   :  { %v4465_v52 = vpop.f32.mrb[48].mxu1 }
0x15c8   :  { %v4471_v48 = vmul.f32 0.03125, %v4465_v52  ;;  %v8236_v20 = vpop.f32.mrb[49].mxu1 }
0x15c9   :  { %v4468_v21 = vpop.f32.mrb[50].mxu1 }
0x15ca   :  { %v4472_v22 = vmax.f32 %v4471_v48, 0.0  ;;  %v8237_v50 = vpop.f32.mrb[51].mxu1  ;;  %v4730_v21 = vrot.slane %v9812_v43, 6 }
0x15cc   :  { %v4473_v58 = vadd.f32 1e-05, %v4472_v22  ;;  %v4745_v22 = vrot.slane %v9818_v37, 6 }
0x15ce   :  { %8913 = vrsqrt.f32 %v4473_v58 }
0x15cf   :  { %v4667_v60 = vpop.f32.mrb[52].mxu1 }
0x15d0   :  { %v4673_v61 = vmul.f32 0.03125, %v4667_v60  ;;  %v8264_v9 = vpop.f32.mrb[53].mxu1  ;;  %v4749_v60 = vrot.slane %v4745_v22, %v9139_v16  ;;  %v8822_v22 = vld [vmem:[#allocation4 + $0x3e0] sm:$0xff]  }
0x15d1   :  { %v4670_v24 = vpop.f32.mrb[54].mxu1 }
0x15d2   :  { %v4677_v56 = vrot.slane %v4673_v61, %v9139_v16  ;;  %v8265_v25 = vpop.f32.mrb[55].mxu1 }
0x15d4   :  { %v9929_v26 = vsub.f32 %v4627_v59, %v4677_v56  ;;  %v9931_v53 = vsub.f32 %v4628_v27, %v4677_v56  ;;  %v9933_v54 = vsub.f32 %v4629_v23, %v4677_v56  ;;  %v9935_v18 = vsub.f32 %v4630_v30, %v4677_v56 }
0x15d6   :  { %v4682_v32 = vmul.f32 %v9929_v26, %v9929_v26  ;;  %v4683_v33 = vmul.f32 %v9931_v53, %v9931_v53  ;;  %v4684_v14 = vmul.f32 %v9933_v54, %v9933_v54  ;;  %v4685_v2 = vmul.f32 %v9935_v18, %v9935_v18 }
0x15d8   :  { %v8914_v63 = vpop.eup %8913  ;;  %v4686_v34 = vpack.c.bf16 %v4683_v33, %v4682_v32  ;;  %v4687_v39 = vpack.c.bf16 %v4685_v2, %v4684_v14 }
0x15d9   :  { %v4475_v35 = vmul.f32 %v8914_v63, %v7080_v19 }
0x15da   :  { %8267 = vmatpush3.bf16.msra.mxu1 %v4686_v34 }
0x15db   :  { %v4480_v17 = vrot.slane %v4475_v35, %v9139_v16  ;;  %8268 = vmatprep.subr.bf16.mxu1 %v8994_v0 }
0x15dd   :  { %v4482_v49 = vmul.f32 %v4480_v17, %v9866_v40  ;;  %v4483_v55 = vmul.f32 %v4480_v17, %v9868_v41  ;;  %v4484_v62 = vmul.f32 %v4480_v17, %v9870_v42  ;;  %v4485_v57 = vmul.f32 %v4480_v17, %v9872_v47  ;;  %v8809_v40 = vld [vmem:[#allocation4 + $0x400] sm:$0xff]   ;;  %v8810_v41 = vld [vmem:[#allocation4 + $0x408] sm:$0xff]   ;;  %v8811_v42 = vld [vmem:[#allocation4 + $0x410] sm:$0xff]  }
0x15de   :  { %8269 = vmatpush3.bf16.msra.mxu1 %v4687_v39  ;;  %v8812_v47 = vld [vmem:[#allocation4 + $0x418] sm:$0xff]  }
0x15df   :  { %v4492_v36 = vadd.f32 %v7084_v38, %v4482_v49  ;;  %v4493_v28 = vadd.f32 %v7084_v38, %v4483_v55  ;;  %v4494_v29 = vadd.f32 %v7084_v38, %v4484_v62  ;;  %v4495_v44 = vadd.f32 %v7084_v38, %v4485_v57  ;;  %8274 = vmatprep.subr.bf16.mxu1 %v8809_v40 }
0x15e1   :  { %8271 = vmatmul.mubr.msk.bf16.vlgmr.msra.gmra.mrb[56].mxu1 %vm83_vm1, %v8996_v13  ;;  %v4496_v46 = vpack.c.bf16 %v4493_v28, %v4492_v36  ;;  %v4497_v3 = vpack.c.bf16 %v4495_v44, %v4494_v29 }
0x15e2   :  { %8275 = vmatpush3.bf16.msra.mxu1 %v8809_v40 }
0x15e3   :  { %8254 = vmatprep.mubr.bf16.mxu0 %v4496_v46  ;;  %8276 = vmatprep.subr.bf16.mxu1 %v8810_v41 }
0x15e4   :  { %8255 = vmatmul.mubr.bf16.vlgmr.msra.gmra.mrb[8].mxu0 %v4497_v3 }
0x15e5   :  { %8338 = vmatprep.mubr.msk.bf16.mxu0 %vm8995_vm0, %v8994_v0 }
0x15e6   :  { %8277 = vmatpush3.bf16.msra.mxu1 %v8810_v41 }
0x15e7   :  { %8278 = vmatprep.subr.bf16.mxu1 %v8811_v42 }
0x15ea   :  { %8279 = vmatpush3.bf16.msra.mxu1 %v8811_v42 }
0x15eb   :  { %8280 = vmatprep.subr.bf16.mxu1 %v8812_v47 }
0x15ee   :  { %8281 = vmatpush3.bf16.msra.mxu1 %v8812_v47 }
0x15ef   :  { %8282 = vmatprep.subr.bf16.mxu1 %v8813_v4 }
0x15f2   :  { %8283 = vmatpush3.bf16.msra.mxu1 %v8813_v4 }
0x15f3   :  { %8284 = vmatprep.subr.bf16.mxu1 %v8814_v5 }
0x15f6   :  { %8285 = vmatpush3.bf16.msra.mxu1 %v8814_v5 }
0x15f7   :  { %8286 = vmatprep.subr.bf16.mxu1 %v8815_v6 }
0x15fa   :  { %8287 = vmatpush3.bf16.msra.mxu1 %v8815_v6 }
0x15fb   :  { %8288 = vmatprep.subr.bf16.mxu1 %v8816_v7 }
0x15fe   :  { %8289 = vmatpush3.bf16.msra.mxu1 %v8816_v7 }
0x15ff   :  { %8294 = vmatprep.subr.bf16.mxu1 %v9961_v8 }
0x16b4   :  { %v4722_v10 = vpop.f32.mrb[56].mxu1 }
0x16b5   :  { %v4728_v11 = vmul.f32 0.03125, %v4722_v10  ;;  %v8272_v12 = vpop.f32.mrb[57].mxu1 }
0x16b6   :  { %v4725_v1 = vpop.f32.mrb[58].mxu1 }
0x16b7   :  { %v4729_v52 = vmax.f32 %v4728_v11, 0.0  ;;  %v8273_v48 = vpop.f32.mrb[59].mxu1 }
0x16b9   :  { %v4732_v20 = vadd.f32 1e-05, %v4729_v52  ;;  %v8819_v52 = vld [vmem:[#allocation4 + $0x3c8] sm:$0xff]  }
0x16bb   :  { %8915 = vrsqrt.f32 %v4732_v20  ;;  %v8820_v20 = vld [vmem:[#allocation4 + $0x3d0] sm:$0xff]  }
0x16c5   :  { %v8916_v50 = vpop.eup %8915 }
0x16c6   :  { %v4734_v58 = vmul.f32 %v8916_v50, %v4730_v21  ;;  %v8821_v21 = vld [vmem:[#allocation4 + $0x3d8] sm:$0xff]   ;;  %v8823_v50 = vld [vmem:[#allocation4 + $0x3e8] sm:$0xff]  }
0x16c8   :  { %v4739_v59 = vrot.slane %v4734_v58, %v9139_v16  ;;  %v8824_v58 = vld [vmem:[#allocation4 + $0x3f0] sm:$0xff]  }
0x16ca   :  { %v4741_v27 = vmul.f32 %v4739_v59, %v9929_v26  ;;  %v4742_v23 = vmul.f32 %v4739_v59, %v9931_v53  ;;  %v4743_v30 = vmul.f32 %v4739_v59, %v9933_v54  ;;  %v4744_v61 = vmul.f32 %v4739_v59, %v9935_v18 }
0x16cc   :  { %v4751_v9 = vadd.f32 %v4749_v60, %v4741_v27  ;;  %v4752_v24 = vadd.f32 %v4749_v60, %v4742_v23  ;;  %v4753_v56 = vadd.f32 %v4749_v60, %v4743_v30  ;;  %v4754_v43 = vadd.f32 %v4749_v60, %v4744_v61  ;;  %v8825_v60 = vld [vmem:[#allocation4 + $0x3f8] sm:$0xff]   ;;  %v8827_v30 = vld [vmem:[#allocation4 + $0x440] sm:$0xff]  }
0x16ce   :  { %v4755_v25 = vadd.f32 %v4751_v9, %v4492_v36  ;;  %v4756_v37 = vadd.f32 %v4752_v24, %v4493_v28  ;;  %v4757_v19 = vadd.f32 %v4753_v56, %v4494_v29  ;;  %v4758_v32 = vadd.f32 %v4754_v43, %v4495_v44 }
0x16d0   :  { %v7250_v33 = vpack.c.bf16 %v4755_v25, %v4755_v25  ;;  %v7251_v63 = vpack.c.bf16 %v4756_v37, %v4756_v37  ;;  %v7252_v34 = vpack.c.bf16 %v4757_v19, %v4757_v19  ;;  %v7253_v14 = vpack.c.bf16 %v4758_v32, %v4758_v32  ;;  %v8828_v37 = vld [vmem:[#allocation4 + $0x448] sm:$0xff]   ;;  %v8829_v32 = vld [vmem:[#allocation4 + $0x450] sm:$0xff]  }
0x16d2   :  { %v4771_v2 = vrot.slane %v7250_v33, 7  ;;  %v4773_v26 = vrot.slane %v7251_v63, 7  ;;  %v4776_v35 = vrot.slane %v7252_v34, 7  ;;  %v4778_v53 = vrot.slane %v7253_v14, 7  ;;  %v8830_v33 = vld [vmem:[#allocation4 + $0x458] sm:$0xff]   ;;  %v8831_v63 = vld [vmem:[#allocation4 + $0x460] sm:$0xff]  }
0x16d3   :  { %v8832_v34 = vld [vmem:[#allocation4 + $0x468] sm:$0xff]   ;;  %v8833_v14 = vld [vmem:[#allocation4 + $0x470] sm:$0xff]  }
0x16d4   :  { %v4772_v17 = vrot.slane %v4771_v2, 4  ;;  %v4775_v54 = vrot.slane %v4773_v26, 4  ;;  %v4777_v39 = vrot.slane %v4776_v35, 4  ;;  %v4780_v18 = vrot.slane %v4778_v53, 4  ;;  %4787 = vst [vmem:[#allocation2] sm:$0xe] %v4771_v2 }
0x16d5   :  { %4790 = vst [vmem:[#allocation2 + $0xc] sm:$0xe] %v4776_v35 }
0x16d6   :  { %v4774_v38 = vsel %vm9261_vm4, %v4772_v17, %v4773_v26  ;;  %v4779_v49 = vsel %vm9261_vm4, %v4777_v39, %v4778_v53  ;;  %4789 = vst [vmem:[#allocation2 + $0x8] sm:$0x1] %v4775_v54  ;;  %4792 = vst [vmem:[#allocation2 + $0x14] sm:$0x1] %v4780_v18  ;;  %v8834_v26 = vld [vmem:[#allocation4 + $0x478] sm:$0xff]  }
0x16d7   :  { %4791 = vst [vmem:[#allocation2 + $0x10] sm:$0xf] %v4779_v49  ;;  %4788 = vst [vmem:[#allocation2 + $0x4] sm:$0xf] %v4774_v38  ;;  %v5482_v39 = vld [vmem:[%s10339_s0 + $0x1c] sm:$0xf] }
0x16d8   :  { %v5483_v18 = vld [vmem:[%s10339_s0 + $0x3c] sm:$0xf] }
0x16db   :  { %v4814_v55 = vld [vmem:[#allocation2] sm:$0xe] }
0x16dc   :  { %v4816_v57 = vld [vmem:[#allocation2 + $0xc] sm:$0xe]  ;;  %v7101_v3 = vrot.slane %v4814_v55, 9  ;;  %v4793_v1 = vld [vmem:[#allocation2] sm:$0xf] }
0x16dd   :  { %v4815_v62 = vld [vmem:[#allocation2 + $0x8] sm:$0x1]  ;;  %v4817_v29 = vld [vmem:[#allocation2 + $0x14] sm:$0x1]  ;;  %v7102_v40 = vrot.slane %v4816_v57, 9 }
0x16de   :  { %v4794_v36 = vld [vmem:[#allocation2 + $0x4] sm:$0xf]  ;;  %v9976_v28 = vld [vmem:[#allocation2 + $0x10] sm:$0xf]  ;;  %v4829_v42 = vrot.slane %v4815_v62, 5  ;;  %v4836_v4 = vrot.slane %v4817_v29, 5  ;;  %v7150_v62 = vcombine.low %v5482_v39, %v5483_v18 }
0x16df   :  { %v4826_v44 = vrot.slane %v4794_v36, 5  ;;  %v4833_v46 = vrot.slane %v9976_v28, 5  ;;  %v7113_v48 = vcombine.low %v4793_v1, %v4794_v36  ;;  %v5076_v59 = vrot.slane %v4794_v36, 6  ;;  %v5066_v23 = vld [vmem:[#allocation2] sm:$0xc] }
0x16e0   :  { %v7123_v9 = vrot.slane %v5066_v23, 10  ;;  %v4795_v56 = vld [vmem:[#allocation2 + $0xc] sm:$0xf]  ;;  %v5083_v2 = vrot.slane %v9976_v28, 6  ;;  %v5069_v35 = vld [vmem:[#allocation2 + $0x14] sm:$0x3] }
0x16e1   :  { %v4828_v41 = vrot.slane %v4826_v44, 4  ;;  %v4835_v47 = vrot.slane %v4833_v46, 4  ;;  %v4827_v5 = vsel %vm9274_vm7, %v7101_v3, %v4826_v44  ;;  %v4834_v7 = vsel %vm9274_vm7, %v7102_v40, %v4833_v46  ;;  %v5068_v17 = vld [vmem:[#allocation2 + $0xc] sm:$0xc]  ;;  %v5484_v36 = vld [vmem:[%s10339_s0 + $0x5c] sm:$0xf] }
0x16e2   :  { %v5078_v27 = vrot.slane %v5076_v59, 4  ;;  %v7114_v43 = vcombine.low %v4795_v56, %v9976_v28  ;;  %v5077_v25 = vsel %vm9287_vm10, %v7123_v9, %v5076_v59  ;;  %v5085_v53 = vrot.slane %v5083_v2, 4  ;;  %v5485_v28 = vld [vmem:[%s10339_s0 + $0x7c] sm:$0xf]  ;;  %v7136_v44 = vld [vmem:[%s10343_s4 + $0x5] ss:$0 sm:$0xff] }
0x16e3   :  { %v4830_v6 = vsel %vm9274_vm7, %v4828_v41, %v4829_v42  ;;  %v4837_v10 = vsel %vm9274_vm7, %v4835_v47, %v4836_v4  ;;  %v5086_v54 = vrot.slane %v5069_v35, 6  ;;  %v7124_v38 = vrot.slane %v5068_v17, 10 }
0x16e4   :  { %v7103_v11 = vcombine.low %v4827_v5, %v4830_v6  ;;  %v7104_v12 = vcombine.low %v4834_v7, %v4837_v10  ;;  %v7151_v29 = vcombine.low %v5484_v36, %v5485_v28  ;;  %v5486_v10 = vunpack.c.l.bf16 %v5482_v39 }
0x16e5   :  { %v5087_v49 = vsel %vm9287_vm10, %v5085_v53, %v5086_v54  ;;  %v5084_v55 = vsel %vm9287_vm10, %v7124_v38, %v5083_v2 }
0x16e6   :  { %8290 = vmatprep.mubr.bf16.mxu1 %v7103_v11  ;;  %v7126_v57 = vcombine.low %v5084_v55, %v5087_v49 }
0x16e7   :  { %8291 = vmatmul.mubr.bf16.vlgmr.msra.gmra.mrb[60].mxu1 %v7104_v12 }
0x16e8   :  { %8295 = vmatpush3.bf16.msra.mxu1 %v9961_v8  ;;  %8310 = vmatprep.mubr.bf16.mxu1 %v7113_v48  ;;  %v5067_v8 = vld [vmem:[#allocation2 + $0x8] sm:$0x3]  ;;  %v5488_v48 = vunpack.c.l.bf16 %v5484_v36 }
0x16e9   :  { %8296 = vmatprep.subr.bf16.mxu1 %v8819_v52  ;;  %v5079_v61 = vrot.slane %v5067_v8, 6 }
0x16eb   :  { %v5080_v24 = vsel %vm9287_vm10, %v5078_v27, %v5079_v61 }
0x16ec   :  { %8297 = vmatpush3.bf16.msra.mxu1 %v8819_v52  ;;  %v7125_v19 = vcombine.low %v5077_v25, %v5080_v24  ;;  %v5487_v52 = vunpack.c.l.bf16 %v5483_v18 }
0x16ed   :  { %8298 = vmatprep.subr.bf16.mxu1 %v8820_v20 }
0x16f0   :  { %8299 = vmatpush3.bf16.msra.mxu1 %v8820_v20  ;;  %v5489_v20 = vunpack.c.l.bf16 %v5485_v28 }
0x16f1   :  { %8300 = vmatprep.subr.bf16.mxu1 %v8821_v21 }
0x16f4   :  { %8301 = vmatpush3.bf16.msra.mxu1 %v8821_v21 }
0x16f5   :  { %8302 = vmatprep.subr.bf16.mxu1 %v8822_v22 }
0x16f8   :  { %8303 = vmatpush3.bf16.msra.mxu1 %v8822_v22 }
0x16f9   :  { %8304 = vmatprep.subr.bf16.mxu1 %v8823_v50 }
0x16fc   :  { %8305 = vmatpush3.bf16.msra.mxu1 %v8823_v50 }
0x16fd   :  { %8306 = vmatprep.subr.bf16.mxu1 %v8824_v58 }
0x1700   :  { %8307 = vmatpush3.bf16.msra.mxu1 %v8824_v58 }
0x1701   :  { %8308 = vmatprep.subr.bf16.mxu1 %v8825_v60 }
0x1704   :  { %8309 = vmatpush3.bf16.msra.mxu1 %v8825_v60 }
0x1705   :  { %8314 = vmatprep.subr.bf16.mxu1 %v8827_v30 }
0x1707   :  { %8311 = vmatmul.mubr.bf16.vlgmr.msra.gmra.mrb[60].mxu1 %v7114_v43 }
0x1708   :  { %8315 = vmatpush3.bf16.msra.mxu1 %v8827_v30  ;;  %8330 = vmatprep.mubr.bf16.mxu1 %v7125_v19 }
0x1709   :  { %8316 = vmatprep.subr.bf16.mxu1 %v8828_v37 }
0x170c   :  { %8317 = vmatpush3.bf16.msra.mxu1 %v8828_v37 }
0x170d   :  { %8318 = vmatprep.subr.bf16.mxu1 %v8829_v32 }
0x1710   :  { %8319 = vmatpush3.bf16.msra.mxu1 %v8829_v32 }
0x1711   :  { %8320 = vmatprep.subr.bf16.mxu1 %v8830_v33 }
0x1714   :  { %8321 = vmatpush3.bf16.msra.mxu1 %v8830_v33 }
0x1715   :  { %8322 = vmatprep.subr.bf16.mxu1 %v8831_v63 }
0x1718   :  { %8323 = vmatpush3.bf16.msra.mxu1 %v8831_v63 }
0x1719   :  { %8324 = vmatprep.subr.bf16.mxu1 %v8832_v34 }
0x171c   :  { %8325 = vmatpush3.bf16.msra.mxu1 %v8832_v34 }
0x171d   :  { %8326 = vmatprep.subr.bf16.mxu1 %v8833_v14 }
0x1720   :  { %8327 = vmatpush3.bf16.msra.mxu1 %v8833_v14 }
0x1721   :  { %8328 = vmatprep.subr.bf16.mxu1 %v8834_v26 }
0x1724   :  { %8329 = vmatpush3.bf16.msra.mxu1 %v8834_v26 }
0x1725   :  { %8370 = vmatprep.subr.bf16.mxu1 %v8994_v0 }
0x1727   :  { %8331 = vmatmul.mubr.bf16.vlgmr.msra.gmra.mrb[60].mxu1 %v7126_v57  ;;  %v8835_v57 = vld [vmem:[%s10346_s7 + $0x180] sm:$0xff]  }
0x1728   :  { %8371 = vmatpush3.bf16.msra.mxu1 %v7150_v62  ;;  %8374 = vmatprep.mubr.msk.bf16.mxu1 %vm8995_vm0, %v8994_v0 }
0x1729   :  { %8372 = vmatprep.subr.bf16.mxu1 %v8994_v0 }
0x172c   :  { %8373 = vmatpush3.bf16.msra.mxu1 %v7151_v29  ;;  %v8836_v29 = vld [vmem:[%s10346_s7 + $0x188] sm:$0xff]  }
0x172d   :  { %8378 = vmatprep.subr.bf16.mxu1 %v8994_v0 }
0x172f   :  { %8375 = vmatmul.mubr.msk.bf16.vlgmr.msra.gmra.mrb[64].mxu1 %vm83_vm1, %v8996_v13 }
0x1730   :  { %8382 = vmatprep.mubr.msk.bf16.mxu1 %vm8995_vm0, %v8994_v0 }
0x17fa   :  { %v8332_v46 = vpop.f32.mrb[60].mxu1 }
0x17fb   :  { %v5194_v3 = vpop.f32.mrb[61].mxu1  ;;  %v5223_v5 = vadd.f32 %v8332_v46, %v7136_v44  ;;  %v8838_v46 = vld [vmem:[%s10346_s7 + $0x198] sm:$0xff]  }
0x17fc   :  { %v5221_v40 = vadd.f32 %v7136_v44, %v5194_v3  ;;  %v8333_v41 = vpop.f32.mrb[62].mxu1  ;;  %v8839_v3 = vld [vmem:[%s10346_s7 + $0x1a0] sm:$0xff]  }
0x17fd   :  { %v5197_v42 = vpop.f32.mrb[63].mxu1  ;;  %v5224_v47 = vadd.f32 %v8333_v41, %v7136_v44  ;;  %v5227_v50 = vmax.f32 %v5223_v5, 0.0  ;;  %v8841_v41 = vld [vmem:[#allocation4 + $0x4c0] sm:$0xff]   ;;  %v8845_v5 = vld [vmem:[#allocation4 + $0x4d0] sm:$0xff]  }
0x17fe   :  { %v5222_v4 = vadd.f32 %v7136_v44, %v5197_v42  ;;  %v5225_v6 = vmax.f32 %v5221_v40, 0.0  ;;  %v8837_v44 = vld [vmem:[%s10346_s7 + $0x190] sm:$0xff]   ;;  %v8840_v40 = vld [vmem:[%s10346_s7 + $0x1a8] sm:$0xff]  }
0x17ff   :  { %v5228_v11 = vmax.f32 %v5224_v47, 0.0  ;;  %v8842_v42 = vld [vmem:[%s10346_s7 + $0x1b0] sm:$0xff]   ;;  %v8843_v47 = vld [vmem:[#allocation4 + $0x4c8] sm:$0xff]  }
0x1800   :  { %v5226_v7 = vmax.f32 %v5222_v4, 0.0  ;;  %v8844_v4 = vld [vmem:[%s10346_s7 + $0x1b8] sm:$0xff]  }
0x1801   :  { %v5234_v8 = vpack.c.bf16 %v5228_v11, %v5227_v50 }
0x1802   :  { %v5233_v12 = vpack.c.bf16 %v5226_v7, %v5225_v6  ;;  %v5526_v1 = vpop.f32.mrb[64].mxu1 }
0x1803   :  { %v5532_v21 = vmul.f32 0.03125, %v5526_v1  ;;  %v8376_v22 = vpop.f32.mrb[65].mxu1  ;;  %v10093_v1 = vld [vmem:[#allocation4 + $0x480] sm:$0xff]  }
0x1804   :  { %8335 = vmatpush3.bf16.msra.mxu0 %v5233_v12  ;;  %v5529_v58 = vpop.f32.mrb[66].mxu1  ;;  %v8850_v12 = vld [vmem:[#allocation4 + $0x4f8] sm:$0xff]  }
0x1805   :  { %v5536_v59 = vrot.slane %v5532_v21, %v9139_v16  ;;  %8336 = vmatprep.subr.bf16.mxu0 %v8994_v0  ;;  %v8377_v60 = vpop.f32.mrb[67].mxu1 }
0x1807   :  { %v10024_v27 = vsub.f32 %v5486_v10, %v5536_v59  ;;  %v10026_v23 = vsub.f32 %v5487_v52, %v5536_v59  ;;  %v10028_v30 = vsub.f32 %v5488_v48, %v5536_v59  ;;  %v10030_v61 = vsub.f32 %v5489_v20, %v5536_v59  ;;  %v8848_v10 = vld [vmem:[#allocation4 + $0x4e8] sm:$0xff]  }
0x1808   :  { %8337 = vmatpush3.bf16.msra.mxu0 %v5234_v8 }
0x1809   :  { %v5541_v9 = vmul.f32 %v10024_v27, %v10024_v27  ;;  %v5542_v24 = vmul.f32 %v10026_v23, %v10026_v23  ;;  %v5543_v56 = vmul.f32 %v10028_v30, %v10028_v30  ;;  %v5544_v43 = vmul.f32 %v10030_v61, %v10030_v61  ;;  %8342 = vmatprep.subr.bf16.mxu0 %v8994_v0 }
0x180b   :  { %8339 = vmatmul.mubr.msk.bf16.vlgmr.msra.gmra.mrb[60].mxu0 %vm83_vm1, %v8996_v13  ;;  %v5545_v25 = vpack.c.bf16 %v5542_v24, %v5541_v9  ;;  %v5546_v37 = vpack.c.bf16 %v5544_v43, %v5543_v56  ;;  %v8941_v9 = vld [vmem:[%s10340_s1] sm:$0xff] }
0x180c   :  { %8346 = vmatprep.mubr.msk.bf16.mxu0 %vm8995_vm0, %v8994_v0  ;;  %v5589_v24 = vrot.slane %v8941_v9, 7 }
0x180d   :  { %8379 = vmatpush3.bf16.msra.mxu1 %v5545_v25 }
0x180e   :  { %8380 = vmatprep.subr.bf16.mxu1 %v8994_v0 }
0x1811   :  { %8381 = vmatpush3.bf16.msra.mxu1 %v5546_v37  ;;  %v7137_v37 = vld [vmem:[%s10344_s5 + $0x5] sm:$0x1] }
0x1812   :  { %8386 = vmatprep.subr.bf16.mxu1 %v8841_v41 }
0x1814   :  { %8383 = vmatmul.mubr.msk.bf16.vlgmr.msra.gmra.mrb[68].mxu1 %vm83_vm1, %v8996_v13 }
0x1815   :  { %8387 = vmatpush3.bf16.msra.mxu1 %v8841_v41 }
0x1816   :  { %8388 = vmatprep.subr.bf16.mxu1 %v8843_v47 }
0x1819   :  { %8389 = vmatpush3.bf16.msra.mxu1 %v8843_v47 }
0x181a   :  { %8390 = vmatprep.subr.bf16.mxu1 %v8845_v5 }
0x181d   :  { %8391 = vmatpush3.bf16.msra.mxu1 %v8845_v5 }
0x18de   :  { %v5269_v19 = vpop.f32.mrb[60].mxu0 }
0x18df   :  { %v5275_v32 = vmul.f32 0.03125, %v5269_v19  ;;  %v8340_v33 = vpop.f32.mrb[61].mxu0  ;;  %v8942_v19 = vld [vmem:[%s10341_s2] sm:$0xff] }
0x18e0   :  { %v5272_v63 = vpop.f32.mrb[62].mxu0 }
0x18e1   :  { %v5279_v34 = vrot.slane %v5275_v32, %v9139_v16  ;;  %v8341_v14 = vpop.f32.mrb[63].mxu0  ;;  %v5604_v32 = vrot.slane %v8942_v19, 7 }
0x18e3   :  { %v10049_v2 = vsub.f32 %v5225_v6, %v5279_v34  ;;  %v10051_v26 = vsub.f32 %v5226_v7, %v5279_v34  ;;  %v10053_v35 = vsub.f32 %v5227_v50, %v5279_v34  ;;  %v10055_v53 = vsub.f32 %v5228_v11, %v5279_v34  ;;  %v8846_v6 = vld [vmem:[#allocation4 + $0x4d8] sm:$0xff]   ;;  %v8847_v7 = vld [vmem:[#allocation4 + $0x4e0] sm:$0xff]   ;;  %v8849_v11 = vld [vmem:[#allocation4 + $0x4f0] sm:$0xff]  }
0x18e4   :  { %8392 = vmatprep.subr.bf16.mxu1 %v8846_v6 }
0x18e5   :  { %v5284_v17 = vmul.f32 %v10049_v2, %v10049_v2  ;;  %v5285_v54 = vmul.f32 %v10051_v26, %v10051_v26  ;;  %v5286_v38 = vmul.f32 %v10053_v35, %v10053_v35  ;;  %v5287_v49 = vmul.f32 %v10055_v53, %v10055_v53  ;;  %8393 = vmatpush3.bf16.msra.mxu1 %v8846_v6 }
0x18e6   :  { %8394 = vmatprep.subr.bf16.mxu1 %v8847_v7 }
0x18e7   :  { %v5581_v39 = vpop.f32.mrb[68].mxu1  ;;  %v5288_v18 = vpack.c.bf16 %v5285_v54, %v5284_v17  ;;  %v5289_v28 = vpack.c.bf16 %v5287_v49, %v5286_v38  ;;  %v5608_v17 = vrot.slane %v5604_v32, %v9139_v16 }
0x18e8   :  { %v8384_v55 = vpop.f32.mrb[69].mxu1  ;;  %v5587_v52 = vmul.f32 0.03125, %v5581_v39  ;;  %v7141_v39 = vld [vmem:[%s10345_s6 + $0x5] ss:$0 sm:$0xff] }
0x18e9   :  { %8343 = vmatpush3.bf16.msra.mxu0 %v5288_v18  ;;  %v5584_v62 = vpop.f32.mrb[70].mxu1  ;;  %8395 = vmatpush3.bf16.msra.mxu1 %v8847_v7 }
0x18ea   :  { %8344 = vmatprep.subr.bf16.mxu0 %v8994_v0  ;;  %v8385_v36 = vpop.f32.mrb[71].mxu1  ;;  %8396 = vmatprep.subr.bf16.mxu1 %v8848_v10  ;;  %v5588_v48 = vmax.f32 %v5587_v52, 0.0 }
0x18ec   :  { %v5591_v20 = vadd.f32 1e-05, %v5588_v48 }
0x18ed   :  { %8345 = vmatpush3.bf16.msra.mxu0 %v5289_v28  ;;  %8397 = vmatpush3.bf16.msra.mxu1 %v8848_v10 }
0x18ee   :  { %8350 = vmatprep.subr.bf16.mxu0 %v8835_v57  ;;  %8398 = vmatprep.subr.bf16.mxu1 %v8849_v11  ;;  %8917 = vrsqrt.f32 %v5591_v20 }
0x18f0   :  { %8347 = vmatmul.mubr.msk.bf16.vlgmr.msra.gmra.mrb[64].mxu0 %vm83_vm1, %v8996_v13 }
0x18f1   :  { %8351 = vmatpush3.bf16.msra.mxu0 %v8835_v57  ;;  %8399 = vmatpush3.bf16.msra.mxu1 %v8849_v11 }
0x18f2   :  { %8352 = vmatprep.subr.bf16.mxu0 %v8836_v29  ;;  %8400 = vmatprep.subr.bf16.mxu1 %v8850_v12 }
0x18f5   :  { %8353 = vmatpush3.bf16.msra.mxu0 %v8836_v29  ;;  %8401 = vmatpush3.bf16.msra.mxu1 %v8850_v12 }
0x18f6   :  { %8354 = vmatprep.subr.bf16.mxu0 %v8837_v44  ;;  %8406 = vmatprep.subr.bf16.mxu1 %v10093_v1 }
0x18f8   :  { %v8918_v56 = vpop.eup %8917 }
0x18f9   :  { %8355 = vmatpush3.bf16.msra.mxu0 %v8837_v44  ;;  %v5593_v43 = vmul.f32 %v8918_v56, %v5589_v24 }
0x18fa   :  { %8356 = vmatprep.subr.bf16.mxu0 %v8838_v46 }
0x18fb   :  { %v5598_v25 = vrot.slane %v5593_v43, %v9139_v16 }
0x18fd   :  { %8357 = vmatpush3.bf16.msra.mxu0 %v8838_v46  ;;  %v5600_v34 = vmul.f32 %v5598_v25, %v10024_v27  ;;  %v5601_v14 = vmul.f32 %v5598_v25, %v10026_v23  ;;  %v5602_v18 = vmul.f32 %v5598_v25, %v10028_v30  ;;  %v5603_v38 = vmul.f32 %v5598_v25, %v10030_v61 }
0x18fe   :  { %8358 = vmatprep.subr.bf16.mxu0 %v8839_v3 }
0x18ff   :  { %v5610_v62 = vadd.f32 %v5608_v17, %v5600_v34  ;;  %v5611_v57 = vadd.f32 %v5608_v17, %v5601_v14  ;;  %v5612_v46 = vadd.f32 %v5608_v17, %v5602_v18  ;;  %v8854_v18 = vld [vmem:[#allocation4 + $0x490] sm:$0xff]  }
0x1901   :  { %8359 = vmatpush3.bf16.msra.mxu0 %v8839_v3  ;;  %v5613_v3 = vadd.f32 %v5608_v17, %v5603_v38  ;;  %v8855_v38 = vld [vmem:[#allocation4 + $0x498] sm:$0xff]  }
0x1902   :  { %8360 = vmatprep.subr.bf16.mxu0 %v8840_v40 }
0x1905   :  { %8361 = vmatpush3.bf16.msra.mxu0 %v8840_v40 }
0x1906   :  { %8362 = vmatprep.subr.bf16.mxu0 %v8842_v42 }
0x1909   :  { %8363 = vmatpush3.bf16.msra.mxu0 %v8842_v42 }
0x190a   :  { %8364 = vmatprep.subr.bf16.mxu0 %v8844_v4 }
0x190d   :  { %8365 = vmatpush3.bf16.msra.mxu0 %v8844_v4 }
0x190e   :  { %8446 = vmatprep.subr.bf16.mxu0 %v8994_v0 }
0x19c3   :  { %v5324_v21 = vpop.f32.mrb[64].mxu0 }
0x19c4   :  { %v5330_v22 = vmul.f32 0.03125, %v5324_v21  ;;  %v8348_v50 = vpop.f32.mrb[65].mxu0 }
0x19c5   :  { %v5327_v58 = vpop.f32.mrb[66].mxu0 }
0x19c6   :  { %v5331_v59 = vmax.f32 %v5330_v22, 0.0  ;;  %v8349_v60 = vpop.f32.mrb[67].mxu0 }
0x19c8   :  { %v5332_v8 = vadd.f32 1e-05, %v5331_v59 }
0x19ca   :  { %8919 = vrsqrt.f32 %v5332_v8 }
0x19d4   :  { %v8920_v33 = vpop.eup %8919 }
0x19d5   :  { %v5334_v63 = vmul.f32 %v8920_v33, %v7137_v37 }
0x19d7   :  { %v5339_v54 = vrot.slane %v5334_v63, %v9139_v16 }
0x19d9   :  { %v5341_v49 = vmul.f32 %v5339_v54, %v10049_v2  ;;  %v5342_v55 = vmul.f32 %v5339_v54, %v10051_v26  ;;  %v5343_v27 = vmul.f32 %v5339_v54, %v10053_v35  ;;  %v5344_v23 = vmul.f32 %v5339_v54, %v10055_v53  ;;  %v8853_v54 = vld [vmem:[#allocation4 + $0x488] sm:$0xff]  }
0x19db   :  { %v5351_v36 = vadd.f32 %v7141_v39, %v5341_v49  ;;  %v5352_v28 = vadd.f32 %v7141_v39, %v5342_v55  ;;  %v5353_v29 = vadd.f32 %v7141_v39, %v5343_v27  ;;  %v5354_v44 = vadd.f32 %v7141_v39, %v5344_v23  ;;  %v8856_v49 = vld [vmem:[#allocation4 + $0x4a0] sm:$0xff]   ;;  %v8858_v55 = vld [vmem:[#allocation4 + $0x4b0] sm:$0xff]   ;;  %v8859_v23 = vld [vmem:[#allocation4 + $0x4b8] sm:$0xff]  }
0x19dd   :  { %v5355_v40 = vpack.c.bf16 %v5352_v28, %v5351_v36  ;;  %v5614_v30 = vadd.f32 %v5610_v62, %v5351_v36  ;;  %v5615_v41 = vadd.f32 %v5611_v57, %v5352_v28  ;;  %v5356_v61 = vpack.c.bf16 %v5354_v44, %v5353_v29  ;;  %v8861_v36 = vld [vmem:[#allocation4 + $0x500] sm:$0xff]  }
0x19de   :  { %v5616_v42 = vadd.f32 %v5612_v46, %v5353_v29  ;;  %v5617_v2 = vadd.f32 %v5613_v3, %v5354_v44 }
0x19df   :  { %8366 = vmatprep.mubr.bf16.mxu0 %v5355_v40  ;;  %v7254_v26 = vpack.c.bf16 %v5614_v30, %v5614_v30  ;;  %v7255_v47 = vpack.c.bf16 %v5615_v41, %v5615_v41  ;;  %v8862_v30 = vld [vmem:[#allocation4 + $0x508] sm:$0xff]  }
0x19e0   :  { %8367 = vmatmul.mubr.bf16.vlgmr.msra.gmra.mrb[8].mxu0 %v5356_v61  ;;  %v7256_v35 = vpack.c.bf16 %v5616_v42, %v5616_v42  ;;  %v7257_v53 = vpack.c.bf16 %v5617_v2, %v5617_v2  ;;  %v8863_v61 = vld [vmem:[#allocation4 + $0x510] sm:$0xff]   ;;  %v8864_v42 = vld [vmem:[#allocation4 + $0x518] sm:$0xff]   ;;  %v8865_v2 = vld [vmem:[#allocation4 + $0x520] sm:$0xff]  }
0x19e1   :  { %v5630_v4 = vrot.slane %v7254_v26, 7  ;;  %v5632_v5 = vrot.slane %v7255_v47, 7  ;;  %8450 = vmatprep.mubr.msk.bf16.mxu0 %vm8995_vm0, %v8994_v0  ;;  %v8866_v26 = vld [vmem:[#allocation4 + $0x528] sm:$0xff]   ;;  %v8867_v47 = vld [vmem:[#allocation4 + $0x530] sm:$0xff]  }
0x19e2   :  { %v5635_v6 = vrot.slane %v7256_v35, 7  ;;  %v5637_v7 = vrot.slane %v7257_v53, 7  ;;  %v8868_v53 = vld [vmem:[#allocation4 + $0x538] sm:$0xff]  }
0x19e3   :  { %v5631_v10 = vrot.slane %v5630_v4, 4  ;;  %v5634_v11 = vrot.slane %v5632_v5, 4  ;;  %5646 = vst [vmem:[#allocation2] sm:$0xe] %v5630_v4 }
0x19e4   :  { %v5636_v12 = vrot.slane %v5635_v6, 4  ;;  %v5639_v52 = vrot.slane %v5637_v7, 4  ;;  %5649 = vst [vmem:[#allocation2 + $0xc] sm:$0xe] %v5635_v6 }
0x19e5   :  { %v5633_v48 = vsel %vm9261_vm4, %v5631_v10, %v5632_v5  ;;  %5648 = vst [vmem:[#allocation2 + $0x8] sm:$0x1] %v5634_v11 }
0x19e6   :  { %5647 = vst [vmem:[#allocation2 + $0x4] sm:$0xf] %v5633_v48  ;;  %v5638_v20 = vsel %vm9261_vm4, %v5636_v12, %v5637_v7  ;;  %5651 = vst [vmem:[#allocation2 + $0x14] sm:$0x1] %v5639_v52  ;;  %v7193_v48 = vld [vmem:[%s10343_s4 + $0x6] ss:$0 sm:$0xff] }
0x19e7   :  { %5650 = vst [vmem:[#allocation2 + $0x10] sm:$0xf] %v5638_v20 }
0x19ea   :  { %v5673_v21 = vld [vmem:[#allocation2] sm:$0xe] }
0x19eb   :  { %v5675_v58 = vld [vmem:[#allocation2 + $0xc] sm:$0xe]  ;;  %v7158_v24 = vrot.slane %v5673_v21, 9  ;;  %v5652_v17 = vld [vmem:[#allocation2] sm:$0xf] }
0x19ec   :  { %v5674_v50 = vld [vmem:[#allocation2 + $0x8] sm:$0x1]  ;;  %v7159_v25 = vrot.slane %v5675_v58, 9  ;;  %v5925_v57 = vld [vmem:[#allocation2] sm:$0xc] }
0x19ed   :  { %v5653_v22 = vld [vmem:[#allocation2 + $0x4] sm:$0xf]  ;;  %v5676_v8 = vld [vmem:[#allocation2 + $0x14] sm:$0x1]  ;;  %v5688_v43 = vrot.slane %v5674_v50, 5  ;;  %v7180_v29 = vrot.slane %v5925_v57, 10 }
0x19ee   :  { %v5685_v59 = vrot.slane %v5653_v22, 5  ;;  %v10125_v60 = vld [vmem:[#allocation2 + $0x10] sm:$0xf]  ;;  %v5695_v19 = vrot.slane %v5676_v8, 5  ;;  %v7170_v39 = vcombine.low %v5652_v17, %v5653_v22  ;;  %v5935_v27 = vrot.slane %v5653_v22, 6  ;;  %v8873_v57 = vld [vmem:[%s10346_s7 + $0x1e0] sm:$0xff]  }
0x19ef   :  { %v5692_v9 = vrot.slane %v10125_v60, 5  ;;  %v5654_v46 = vld [vmem:[#allocation2 + $0xc] sm:$0xf]  ;;  %v5942_v35 = vrot.slane %v10125_v60, 6  ;;  %v5928_v4 = vld [vmem:[#allocation2 + $0x14] sm:$0x3] }
0x19f0   :  { %v5687_v56 = vrot.slane %v5685_v59, 4  ;;  %v5686_v51 = vsel %vm9274_vm7, %v7158_v24, %v5685_v59  ;;  %v5937_v62 = vrot.slane %v5935_v27, 4  ;;  %v7171_v3 = vcombine.low %v5654_v46, %v10125_v60  ;;  %v5927_v6 = vld [vmem:[#allocation2 + $0xc] sm:$0xc] }
0x19f1   :  { %v5694_v37 = vrot.slane %v5692_v9, 4  ;;  %v5693_v63 = vsel %vm9274_vm7, %v7159_v25, %v5692_v9  ;;  %v5936_v40 = vsel %vm9287_vm10, %v7180_v29, %v5935_v27  ;;  %v5944_v5 = vrot.slane %v5942_v35, 4  ;;  %v8876_v29 = vld [vmem:[%s10346_s7 + $0x1f8] sm:$0xff]  }
0x19f2   :  { %v5689_v32 = vsel %vm9274_vm7, %v5687_v56, %v5688_v43  ;;  %v5945_v7 = vrot.slane %v5928_v4, 6  ;;  %v7181_v10 = vrot.slane %v5927_v6, 10 }
0x19f3   :  { %v7160_v33 = vcombine.low %v5686_v51, %v5689_v32  ;;  %v5696_v34 = vsel %vm9274_vm7, %v5694_v37, %v5695_v19 }
0x19f4   :  { %v7161_v14 = vcombine.low %v5693_v63, %v5696_v34  ;;  %v5946_v11 = vsel %vm9287_vm10, %v5944_v5, %v5945_v7  ;;  %v5943_v12 = vsel %vm9287_vm10, %v7181_v10, %v5942_v35  ;;  %v7198_v35 = vld [vmem:[%s10345_s6 + $0x6] ss:$0 sm:$0xff] }
0x19f5   :  { %8402 = vmatprep.mubr.bf16.mxu1 %v7160_v33  ;;  %v7183_v52 = vcombine.low %v5943_v12, %v5946_v11 }
0x19f6   :  { %8403 = vmatmul.mubr.bf16.vlgmr.msra.gmra.mrb[72].mxu1 %v7161_v14 }
0x19f7   :  { %8407 = vmatpush3.bf16.msra.mxu1 %v10093_v1  ;;  %8422 = vmatprep.mubr.bf16.mxu1 %v7170_v39  ;;  %v5926_v1 = vld [vmem:[#allocation2 + $0x8] sm:$0x3] }
0x19f8   :  { %8408 = vmatprep.subr.bf16.mxu1 %v8853_v54  ;;  %v5938_v28 = vrot.slane %v5926_v1, 6  ;;  %v8871_v1 = vld [vmem:[%s10346_s7 + $0x1d0] sm:$0xff]  }
0x19fa   :  { %v5939_v44 = vsel %vm9287_vm10, %v5937_v62, %v5938_v28  ;;  %v8872_v62 = vld [vmem:[%s10346_s7 + $0x1d8] sm:$0xff]   ;;  %v8875_v28 = vld [vmem:[%s10346_s7 + $0x1f0] sm:$0xff]  }
0x19fb   :  { %8409 = vmatpush3.bf16.msra.mxu1 %v8853_v54  ;;  %v7182_v41 = vcombine.low %v5936_v40, %v5939_v44 }
0x19fc   :  { %8410 = vmatprep.subr.bf16.mxu1 %v8854_v18 }
0x19ff   :  { %8411 = vmatpush3.bf16.msra.mxu1 %v8854_v18 }
0x1a00   :  { %8412 = vmatprep.subr.bf16.mxu1 %v8855_v38 }
0x1a03   :  { %8413 = vmatpush3.bf16.msra.mxu1 %v8855_v38 }
0x1a04   :  { %8414 = vmatprep.subr.bf16.mxu1 %v8856_v49 }
0x1a07   :  { %8415 = vmatpush3.bf16.msra.mxu1 %v8856_v49 }
0x1a08   :  { %8416 = vmatprep.subr.bf16.mxu1 %v8857_v31 }
0x1a0b   :  { %8417 = vmatpush3.bf16.msra.mxu1 %v8857_v31 }
0x1a0c   :  { %8418 = vmatprep.subr.bf16.mxu1 %v8858_v55 }
0x1a0f   :  { %8419 = vmatpush3.bf16.msra.mxu1 %v8858_v55  ;;  %v8869_v55 = vld [vmem:[%s10346_s7 + $0x1c0] sm:$0xff]  }
0x1a10   :  { %8420 = vmatprep.subr.bf16.mxu1 %v8859_v23 }
0x1a13   :  { %8421 = vmatpush3.bf16.msra.mxu1 %v8859_v23  ;;  %v8870_v23 = vld [vmem:[%s10346_s7 + $0x1c8] sm:$0xff]  }
0x1a14   :  { %8426 = vmatprep.subr.bf16.mxu1 %v8861_v36 }
0x1a16   :  { %8423 = vmatmul.mubr.bf16.vlgmr.msra.gmra.mrb[72].mxu1 %v7171_v3 }
0x1a17   :  { %8427 = vmatpush3.bf16.msra.mxu1 %v8861_v36  ;;  %8442 = vmatprep.mubr.bf16.mxu1 %v7182_v41  ;;  %v8874_v36 = vld [vmem:[%s10346_s7 + $0x1e8] sm:$0xff]  }
0x1a18   :  { %8428 = vmatprep.subr.bf16.mxu1 %v8862_v30 }
0x1a1b   :  { %8429 = vmatpush3.bf16.msra.mxu1 %v8862_v30 }
0x1a1c   :  { %8430 = vmatprep.subr.bf16.mxu1 %v8863_v61 }
0x1a1f   :  { %8431 = vmatpush3.bf16.msra.mxu1 %v8863_v61 }
0x1a20   :  { %8432 = vmatprep.subr.bf16.mxu1 %v8864_v42 }
0x1a23   :  { %8433 = vmatpush3.bf16.msra.mxu1 %v8864_v42  ;;  %v7194_v42 = vld [vmem:[%s10344_s5 + $0x6] sm:$0x1] }
0x1a24   :  { %8434 = vmatprep.subr.bf16.mxu1 %v8865_v2 }
0x1a27   :  { %8435 = vmatpush3.bf16.msra.mxu1 %v8865_v2 }
0x1a28   :  { %8436 = vmatprep.subr.bf16.mxu1 %v8866_v26 }
0x1a2b   :  { %8437 = vmatpush3.bf16.msra.mxu1 %v8866_v26 }
0x1a2c   :  { %8438 = vmatprep.subr.bf16.mxu1 %v8867_v47 }
0x1a2f   :  { %8439 = vmatpush3.bf16.msra.mxu1 %v8867_v47 }
0x1a30   :  { %8440 = vmatprep.subr.bf16.mxu1 %v8868_v53 }
0x1a33   :  { %8441 = vmatpush3.bf16.msra.mxu1 %v8868_v53 }
0x1a34   :  { %8518 = vmatprep.subr.bf16.mxu1 %v8994_v0 }
0x1a36   :  { %8443 = vmatmul.mubr.bf16.vlgmr.msra.gmra.mrb[72].mxu1 %v7183_v52 }
0x1a37   :  { %8534 = vmatprep.mubr.msk.bf16.mxu1 %vm8995_vm0, %v8994_v0 }
0x1b09   :  { %v8444_v20 = vpop.f32.mrb[72].mxu1 }
0x1b0a   :  { %v6053_v21 = vpop.f32.mrb[73].mxu1  ;;  %v6082_v45 = vadd.f32 %v8444_v20, %v7193_v48  ;;  %v7207_v20 = vld [vmem:[%s10347_s8] ss:$0 sm:$0xff] }
0x1b0b   :  { %v6080_v22 = vadd.f32 %v7193_v48, %v6053_v21  ;;  %v8445_v50 = vpop.f32.mrb[74].mxu1 }
0x1b0c   :  { %v6056_v58 = vpop.f32.mrb[75].mxu1  ;;  %v6083_v59 = vadd.f32 %v8445_v50, %v7193_v48  ;;  %v6086_v43 = vmax.f32 %v6082_v45, 0.0 }
0x1b0d   :  { %v6081_v60 = vadd.f32 %v7193_v48, %v6056_v58  ;;  %v6084_v8 = vmax.f32 %v6080_v22, 0.0 }
0x1b0e   :  { %v6087_v24 = vmax.f32 %v6083_v59, 0.0 }
0x1b0f   :  { %v6085_v9 = vmax.f32 %v6081_v60, 0.0 }
0x1b10   :  { %v6093_v25 = vpack.c.bf16 %v6087_v24, %v6086_v43 }
0x1b11   :  { %v6092_v56 = vpack.c.bf16 %v6085_v9, %v6084_v8 }
0x1b13   :  { %8447 = vmatpush3.bf16.msra.mxu0 %v6092_v56 }
0x1b14   :  { %8448 = vmatprep.subr.bf16.mxu0 %v8994_v0 }
0x1b17   :  { %8449 = vmatpush3.bf16.msra.mxu0 %v6093_v25 }
0x1b18   :  { %8454 = vmatprep.subr.bf16.mxu0 %v8994_v0 }
0x1b1a   :  { %8451 = vmatmul.mubr.msk.bf16.vlgmr.msra.gmra.mrb[68].mxu0 %vm83_vm1, %v8996_v13 }
0x1b1b   :  { %8458 = vmatprep.mubr.msk.bf16.mxu0 %vm8995_vm0, %v8994_v0 }
0x1bed   :  { %v6128_v37 = vpop.f32.mrb[68].mxu0 }
0x1bee   :  { %v6134_v19 = vmul.f32 0.03125, %v6128_v37  ;;  %v8452_v51 = vpop.f32.mrb[69].mxu0 }
0x1bef   :  { %v6131_v32 = vpop.f32.mrb[70].mxu0 }
0x1bf0   :  { %v6138_v33 = vrot.slane %v6134_v19, %v9139_v16  ;;  %v8453_v63 = vpop.f32.mrb[71].mxu0 }
0x1bf2   :  { %v6139_v34 = vsub.f32 %v6084_v8, %v6138_v33  ;;  %v6140_v14 = vsub.f32 %v6085_v9, %v6138_v33  ;;  %v6141_v17 = vsub.f32 %v6086_v43, %v6138_v33  ;;  %v6142_v54 = vsub.f32 %v6087_v24, %v6138_v33 }
0x1bf4   :  { %v6143_v39 = vmul.f32 %v6139_v34, %v6139_v34  ;;  %v6144_v18 = vmul.f32 %v6140_v14, %v6140_v14  ;;  %v6145_v49 = vmul.f32 %v6141_v17, %v6141_v17  ;;  %v6146_v31 = vmul.f32 %v6142_v54, %v6142_v54 }
0x1bf6   :  { %v6147_v38 = vpack.c.bf16 %v6144_v18, %v6143_v39  ;;  %v6148_v27 = vpack.c.bf16 %v6146_v31, %v6145_v49 }
0x1bf8   :  { %8455 = vmatpush3.bf16.msra.mxu0 %v6147_v38 }
0x1bf9   :  { %8456 = vmatprep.subr.bf16.mxu0 %v8994_v0 }
0x1bfc   :  { %8457 = vmatpush3.bf16.msra.mxu0 %v6148_v27 }
0x1bfd   :  { %8462 = vmatprep.subr.bf16.mxu0 %v8869_v55 }
0x1bff   :  { %8459 = vmatmul.mubr.msk.bf16.vlgmr.msra.gmra.mrb[72].mxu0 %vm83_vm1, %v8996_v13 }
0x1c00   :  { %8463 = vmatpush3.bf16.msra.mxu0 %v8869_v55 }
0x1c01   :  { %8464 = vmatprep.subr.bf16.mxu0 %v8870_v23 }
0x1c04   :  { %8465 = vmatpush3.bf16.msra.mxu0 %v8870_v23  ;;  %v8877_v23 = vld [vmem:[%s10350_s11] sm:$0xff]  }
0x1c05   :  { %8466 = vmatprep.subr.bf16.mxu0 %v8871_v1 }
0x1c08   :  { %8467 = vmatpush3.bf16.msra.mxu0 %v8871_v1  ;;  %v8878_v1 = vld [vmem:[%s10350_s11 + $0x8] sm:$0xff]  }
0x1c09   :  { %8468 = vmatprep.subr.bf16.mxu0 %v8872_v62 }
0x1c0c   :  { %8469 = vmatpush3.bf16.msra.mxu0 %v8872_v62  ;;  %v8879_v62 = vld [vmem:[%s10350_s11 + $0x10] sm:$0xff]  }
0x1c0d   :  { %8470 = vmatprep.subr.bf16.mxu0 %v8873_v57 }
0x1c10   :  { %8471 = vmatpush3.bf16.msra.mxu0 %v8873_v57  ;;  %v8881_v57 = vld [vmem:[%s10350_s11 + $0x20] sm:$0xff]  }
0x1c11   :  { %8472 = vmatprep.subr.bf16.mxu0 %v8874_v36 }
0x1c14   :  { %8473 = vmatpush3.bf16.msra.mxu0 %v8874_v36  ;;  %v8882_v36 = vld [vmem:[%s10350_s11 + $0x28] sm:$0xff]  }
0x1c15   :  { %8474 = vmatprep.subr.bf16.mxu0 %v8875_v28 }
0x1c18   :  { %8475 = vmatpush3.bf16.msra.mxu0 %v8875_v28  ;;  %v8883_v28 = vld [vmem:[%s10350_s11 + $0x30] sm:$0xff]  }
0x1c19   :  { %8476 = vmatprep.subr.bf16.mxu0 %v8876_v29 }
0x1c1c   :  { %8477 = vmatpush3.bf16.msra.mxu0 %v8876_v29  ;;  %v8884_v29 = vld [vmem:[%s10350_s11 + $0x38] sm:$0xff]  }
0x1c1d   :  { %8482 = vmatprep.subr.bf16.mxu0 %v8994_v0 }
0x1cd2   :  { %v6183_v44 = vpop.f32.mrb[72].mxu0 }
0x1cd3   :  { %v6189_v46 = vmul.f32 0.03125, %v6183_v44  ;;  %v8460_v3 = vpop.f32.mrb[73].mxu0  ;;  %v8885_v44 = vld [vmem:[%s10352_s13] sm:$0xff]  }
0x1cd4   :  { %v6186_v40 = vpop.f32.mrb[74].mxu0  ;;  %8519 = vmatpush3.bf16.msra.mxu1 %v8885_v44  ;;  %v8887_v3 = vld [vmem:[%s10352_s13 + $0x10] sm:$0xff]  }
0x1cd5   :  { %v6190_v30 = vmax.f32 %v6189_v46, 0.0  ;;  %v8461_v41 = vpop.f32.mrb[75].mxu0  ;;  %v8886_v46 = vld [vmem:[%s10352_s13 + $0x8] sm:$0xff]   ;;  %8520 = vmatprep.subr.bf16.mxu1 %v8994_v0  ;;  %v8888_v40 = vld [vmem:[%s10352_s13 + $0x18] sm:$0xff]  }
0x1cd6   :  { %v8890_v41 = vld [vmem:[%s10352_s13 + $0x28] sm:$0xff]  }
0x1cd7   :  { %v6191_v61 = vadd.f32 1e-05, %v6190_v30  ;;  %v8889_v30 = vld [vmem:[%s10352_s13 + $0x20] sm:$0xff]  }
0x1cd8   :  { %8521 = vmatpush3.bf16.msra.mxu1 %v8886_v46 }
0x1cd9   :  { %8921 = vrsqrt.f32 %v6191_v61  ;;  %8522 = vmatprep.subr.bf16.mxu1 %v8994_v0 }
0x1cdc   :  { %8523 = vmatpush3.bf16.msra.mxu1 %v8887_v3 }
0x1cdd   :  { %8524 = vmatprep.subr.bf16.mxu1 %v8994_v0 }
0x1ce0   :  { %8525 = vmatpush3.bf16.msra.mxu1 %v8888_v40 }
0x1ce1   :  { %8526 = vmatprep.subr.bf16.mxu1 %v8994_v0 }
0x1ce3   :  { %v8922_v2 = vpop.eup %8921 }
0x1ce4   :  { %v6193_v26 = vmul.f32 %v8922_v2, %v7194_v42  ;;  %8527 = vmatpush3.bf16.msra.mxu1 %v8889_v30 }
0x1ce5   :  { %8528 = vmatprep.subr.bf16.mxu1 %v8994_v0 }
0x1ce6   :  { %v6198_v47 = vrot.slane %v6193_v26, %v9139_v16 }
0x1ce8   :  { %v6200_v53 = vmul.f32 %v6198_v47, %v6139_v34  ;;  %v6201_v4 = vmul.f32 %v6198_v47, %v6140_v14  ;;  %v6202_v5 = vmul.f32 %v6198_v47, %v6141_v17  ;;  %v6203_v6 = vmul.f32 %v6198_v47, %v6142_v54  ;;  %8529 = vmatpush3.bf16.msra.mxu1 %v8890_v41 }
0x1ce9   :  { %8530 = vmatprep.subr.bf16.mxu1 %v8994_v0  ;;  %v8998_v41 = vmov 1966171168  }
0x1cea   :  { %v6210_v7 = vadd.f32 %v7198_v35, %v6200_v53  ;;  %v6211_v10 = vadd.f32 %v7198_v35, %v6201_v4  ;;  %v6212_v11 = vadd.f32 %v7198_v35, %v6202_v5  ;;  %v6213_v12 = vadd.f32 %v7198_v35, %v6203_v6  ;;  %v6360_v4 = vld [vmem:[%s10348_s9] sm:$0x1] }
0x1cec   :  { %v6214_v52 = vpack.c.bf16 %v6211_v10, %v6210_v7  ;;  %v6215_v48 = vpack.c.bf16 %v6213_v12, %v6212_v11  ;;  %v7210_v10 = vld [vmem:[%s10349_s10] ss:$0 sm:$0xff] }
0x1cee   :  { %8478 = vmatprep.mubr.bf16.mxu0 %v6214_v52 }
0x1cef   :  { %8479 = vmatmul.mubr.bf16.vlgmr.msra.gmra.mrb[8].mxu0 %v6215_v48 }
0x1cf0   :  { %8486 = vmatprep.mubr.msk.bf16.mxu0 %vm8995_vm0, %v8994_v0 }
0x1dc2   :  { %v8480_v21 = vpop.f32.mrb[8].mxu0 }
0x1dc3   :  { %v6314_v22 = vpop.f32.mrb[9].mxu0  ;;  %v6354_v8 = vadd.f32 %v8480_v21, %v7207_v20 }
0x1dc4   :  { %v6352_v50 = vadd.f32 %v7207_v20, %v6314_v22  ;;  %v8481_v58 = vpop.f32.mrb[10].mxu0 }
0x1dc5   :  { %v6317_v59 = vpop.f32.mrb[11].mxu0  ;;  %v6355_v60 = vadd.f32 %v8481_v58, %v7207_v20  ;;  %v6358_v25 = vmax.f32 %v6354_v8, 0.0 }
0x1dc6   :  { %v6353_v45 = vadd.f32 %v7207_v20, %v6317_v59  ;;  %v6356_v9 = vmax.f32 %v6352_v50, 0.0 }
0x1dc7   :  { %v6359_v56 = vmax.f32 %v6355_v60, 0.0 }
0x1dc8   :  { %v6357_v24 = vmax.f32 %v6353_v45, 0.0 }
0x1dc9   :  { %v6363_v37 = vpack.c.bf16 %v6359_v56, %v6358_v25 }
0x1dca   :  { %v6362_v43 = vpack.c.bf16 %v6357_v24, %v6356_v9 }
0x1dcc   :  { %8483 = vmatpush3.bf16.msra.mxu0 %v6362_v43 }
0x1dcd   :  { %8484 = vmatprep.subr.bf16.mxu0 %v8994_v0 }
0x1dd0   :  { %8485 = vmatpush3.bf16.msra.mxu0 %v6363_v37 }
0x1dd1   :  { %8490 = vmatprep.subr.bf16.mxu0 %v8994_v0 }
0x1dd3   :  { %8487 = vmatmul.mubr.msk.bf16.vlgmr.msra.gmra.mrb[76].mxu0 %vm83_vm1, %v8996_v13 }
0x1dd4   :  { %8494 = vmatprep.mubr.msk.bf16.mxu0 %vm8995_vm0, %v8994_v0 }
0x1ea6   :  { %v6398_v19 = vpop.f32.mrb[76].mxu0 }
0x1ea7   :  { %v6404_v51 = vmul.f32 0.03125, %v6398_v19  ;;  %v8488_v32 = vpop.f32.mrb[77].mxu0 }
0x1ea8   :  { %v6401_v33 = vpop.f32.mrb[78].mxu0 }
0x1ea9   :  { %v6408_v63 = vrot.slane %v6404_v51, %v9139_v16  ;;  %v8489_v34 = vpop.f32.mrb[79].mxu0 }
0x1eab   :  { %v10207_v14 = vsub.f32 %v6356_v9, %v6408_v63  ;;  %v10209_v17 = vsub.f32 %v6357_v24, %v6408_v63  ;;  %v10211_v54 = vsub.f32 %v6358_v25, %v6408_v63  ;;  %v10213_v39 = vsub.f32 %v6359_v56, %v6408_v63 }
0x1ead   :  { %v6413_v18 = vmul.f32 %v10207_v14, %v10207_v14  ;;  %v6414_v38 = vmul.f32 %v10209_v17, %v10209_v17  ;;  %v6415_v31 = vmul.f32 %v10211_v54, %v10211_v54  ;;  %v6416_v55 = vmul.f32 %v10213_v39, %v10213_v39 }
0x1eaf   :  { %v6417_v49 = vpack.c.bf16 %v6414_v38, %v6413_v18  ;;  %v6418_v27 = vpack.c.bf16 %v6416_v55, %v6415_v31  ;;  %v8891_v38 = vld [vmem:[%s10352_s13 + $0x30] sm:$0xff]   ;;  %v7211_v31 = vld [vmem:[%s10351_s12] ss:$0 sm:$0xff]  ;;  %s8999_s12 = smov [#allocation7]  }
0x1eb0   :  { %8531 = vmatpush3.bf16.msra.mxu1 %v8891_v38 }
0x1eb1   :  { %8491 = vmatpush3.bf16.msra.mxu0 %v6417_v49  ;;  %v8892_v49 = vld [vmem:[%s10352_s13 + $0x38] sm:$0xff]   ;;  %8532 = vmatprep.subr.bf16.mxu1 %v8994_v0  ;;  %s6787_s13 = sshll.u32 %s8999_s12, 4  ;;  %s6788_s13 = int_to_ptr.vmem [resolvable:$true] %s6787_s13 }
0x1eb2   :  { %8492 = vmatprep.subr.bf16.mxu0 %v8994_v0  ;;  %p8970_p9 = scmp.lt.s32.totalorder %s6788_s13, %s6788_s13 }
0x1eb4   :  { %8533 = vmatpush3.bf16.msra.mxu1 %v8892_v49 }
0x1eb5   :  { %8493 = vmatpush3.bf16.msra.mxu0 %v6418_v27 }
0x1eb6   :  { %8498 = vmatprep.subr.bf16.mxu0 %v8994_v0 }
0x1eb8   :  { %8495 = vmatmul.mubr.msk.bf16.vlgmr.msra.gmra.mrb[80].mxu0 %vm83_vm1, %v8996_v13  ;;  %v8880_v13 = vld [vmem:[%s10350_s11 + $0x18] sm:$0xff]  }
0x1eb9   :  { %8514 = vmatprep.mubr.msk.bf16.mxu0 %vm8995_vm0, %v8994_v0  ;;  %8499 = vmatpush3.bf16.msra.mxu0 %v8877_v23 }
0x1eba   :  { %8500 = vmatprep.subr.bf16.mxu0 %v8994_v0 }
0x1ebd   :  { %8501 = vmatpush3.bf16.msra.mxu0 %v8878_v1 }
0x1ebe   :  { %8502 = vmatprep.subr.bf16.mxu0 %v8994_v0 }
0x1ec1   :  { %8503 = vmatpush3.bf16.msra.mxu0 %v8879_v62 }
0x1ec2   :  { %8504 = vmatprep.subr.bf16.mxu0 %v8994_v0 }
0x1ec5   :  { %8505 = vmatpush3.bf16.msra.mxu0 %v8880_v13 }
0x1ec6   :  { %8506 = vmatprep.subr.bf16.mxu0 %v8994_v0 }
0x1ec9   :  { %8507 = vmatpush3.bf16.msra.mxu0 %v8881_v57 }
0x1eca   :  { %8508 = vmatprep.subr.bf16.mxu0 %v8994_v0 }
0x1ecd   :  { %8509 = vmatpush3.bf16.msra.mxu0 %v8882_v36  ;;  %v7220_v36 = vld [vmem:[%s10353_s14] ss:$0 sm:$0xff]  ;;  %s8965_s14 = scalar_lea.vmem %s6788_s13, 512 }
0x1ece   :  { %8510 = vmatprep.subr.bf16.mxu0 %v8994_v0  ;;  %p8966_p8 = scmp.ne.s32.totalorder %s6788_s13, %s8965_s14  ;;  %p8971_p10 = scmp.lt.s32.totalorder %s8965_s14, %s8965_s14 }
0x1ed0   :  { %p8972_p11 = por %p8971_p10, %p8970_p9 }
0x1ed1   :  { %8511 = vmatpush3.bf16.msra.mxu0 %v8883_v28 }
0x1ed2   :  { %8512 = vmatprep.subr.bf16.mxu0 %v8994_v0  ;;  %p8973_p12 = pnand %p8972_p11, %p8966_p8 }
0x1ed5   :  { %8513 = vmatpush3.bf16.msra.mxu0 %v8884_v29 }
0x1f8b   :  { %v6453_v61 = vpop.f32.mrb[80].mxu0 }
0x1f8c   :  { %v6459_v42 = vmul.f32 0.03125, %v6453_v61  ;;  %v8496_v2 = vpop.f32.mrb[81].mxu0  ;;  %v6743_v61 = vunpack.c.l.s4 %v8998_v41 }
0x1f8d   :  { %v6456_v26 = vpop.f32.mrb[82].mxu0 }
0x1f8e   :  { %v6460_v47 = vmax.f32 %v6459_v42, 0.0  ;;  %v8497_v35 = vpop.f32.mrb[83].mxu0  ;;  %v6744_v42 = vunpack.c.0.s8 %v6743_v61 }
0x1f90   :  { %v6461_v53 = vadd.f32 1e-05, %v6460_v47  ;;  %v6747_v2 = vsub.s32 %v6744_v42, %v9136_v15 }
0x1f92   :  { %8923 = vrsqrt.f32 %v6461_v53 }
0x1f9c   :  { %v8924_v5 = vpop.eup %8923 }
0x1f9d   :  { %v6463_v6 = vmul.f32 %v8924_v5, %v6360_v4 }
0x1f9f   :  { %v6468_v7 = vrot.slane %v6463_v6, %v9139_v16 }
0x1fa1   :  { %v6470_v11 = vmul.f32 %v6468_v7, %v10207_v14  ;;  %v6471_v12 = vmul.f32 %v6468_v7, %v10209_v17  ;;  %v6472_v52 = vmul.f32 %v6468_v7, %v10211_v54  ;;  %v6473_v48 = vmul.f32 %v6468_v7, %v10213_v39 }
0x1fa3   :  { %v10295_v20 = vadd.f32 %v7210_v10, %v6470_v11  ;;  %v10297_v21 = vadd.f32 %v7210_v10, %v6471_v12  ;;  %v10299_v22 = vadd.f32 %v7210_v10, %v6472_v52  ;;  %v10301_v50 = vadd.f32 %v7210_v10, %v6473_v48 }
0x1fa5   :  { %v6484_v58 = vadd.f32 %v10297_v21, %v10295_v20  ;;  %v6491_v59 = vadd.f32 %v10301_v50, %v10299_v22 }
0x1fa7   :  { %v6485_v60 = vrot.slane %v6484_v58, 4  ;;  %v6492_v45 = vrot.slane %v6491_v59, 4 }
0x1fa9   :  { %v6486_v8 = vadd.f32 %v6485_v60, %v6484_v58  ;;  %v6493_v9 = vadd.f32 %v6492_v45, %v6491_v59 }
0x1fab   :  { %v6487_v24 = vrot.slane %v6486_v8, 2  ;;  %v6494_v56 = vrot.slane %v6493_v9, 2 }
0x1fad   :  { %v6488_v43 = vadd.f32 %v6487_v24, %v6486_v8  ;;  %v6495_v25 = vadd.f32 %v6494_v56, %v6493_v9 }
0x1faf   :  { %v6489_v37 = vrot.slane %v6488_v43, 1  ;;  %v6496_v19 = vrot.slane %v6495_v25, 1 }
0x1fb1   :  { %v6490_v51 = vadd.f32 %v6489_v37, %v6488_v43  ;;  %v6497_v32 = vadd.f32 %v6496_v19, %v6495_v25 }
0x1fb3   :  { %v6499_v33 = vmul.f32 0.0625, %v6490_v51  ;;  %v6500_v63 = vmul.f32 0.0625, %v6497_v32 }
0x1fb5   :  { %v6501_v34 = vpack.c.bf16 %v6499_v33, %v6499_v33  ;;  %v6502_v14 = vpack.c.bf16 %v6500_v63, %v6500_v63 }
0x1fb7   :  { %v6528_v17 = vunpack.c.l.b16 %v6501_v34  ;;  %v6529_v54 = vunpack.c.l.b16 %v6502_v14 }
0x1fb9   :  { %v6531_v39 = vsel %vm6530_vm11, %v6529_v54, %v6528_v17 }
0x1fba   :  { %v6532_v18 = vpack.c.b16 %v6531_v39, %v6531_v39 }
0x1fbc   :  { %8515 = vmatmul.mubr.bf16.vlgmr.msra.gmra.mrb[84].mxu0 %v6532_v18 }
0x208f   :  { %v6616_v55 = vpop.f32.mrb[84].mxu0 }
0x2090   :  { %v6617_v27 = vadd.f32 %v7211_v31, %v6616_v55  ;;  %v8516_v23 = vpop.f32.mrb[85].mxu0 }
0x2091   :  { %v6619_v1 = vpop.f32.mrb[86].mxu0 }
0x2092   :  { %v6622_v62 = vmax.f32 %v6617_v27, 0.0  ;;  %v8517_v13 = vpop.f32.mrb[87].mxu0 }
0x2094   :  { %v6623_v57 = vpack.c.bf16 %v6622_v62, %v6622_v62 }
0x2096   :  { %8535 = vmatmul.mubr.bf16.vlgmr.msra.gmra.mrb[76].mxu1 %v6623_v57 }
0x2169   :  { %v6729_v28 = vpop.f32.mrb[76].mxu1 }
0x216a   :  { %v6730_v29 = vadd.f32 %v7220_v36, %v6729_v28  ;;  %v8536_v0 = vpop.f32.mrb[77].mxu1 }
0x216b   :  { %v6732_v44 = vpop.f32.mrb[78].mxu1 }
0x216c   :  { %v7229_v46 = vmul.f32 -1.442695, %v6730_v29  ;;  %v8537_v3 = vpop.f32.mrb[79].mxu1 }
0x216e   :  { %8925 = vpow2.f32 %v7229_v46 }
0x2178   :  { %v8926_v40 = vpop.eup %8925 }
0x2179   :  { %v6738_v30 = vadd.f32 1.0, %v8926_v40 }
0x217b   :  { %8927 = vrcp.f32 %v6738_v30 }
0x2185   :  { %v8928_v26 = vpop.eup %8927 }
0x2186   :  { %v6748_v47 = vrot.slane %v8928_v26, %v6747_v2 }
0x2188   :  { %v6749_v35 = vcombine.high %v6748_v47, %v6748_v47  ;;  %v6756_v53 = vrot.slane %v6748_v47, %v6747_v2 }
0x218a   :  { %v6763_v4 = vrot.slane %v6749_v35, %v6747_v2  ;;  %v6767_v5 = vrot.slane %v6756_v53, %v9139_v16 }
0x218c   :  { %v6771_v6 = vrot.slane %v6763_v4, %v9139_v16  ;;  %v6774_v7 = vmul.f32 %v6767_v5, %v10295_v20  ;;  %v6775_v10 = vmul.f32 %v6767_v5, %v10297_v21 }
0x218e   :  { %v6776_v11 = vmul.f32 %v6771_v6, %v10299_v22  ;;  %v6777_v12 = vmul.f32 %v6771_v6, %v10301_v50  ;;  %6778 = vst [vmem:[#allocation7] sm:$0xff] %v6774_v7  ;;  %6779 = vst [vmem:[#allocation7 + $0x8] sm:$0xff] %v6775_v10 }
0x2190   :  { %6780 = vst [vmem:[#allocation7 + $0x10] sm:$0xff] %v6776_v11  ;;  %6781 = vst [vmem:[#allocation7 + $0x18] sm:$0xff] %v6777_v12 }
0x2191   :  { %8976 = shalt.err (!%p8973_p12)
}
0x2192   :  { %s8977_s29 = scalar_lea.hbm %s10354_s15, 512 }
0x2193   :  { %p8978_p13 = scmp.ne.s32.totalorder %s10354_s15, %s8977_s29  ;;  %p8981_p0 = scmp.lt.u32.totalorder %s8977_s29, %s10354_s15 }
0x2195   :  { %p8983_p1 = pnand %p8981_p0, %p8978_p13 }
0x2197   :  { %8986 = shalt.err (!%p8983_p1)
}
0x2198   :  { %s9000_s7 = smov 128   ;;  %s9001_s2 = smov 8  }
0x2199   :  { %6793 = dma.vmem_to_hbm [thread:$0]  %s6788_s13, 512, %s10354_s15, [#allocation6], %s9000_s7, %s9000_s7, %s9001_s2  }
0x219a   :  { %8989 = dma.done.wait [#allocation6], 512  }
0x219b   :  { %8990 = vsyncadd [#allocation6], 4294966784 }
0x219c   :  { %6797 = vsyncpa [#allocation5], 1 }
0x219d   :  { %6798 = vsyncpa [#allocation6], 1 }

</bundles_post_ra>
